<compile_context>
chip_gen: v7x
topology: tpu7x:2x2x1
jax: 0.10.0
libtpu: 0.0.40
codegen_flags: <defaults>
</compile_context>

<pallas_src>
import functools

import jax
import jax.numpy as jnp
from jax.experimental import pallas as pl
from jax.experimental.pallas import tpu as pltpu


# --------------------------------------------------------------------------- #
# Fused kernel: conv3x3 + bias + bilinear x2 + ReLU + channel-concat(skip)     #
# --------------------------------------------------------------------------- #
def _upsample_block_kernel(x_ref, w_ref, b_ref, skip_ref, o_ref, *,
                           tile_h, H, W, cin, cout):
    """One (batch, H-tile) grid step.

    x_ref    : (1, H+2, W+2, cin)            bf16 zero-padded NHWC image (resident)
    w_ref    : (9, cin, cout)                bf16 3x3 taps as 9 (cin, cout) slabs
    b_ref    : (1, cout)                     f32 bias
    skip_ref : (1, 2*tile_h, 2*W, cskip)     f32 skip tile (already 2x resolution)
    o_ref    : (1, 2*tile_h, 2*W, cout+cskip) f32 concatenated output tile
    """
    t = pl.program_id(1)
    r0 = t * tile_h                      # first conv-output row of this tile

    def conv_rows(row_start, nrows):
        # conv output rows [row_start, row_start + nrows): in-kernel im2col as
        # 9 accumulated MXU matmuls (bf16 in, f32 accumulate).
        acc = jnp.zeros((nrows * W, cout), jnp.float32)
        for k in range(9):
            di, dj = k // 3, k % 3
            xs = x_ref[0, pl.ds(row_start + di, nrows), dj:dj + W, :]
            xs = xs.reshape(nrows * W, cin)
            acc = acc + jnp.dot(xs, w_ref[k],
                                preferred_element_type=jnp.float32)
        acc = acc + b_ref[...]
        return acc.reshape(nrows, W, cout)

    # Main rows plus one recomputed, clamped halo row above/below: the
    # align_corners=False bilinear rows 2r / 2r+1 need conv rows r-1, r, r+1.
    main = conv_rows(r0, tile_h)                                   # (TH,   W, C)
    above = conv_rows(jnp.maximum(r0 - 1, 0), 1)                   # (1,    W, C)
    below = conv_rows(jnp.minimum(r0 + tile_h, H - 1), 1)          # (1,    W, C)
    ext = jnp.concatenate([above, main, below], axis=0)            # (TH+2, W, C)

    # ---- bilinear x2 along W: out[2j] = .25 c[j-1] + .75 c[j] (edge clamped),
    #                           out[2j+1] = .75 c[j] + .25 c[j+1] -------------
    left = jnp.concatenate([ext[:, :1, :], ext[:, :-1, :]], axis=1)
    right = jnp.concatenate([ext[:, 1:, :], ext[:, -1:, :]], axis=1)
    w_even = 0.25 * left + 0.75 * ext
    w_odd = 0.75 * ext + 0.25 * right
    ext = jnp.stack([w_even, w_odd], axis=2)                       # (TH+2, W, 2, C)
    ext = ext.reshape(tile_h + 2, 2 * W, cout)                     # (TH+2, 2W, C)

    # ---- bilinear x2 along H using the halo rows ----------------------------
    top = ext[:tile_h]
    mid = ext[1:tile_h + 1]
    bot = ext[2:tile_h + 2]
    h_even = 0.25 * top + 0.75 * mid
    h_odd = 0.75 * mid + 0.25 * bot
    up = jnp.stack([h_even, h_odd], axis=1)                        # (TH, 2, 2W, C)
    up = up.reshape(2 * tile_h, 2 * W, cout)

    up = jnp.maximum(up, 0.0)                                      # fused ReLU

    # Fused channel concat: upsampled conv result + skip into one output slab.
    # TODO(synk): for very small Cout/Cskip the channel-minor stores are lane-
    # sparse; a lane-dense (W*C flattened) output presentation would help.
    o_ref[0, :, :, :cout] = up
    o_ref[0, :, :, cout:] = skip_ref[0]


# --------------------------------------------------------------------------- #
# Wrapper                                                                      #
# --------------------------------------------------------------------------- #
def unet_upsample_block(x_nchw, skip_nchw, params, *, tile_h=8):
    """Pallas forward of UNetUpsampleBlock(upsampler='bilinear')."""
    n, cin, H, W = x_nchw.shape
    ns, cskip, H2, W2 = skip_nchw.shape
    assert (ns, H2, W2) == (n, 2 * H, 2 * W), (skip_nchw.shape, x_nchw.shape)
    cout = params["w"].shape[-1]
    tile_h = min(tile_h, H)
    assert H % tile_h == 0

    # NCHW -> NHWC, zero-pad for the 3x3/pad=1 conv, bf16 MXU inputs.
    # TODO(synk): the NCHW<->NHWC boundary transposes and the pad stay as XLA glue.
    x = jnp.transpose(x_nchw, (0, 2, 3, 1)).astype(jnp.float32)
    x = jnp.pad(x, ((0, 0), (1, 1), (1, 1), (0, 0))).astype(jnp.bfloat16)
    skip = jnp.transpose(skip_nchw, (0, 2, 3, 1)).astype(jnp.float32)
    w9 = params["w"].astype(jnp.bfloat16)                 # (9, cin, cout)
    b = params["b"].astype(jnp.float32)                   # (1, cout)

    kern = functools.partial(_upsample_block_kernel, tile_h=tile_h,
                             H=H, W=W, cin=cin, cout=cout)
    grid = (n, H // tile_h)

    out = pl.pallas_call(
        kern,
        out_shape=jax.ShapeDtypeStruct((n, 2 * H, 2 * W, cout + cskip),
                                       jnp.float32),
        grid_spec=pltpu.PrefetchScalarGridSpec(
            num_scalar_prefetch=0,
            grid=grid,
            in_specs=[
                # Padded image: tile-invariant map -> DMA'd once per batch elem,
                # stays resident in VMEM across all H tiles of that element.
                pl.BlockSpec((1, H + 2, W + 2, cin),
                             lambda nn, t: (nn, 0, 0, 0)),
                pl.BlockSpec((9, cin, cout), lambda nn, t: (0, 0, 0)),
                pl.BlockSpec((1, cout), lambda nn, t: (0, 0)),
                pl.BlockSpec((1, 2 * tile_h, 2 * W, cskip),
                             lambda nn, t: (nn, t, 0, 0)),
            ],
            out_specs=pl.BlockSpec((1, 2 * tile_h, 2 * W, cout + cskip),
                                   lambda nn, t: (nn, t, 0, 0)),
        ),
        compiler_params=pltpu.CompilerParams(
            dimension_semantics=("parallel", "parallel"),
            vmem_limit_bytes=32 * 1024 * 1024),
    )(x, w9, b, skip)

    return jnp.transpose(out, (0, 3, 1, 2))               # NHWC -> NCHW


# --------------------------------------------------------------------------- #
# Pure-JAX reference (same bf16 MXU inputs) for the correctness check          #
# --------------------------------------------------------------------------- #
def _ref_upsample2x(a, axis):
    # nn.Upsample(scale_factor=2, mode='bilinear', align_corners=False) along axis
    ln = a.shape[axis]
    idx = jnp.arange(ln)
    am = jnp.take(a, jnp.maximum(idx - 1, 0), axis=axis)
    ap = jnp.take(a, jnp.minimum(idx + 1, ln - 1), axis=axis)
    even = 0.25 * am + 0.75 * a
    odd = 0.75 * a + 0.25 * ap
    st = jnp.stack([even, odd], axis=axis + 1)
    shape = list(a.shape)
    shape[axis] = 2 * ln
    return st.reshape(shape)


def reference_forward(x_nchw, skip_nchw, params):
    cin = x_nchw.shape[1]
    cout = params["w"].shape[-1]
    xb = x_nchw.astype(jnp.bfloat16).astype(jnp.float32)
    wb = params["w"].astype(jnp.bfloat16).astype(jnp.float32)
    w_hwio = wb.reshape(3, 3, cin, cout)
    y = jax.lax.conv_general_dilated(
        xb, w_hwio, window_strides=(1, 1), padding=((1, 1), (1, 1)),
        dimension_numbers=("NCHW", "HWIO", "NCHW"),
        precision=jax.lax.Precision.HIGHEST)
    y = y + params["b"].reshape(1, cout, 1, 1)
    y = _ref_upsample2x(_ref_upsample2x(y, 2), 3)
    y = jnp.maximum(y, 0.0)
    return jnp.concatenate([y, skip_nchw.astype(jnp.float32)], axis=1)


# --------------------------------------------------------------------------- #
if __name__ == "__main__":
    key = jax.random.PRNGKey(0)
    kx, ky, kw, kb = jax.random.split(key, 4)

    N, CIN, COUT, H, W = 2, 4, 4, 16, 16
    x = jax.random.normal(kx, (N, CIN, H, W), jnp.float32)          # NCHW
    skip = jax.random.normal(ky, (N, COUT, 2 * H, 2 * W), jnp.float32)

    fan_in = 9 * CIN
    params = {
        # HWIO (3,3,Cin,Cout) stored as 9 (Cin,Cout) slabs: tap k = 3*di + dj
        "w": (jax.random.normal(kw, (3, 3, CIN, COUT), jnp.float32)
              * (2.0 / fan_in) ** 0.5).reshape(9, CIN, COUT),
        "b": jax.random.normal(kb, (1, COUT), jnp.float32) * 0.1,
    }

    fwd = jax.jit(unet_upsample_block)
    out = jax.block_until_ready(fwd(x, skip, params))

    assert out.shape == (N, COUT + COUT, 2 * H, 2 * W), out.shape
    assert bool(jnp.all(jnp.isfinite(out)))

    ref = reference_forward(x, skip, params)
    err = float(jnp.max(jnp.abs(out - ref)))
    assert err < 1e-3, f"max abs err vs reference: {err}"
    print("KERNEL_OK")
</pallas_src>

<mosaic_0001>
module attributes {stable_mosaic.version = 11 : i64} {
  func.func @_upsample_block_kernel(%arg0: i32, %arg1: i32, %arg2: memref<1x18x18x4xbf16, #tpu.memory_space<vmem>>, %arg3: memref<9x4x4xbf16, #tpu.memory_space<vmem>>, %arg4: memref<1x4xf32, #tpu.memory_space<vmem>>, %arg5: memref<1x16x32x4xf32, #tpu.memory_space<vmem>>, %arg6: memref<1x16x32x8xf32, #tpu.memory_space<vmem>>) attributes {dimension_semantics = [#tpu.dimension_semantics<parallel>, #tpu.dimension_semantics<parallel>], iteration_bounds = array<i64: 2, 2>, scalar_prefetch = 0 : i64, scratch_operands = 0 : i64, tpu.core_type = #tpu.core_type<tc>, window_params = [{transform_indices = @transform_0, window_bounds = array<i64: 1, 18, 18, 4>}, {pipeline_mode = #tpu.pipeline_mode<synchronous>, transform_indices = @transform_1, window_bounds = array<i64: 9, 4, 4>}, {pipeline_mode = #tpu.pipeline_mode<synchronous>, transform_indices = @transform_2, window_bounds = array<i64: 1, 4>}, {transform_indices = @transform_3, window_bounds = array<i64: 1, 16, 32, 4>}, {transform_indices = @transform_4, window_bounds = array<i64: 1, 16, 32, 8>}]} {
    %c8_i32 = arith.constant 8 : i32
    %0 = arith.muli %arg1, %c8_i32 : i32
    %cst = arith.constant 0.000000e+00 : f32
    %1 = vector.broadcast %cst : f32 to vector<128x4xf32>
    %c0_i32 = arith.constant 0 : i32
    %2 = arith.addi %0, %c0_i32 : i32
    %c0 = arith.constant 0 : index
    %3 = arith.index_cast %2 : i32 to index
    %c0_0 = arith.constant 0 : index
    %c0_1 = arith.constant 0 : index
    %4 = vector.load %arg2[%c0, %3, %c0_0, %c0_1] : memref<1x18x18x4xbf16, #tpu.memory_space<vmem>>, vector<1x8x16x4xbf16>
    %5 = vector.shape_cast %4 : vector<1x8x16x4xbf16> to vector<8x16x4xbf16>
    %6 = vector.shape_cast %5 : vector<8x16x4xbf16> to vector<128x4xbf16>
    %c0_2 = arith.constant 0 : index
    %c0_3 = arith.constant 0 : index
    %c0_4 = arith.constant 0 : index
    %7 = vector.load %arg3[%c0_2, %c0_3, %c0_4] : memref<9x4x4xbf16, #tpu.memory_space<vmem>>, vector<1x4x4xbf16>
    %8 = vector.shape_cast %7 : vector<1x4x4xbf16> to vector<4x4xbf16>
    %cst_5 = arith.constant dense<0.000000e+00> : vector<128x4xf32>
    %9 = tpu.matmul %6, %8, %cst_5 {dimension_numbers = #tpu.dot_dimension_numbers<[1], [0], [0], [1], [0, 0, 1, 1], [], []>} : vector<128x4xbf16>, vector<4x4xbf16>, vector<128x4xf32> -> vector<128x4xf32>
    %10 = arith.addf %1, %9 : vector<128x4xf32>
    %c0_i32_6 = arith.constant 0 : i32
    %11 = arith.addi %0, %c0_i32_6 : i32
    %c0_7 = arith.constant 0 : index
    %12 = arith.index_cast %11 : i32 to index
    %c1 = arith.constant 1 : index
    %c0_8 = arith.constant 0 : index
    %13 = vector.load %arg2[%c0_7, %12, %c1, %c0_8] : memref<1x18x18x4xbf16, #tpu.memory_space<vmem>>, vector<1x8x16x4xbf16>
    %14 = vector.shape_cast %13 : vector<1x8x16x4xbf16> to vector<8x16x4xbf16>
    %15 = vector.shape_cast %14 : vector<8x16x4xbf16> to vector<128x4xbf16>
    %c1_9 = arith.constant 1 : index
    %c0_10 = arith.constant 0 : index
    %c0_11 = arith.constant 0 : index
    %16 = vector.load %arg3[%c1_9, %c0_10, %c0_11] : memref<9x4x4xbf16, #tpu.memory_space<vmem>>, vector<1x4x4xbf16>
    %17 = vector.shape_cast %16 : vector<1x4x4xbf16> to vector<4x4xbf16>
    %cst_12 = arith.constant dense<0.000000e+00> : vector<128x4xf32>
    %18 = tpu.matmul %15, %17, %cst_12 {dimension_numbers = #tpu.dot_dimension_numbers<[1], [0], [0], [1], [0, 0, 1, 1], [], []>} : vector<128x4xbf16>, vector<4x4xbf16>, vector<128x4xf32> -> vector<128x4xf32>
    %19 = arith.addf %10, %18 : vector<128x4xf32>
    %c0_i32_13 = arith.constant 0 : i32
    %20 = arith.addi %0, %c0_i32_13 : i32
    %c0_14 = arith.constant 0 : index
    %21 = arith.index_cast %20 : i32 to index
    %c2 = arith.constant 2 : index
    %c0_15 = arith.constant 0 : index
    %22 = vector.load %arg2[%c0_14, %21, %c2, %c0_15] : memref<1x18x18x4xbf16, #tpu.memory_space<vmem>>, vector<1x8x16x4xbf16>
    %23 = vector.shape_cast %22 : vector<1x8x16x4xbf16> to vector<8x16x4xbf16>
    %24 = vector.shape_cast %23 : vector<8x16x4xbf16> to vector<128x4xbf16>
    %c2_16 = arith.constant 2 : index
    %c0_17 = arith.constant 0 : index
    %c0_18 = arith.constant 0 : index
    %25 = vector.load %arg3[%c2_16, %c0_17, %c0_18] : memref<9x4x4xbf16, #tpu.memory_space<vmem>>, vector<1x4x4xbf16>
    %26 = vector.shape_cast %25 : vector<1x4x4xbf16> to vector<4x4xbf16>
    %cst_19 = arith.constant dense<0.000000e+00> : vector<128x4xf32>
    %27 = tpu.matmul %24, %26, %cst_19 {dimension_numbers = #tpu.dot_dimension_numbers<[1], [0], [0], [1], [0, 0, 1, 1], [], []>} : vector<128x4xbf16>, vector<4x4xbf16>, vector<128x4xf32> -> vector<128x4xf32>
    %28 = arith.addf %19, %27 : vector<128x4xf32>
    %c1_i32 = arith.constant 1 : i32
    %29 = arith.addi %0, %c1_i32 : i32
    %c0_20 = arith.constant 0 : index
    %30 = arith.index_cast %29 : i32 to index
    %c0_21 = arith.constant 0 : index
    %c0_22 = arith.constant 0 : index
    %31 = vector.load %arg2[%c0_20, %30, %c0_21, %c0_22] : memref<1x18x18x4xbf16, #tpu.memory_space<vmem>>, vector<1x8x16x4xbf16>
    %32 = vector.shape_cast %31 : vector<1x8x16x4xbf16> to vector<8x16x4xbf16>
    %33 = vector.shape_cast %32 : vector<8x16x4xbf16> to vector<128x4xbf16>
    %c3 = arith.constant 3 : index
    %c0_23 = arith.constant 0 : index
    %c0_24 = arith.constant 0 : index
    %34 = vector.load %arg3[%c3, %c0_23, %c0_24] : memref<9x4x4xbf16, #tpu.memory_space<vmem>>, vector<1x4x4xbf16>
    %35 = vector.shape_cast %34 : vector<1x4x4xbf16> to vector<4x4xbf16>
    %cst_25 = arith.constant dense<0.000000e+00> : vector<128x4xf32>
    %36 = tpu.matmul %33, %35, %cst_25 {dimension_numbers = #tpu.dot_dimension_numbers<[1], [0], [0], [1], [0, 0, 1, 1], [], []>} : vector<128x4xbf16>, vector<4x4xbf16>, vector<128x4xf32> -> vector<128x4xf32>
    %37 = arith.addf %28, %36 : vector<128x4xf32>
    %c1_i32_26 = arith.constant 1 : i32
    %38 = arith.addi %0, %c1_i32_26 : i32
    %c0_27 = arith.constant 0 : index
    %39 = arith.index_cast %38 : i32 to index
    %c1_28 = arith.constant 1 : index
    %c0_29 = arith.constant 0 : index
    %40 = vector.load %arg2[%c0_27, %39, %c1_28, %c0_29] : memref<1x18x18x4xbf16, #tpu.memory_space<vmem>>, vector<1x8x16x4xbf16>
    %41 = vector.shape_cast %40 : vector<1x8x16x4xbf16> to vector<8x16x4xbf16>
    %42 = vector.shape_cast %41 : vector<8x16x4xbf16> to vector<128x4xbf16>
    %c4 = arith.constant 4 : index
    %c0_30 = arith.constant 0 : index
    %c0_31 = arith.constant 0 : index
    %43 = vector.load %arg3[%c4, %c0_30, %c0_31] : memref<9x4x4xbf16, #tpu.memory_space<vmem>>, vector<1x4x4xbf16>
    %44 = vector.shape_cast %43 : vector<1x4x4xbf16> to vector<4x4xbf16>
    %cst_32 = arith.constant dense<0.000000e+00> : vector<128x4xf32>
    %45 = tpu.matmul %42, %44, %cst_32 {dimension_numbers = #tpu.dot_dimension_numbers<[1], [0], [0], [1], [0, 0, 1, 1], [], []>} : vector<128x4xbf16>, vector<4x4xbf16>, vector<128x4xf32> -> vector<128x4xf32>
    %46 = arith.addf %37, %45 : vector<128x4xf32>
    %c1_i32_33 = arith.constant 1 : i32
    %47 = arith.addi %0, %c1_i32_33 : i32
    %c0_34 = arith.constant 0 : index
    %48 = arith.index_cast %47 : i32 to index
    %c2_35 = arith.constant 2 : index
    %c0_36 = arith.constant 0 : index
    %49 = vector.load %arg2[%c0_34, %48, %c2_35, %c0_36] : memref<1x18x18x4xbf16, #tpu.memory_space<vmem>>, vector<1x8x16x4xbf16>
    %50 = vector.shape_cast %49 : vector<1x8x16x4xbf16> to vector<8x16x4xbf16>
    %51 = vector.shape_cast %50 : vector<8x16x4xbf16> to vector<128x4xbf16>
    %c5 = arith.constant 5 : index
    %c0_37 = arith.constant 0 : index
    %c0_38 = arith.constant 0 : index
    %52 = vector.load %arg3[%c5, %c0_37, %c0_38] : memref<9x4x4xbf16, #tpu.memory_space<vmem>>, vector<1x4x4xbf16>
    %53 = vector.shape_cast %52 : vector<1x4x4xbf16> to vector<4x4xbf16>
    %cst_39 = arith.constant dense<0.000000e+00> : vector<128x4xf32>
    %54 = tpu.matmul %51, %53, %cst_39 {dimension_numbers = #tpu.dot_dimension_numbers<[1], [0], [0], [1], [0, 0, 1, 1], [], []>} : vector<128x4xbf16>, vector<4x4xbf16>, vector<128x4xf32> -> vector<128x4xf32>
    %55 = arith.addf %46, %54 : vector<128x4xf32>
    %c2_i32 = arith.constant 2 : i32
    %56 = arith.addi %0, %c2_i32 : i32
    %c0_40 = arith.constant 0 : index
    %57 = arith.index_cast %56 : i32 to index
    %c0_41 = arith.constant 0 : index
    %c0_42 = arith.constant 0 : index
    %58 = vector.load %arg2[%c0_40, %57, %c0_41, %c0_42] : memref<1x18x18x4xbf16, #tpu.memory_space<vmem>>, vector<1x8x16x4xbf16>
    %59 = vector.shape_cast %58 : vector<1x8x16x4xbf16> to vector<8x16x4xbf16>
    %60 = vector.shape_cast %59 : vector<8x16x4xbf16> to vector<128x4xbf16>
    %c6 = arith.constant 6 : index
    %c0_43 = arith.constant 0 : index
    %c0_44 = arith.constant 0 : index
    %61 = vector.load %arg3[%c6, %c0_43, %c0_44] : memref<9x4x4xbf16, #tpu.memory_space<vmem>>, vector<1x4x4xbf16>
    %62 = vector.shape_cast %61 : vector<1x4x4xbf16> to vector<4x4xbf16>
    %cst_45 = arith.constant dense<0.000000e+00> : vector<128x4xf32>
    %63 = tpu.matmul %60, %62, %cst_45 {dimension_numbers = #tpu.dot_dimension_numbers<[1], [0], [0], [1], [0, 0, 1, 1], [], []>} : vector<128x4xbf16>, vector<4x4xbf16>, vector<128x4xf32> -> vector<128x4xf32>
    %64 = arith.addf %55, %63 : vector<128x4xf32>
    %c2_i32_46 = arith.constant 2 : i32
    %65 = arith.addi %0, %c2_i32_46 : i32
    %c0_47 = arith.constant 0 : index
    %66 = arith.index_cast %65 : i32 to index
    %c1_48 = arith.constant 1 : index
    %c0_49 = arith.constant 0 : index
    %67 = vector.load %arg2[%c0_47, %66, %c1_48, %c0_49] : memref<1x18x18x4xbf16, #tpu.memory_space<vmem>>, vector<1x8x16x4xbf16>
    %68 = vector.shape_cast %67 : vector<1x8x16x4xbf16> to vector<8x16x4xbf16>
    %69 = vector.shape_cast %68 : vector<8x16x4xbf16> to vector<128x4xbf16>
    %c7 = arith.constant 7 : index
    %c0_50 = arith.constant 0 : index
    %c0_51 = arith.constant 0 : index
    %70 = vector.load %arg3[%c7, %c0_50, %c0_51] : memref<9x4x4xbf16, #tpu.memory_space<vmem>>, vector<1x4x4xbf16>
    %71 = vector.shape_cast %70 : vector<1x4x4xbf16> to vector<4x4xbf16>
    %cst_52 = arith.constant dense<0.000000e+00> : vector<128x4xf32>
    %72 = tpu.matmul %69, %71, %cst_52 {dimension_numbers = #tpu.dot_dimension_numbers<[1], [0], [0], [1], [0, 0, 1, 1], [], []>} : vector<128x4xbf16>, vector<4x4xbf16>, vector<128x4xf32> -> vector<128x4xf32>
    %73 = arith.addf %64, %72 : vector<128x4xf32>
    %c2_i32_53 = arith.constant 2 : i32
    %74 = arith.addi %0, %c2_i32_53 : i32
    %c0_54 = arith.constant 0 : index
    %75 = arith.index_cast %74 : i32 to index
    %c2_55 = arith.constant 2 : index
    %c0_56 = arith.constant 0 : index
    %76 = vector.load %arg2[%c0_54, %75, %c2_55, %c0_56] : memref<1x18x18x4xbf16, #tpu.memory_space<vmem>>, vector<1x8x16x4xbf16>
    %77 = vector.shape_cast %76 : vector<1x8x16x4xbf16> to vector<8x16x4xbf16>
    %78 = vector.shape_cast %77 : vector<8x16x4xbf16> to vector<128x4xbf16>
    %c8 = arith.constant 8 : index
    %c0_57 = arith.constant 0 : index
    %c0_58 = arith.constant 0 : index
    %79 = vector.load %arg3[%c8, %c0_57, %c0_58] : memref<9x4x4xbf16, #tpu.memory_space<vmem>>, vector<1x4x4xbf16>
    %80 = vector.shape_cast %79 : vector<1x4x4xbf16> to vector<4x4xbf16>
    %cst_59 = arith.constant dense<0.000000e+00> : vector<128x4xf32>
    %81 = tpu.matmul %78, %80, %cst_59 {dimension_numbers = #tpu.dot_dimension_numbers<[1], [0], [0], [1], [0, 0, 1, 1], [], []>} : vector<128x4xbf16>, vector<4x4xbf16>, vector<128x4xf32> -> vector<128x4xf32>
    %82 = arith.addf %73, %81 : vector<128x4xf32>
    %c0_60 = arith.constant 0 : index
    %c0_61 = arith.constant 0 : index
    %83 = vector.load %arg4[%c0_60, %c0_61] : memref<1x4xf32, #tpu.memory_space<vmem>>, vector<1x4xf32>
    %84 = vector.broadcast %83 : vector<1x4xf32> to vector<128x4xf32>
    %85 = arith.addf %82, %84 : vector<128x4xf32>
    %86 = vector.shape_cast %85 : vector<128x4xf32> to vector<8x16x4xf32>
    %c1_i32_62 = arith.constant 1 : i32
    %87 = arith.subi %0, %c1_i32_62 : i32
    %c0_i32_63 = arith.constant 0 : i32
    %88 = arith.maxsi %87, %c0_i32_63 : i32
    %cst_64 = arith.constant 0.000000e+00 : f32
    %89 = vector.broadcast %cst_64 : f32 to vector<16x4xf32>
    %c0_i32_65 = arith.constant 0 : i32
    %90 = arith.addi %88, %c0_i32_65 : i32
    %c0_66 = arith.constant 0 : index
    %91 = arith.index_cast %90 : i32 to index
    %c0_67 = arith.constant 0 : index
    %c0_68 = arith.constant 0 : index
    %92 = vector.load %arg2[%c0_66, %91, %c0_67, %c0_68] : memref<1x18x18x4xbf16, #tpu.memory_space<vmem>>, vector<1x1x16x4xbf16>
    %93 = vector.shape_cast %92 : vector<1x1x16x4xbf16> to vector<1x16x4xbf16>
    %94 = vector.shape_cast %93 : vector<1x16x4xbf16> to vector<16x4xbf16>
    %c0_69 = arith.constant 0 : index
    %c0_70 = arith.constant 0 : index
    %c0_71 = arith.constant 0 : index
    %95 = vector.load %arg3[%c0_69, %c0_70, %c0_71] : memref<9x4x4xbf16, #tpu.memory_space<vmem>>, vector<1x4x4xbf16>
    %96 = vector.shape_cast %95 : vector<1x4x4xbf16> to vector<4x4xbf16>
    %cst_72 = arith.constant dense<0.000000e+00> : vector<16x4xf32>
    %97 = tpu.matmul %94, %96, %cst_72 {dimension_numbers = #tpu.dot_dimension_numbers<[1], [0], [0], [1], [0, 0, 1, 1], [], []>} : vector<16x4xbf16>, vector<4x4xbf16>, vector<16x4xf32> -> vector<16x4xf32>
    %98 = arith.addf %89, %97 : vector<16x4xf32>
    %c0_i32_73 = arith.constant 0 : i32
    %99 = arith.addi %88, %c0_i32_73 : i32
    %c0_74 = arith.constant 0 : index
    %100 = arith.index_cast %99 : i32 to index
    %c1_75 = arith.constant 1 : index
    %c0_76 = arith.constant 0 : index
    %101 = vector.load %arg2[%c0_74, %100, %c1_75, %c0_76] : memref<1x18x18x4xbf16, #tpu.memory_space<vmem>>, vector<1x1x16x4xbf16>
    %102 = vector.shape_cast %101 : vector<1x1x16x4xbf16> to vector<1x16x4xbf16>
    %103 = vector.shape_cast %102 : vector<1x16x4xbf16> to vector<16x4xbf16>
    %c1_77 = arith.constant 1 : index
    %c0_78 = arith.constant 0 : index
    %c0_79 = arith.constant 0 : index
    %104 = vector.load %arg3[%c1_77, %c0_78, %c0_79] : memref<9x4x4xbf16, #tpu.memory_space<vmem>>, vector<1x4x4xbf16>
    %105 = vector.shape_cast %104 : vector<1x4x4xbf16> to vector<4x4xbf16>
    %cst_80 = arith.constant dense<0.000000e+00> : vector<16x4xf32>
    %106 = tpu.matmul %103, %105, %cst_80 {dimension_numbers = #tpu.dot_dimension_numbers<[1], [0], [0], [1], [0, 0, 1, 1], [], []>} : vector<16x4xbf16>, vector<4x4xbf16>, vector<16x4xf32> -> vector<16x4xf32>
    %107 = arith.addf %98, %106 : vector<16x4xf32>
    %c0_i32_81 = arith.constant 0 : i32
    %108 = arith.addi %88, %c0_i32_81 : i32
    %c0_82 = arith.constant 0 : index
    %109 = arith.index_cast %108 : i32 to index
    %c2_83 = arith.constant 2 : index
    %c0_84 = arith.constant 0 : index
    %110 = vector.load %arg2[%c0_82, %109, %c2_83, %c0_84] : memref<1x18x18x4xbf16, #tpu.memory_space<vmem>>, vector<1x1x16x4xbf16>
    %111 = vector.shape_cast %110 : vector<1x1x16x4xbf16> to vector<1x16x4xbf16>
    %112 = vector.shape_cast %111 : vector<1x16x4xbf16> to vector<16x4xbf16>
    %c2_85 = arith.constant 2 : index
    %c0_86 = arith.constant 0 : index
    %c0_87 = arith.constant 0 : index
    %113 = vector.load %arg3[%c2_85, %c0_86, %c0_87] : memref<9x4x4xbf16, #tpu.memory_space<vmem>>, vector<1x4x4xbf16>
    %114 = vector.shape_cast %113 : vector<1x4x4xbf16> to vector<4x4xbf16>
    %cst_88 = arith.constant dense<0.000000e+00> : vector<16x4xf32>
    %115 = tpu.matmul %112, %114, %cst_88 {dimension_numbers = #tpu.dot_dimension_numbers<[1], [0], [0], [1], [0, 0, 1, 1], [], []>} : vector<16x4xbf16>, vector<4x4xbf16>, vector<16x4xf32> -> vector<16x4xf32>
    %116 = arith.addf %107, %115 : vector<16x4xf32>
    %c1_i32_89 = arith.constant 1 : i32
    %117 = arith.addi %88, %c1_i32_89 : i32
    %c0_90 = arith.constant 0 : index
    %118 = arith.index_cast %117 : i32 to index
    %c0_91 = arith.constant 0 : index
    %c0_92 = arith.constant 0 : index
    %119 = vector.load %arg2[%c0_90, %118, %c0_91, %c0_92] : memref<1x18x18x4xbf16, #tpu.memory_space<vmem>>, vector<1x1x16x4xbf16>
    %120 = vector.shape_cast %119 : vector<1x1x16x4xbf16> to vector<1x16x4xbf16>
    %121 = vector.shape_cast %120 : vector<1x16x4xbf16> to vector<16x4xbf16>
    %c3_93 = arith.constant 3 : index
    %c0_94 = arith.constant 0 : index
    %c0_95 = arith.constant 0 : index
    %122 = vector.load %arg3[%c3_93, %c0_94, %c0_95] : memref<9x4x4xbf16, #tpu.memory_space<vmem>>, vector<1x4x4xbf16>
    %123 = vector.shape_cast %122 : vector<1x4x4xbf16> to vector<4x4xbf16>
    %cst_96 = arith.constant dense<0.000000e+00> : vector<16x4xf32>
    %124 = tpu.matmul %121, %123, %cst_96 {dimension_numbers = #tpu.dot_dimension_numbers<[1], [0], [0], [1], [0, 0, 1, 1], [], []>} : vector<16x4xbf16>, vector<4x4xbf16>, vector<16x4xf32> -> vector<16x4xf32>
    %125 = arith.addf %116, %124 : vector<16x4xf32>
    %c1_i32_97 = arith.constant 1 : i32
    %126 = arith.addi %88, %c1_i32_97 : i32
    %c0_98 = arith.constant 0 : index
    %127 = arith.index_cast %126 : i32 to index
    %c1_99 = arith.constant 1 : index
    %c0_100 = arith.constant 0 : index
    %128 = vector.load %arg2[%c0_98, %127, %c1_99, %c0_100] : memref<1x18x18x4xbf16, #tpu.memory_space<vmem>>, vector<1x1x16x4xbf16>
    %129 = vector.shape_cast %128 : vector<1x1x16x4xbf16> to vector<1x16x4xbf16>
    %130 = vector.shape_cast %129 : vector<1x16x4xbf16> to vector<16x4xbf16>
    %c4_101 = arith.constant 4 : index
    %c0_102 = arith.constant 0 : index
    %c0_103 = arith.constant 0 : index
    %131 = vector.load %arg3[%c4_101, %c0_102, %c0_103] : memref<9x4x4xbf16, #tpu.memory_space<vmem>>, vector<1x4x4xbf16>
    %132 = vector.shape_cast %131 : vector<1x4x4xbf16> to vector<4x4xbf16>
    %cst_104 = arith.constant dense<0.000000e+00> : vector<16x4xf32>
    %133 = tpu.matmul %130, %132, %cst_104 {dimension_numbers = #tpu.dot_dimension_numbers<[1], [0], [0], [1], [0, 0, 1, 1], [], []>} : vector<16x4xbf16>, vector<4x4xbf16>, vector<16x4xf32> -> vector<16x4xf32>
    %134 = arith.addf %125, %133 : vector<16x4xf32>
    %c1_i32_105 = arith.constant 1 : i32
    %135 = arith.addi %88, %c1_i32_105 : i32
    %c0_106 = arith.constant 0 : index
    %136 = arith.index_cast %135 : i32 to index
    %c2_107 = arith.constant 2 : index
    %c0_108 = arith.constant 0 : index
    %137 = vector.load %arg2[%c0_106, %136, %c2_107, %c0_108] : memref<1x18x18x4xbf16, #tpu.memory_space<vmem>>, vector<1x1x16x4xbf16>
    %138 = vector.shape_cast %137 : vector<1x1x16x4xbf16> to vector<1x16x4xbf16>
    %139 = vector.shape_cast %138 : vector<1x16x4xbf16> to vector<16x4xbf16>
    %c5_109 = arith.constant 5 : index
    %c0_110 = arith.constant 0 : index
    %c0_111 = arith.constant 0 : index
    %140 = vector.load %arg3[%c5_109, %c0_110, %c0_111] : memref<9x4x4xbf16, #tpu.memory_space<vmem>>, vector<1x4x4xbf16>
    %141 = vector.shape_cast %140 : vector<1x4x4xbf16> to vector<4x4xbf16>
    %cst_112 = arith.constant dense<0.000000e+00> : vector<16x4xf32>
    %142 = tpu.matmul %139, %141, %cst_112 {dimension_numbers = #tpu.dot_dimension_numbers<[1], [0], [0], [1], [0, 0, 1, 1], [], []>} : vector<16x4xbf16>, vector<4x4xbf16>, vector<16x4xf32> -> vector<16x4xf32>
    %143 = arith.addf %134, %142 : vector<16x4xf32>
    %c2_i32_113 = arith.constant 2 : i32
    %144 = arith.addi %88, %c2_i32_113 : i32
    %c0_114 = arith.constant 0 : index
    %145 = arith.index_cast %144 : i32 to index
    %c0_115 = arith.constant 0 : index
    %c0_116 = arith.constant 0 : index
    %146 = vector.load %arg2[%c0_114, %145, %c0_115, %c0_116] : memref<1x18x18x4xbf16, #tpu.memory_space<vmem>>, vector<1x1x16x4xbf16>
    %147 = vector.shape_cast %146 : vector<1x1x16x4xbf16> to vector<1x16x4xbf16>
    %148 = vector.shape_cast %147 : vector<1x16x4xbf16> to vector<16x4xbf16>
    %c6_117 = arith.constant 6 : index
    %c0_118 = arith.constant 0 : index
    %c0_119 = arith.constant 0 : index
    %149 = vector.load %arg3[%c6_117, %c0_118, %c0_119] : memref<9x4x4xbf16, #tpu.memory_space<vmem>>, vector<1x4x4xbf16>
    %150 = vector.shape_cast %149 : vector<1x4x4xbf16> to vector<4x4xbf16>
    %cst_120 = arith.constant dense<0.000000e+00> : vector<16x4xf32>
    %151 = tpu.matmul %148, %150, %cst_120 {dimension_numbers = #tpu.dot_dimension_numbers<[1], [0], [0], [1], [0, 0, 1, 1], [], []>} : vector<16x4xbf16>, vector<4x4xbf16>, vector<16x4xf32> -> vector<16x4xf32>
    %152 = arith.addf %143, %151 : vector<16x4xf32>
    %c2_i32_121 = arith.constant 2 : i32
    %153 = arith.addi %88, %c2_i32_121 : i32
    %c0_122 = arith.constant 0 : index
    %154 = arith.index_cast %153 : i32 to index
    %c1_123 = arith.constant 1 : index
    %c0_124 = arith.constant 0 : index
    %155 = vector.load %arg2[%c0_122, %154, %c1_123, %c0_124] : memref<1x18x18x4xbf16, #tpu.memory_space<vmem>>, vector<1x1x16x4xbf16>
    %156 = vector.shape_cast %155 : vector<1x1x16x4xbf16> to vector<1x16x4xbf16>
    %157 = vector.shape_cast %156 : vector<1x16x4xbf16> to vector<16x4xbf16>
    %c7_125 = arith.constant 7 : index
    %c0_126 = arith.constant 0 : index
    %c0_127 = arith.constant 0 : index
    %158 = vector.load %arg3[%c7_125, %c0_126, %c0_127] : memref<9x4x4xbf16, #tpu.memory_space<vmem>>, vector<1x4x4xbf16>
    %159 = vector.shape_cast %158 : vector<1x4x4xbf16> to vector<4x4xbf16>
    %cst_128 = arith.constant dense<0.000000e+00> : vector<16x4xf32>
    %160 = tpu.matmul %157, %159, %cst_128 {dimension_numbers = #tpu.dot_dimension_numbers<[1], [0], [0], [1], [0, 0, 1, 1], [], []>} : vector<16x4xbf16>, vector<4x4xbf16>, vector<16x4xf32> -> vector<16x4xf32>
    %161 = arith.addf %152, %160 : vector<16x4xf32>
    %c2_i32_129 = arith.constant 2 : i32
    %162 = arith.addi %88, %c2_i32_129 : i32
    %c0_130 = arith.constant 0 : index
    %163 = arith.index_cast %162 : i32 to index
    %c2_131 = arith.constant 2 : index
    %c0_132 = arith.constant 0 : index
    %164 = vector.load %arg2[%c0_130, %163, %c2_131, %c0_132] : memref<1x18x18x4xbf16, #tpu.memory_space<vmem>>, vector<1x1x16x4xbf16>
    %165 = vector.shape_cast %164 : vector<1x1x16x4xbf16> to vector<1x16x4xbf16>
    %166 = vector.shape_cast %165 : vector<1x16x4xbf16> to vector<16x4xbf16>
    %c8_133 = arith.constant 8 : index
    %c0_134 = arith.constant 0 : index
    %c0_135 = arith.constant 0 : index
    %167 = vector.load %arg3[%c8_133, %c0_134, %c0_135] : memref<9x4x4xbf16, #tpu.memory_space<vmem>>, vector<1x4x4xbf16>
    %168 = vector.shape_cast %167 : vector<1x4x4xbf16> to vector<4x4xbf16>
    %cst_136 = arith.constant dense<0.000000e+00> : vector<16x4xf32>
    %169 = tpu.matmul %166, %168, %cst_136 {dimension_numbers = #tpu.dot_dimension_numbers<[1], [0], [0], [1], [0, 0, 1, 1], [], []>} : vector<16x4xbf16>, vector<4x4xbf16>, vector<16x4xf32> -> vector<16x4xf32>
    %170 = arith.addf %161, %169 : vector<16x4xf32>
    %c0_137 = arith.constant 0 : index
    %c0_138 = arith.constant 0 : index
    %171 = vector.load %arg4[%c0_137, %c0_138] : memref<1x4xf32, #tpu.memory_space<vmem>>, vector<1x4xf32>
    %172 = vector.broadcast %171 : vector<1x4xf32> to vector<16x4xf32>
    %173 = arith.addf %170, %172 : vector<16x4xf32>
    %174 = vector.shape_cast %173 : vector<16x4xf32> to vector<1x16x4xf32>
    %c8_i32_139 = arith.constant 8 : i32
    %175 = arith.addi %0, %c8_i32_139 : i32
    %c15_i32 = arith.constant 15 : i32
    %176 = arith.minsi %175, %c15_i32 : i32
    %cst_140 = arith.constant 0.000000e+00 : f32
    %177 = vector.broadcast %cst_140 : f32 to vector<16x4xf32>
    %c0_i32_141 = arith.constant 0 : i32
    %178 = arith.addi %176, %c0_i32_141 : i32
    %c0_142 = arith.constant 0 : index
    %179 = arith.index_cast %178 : i32 to index
    %c0_143 = arith.constant 0 : index
    %c0_144 = arith.constant 0 : index
    %180 = vector.load %arg2[%c0_142, %179, %c0_143, %c0_144] : memref<1x18x18x4xbf16, #tpu.memory_space<vmem>>, vector<1x1x16x4xbf16>
    %181 = vector.shape_cast %180 : vector<1x1x16x4xbf16> to vector<1x16x4xbf16>
    %182 = vector.shape_cast %181 : vector<1x16x4xbf16> to vector<16x4xbf16>
    %c0_145 = arith.constant 0 : index
    %c0_146 = arith.constant 0 : index
    %c0_147 = arith.constant 0 : index
    %183 = vector.load %arg3[%c0_145, %c0_146, %c0_147] : memref<9x4x4xbf16, #tpu.memory_space<vmem>>, vector<1x4x4xbf16>
    %184 = vector.shape_cast %183 : vector<1x4x4xbf16> to vector<4x4xbf16>
    %cst_148 = arith.constant dense<0.000000e+00> : vector<16x4xf32>
    %185 = tpu.matmul %182, %184, %cst_148 {dimension_numbers = #tpu.dot_dimension_numbers<[1], [0], [0], [1], [0, 0, 1, 1], [], []>} : vector<16x4xbf16>, vector<4x4xbf16>, vector<16x4xf32> -> vector<16x4xf32>
    %186 = arith.addf %177, %185 : vector<16x4xf32>
    %c0_i32_149 = arith.constant 0 : i32
    %187 = arith.addi %176, %c0_i32_149 : i32
    %c0_150 = arith.constant 0 : index
    %188 = arith.index_cast %187 : i32 to index
    %c1_151 = arith.constant 1 : index
    %c0_152 = arith.constant 0 : index
    %189 = vector.load %arg2[%c0_150, %188, %c1_151, %c0_152] : memref<1x18x18x4xbf16, #tpu.memory_space<vmem>>, vector<1x1x16x4xbf16>
    %190 = vector.shape_cast %189 : vector<1x1x16x4xbf16> to vector<1x16x4xbf16>
    %191 = vector.shape_cast %190 : vector<1x16x4xbf16> to vector<16x4xbf16>
    %c1_153 = arith.constant 1 : index
    %c0_154 = arith.constant 0 : index
    %c0_155 = arith.constant 0 : index
    %192 = vector.load %arg3[%c1_153, %c0_154, %c0_155] : memref<9x4x4xbf16, #tpu.memory_space<vmem>>, vector<1x4x4xbf16>
    %193 = vector.shape_cast %192 : vector<1x4x4xbf16> to vector<4x4xbf16>
    %cst_156 = arith.constant dense<0.000000e+00> : vector<16x4xf32>
    %194 = tpu.matmul %191, %193, %cst_156 {dimension_numbers = #tpu.dot_dimension_numbers<[1], [0], [0], [1], [0, 0, 1, 1], [], []>} : vector<16x4xbf16>, vector<4x4xbf16>, vector<16x4xf32> -> vector<16x4xf32>
    %195 = arith.addf %186, %194 : vector<16x4xf32>
    %c0_i32_157 = arith.constant 0 : i32
    %196 = arith.addi %176, %c0_i32_157 : i32
    %c0_158 = arith.constant 0 : index
    %197 = arith.index_cast %196 : i32 to index
    %c2_159 = arith.constant 2 : index
    %c0_160 = arith.constant 0 : index
    %198 = vector.load %arg2[%c0_158, %197, %c2_159, %c0_160] : memref<1x18x18x4xbf16, #tpu.memory_space<vmem>>, vector<1x1x16x4xbf16>
    %199 = vector.shape_cast %198 : vector<1x1x16x4xbf16> to vector<1x16x4xbf16>
    %200 = vector.shape_cast %199 : vector<1x16x4xbf16> to vector<16x4xbf16>
    %c2_161 = arith.constant 2 : index
    %c0_162 = arith.constant 0 : index
    %c0_163 = arith.constant 0 : index
    %201 = vector.load %arg3[%c2_161, %c0_162, %c0_163] : memref<9x4x4xbf16, #tpu.memory_space<vmem>>, vector<1x4x4xbf16>
    %202 = vector.shape_cast %201 : vector<1x4x4xbf16> to vector<4x4xbf16>
    %cst_164 = arith.constant dense<0.000000e+00> : vector<16x4xf32>
    %203 = tpu.matmul %200, %202, %cst_164 {dimension_numbers = #tpu.dot_dimension_numbers<[1], [0], [0], [1], [0, 0, 1, 1], [], []>} : vector<16x4xbf16>, vector<4x4xbf16>, vector<16x4xf32> -> vector<16x4xf32>
    %204 = arith.addf %195, %203 : vector<16x4xf32>
    %c1_i32_165 = arith.constant 1 : i32
    %205 = arith.addi %176, %c1_i32_165 : i32
    %c0_166 = arith.constant 0 : index
    %206 = arith.index_cast %205 : i32 to index
    %c0_167 = arith.constant 0 : index
    %c0_168 = arith.constant 0 : index
    %207 = vector.load %arg2[%c0_166, %206, %c0_167, %c0_168] : memref<1x18x18x4xbf16, #tpu.memory_space<vmem>>, vector<1x1x16x4xbf16>
    %208 = vector.shape_cast %207 : vector<1x1x16x4xbf16> to vector<1x16x4xbf16>
    %209 = vector.shape_cast %208 : vector<1x16x4xbf16> to vector<16x4xbf16>
    %c3_169 = arith.constant 3 : index
    %c0_170 = arith.constant 0 : index
    %c0_171 = arith.constant 0 : index
    %210 = vector.load %arg3[%c3_169, %c0_170, %c0_171] : memref<9x4x4xbf16, #tpu.memory_space<vmem>>, vector<1x4x4xbf16>
    %211 = vector.shape_cast %210 : vector<1x4x4xbf16> to vector<4x4xbf16>
    %cst_172 = arith.constant dense<0.000000e+00> : vector<16x4xf32>
    %212 = tpu.matmul %209, %211, %cst_172 {dimension_numbers = #tpu.dot_dimension_numbers<[1], [0], [0], [1], [0, 0, 1, 1], [], []>} : vector<16x4xbf16>, vector<4x4xbf16>, vector<16x4xf32> -> vector<16x4xf32>
    %213 = arith.addf %204, %212 : vector<16x4xf32>
    %c1_i32_173 = arith.constant 1 : i32
    %214 = arith.addi %176, %c1_i32_173 : i32
    %c0_174 = arith.constant 0 : index
    %215 = arith.index_cast %214 : i32 to index
    %c1_175 = arith.constant 1 : index
    %c0_176 = arith.constant 0 : index
    %216 = vector.load %arg2[%c0_174, %215, %c1_175, %c0_176] : memref<1x18x18x4xbf16, #tpu.memory_space<vmem>>, vector<1x1x16x4xbf16>
    %217 = vector.shape_cast %216 : vector<1x1x16x4xbf16> to vector<1x16x4xbf16>
    %218 = vector.shape_cast %217 : vector<1x16x4xbf16> to vector<16x4xbf16>
    %c4_177 = arith.constant 4 : index
    %c0_178 = arith.constant 0 : index
    %c0_179 = arith.constant 0 : index
    %219 = vector.load %arg3[%c4_177, %c0_178, %c0_179] : memref<9x4x4xbf16, #tpu.memory_space<vmem>>, vector<1x4x4xbf16>
    %220 = vector.shape_cast %219 : vector<1x4x4xbf16> to vector<4x4xbf16>
    %cst_180 = arith.constant dense<0.000000e+00> : vector<16x4xf32>
    %221 = tpu.matmul %218, %220, %cst_180 {dimension_numbers = #tpu.dot_dimension_numbers<[1], [0], [0], [1], [0, 0, 1, 1], [], []>} : vector<16x4xbf16>, vector<4x4xbf16>, vector<16x4xf32> -> vector<16x4xf32>
    %222 = arith.addf %213, %221 : vector<16x4xf32>
    %c1_i32_181 = arith.constant 1 : i32
    %223 = arith.addi %176, %c1_i32_181 : i32
    %c0_182 = arith.constant 0 : index
    %224 = arith.index_cast %223 : i32 to index
    %c2_183 = arith.constant 2 : index
    %c0_184 = arith.constant 0 : index
    %225 = vector.load %arg2[%c0_182, %224, %c2_183, %c0_184] : memref<1x18x18x4xbf16, #tpu.memory_space<vmem>>, vector<1x1x16x4xbf16>
    %226 = vector.shape_cast %225 : vector<1x1x16x4xbf16> to vector<1x16x4xbf16>
    %227 = vector.shape_cast %226 : vector<1x16x4xbf16> to vector<16x4xbf16>
    %c5_185 = arith.constant 5 : index
    %c0_186 = arith.constant 0 : index
    %c0_187 = arith.constant 0 : index
    %228 = vector.load %arg3[%c5_185, %c0_186, %c0_187] : memref<9x4x4xbf16, #tpu.memory_space<vmem>>, vector<1x4x4xbf16>
    %229 = vector.shape_cast %228 : vector<1x4x4xbf16> to vector<4x4xbf16>
    %cst_188 = arith.constant dense<0.000000e+00> : vector<16x4xf32>
    %230 = tpu.matmul %227, %229, %cst_188 {dimension_numbers = #tpu.dot_dimension_numbers<[1], [0], [0], [1], [0, 0, 1, 1], [], []>} : vector<16x4xbf16>, vector<4x4xbf16>, vector<16x4xf32> -> vector<16x4xf32>
    %231 = arith.addf %222, %230 : vector<16x4xf32>
    %c2_i32_189 = arith.constant 2 : i32
    %232 = arith.addi %176, %c2_i32_189 : i32
    %c0_190 = arith.constant 0 : index
    %233 = arith.index_cast %232 : i32 to index
    %c0_191 = arith.constant 0 : index
    %c0_192 = arith.constant 0 : index
    %234 = vector.load %arg2[%c0_190, %233, %c0_191, %c0_192] : memref<1x18x18x4xbf16, #tpu.memory_space<vmem>>, vector<1x1x16x4xbf16>
    %235 = vector.shape_cast %234 : vector<1x1x16x4xbf16> to vector<1x16x4xbf16>
    %236 = vector.shape_cast %235 : vector<1x16x4xbf16> to vector<16x4xbf16>
    %c6_193 = arith.constant 6 : index
    %c0_194 = arith.constant 0 : index
    %c0_195 = arith.constant 0 : index
    %237 = vector.load %arg3[%c6_193, %c0_194, %c0_195] : memref<9x4x4xbf16, #tpu.memory_space<vmem>>, vector<1x4x4xbf16>
    %238 = vector.shape_cast %237 : vector<1x4x4xbf16> to vector<4x4xbf16>
    %cst_196 = arith.constant dense<0.000000e+00> : vector<16x4xf32>
    %239 = tpu.matmul %236, %238, %cst_196 {dimension_numbers = #tpu.dot_dimension_numbers<[1], [0], [0], [1], [0, 0, 1, 1], [], []>} : vector<16x4xbf16>, vector<4x4xbf16>, vector<16x4xf32> -> vector<16x4xf32>
    %240 = arith.addf %231, %239 : vector<16x4xf32>
    %c2_i32_197 = arith.constant 2 : i32
    %241 = arith.addi %176, %c2_i32_197 : i32
    %c0_198 = arith.constant 0 : index
    %242 = arith.index_cast %241 : i32 to index
    %c1_199 = arith.constant 1 : index
    %c0_200 = arith.constant 0 : index
    %243 = vector.load %arg2[%c0_198, %242, %c1_199, %c0_200] : memref<1x18x18x4xbf16, #tpu.memory_space<vmem>>, vector<1x1x16x4xbf16>
    %244 = vector.shape_cast %243 : vector<1x1x16x4xbf16> to vector<1x16x4xbf16>
    %245 = vector.shape_cast %244 : vector<1x16x4xbf16> to vector<16x4xbf16>
    %c7_201 = arith.constant 7 : index
    %c0_202 = arith.constant 0 : index
    %c0_203 = arith.constant 0 : index
    %246 = vector.load %arg3[%c7_201, %c0_202, %c0_203] : memref<9x4x4xbf16, #tpu.memory_space<vmem>>, vector<1x4x4xbf16>
    %247 = vector.shape_cast %246 : vector<1x4x4xbf16> to vector<4x4xbf16>
    %cst_204 = arith.constant dense<0.000000e+00> : vector<16x4xf32>
    %248 = tpu.matmul %245, %247, %cst_204 {dimension_numbers = #tpu.dot_dimension_numbers<[1], [0], [0], [1], [0, 0, 1, 1], [], []>} : vector<16x4xbf16>, vector<4x4xbf16>, vector<16x4xf32> -> vector<16x4xf32>
    %249 = arith.addf %240, %248 : vector<16x4xf32>
    %c2_i32_205 = arith.constant 2 : i32
    %250 = arith.addi %176, %c2_i32_205 : i32
    %c0_206 = arith.constant 0 : index
    %251 = arith.index_cast %250 : i32 to index
    %c2_207 = arith.constant 2 : index
    %c0_208 = arith.constant 0 : index
    %252 = vector.load %arg2[%c0_206, %251, %c2_207, %c0_208] : memref<1x18x18x4xbf16, #tpu.memory_space<vmem>>, vector<1x1x16x4xbf16>
    %253 = vector.shape_cast %252 : vector<1x1x16x4xbf16> to vector<1x16x4xbf16>
    %254 = vector.shape_cast %253 : vector<1x16x4xbf16> to vector<16x4xbf16>
    %c8_209 = arith.constant 8 : index
    %c0_210 = arith.constant 0 : index
    %c0_211 = arith.constant 0 : index
    %255 = vector.load %arg3[%c8_209, %c0_210, %c0_211] : memref<9x4x4xbf16, #tpu.memory_space<vmem>>, vector<1x4x4xbf16>
    %256 = vector.shape_cast %255 : vector<1x4x4xbf16> to vector<4x4xbf16>
    %cst_212 = arith.constant dense<0.000000e+00> : vector<16x4xf32>
    %257 = tpu.matmul %254, %256, %cst_212 {dimension_numbers = #tpu.dot_dimension_numbers<[1], [0], [0], [1], [0, 0, 1, 1], [], []>} : vector<16x4xbf16>, vector<4x4xbf16>, vector<16x4xf32> -> vector<16x4xf32>
    %258 = arith.addf %249, %257 : vector<16x4xf32>
    %c0_213 = arith.constant 0 : index
    %c0_214 = arith.constant 0 : index
    %259 = vector.load %arg4[%c0_213, %c0_214] : memref<1x4xf32, #tpu.memory_space<vmem>>, vector<1x4xf32>
    %260 = vector.broadcast %259 : vector<1x4xf32> to vector<16x4xf32>
    %261 = arith.addf %258, %260 : vector<16x4xf32>
    %262 = vector.shape_cast %261 : vector<16x4xf32> to vector<1x16x4xf32>
    %263 = tpu.concatenate %174, %86, %262 in 0 : vector<1x16x4xf32>, vector<8x16x4xf32>, vector<1x16x4xf32> -> vector<10x16x4xf32>
    %264 = vector.extract_strided_slice %263 {offsets = [0, 0, 0], sizes = [10, 1, 4], strides = [1, 1, 1]} : vector<10x16x4xf32> to vector<10x1x4xf32>
    %265 = vector.extract_strided_slice %263 {offsets = [0, 0, 0], sizes = [10, 15, 4], strides = [1, 1, 1]} : vector<10x16x4xf32> to vector<10x15x4xf32>
    %266 = tpu.concatenate %264, %265 in 1 : vector<10x1x4xf32>, vector<10x15x4xf32> -> vector<10x16x4xf32>
    %267 = vector.extract_strided_slice %263 {offsets = [0, 1, 0], sizes = [10, 15, 4], strides = [1, 1, 1]} : vector<10x16x4xf32> to vector<10x15x4xf32>
    %268 = vector.extract_strided_slice %263 {offsets = [0, 15, 0], sizes = [10, 1, 4], strides = [1, 1, 1]} : vector<10x16x4xf32> to vector<10x1x4xf32>
    %269 = tpu.concatenate %267, %268 in 1 : vector<10x15x4xf32>, vector<10x1x4xf32> -> vector<10x16x4xf32>
    %cst_215 = arith.constant 2.500000e-01 : f32
    %270 = vector.broadcast %cst_215 : f32 to vector<10x16x4xf32>
    %271 = arith.mulf %270, %266 : vector<10x16x4xf32>
    %cst_216 = arith.constant 7.500000e-01 : f32
    %272 = vector.broadcast %cst_216 : f32 to vector<10x16x4xf32>
    %273 = arith.mulf %272, %263 : vector<10x16x4xf32>
    %274 = arith.addf %271, %273 : vector<10x16x4xf32>
    %cst_217 = arith.constant 7.500000e-01 : f32
    %275 = vector.broadcast %cst_217 : f32 to vector<10x16x4xf32>
    %276 = arith.mulf %275, %263 : vector<10x16x4xf32>
    %cst_218 = arith.constant 2.500000e-01 : f32
    %277 = vector.broadcast %cst_218 : f32 to vector<10x16x4xf32>
    %278 = arith.mulf %277, %269 : vector<10x16x4xf32>
    %279 = arith.addf %276, %278 : vector<10x16x4xf32>
    %280 = vector.shape_cast %274 : vector<10x16x4xf32> to vector<10x16x1x4xf32>
    %281 = vector.shape_cast %279 : vector<10x16x4xf32> to vector<10x16x1x4xf32>
    %282 = tpu.concatenate %280, %281 in 2 : vector<10x16x1x4xf32>, vector<10x16x1x4xf32> -> vector<10x16x2x4xf32>
    %283 = vector.shape_cast %282 : vector<10x16x2x4xf32> to vector<10x32x4xf32>
    %284 = vector.extract_strided_slice %283 {offsets = [0, 0, 0], sizes = [8, 32, 4], strides = [1, 1, 1]} : vector<10x32x4xf32> to vector<8x32x4xf32>
    %285 = vector.extract_strided_slice %283 {offsets = [1, 0, 0], sizes = [8, 32, 4], strides = [1, 1, 1]} : vector<10x32x4xf32> to vector<8x32x4xf32>
    %286 = vector.extract_strided_slice %283 {offsets = [2, 0, 0], sizes = [8, 32, 4], strides = [1, 1, 1]} : vector<10x32x4xf32> to vector<8x32x4xf32>
    %cst_219 = arith.constant 2.500000e-01 : f32
    %287 = vector.broadcast %cst_219 : f32 to vector<8x32x4xf32>
    %288 = arith.mulf %287, %284 : vector<8x32x4xf32>
    %cst_220 = arith.constant 7.500000e-01 : f32
    %289 = vector.broadcast %cst_220 : f32 to vector<8x32x4xf32>
    %290 = arith.mulf %289, %285 : vector<8x32x4xf32>
    %291 = arith.addf %288, %290 : vector<8x32x4xf32>
    %cst_221 = arith.constant 7.500000e-01 : f32
    %292 = vector.broadcast %cst_221 : f32 to vector<8x32x4xf32>
    %293 = arith.mulf %292, %285 : vector<8x32x4xf32>
    %cst_222 = arith.constant 2.500000e-01 : f32
    %294 = vector.broadcast %cst_222 : f32 to vector<8x32x4xf32>
    %295 = arith.mulf %294, %286 : vector<8x32x4xf32>
    %296 = arith.addf %293, %295 : vector<8x32x4xf32>
    %297 = vector.shape_cast %291 : vector<8x32x4xf32> to vector<8x1x32x4xf32>
    %298 = vector.shape_cast %296 : vector<8x32x4xf32> to vector<8x1x32x4xf32>
    %299 = tpu.concatenate %297, %298 in 1 : vector<8x1x32x4xf32>, vector<8x1x32x4xf32> -> vector<8x2x32x4xf32>
    %300 = vector.shape_cast %299 : vector<8x2x32x4xf32> to vector<16x32x4xf32>
    %cst_223 = arith.constant 0.000000e+00 : f32
    %301 = vector.broadcast %cst_223 : f32 to vector<16x32x4xf32>
    %302 = arith.maximumf %300, %301 : vector<16x32x4xf32>
    %c0_224 = arith.constant 0 : index
    %c0_225 = arith.constant 0 : index
    %c0_226 = arith.constant 0 : index
    %c0_227 = arith.constant 0 : index
    %303 = vector.load %arg6[%c0_224, %c0_225, %c0_226, %c0_227] : memref<1x16x32x8xf32, #tpu.memory_space<vmem>>, vector<1x16x32x4xf32>
    %304 = vector.shape_cast %303 : vector<1x16x32x4xf32> to vector<16x32x4xf32>
    %305 = vector.shape_cast %302 : vector<16x32x4xf32> to vector<1x16x32x4xf32>
    tpu.vector_store %arg6[%c0_224, %c0_225, %c0_226, %c0_227], %305 {strides = array<i32>} : memref<1x16x32x8xf32, #tpu.memory_space<vmem>>, vector<1x16x32x4xf32>,
    %c0_228 = arith.constant 0 : index
    %c0_229 = arith.constant 0 : index
    %c0_230 = arith.constant 0 : index
    %c0_231 = arith.constant 0 : index
    %306 = vector.load %arg5[%c0_228, %c0_229, %c0_230, %c0_231] : memref<1x16x32x4xf32, #tpu.memory_space<vmem>>, vector<1x16x32x4xf32>
    %307 = vector.shape_cast %306 : vector<1x16x32x4xf32> to vector<16x32x4xf32>
    %c0_232 = arith.constant 0 : index
    %c0_233 = arith.constant 0 : index
    %c0_234 = arith.constant 0 : index
    %c4_235 = arith.constant 4 : index
    %308 = vector.load %arg6[%c0_232, %c0_233, %c0_234, %c4_235] : memref<1x16x32x8xf32, #tpu.memory_space<vmem>>, vector<1x16x32x4xf32>
    %309 = vector.shape_cast %308 : vector<1x16x32x4xf32> to vector<16x32x4xf32>
    %310 = vector.shape_cast %307 : vector<16x32x4xf32> to vector<1x16x32x4xf32>
    tpu.vector_store %arg6[%c0_232, %c0_233, %c0_234, %c4_235], %310 {strides = array<i32>} : memref<1x16x32x8xf32, #tpu.memory_space<vmem>>, vector<1x16x32x4xf32>,
    return
  }
  func.func @transform_0(%arg0: i32, %arg1: i32) -> (i32, i32, i32, i32) {
    %c0_i32 = arith.constant 0 : i32
    %c0_i32_0 = arith.constant 0 : i32
    %c0_i32_1 = arith.constant 0 : i32
    %c0_i32_2 = arith.constant 0 : i32
    return %arg0, %c0_i32, %c0_i32_0, %c0_i32_1 : i32, i32, i32, i32
  }
  func.func @transform_1(%arg0: i32, %arg1: i32) -> (i32, i32, i32) {
    %c0_i32 = arith.constant 0 : i32
    %c0_i32_0 = arith.constant 0 : i32
    %c0_i32_1 = arith.constant 0 : i32
    %c0_i32_2 = arith.constant 0 : i32
    return %c0_i32, %c0_i32_0, %c0_i32_1 : i32, i32, i32
  }
  func.func @transform_2(%arg0: i32, %arg1: i32) -> (i32, i32) {
    %c0_i32 = arith.constant 0 : i32
    %c0_i32_0 = arith.constant 0 : i32
    %c0_i32_1 = arith.constant 0 : i32
    return %c0_i32, %c0_i32_0 : i32, i32
  }
  func.func @transform_3(%arg0: i32, %arg1: i32) -> (i32, i32, i32, i32) {
    %c0_i32 = arith.constant 0 : i32
    %c0_i32_0 = arith.constant 0 : i32
    %c0_i32_1 = arith.constant 0 : i32
    return %arg0, %arg1, %c0_i32, %c0_i32_0 : i32, i32, i32, i32
  }
  func.func @transform_4(%arg0: i32, %arg1: i32) -> (i32, i32, i32, i32) {
    %c0_i32 = arith.constant 0 : i32
    %c0_i32_0 = arith.constant 0 : i32
    %c0_i32_1 = arith.constant 0 : i32
    return %arg0, %arg1, %c0_i32, %c0_i32_0 : i32, i32, i32, i32
  }
}

</mosaic_0001>

<bundles_post_ra>
// kernel: unet_upsample_block.1
= control target key start
LH: loop header
LB: loop body
LE: loop exit
PB: predicated region body
PF: predicated region fallthrough
CT: control target
= control target key end

     0   :  { %s11025_s15 = smov 0   ;;  %s11027_s16 = smov 0   ;;  %s15723_s0 = inlined_call_operand.vmem [shape: bf16[2,18,18,4], index: 0, kind: input, shape index: {}]   ;;  %s15724_s1 = inlined_call_operand.vmem [shape: bf16[9,4,4], index: 1, kind: input, shape index: {}]   ;;  %s15725_s2 = inlined_call_operand.vmem [shape: f32[1,4], index: 2, kind: input, shape index: {}]   ;;  %s15726_s3 = inlined_call_operand.vmem [shape: f32[2,32,32,4], index: 3, kind: input, shape index: {}]   ;;  %s15727_s4 = inlined_call_operand.vmem [shape: f32[2,32,32,8], index: 4, kind: output, shape index: {}]  }
   0x1   :  { %s11029_s17 = smov 0   ;;  %s11031_s18 = smov 0  }
   0x2   :  { %s11033_s19 = smov 0  }
   0x3 LB: > { %s23_s20 = sadd.s32 1, %s10985_s17  ;;  %s26_s21 = sadd.s32 1, %s10989_s18  ;;  %s10993_s19 = sphi %s11033_s19, %s14_s19   ;;  %s10989_s18 = sphi %s11031_s18, %s16598_s18   ;;  %s10985_s17 = sphi %s11029_s17, %s16597_s17   ;;  %s10981_s16 = sphi %s11027_s16, %s16596_s16   ;;  %s10977_s15 = sphi %s11025_s15, %s16595_s15  }
   0x4   : > { %p24_p0 = scmp.ge.s32.totalorder %s23_s20, 2  ;;  %p9971_p1 = scmp.ge.s32.totalorder %s10993_s19, 1 }
   0x5   : > { %p194_p2 = scmp.lt.s32.totalorder %s10993_s19, 5 }
   0x6   : > { %s16600_s20 = smov (%p24_p0, %s23_s20), 0  ;;  %s16602_s21 = smov (!%p24_p0, %s26_s21), %s10989_s18 }
   0x7   : > { %p195_p3 = pnand %p9971_p1, %p194_p2  ;;  %p28_p4 = scmp.ge.s32.totalorder %s16602_s21, 2 }
   0x9   : > { %s16604_s21 = smov (%p28_p4, %s16602_s21), 0  ;;  %198 = sbr.rel (%p195_p3) target bundleno = 988 (0x3dc), region = 36 }
  0x10   : > { %vm538_vm0 = vcmask 1041408   ;;  %v11060_v0 = vld [vmem:[%s15724_s1 + $0x4] sm:$0x3]  ;;  %v9984_v1 = vld [vmem:[%s15724_s1 + $0x2] sm:$0x3]  ;;  %p235_p5 = scmp.lt.s32.totalorder %s10981_s16, 1 }
  0x11   : > { %10852 = vmatprep.subr.msk.bf16.mxu0 %vm538_vm0, %v11060_v0  ;;  %v11069_v2 = vsel %vm538_vm0, %v11060_v0, 0  ;;  %v11072_v3 = vsel %vm538_vm0, %v9984_v1, 0  ;;  %10850 = vmatprep.subr.msk.bf16.mxu1 %vm538_vm0, %v9984_v1  ;;  %s10330_s26 = smul.u32 96, %s10977_s15  ;;  %v283_v4 = vld [vmem:[%s15724_s1] sm:$0x3]  ;;  %vm827_vm1 = vcmask 1042432  }
  0x12   : > { %10487 = vmatpush3.bf16.msra.mxu0 %v11069_v2  ;;  %s16606_s16 = smov (!%p235_p5, %s10981_s16), 1  ;;  %10451 = vmatpush3.bf16.msra.mxu1 %v11072_v3  ;;  %v10060_v5 = vld [vmem:[%s15724_s1 + $0x6] sm:$0x3]  ;;  %vm828_vm2 = vcmask 1046532   ;;  %v11092_v6 = vld [vmem:[%s15724_s1 + $0x8] sm:$0x3] }
  0x13   : > { %s10860_s5 = smul.u32 216, %s16606_s16  ;;  %10851 = vmatprep.subr.msk.bf16.mxu1 %vm538_vm0, %v283_v4  ;;  %10854 = vmatprep.subr.msk.bf16.mxu0 %vm538_vm0, %v10060_v5  ;;  %vm513_vm3 = vcmask 31744   ;;  %vm292_vm4 = vsmask.f32 3328  ;;  %vm11102_vm5 = vmor %vm827_vm1, %vm828_vm2  ;;  %vm293_vm6 = vsmask.f32 7440 }
  0x14   : > { %v11107_v8 = vsel %vm538_vm0, %v283_v4, 0  ;;  %v11110_v9 = vsel %vm538_vm0, %v10060_v5, 0  ;;  %v11114_v10 = vsel %vm538_vm0, %v11092_v6, 0  ;;  %vm11157_vm7 = vmor %vm292_vm4, %vm293_vm6  ;;  %s9981_s12 = sshll.u32 %s10977_s15, 3  ;;  %vm10996_vm8 = vmmov 0   ;;  %s9973_s6 = sshll.u32 %s10977_s15, 4 }
  0x15   : > { %s11097_s10 = scalar_lea.vmem %s15723_s0, %s10860_s5  ;;  %s11288_s13 = sadd.s32 4294967295, %s9981_s12  ;;  %vm2768_vm9 = vsmask.f32 7424  ;;  %vm2872_vm10 = vcmask 1046528   ;;  %vm3831_vm11 = vcmask 1040384   ;;  %vm9765_vm12 = vcmask 64544  }
  0x16   : > { %s11100_s11 = scalar_lea.vmem %s11097_s10, %s10330_s26  ;;  %p2752_p6 = scmp.gt.s32.totalorder %s11288_s13, 0 }
  0x17   : > { %v11117_v11 = vld [vmem:[%s11100_s11 + $0x4] sm:$0xf]  ;;  %v284_v12 = vld [vmem:[%s11100_s11 + $0x8] sm:$0x1]  ;;  %v803_v13 = vld [vmem:[%s11100_s11] sm:$0xe] }
  0x18   : > { %v10017_v14 = vrot.slane %v803_v13, 9  ;;  %v832_v15 = vrot.slane %v11117_v11, 5  ;;  %v835_v16 = vrot.slane %v284_v12, 5  ;;  %v11123_v17 = vld [vmem:[%s11100_s11 + $0x10] sm:$0xf]  ;;  %v305_v18 = vshll.u32 %v11117_v11, 16 }
  0x19   : > { %v285_v19 = vld [vmem:[%s11100_s11 + $0x14] sm:$0x1]  ;;  %v804_v20 = vld [vmem:[%s11100_s11 + $0xc] sm:$0xe]  ;;  %v839_v21 = vrot.slane %v11123_v17, 5  ;;  %v309_v22 = vshrl.u32 %v11117_v11, 16 }
  0x1a   : > { %v833_v23 = vsel %vm11102_vm5, %v10017_v14, %v832_v15  ;;  %v834_v24 = vrot.slane %v832_v15, 4  ;;  %v10018_v25 = vrot.slane %v804_v20, 9  ;;  %v842_v26 = vrot.slane %v285_v19, 5  ;;  %v11133_v27 = vld [vmem:[%s11100_s11] sm:$0xf]  ;;  %s16608_s13 = smov (!%p2752_p6, %s11288_s13), 0 }
  0x1b   : > { %v841_v28 = vrot.slane %v839_v21, 4  ;;  %v296_v29 = vshrl.u32 %v11133_v27, 16  ;;  %v299_v30 = vshll.u32 %v11133_v27, 16  ;;  %v307_v31 = vrot.slane %v305_v18, 5  ;;  %v11138_v32 = vld [vmem:[%s11100_s11 + $0xc] sm:$0xf] }
  0x1c   : > { %v836_v33 = vsel %vm11102_vm5, %v834_v24, %v835_v16  ;;  %v840_v34 = vsel %vm11102_vm5, %v10018_v25, %v839_v21  ;;  %v311_v35 = vrot.slane %v309_v22, 4  ;;  %v315_v36 = vshll.u32 %v284_v12, 16  ;;  %v805_v41 = vld [vmem:[%s11100_s11 + $0x18] sm:$0xe]  ;;  %v11149_v46 = vld [vmem:[%s11100_s11 + $0x1c] sm:$0xf] }
  0x1d   : > { %v10026_v37 = vcombine.low %v833_v23, %v836_v33  ;;  %v843_v38 = vsel %vm11102_vm5, %v841_v28, %v842_v26  ;;  %v298_v39 = vrot.slane %v296_v29, 4  ;;  %v301_v40 = vrot.slane %v299_v30, 5  ;;  %v11152_v47 = vld [vmem:[%s11100_s11 + $0x20] sm:$0x1]  ;;  %v11165_v53 = vld [vmem:[%s11100_s11 + $0x28] sm:$0xf] }
  0x1e   : > { %v10027_v42 = vcombine.low %v840_v34, %v843_v38  ;;  %v312_v43 = vor.u32 %v311_v35, %v307_v31  ;;  %v317_v44 = vrot.slane %v315_v36, 5  ;;  %v320_v45 = vshrl.u32 %v11138_v32, 16  ;;  %v806_v58 = vld [vmem:[%s11100_s11 + $0x24] sm:$0xe]  ;;  %v11171_v63 = vld [vmem:[%s11100_s11 + $0x2c] sm:$0x1] }
  0x1f   : > { %10488 = vmatprep.mubr.msk.bf16.mxu0 %vm513_vm3, %v10026_v37  ;;  %v302_v49 = vor.u32 %v301_v40, %v298_v39  ;;  %v323_v50 = vshll.u32 %v11138_v32, 16  ;;  %v329_v51 = vshll.u32 %v11123_v17, 16  ;;  %v333_v52 = vshrl.u32 %v11123_v17, 16  ;;  %v11178_v13 = vld [vmem:[%s11100_s11 + $0x18] sm:$0xf]  ;;  %s10331_s23 = smul.u32 12, %s16608_s13 }
  0x20   : > { %10489 = vmatmul.mubr.msk.bf16.vlgmr.msra.gmra.mrb[0].mxu0 %vm513_vm3, %v10027_v42  ;;  %v313_v54 = vrot.slane %v312_v43, 4  ;;  %v322_v55 = vrot.slane %v320_v45, 4  ;;  %v339_v56 = vshll.u32 %v285_v19, 16  ;;  %v10019_v57 = vrot.slane %v805_v41, 9  ;;  %v11206_v41 = vld [vmem:[%s11100_s11 + $0x34] sm:$0xf] }
  0x21   : > { %v303_v59 = vrot.slane %v302_v49, 4  ;;  %v325_v60 = vrot.slane %v323_v50, 5  ;;  %v331_v61 = vrot.slane %v329_v51, 5  ;;  %v335_v62 = vrot.slane %v333_v52, 4  ;;  %10505 = vmatpush3.bf16.msra.mxu0 %v11110_v9  ;;  %v11213_v49 = vld [vmem:[%s11100_s11 + $0x38] sm:$0x1]  ;;  %s11366_s24 = scalar_lea.vmem %s11097_s10, %s10331_s23 }
  0x22   : > { %v318_v1 = vsel %vm11157_vm7, %v313_v54, %v317_v44  ;;  %v341_v4 = vrot.slane %v339_v56, 5  ;;  %v846_v5 = vrot.slane %v11149_v46, 5  ;;  %v849_v12 = vrot.slane %v11152_v47, 5  ;;  %10855 = vmatprep.subr.msk.bf16.mxu0 %vm538_vm0, %v11092_v6  ;;  %s11484_s25 = sadd.s32 8, %s9981_s12  ;;  %p243_p8 = scmp.lt.s32.totalorder %s9973_s6, 31 }
  0x23   : > { %v308_v14 = vsel %vm11157_vm7, %v303_v59, %v307_v31  ;;  %v326_v15 = vor.u32 %v325_v60, %v322_v55  ;;  %v336_v16 = vor.u32 %v335_v62, %v331_v61  ;;  %v10020_v18 = vrot.slane %v806_v58, 9  ;;  %v11196_v31 = vld [vmem:[%s11100_s11 + $0x24] sm:$0xf]  ;;  %v807_v55 = vld [vmem:[%s11100_s11 + $0x30] sm:$0xe]  ;;  %p3283_p7 = scmp.lt.s32.totalorder %s11484_s25, 15 }
  0x24   : > { %v9985_v19 = vcombine.low %v308_v14, %v318_v1  ;;  %v847_v20 = vsel %vm11102_vm5, %v10019_v57, %v846_v5  ;;  %v848_v21 = vrot.slane %v846_v5, 4  ;;  %v853_v22 = vrot.slane %v11165_v53, 5  ;;  %v11223_v59 = vld [vmem:[%s11100_s11 + $0x40] sm:$0xf]  ;;  %v11226_v60 = vld [vmem:[%s11100_s11 + $0x44] sm:$0x1] }
  0x25   : > { %v327_v23 = vrot.slane %v326_v15, 4  ;;  %v337_v24 = vrot.slane %v336_v16, 4  ;;  %v856_v25 = vrot.slane %v11171_v63, 5  ;;  %v344_v6 = vshrl.u32 %v11178_v13, 16  ;;  %v808_v5 = vld [vmem:[%s11100_s11 + $0x3c] sm:$0xe] }
  0x26   : > { %10452 = vmatprep.mubr.msk.bf16.mxu1 %vm513_vm3, %v9985_v19  ;;  %v850_v26 = vsel %vm11102_vm5, %v848_v21, %v849_v12  ;;  %v854_v28 = vsel %vm11102_vm5, %v10020_v18, %v853_v22  ;;  %v855_v29 = vrot.slane %v853_v22, 4  ;;  %v347_v30 = vshll.u32 %v11178_v13, 16  ;;  %v11234_v18 = vld [vmem:[%s11100_s11 + $0x30] sm:$0xf]  ;;  %s16610_s25 = smov (!%p3283_p7, %s11484_s25), 15  ;;  %s9975_s15 = sshll.u32 %s16606_s16, 7 }
  0x27   : > { %v332_v33 = vsel %vm11157_vm7, %v327_v23, %v331_v61  ;;  %v342_v34 = vsel %vm11157_vm7, %v337_v24, %v341_v4  ;;  %v10028_v35 = vcombine.low %v847_v20, %v850_v26  ;;  %v346_v36 = vrot.slane %v344_v6, 4  ;;  %s10332_s28 = smul.u32 12, %s16610_s25  ;;  %s16612_s6 = smov (!%p243_p8, %s9973_s6), 31 }
  0x28   : > { %v9986_v37 = vcombine.low %v332_v33, %v342_v34  ;;  %v857_v38 = vsel %vm11102_vm5, %v855_v29, %v856_v25  ;;  %v349_v39 = vrot.slane %v347_v30, 5  ;;  %v353_v40 = vshll.u32 %v11149_v46, 16  ;;  %v11244_v29 = vld [vmem:[%s11100_s11 + $0x3c] sm:$0xf]  ;;  %s9974_s7 = sshll.u32 %s16612_s6, 2  ;;  %s10997_s13 = smov 4  }
  0x29   : > { %10492 = vmatprep.mubr.msk.bf16.mxu0 %vm513_vm3, %v10028_v35  ;;  %v10029_v42 = vcombine.low %v854_v28, %v857_v38  ;;  %v357_v43 = vshrl.u32 %v11149_v46, 16  ;;  %v363_v44 = vshll.u32 %v11152_v47, 16  ;;  %v368_v45 = vshrl.u32 %v11196_v31, 16  ;;  %s11571_s29 = scalar_lea.vmem %s11097_s10, %s10332_s28  ;;  %s11686_s8 = sadd.s32 %s9975_s15, %s9974_s7 }
  0x2a   : > { %10453 = vmatmul.mubr.msk.bf16.vlgmr.msra.gmra.mrb[0].mxu1 %vm513_vm3, %v9986_v37  ;;  %v350_v50 = vor.u32 %v349_v39, %v346_v36  ;;  %v355_v51 = vrot.slane %v353_v40, 5  ;;  %v371_v52 = vshll.u32 %v11196_v31, 16  ;;  %v377_v54 = vshll.u32 %v11165_v53, 16  ;;  %s9976_s16 = sshll.u32 %s11686_s8, 3 }
  0x2b   : > { %10469 = vmatpush3.bf16.msra.mxu1 %v11107_v8  ;;  %10493 = vmatmul.mubr.msk.bf16.gmra.mrb[4].mxu0 %vm513_vm3, %v10029_v42  ;;  %v359_v47 = vrot.slane %v357_v43, 4  ;;  %v365_v56 = vrot.slane %v363_v44, 5  ;;  %v370_v57 = vrot.slane %v368_v45, 4  ;;  %v381_v58 = vshrl.u32 %v11165_v53, 16  ;;  %s11702_s12 = scalar_lea.vmem %s15726_s3, %s9976_s16  ;;  %s13003_s26 = scalar_lea.vmem %s15727_s4, %s9976_s16 }
  0x2c   : > { %v351_v61 = vrot.slane %v350_v50, 4  ;;  %v373_v62 = vrot.slane %v371_v52, 5  ;;  %v379_v1 = vrot.slane %v377_v54, 5  ;;  %v387_v4 = vshll.u32 %v11171_v63, 16  ;;  %10853 = vmatprep.subr.msk.bf16.mxu1 %vm538_vm0, %v11060_v0  ;;  %v9493_v7 = vld [vmem:[%s11702_s12 + $0x180] sm:$0xff] }
  0x2d   : > { %v360_v12 = vor.u32 %v359_v47, %v355_v51  ;;  %v383_v14 = vrot.slane %v381_v58, 4  ;;  %v10021_v15 = vrot.slane %v807_v55, 9  ;;  %v860_v16 = vrot.slane %v11206_v41, 5  ;;  %v11269_v58 = vld [vmem:[%s11100_s11 + $0x48] sm:$0xf] }
  0x2e   : > { %v356_v19 = vsel %vm11157_vm7, %v351_v61, %v355_v51  ;;  %v374_v20 = vor.u32 %v373_v62, %v370_v57  ;;  %v389_v21 = vrot.slane %v387_v4, 5  ;;  %v863_v22 = vrot.slane %v11213_v49, 5  ;;  %v10906_v57 = vld [vmem:[%s11100_s11 + $0xc] sm:$0xff]  }
  0x2f   : > { %v361_v63 = vrot.slane %v360_v12, 4  ;;  %v384_v23 = vor.u32 %v383_v14, %v379_v1  ;;  %v861_v0 = vsel %vm11102_vm5, %v10021_v15, %v860_v16  ;;  %v862_v24 = vrot.slane %v860_v16, 4 }
  0x30   : > { %v375_v25 = vrot.slane %v374_v20, 4  ;;  %v10022_v6 = vrot.slane %v808_v5, 9  ;;  %v867_v26 = vrot.slane %v11223_v59, 5  ;;  %v870_v28 = vrot.slane %v11226_v60, 5  ;;  %v11278_v20 = vld [vmem:[%s11100_s11 + $0x4c] sm:$0xf] }
  0x31   : > { %v366_v30 = vsel %vm11157_vm7, %v361_v63, %v365_v56  ;;  %v385_v33 = vrot.slane %v384_v23, 4  ;;  %v864_v34 = vsel %vm11102_vm5, %v862_v24, %v863_v22  ;;  %v392_v35 = vshrl.u32 %v11234_v18, 16 }
  0x32   : > { %v9987_v36 = vcombine.low %v356_v19, %v366_v30  ;;  %v380_v37 = vsel %vm11157_vm7, %v375_v25, %v379_v1  ;;  %v10030_v38 = vcombine.low %v861_v0, %v864_v34  ;;  %v868_v39 = vsel %vm11102_vm5, %v10022_v6, %v867_v26  ;;  %v11283_v0 = vld [vmem:[%s11100_s11 + $0x50] sm:$0x1] }
  0x33   : > { %v390_v40 = vsel %vm11157_vm7, %v385_v33, %v389_v21  ;;  %v869_v42 = vrot.slane %v867_v26, 4  ;;  %v394_v43 = vrot.slane %v392_v35, 4  ;;  %v395_v44 = vshll.u32 %v11234_v18, 16  ;;  %v11294_v35 = vld [vmem:[%s11100_s11 + $0x54] sm:$0xf] }
  0x34   : > { %10456 = vmatprep.mubr.msk.bf16.mxu1 %vm513_vm3, %v9987_v36  ;;  %v9988_v45 = vcombine.low %v380_v37, %v390_v40  ;;  %10496 = vmatprep.mubr.msk.bf16.mxu0 %vm513_vm3, %v10030_v38  ;;  %v401_v50 = vshll.u32 %v11206_v41, 16  ;;  %v405_v51 = vshrl.u32 %v11206_v41, 16  ;;  %v411_v52 = vshll.u32 %v11213_v49, 16  ;;  %v10907_v38 = vld [vmem:[%s11100_s11 + $0x18] sm:$0xff]  }
  0x35   : > { %v871_v54 = vsel %vm11102_vm5, %v869_v42, %v870_v28  ;;  %v397_v55 = vrot.slane %v395_v44, 5  ;;  %v416_v47 = vshrl.u32 %v11244_v29, 16  ;;  %v419_v56 = vshll.u32 %v11244_v29, 16  ;;  %v11302_v42 = vld [vmem:[%s11100_s11 + $0x58] sm:$0xf] }
  0x36   : > { %10457 = vmatmul.mubr.msk.bf16.gmra.mrb[4].mxu1 %vm513_vm3, %v9988_v45  ;;  %v10031_v61 = vcombine.low %v868_v39, %v871_v54  ;;  %v403_v62 = vrot.slane %v401_v50, 5  ;;  %v407_v1 = vrot.slane %v405_v51, 4  ;;  %v413_v4 = vrot.slane %v411_v52, 5  ;;  %v11308_v51 = vld [vmem:[%s11100_s11 + $0x5c] sm:$0x1]  ;;  %v10908_v52 = vld [vmem:[%s11100_s11 + $0x24] sm:$0xff]  }
  0x37   : > { %v398_v49 = vor.u32 %v397_v55, %v394_v43  ;;  %v418_v5 = vrot.slane %v416_v47, 4  ;;  %v421_v12 = vrot.slane %v419_v56, 5  ;;  %v425_v14 = vshll.u32 %v11223_v59, 16 }
  0x38   : > { %10497 = vmatmul.mubr.msk.bf16.gmra.mrb[8].mxu0 %vm513_vm3, %v10031_v61  ;;  %v408_v15 = vor.u32 %v407_v1, %v403_v62  ;;  %v429_v16 = vshrl.u32 %v11223_v59, 16  ;;  %v435_v19 = vshll.u32 %v11226_v60, 16  ;;  %v440_v21 = vshrl.u32 %v11269_v58, 16 }
  0x39   : > { %v399_v22 = vrot.slane %v398_v49, 4  ;;  %v422_v63 = vor.u32 %v421_v12, %v418_v5  ;;  %v427_v23 = vrot.slane %v425_v14, 5  ;;  %10506 = vmatprep.mubr.msk.bf16.mxu0 %vm513_vm3, %v10906_v57  ;;  %v443_v24 = vshll.u32 %v11269_v58, 16 }
  0x3a   : > { %v409_v60 = vrot.slane %v408_v15, 4  ;;  %v431_v25 = vrot.slane %v429_v16, 4  ;;  %v437_v6 = vrot.slane %v435_v19, 5  ;;  %v442_v26 = vrot.slane %v440_v21, 4 }
  0x3b   : > { %v404_v28 = vsel %vm11157_vm7, %v399_v22, %v403_v62  ;;  %v423_v30 = vrot.slane %v422_v63, 4  ;;  %v445_v33 = vrot.slane %v443_v24, 5  ;;  %v449_v34 = vshll.u32 %v11278_v20, 16  ;;  %v10077_v24 = vld [vmem:[%s11100_s11 + $0xc] sm:$0xf] }
  0x3c   : > { %v414_v36 = vsel %vm11157_vm7, %v409_v60, %v413_v4  ;;  %v432_v37 = vor.u32 %v431_v25, %v427_v23  ;;  %v453_v39 = vshrl.u32 %v11278_v20, 16  ;;  %v459_v40 = vshll.u32 %v11283_v0, 16  ;;  %v10134_v4 = vld [vmem:[%s15724_s1 + $0xa] sm:$0x3]  ;;  %v11336_v60 = vld [vmem:[%s11100_s11 + $0x10] sm:$0xf] }
  0x3d   : > { %v9989_v43 = vcombine.low %v404_v28, %v414_v36  ;;  %v428_v44 = vsel %vm11157_vm7, %v423_v30, %v427_v23  ;;  %v446_v45 = vor.u32 %v445_v33, %v442_v26  ;;  %v451_v50 = vrot.slane %v449_v34, 5  ;;  %v10909_v28 = vld [vmem:[%s11100_s11 + $0x30] sm:$0xff]   ;;  %v10080_v30 = vld [vmem:[%s11100_s11 + $0x18] sm:$0xf]  ;;  %v10912_v36 = vld [vmem:[%s11100_s11 + $0x3c] sm:$0xff]  }
  0x3e   : > { %v433_v54 = vrot.slane %v432_v37, 4  ;;  %v455_v55 = vrot.slane %v453_v39, 4  ;;  %v461_v47 = vrot.slane %v459_v40, 5  ;;  %v464_v56 = vshrl.u32 %v11294_v35, 16 }
  0x3f   : > { %10460 = vmatprep.mubr.msk.bf16.mxu1 %vm513_vm3, %v9989_v43  ;;  %v447_v57 = vrot.slane %v446_v45, 4  ;;  %v467_v61 = vshll.u32 %v11294_v35, 16  ;;  %v473_v62 = vshll.u32 %v11302_v42, 16  ;;  %v477_v1 = vshrl.u32 %v11302_v42, 16 }
  0x40   : > { %v438_v49 = vsel %vm11157_vm7, %v433_v54, %v437_v6  ;;  %10507 = vmatmul.mubr.msk.bf16.vlgmr.msra.gmra.mrb[0].mxu0 %vm513_vm3, %v10907_v38  ;;  %v456_v5 = vor.u32 %v455_v55, %v451_v50  ;;  %v466_v12 = vrot.slane %v464_v56, 4  ;;  %v483_v14 = vshll.u32 %v11308_v51, 16  ;;  %v11345_v38 = vld [vmem:[%s11100_s11 + $0x14] sm:$0x1] }
  0x41   : > { %v9990_v15 = vcombine.low %v428_v44, %v438_v49  ;;  %v469_v16 = vrot.slane %v467_v61, 5  ;;  %v475_v19 = vrot.slane %v473_v62, 5  ;;  %10510 = vmatprep.mubr.msk.bf16.mxu0 %vm513_vm3, %v10908_v52  ;;  %10523 = vmatpush3.bf16.msra.mxu0 %v11114_v10  ;;  %v452_v21 = vsel %vm11157_vm7, %v447_v57, %v451_v50  ;;  %v11355_v52 = vld [vmem:[%s11100_s11 + $0x1c] sm:$0xf]  ;;  %v11363_v61 = vld [vmem:[%s11100_s11 + $0x20] sm:$0x1] }
  0x42   : > { %v457_v22 = vrot.slane %v456_v5, 4  ;;  %v479_v63 = vrot.slane %v477_v1, 4  ;;  %10856 = vmatprep.subr.msk.bf16.mxu0 %vm538_vm0, %v10134_v4  ;;  %v485_v26 = vrot.slane %v483_v14, 5  ;;  %v1279_v39 = vshrl.u32 %v10077_v24, 16 }
  0x43   : > { %10461 = vmatmul.mubr.msk.bf16.gmra.mrb[8].mxu1 %vm513_vm3, %v9990_v15  ;;  %v470_v23 = vor.u32 %v469_v16, %v466_v12  ;;  %v1282_v40 = vshll.u32 %v10077_v24, 16  ;;  %v1288_v43 = vshll.u32 %v11336_v60, 16  ;;  %v10001_v45 = vcombine.low %v11133_v27, %v11117_v11  ;;  %v10083_v15 = vld [vmem:[%s11100_s11 + $0x24] sm:$0xf] }
  0x44   : > { %v462_v25 = vsel %vm11157_vm7, %v457_v22, %v461_v47  ;;  %v480_v6 = vor.u32 %v479_v63, %v475_v19  ;;  %v1292_v50 = vshrl.u32 %v11336_v60, 16  ;;  %v1303_v54 = vshrl.u32 %v10080_v30, 16  ;;  %v11379_v22 = vld [vmem:[%s11100_s11 + $0x28] sm:$0xf] }
  0x45   : > { %v9991_v33 = vcombine.low %v452_v21, %v462_v25  ;;  %v471_v34 = vrot.slane %v470_v23, 4  ;;  %v1281_v47 = vrot.slane %v1279_v39, 4  ;;  %v1284_v56 = vrot.slane %v1282_v40, 5  ;;  %v10913_v23 = vld [vmem:[%s11100_s11 + $0x48] sm:$0xff]   ;;  %v10086_v40 = vld [vmem:[%s11100_s11 + $0x30] sm:$0xf] }
  0x46   : > { %v481_v37 = vrot.slane %v480_v6, 4  ;;  %v11360_v57 = vrot.slane %v1288_v43, 5  ;;  %v1294_v27 = vrot.slane %v1292_v50, 4  ;;  %v1298_v62 = vshll.u32 %v11345_v38, 16 }
  0x47   : > { %10464 = vmatprep.mubr.msk.bf16.mxu1 %vm513_vm3, %v9991_v33  ;;  %v476_v44 = vsel %vm11157_vm7, %v471_v34, %v475_v19  ;;  %v1305_v1 = vrot.slane %v1303_v54, 4  ;;  %v1285_v49 = vor.u32 %v1284_v56, %v1281_v47  ;;  %v1306_v5 = vshll.u32 %v10080_v30, 16 }
  0x48   : > { %v486_v55 = vsel %vm11157_vm7, %v481_v37, %v485_v26  ;;  %10511 = vmatmul.mubr.msk.bf16.gmra.mrb[4].mxu0 %vm513_vm3, %v10909_v28  ;;  %v1312_v12 = vshll.u32 %v11355_v52, 16  ;;  %v1316_v14 = vshrl.u32 %v11355_v52, 16  ;;  %v10002_v16 = vcombine.low %v11138_v32, %v11123_v17  ;;  %v10916_v32 = vld [vmem:[%s11100_s11 + $0x54] sm:$0xff]   ;;  %v11393_v37 = vld [vmem:[%s11100_s11 + $0x2c] sm:$0x1] }
  0x49   : > { %v9992_v11 = vcombine.low %v476_v44, %v486_v55  ;;  %10514 = vmatprep.mubr.msk.bf16.mxu0 %vm513_vm3, %v10912_v36  ;;  %v1295_v19 = vor.u32 %v1294_v27, %v11360_v57  ;;  %v1322_v21 = vshll.u32 %v11363_v61, 16  ;;  %v11382_v63 = vsel %vm538_vm0, %v10134_v4, 0 }
  0x4a   : > { %v1286_v24 = vrot.slane %v1285_v49, 4  ;;  %v1308_v25 = vrot.slane %v1306_v5, 5  ;;  %v11386_v6 = vrot.slane %v1312_v12, 5  ;;  %v1318_v26 = vrot.slane %v1316_v14, 4  ;;  %v11420_v49 = vld [vmem:[%s11100_s11 + $0x38] sm:$0x1] }
  0x4b   : > { %10465 = vmatmul.mubr.msk.bf16.gmra.mrb[12].mxu1 %vm513_vm3, %v9992_v11  ;;  %v10003_v17 = vcombine.low %v11178_v13, %v11149_v46  ;;  %v1300_v28 = vrot.slane %v1298_v62, 5  ;;  %v1327_v30 = vshrl.u32 %v10083_v15, 16  ;;  %v1330_v33 = vshll.u32 %v10083_v15, 16  ;;  %v11401_v13 = vld [vmem:[%s11100_s11 + $0x34] sm:$0xf]  ;;  %v10917_v14 = vld [vmem:[%s11100_s11 + $0x60] sm:$0xff]  }
  0x4c   : > { %10470 = vmatprep.mubr.msk.bf16.mxu1 %vm513_vm3, %v10001_v45  ;;  %v1296_v34 = vrot.slane %v1295_v19, 4  ;;  %v1309_v4 = vor.u32 %v1308_v25, %v1305_v1  ;;  %v1319_v36 = vor.u32 %v1318_v26, %v11386_v6  ;;  %v1336_v39 = vshll.u32 %v11379_v22, 16  ;;  %v10089_v25 = vld [vmem:[%s11100_s11 + $0x3c] sm:$0xf] }
  0x4d   : > { %v10004_v43 = vcombine.low %v11196_v31, %v11165_v53  ;;  %v1329_v44 = vrot.slane %v1327_v30, 4  ;;  %v1332_v45 = vrot.slane %v1330_v33, 5  ;;  %v1340_v46 = vshrl.u32 %v11379_v22, 16  ;;  %v10095_v53 = vld [vmem:[%s11100_s11 + $0x54] sm:$0xf] }
  0x4e   : > { %v1291_v50 = vsel %vm11157_vm7, %v1286_v24, %v11360_v57  ;;  %v11407_v54 = vrot.slane %v1309_v4, 4  ;;  %v11409_v55 = vrot.slane %v1322_v21, 5  ;;  %v11411_v47 = vrot.slane %v1336_v39, 5  ;;  %v809_v24 = vld [vmem:[%s11100_s11 + $0x48] sm:$0xe] }
  0x4f   : > { %v11414_v56 = vrot.slane %v1319_v36, 4  ;;  %v1333_v11 = vor.u32 %v1332_v45, %v1329_v44  ;;  %v1342_v27 = vrot.slane %v1340_v46, 4  ;;  %v1351_v62 = vshrl.u32 %v10086_v40, 16 }
  0x50   : > { %10515 = vmatmul.mubr.msk.bf16.gmra.mrb[8].mxu0 %vm513_vm3, %v10913_v23  ;;  %v1301_v1 = vsel %vm11157_vm7, %v1296_v34, %v1300_v28  ;;  %v1346_v57 = vshll.u32 %v11393_v37, 16  ;;  %v1354_v5 = vshll.u32 %v10086_v40, 16  ;;  %v1360_v12 = vshll.u32 %v11401_v13, 16  ;;  %v11445_v34 = vld [vmem:[%s11100_s11 + $0x40] sm:$0xf] }
  0x51   : > { %10518 = vmatprep.mubr.msk.bf16.mxu0 %vm513_vm3, %v10916_v32  ;;  %v10005_v15 = vcombine.low %v11234_v18, %v11206_v41  ;;  %v10006_v19 = vcombine.low %v11244_v29, %v11223_v59  ;;  %v1334_v21 = vrot.slane %v1333_v11, 4  ;;  %v1343_v23 = vor.u32 %v1342_v27, %v11411_v47 }
  0x52   : > { %v1353_v26 = vrot.slane %v1351_v62, 4  ;;  %v1362_v32 = vrot.slane %v1360_v12, 5  ;;  %v1364_v28 = vshrl.u32 %v11401_v13, 16  ;;  %v10102_v41 = vcombine.low %v1291_v50, %v1301_v1  ;;  %v11461_v12 = vld [vmem:[%s11100_s11 + $0x4c] sm:$0xf] }
  0x53   : > { %10471 = vmatmul.mubr.msk.bf16.vlgmr.msra.gmra.mrb[0].mxu1 %vm513_vm3, %v10002_v16  ;;  %v1356_v16 = vrot.slane %v1354_v5, 5  ;;  %v1315_v18 = vsel %vm11157_vm7, %v11407_v54, %v11386_v6  ;;  %v1325_v30 = vsel %vm11157_vm7, %v11414_v56, %v11409_v55  ;;  %v1370_v33 = vshll.u32 %v11420_v49, 16  ;;  %v10092_v5 = vld [vmem:[%s11100_s11 + $0x48] sm:$0xf] }
  0x54   : > { %10721 = vmatpush3.bf16.msra.mxu1 %v11069_v2  ;;  %10474 = vmatprep.mubr.msk.bf16.mxu1 %vm513_vm3, %v10003_v17  ;;  %v11448_v17 = vld [vmem:[%s11100_s11 + $0x44] sm:$0x1]  ;;  %v15728_v4 = vmov 0.0   ;;  %v1344_v36 = vrot.slane %v1343_v23, 4  ;;  %v1348_v39 = vrot.slane %v1346_v57, 5  ;;  %v1366_v44 = vrot.slane %v1364_v28, 4 }
  0x55   : > { %10612 = vmatprep.subr.bf16.mxu1 %v15728_v4  ;;  %v1357_v40 = vor.u32 %v1356_v16, %v1353_v26  ;;  %v10023_v6 = vrot.slane %v809_v24, 9  ;;  %v874_v45 = vrot.slane %v11278_v20, 5  ;;  %v1375_v46 = vshrl.u32 %v10089_v25, 16  ;;  %v11468_v24 = vld [vmem:[%s11100_s11 + $0x50] sm:$0x1] }
  0x56   : > { %v1378_v50 = vshll.u32 %v10089_v25, 16  ;;  %v1339_v54 = vsel %vm11157_vm7, %v1334_v21, %v11411_v47  ;;  %v1367_v56 = vor.u32 %v1366_v44, %v1362_v32  ;;  %v1372_v11 = vrot.slane %v1370_v33, 5 }
  0x57   : > { %v1358_v55 = vrot.slane %v1357_v40, 4  ;;  %v877_v27 = vrot.slane %v11283_v0, 5  ;;  %v1377_v62 = vrot.slane %v1375_v46, 4  ;;  %v1384_v57 = vshll.u32 %v11445_v34, 16 }
  0x58   : > { %10519 = vmatmul.mubr.msk.bf16.gmra.mrb[12].mxu0 %vm513_vm3, %v10917_v14  ;;  %v1380_v1 = vrot.slane %v1378_v50, 5  ;;  %v1349_v14 = vsel %vm11157_vm7, %v1344_v36, %v1348_v39  ;;  %v1368_v47 = vrot.slane %v1367_v56, 4  ;;  %v1388_v21 = vshrl.u32 %v11445_v34, 16 }
  0x59   : > { %10524 = vmatprep.mubr.msk.bf16.mxu0 %vm513_vm3, %v10102_v41  ;;  %v1394_v23 = vshll.u32 %v11448_v17, 16  ;;  %v10007_v0 = vcombine.low %v11269_v58, %v11278_v20  ;;  %v876_v25 = vrot.slane %v874_v45, 4  ;;  %v1386_v16 = vrot.slane %v1384_v57, 5 }
  0x5a   : > { %v1381_v26 = vor.u32 %v1380_v1, %v1377_v62  ;;  %v10103_v28 = vcombine.low %v1315_v18, %v1325_v30  ;;  %v1363_v41 = vsel %vm11157_vm7, %v1358_v55, %v1362_v32  ;;  %v1373_v33 = vsel %vm11157_vm7, %v1368_v47, %v1372_v11  ;;  %v11496_v32 = vld [vmem:[%s15724_s1 + $0xc] sm:$0x3]  ;;  %v11512_v1 = vld [vmem:[%s11100_s11 + $0x5c] sm:$0x1] }
  0x5b   : > { %10475 = vmatmul.mubr.msk.bf16.gmra.mrb[4].mxu1 %vm513_vm3, %v10004_v43  ;;  %v1390_v36 = vrot.slane %v1388_v21, 4  ;;  %v10104_v31 = vcombine.low %v1339_v54, %v1349_v14  ;;  %v11488_v58 = vsel %vm11102_vm5, %v10023_v6, %v874_v45  ;;  %v1396_v43 = vrot.slane %v1394_v23, 5  ;;  %v10098_v23 = vld [vmem:[%s11100_s11 + $0x60] sm:$0xf] }
  0x5c   : > { %10478 = vmatprep.mubr.msk.bf16.mxu1 %vm513_vm3, %v10005_v15  ;;  %v1382_v20 = vrot.slane %v1381_v26, 4  ;;  %v11491_v15 = vld [vmem:[%s11100_s11 + $0x58] sm:$0xf]  ;;  %v1399_v30 = vshrl.u32 %v10092_v5, 16  ;;  %v1402_v39 = vshll.u32 %v10092_v5, 16  ;;  %v1408_v40 = vshll.u32 %v11461_v12, 16 }
  0x5d   : > { %v1391_v18 = vor.u32 %v1390_v36, %v1386_v16  ;;  %v10105_v44 = vcombine.low %v1363_v41, %v1373_v33  ;;  %v11501_v6 = vsel %vm11102_vm5, %v876_v25, %v877_v27  ;;  %v1412_v45 = vshrl.u32 %v11461_v12, 16  ;;  %v11526_v41 = vld [vmem:[%s11100_s11 + $0x64] sm:$0xf] }
  0x5e   : > { %v1418_v46 = vshll.u32 %v11468_v24, 16  ;;  %v1387_v50 = vsel %vm11157_vm7, %v1382_v20, %v1386_v16  ;;  %v1401_v55 = vrot.slane %v1399_v30, 4  ;;  %v1404_v56 = vrot.slane %v1402_v39, 5 }
  0x5f   : > { %v1392_v54 = vrot.slane %v1391_v18, 4  ;;  %v1410_v11 = vrot.slane %v1408_v40, 5  ;;  %v1414_v27 = vrot.slane %v1412_v45, 4  ;;  %v1423_v57 = vshrl.u32 %v10095_v53, 16 }
  0x60   : > { %10525 = vmatmul.mubr.msk.bf16.vlgmr.msra.gmra.mrb[0].mxu0 %vm513_vm3, %v10103_v28  ;;  %v1420_v62 = vrot.slane %v1418_v46, 5  ;;  %v1405_v14 = vor.u32 %v1404_v56, %v1401_v55  ;;  %v1426_v47 = vshll.u32 %v10095_v53, 16  ;;  %v1432_v21 = vshll.u32 %v11491_v15, 16  ;;  %v810_v55 = vld [vmem:[%s11100_s11 + $0x54] sm:$0xe] }
  0x61   : > { %10528 = vmatprep.mubr.msk.bf16.mxu0 %vm513_vm3, %v10104_v31  ;;  %10541 = vmatpush3.bf16.msra.mxu0 %v11382_v63  ;;  %v1397_v5 = vsel %vm11157_vm7, %v1392_v54, %v1396_v43  ;;  %v1415_v26 = vor.u32 %v1414_v27, %v1410_v11  ;;  %v1425_v16 = vrot.slane %v1423_v57, 4  ;;  %v1436_v28 = vshrl.u32 %v11491_v15, 16 }
  0x62   : > { %10857 = vmatprep.subr.msk.bf16.mxu0 %vm538_vm0, %v11496_v32  ;;  %v10106_v25 = vcombine.low %v1387_v50, %v1397_v5  ;;  %v1406_v33 = vrot.slane %v1405_v14, 4  ;;  %v1428_v36 = vrot.slane %v1426_v47, 5  ;;  %v1434_v53 = vrot.slane %v1432_v21, 5  ;;  %v2757_v14 = vld [vmem:[%s11366_s24] sm:$0xf] }
  0x63   : > { %10479 = vmatmul.mubr.msk.bf16.gmra.mrb[8].mxu1 %vm513_vm3, %v10006_v19  ;;  %v1442_v31 = vshll.u32 %v11512_v1, 16  ;;  %v1416_v59 = vrot.slane %v1415_v26, 4  ;;  %v1438_v29 = vrot.slane %v1436_v28, 4  ;;  %v11536_v19 = vld [vmem:[%s11100_s11 + $0x68] sm:$0x1]  ;;  %v1447_v20 = vshrl.u32 %v10098_v23, 16 }
  0x64   : > { %10482 = vmatprep.mubr.msk.bf16.mxu1 %vm513_vm3, %v10007_v0  ;;  %v1450_v43 = vshll.u32 %v10098_v23, 16  ;;  %v881_v18 = vrot.slane %v11302_v42, 5  ;;  %v10008_v0 = vcombine.low %v11294_v35, %v11302_v42  ;;  %v1429_v30 = vor.u32 %v1428_v36, %v1425_v16 }
  0x65   : > { %v1456_v39 = vshll.u32 %v11526_v41, 16  ;;  %v1439_v40 = vor.u32 %v1438_v29, %v1434_v53  ;;  %v1444_v45 = vrot.slane %v1442_v31, 5  ;;  %v1449_v46 = vrot.slane %v1447_v20, 4 }
  0x66   : > { %v1452_v50 = vrot.slane %v1450_v43, 5  ;;  %v10032_v54 = vcombine.low %v11488_v58, %v11501_v6  ;;  %v1430_v56 = vrot.slane %v1429_v30, 4  ;;  %v1460_v35 = vshrl.u32 %v11526_v41, 16 }
  0x67   : > { %v1458_v27 = vrot.slane %v1456_v39, 5  ;;  %v1411_v42 = vsel %vm11157_vm7, %v1406_v33, %v1410_v11  ;;  %v1421_v57 = vsel %vm11157_vm7, %v1416_v59, %v1420_v62  ;;  %v1440_v5 = vrot.slane %v1439_v40, 4  ;;  %v10118_v33 = vld [vmem:[%s11100_s11 + $0xc] sm:$0xe] }
  0x68   : > { %10529 = vmatmul.mubr.msk.bf16.gmra.mrb[4].mxu0 %vm513_vm3, %v10105_v44  ;;  %v11554_v44 = vld [vmem:[%s11366_s24 + $0x4] sm:$0xf]  ;;  %v1435_v58 = vsel %vm11157_vm7, %v1430_v56, %v1434_v53  ;;  %v1453_v6 = vor.u32 %v1452_v50, %v1449_v46  ;;  %v1462_v47 = vrot.slane %v1460_v35, 4  ;;  %v1466_v21 = vshll.u32 %v11536_v19, 16 }
  0x69   : > { %10532 = vmatprep.mubr.msk.bf16.mxu0 %vm513_vm3, %v10106_v25  ;;  %v884_v23 = vrot.slane %v11308_v51, 5  ;;  %v10024_v11 = vrot.slane %v810_v55, 9  ;;  %v1445_v62 = vsel %vm11157_vm7, %v1440_v5, %v1444_v45  ;;  %v883_v25 = vrot.slane %v881_v18, 4 }
  0x6a   : > { %v10107_v26 = vcombine.low %v1411_v42, %v1421_v57  ;;  %v1463_v16 = vor.u32 %v1462_v47, %v1458_v27  ;;  %v11566_v28 = vcombine.low %v2757_v14, %v11554_v44  ;;  %v10108_v36 = vcombine.low %v1435_v58, %v1445_v62  ;;  %v10120_v42 = vld [vmem:[%s11100_s11 + $0x24] sm:$0xe] }
  0x6b   : > { %10483 = vmatmul.mubr.msk.bf16.gmra.mrb[12].mxu1 %vm513_vm3, %v10008_v0  ;;  %v1670_v53 = vrot.slane %v11336_v60, 5  ;;  %v1454_v51 = vrot.slane %v1453_v6, 4  ;;  %v1468_v59 = vrot.slane %v1466_v21, 5  ;;  %v10126_v29 = vrot.slane %v10118_v33, 9 }
  0x6c   : > { %10500 = vmatprep.mubr.msk.bf16.mxu1 %vm513_vm3, %v10032_v54  ;;  %v1464_v31 = vrot.slane %v1463_v16, 4  ;;  %v1673_v43 = vrot.slane %v11345_v38, 5  ;;  %v882_v0 = vsel %vm11102_vm5, %v10024_v11, %v881_v18  ;;  %v885_v30 = vsel %vm11102_vm5, %v883_v25, %v884_v23  ;;  %v11580_v60 = vld [vmem:[%s11366_s24 + $0x8] ss:$0 sps:$4 sm:$0x11]  }
  0x6d   : > { %v1672_v20 = vrot.slane %v1670_v53, 4  ;;  %v2772_v39 = vshll.u32 %v11566_v28, 16  ;;  %v1459_v40 = vsel %vm11157_vm7, %v1454_v51, %v1458_v27  ;;  %v1677_v18 = vrot.slane %v11355_v52, 5  ;;  %v10119_v54 = vld [vmem:[%s11100_s11 + $0x18] sm:$0xe] }
  0x6e   : > { %v1469_v38 = vsel %vm11157_vm7, %v1464_v31, %v1468_v59  ;;  %v10033_v45 = vcombine.low %v882_v0, %v885_v30  ;;  %v1671_v46 = vsel %vm11102_vm5, %v10126_v29, %v1670_v53  ;;  %v1684_v55 = vrot.slane %v11379_v22, 5  ;;  %v10121_v11 = vld [vmem:[%s11100_s11 + $0x30] sm:$0xe]  ;;  %v11643_v30 = vld [vmem:[%s15724_s1 + $0xe] sm:$0x3] }
  0x6f   : > { %v1674_v50 = vsel %vm11102_vm5, %v1672_v20, %v1673_v43  ;;  %v2770_v56 = vshrl.u32 %v11566_v28, 16  ;;  %v2774_v35 = vrot.slane %v2772_v39, 1  ;;  %v2777_v27 = vshll.u32 %v11580_v60, 16 }
  0x70   : > { %10533 = vmatmul.mubr.msk.bf16.gmra.mrb[8].mxu0 %vm513_vm3, %v10107_v26  ;;  %v10109_v57 = vcombine.low %v1459_v40, %v1469_v38  ;;  %v10135_v5 = vcombine.low %v1671_v46, %v1674_v50  ;;  %v10127_v14 = vrot.slane %v10119_v54, 9  ;;  %v1679_v52 = vrot.slane %v1677_v18, 4  ;;  %v10123_v38 = vld [vmem:[%s11100_s11 + $0x48] sm:$0xe] }
  0x71   : > { %10536 = vmatprep.mubr.msk.bf16.mxu0 %vm513_vm3, %v10108_v36  ;;  %v1680_v58 = vrot.slane %v11363_v61, 5  ;;  %v10128_v6 = vrot.slane %v10120_v42, 9  ;;  %v1686_v47 = vrot.slane %v1684_v55, 4  ;;  %v1687_v21 = vrot.slane %v11393_v37, 5  ;;  %v10122_v36 = vld [vmem:[%s11100_s11 + $0x3c] sm:$0xe] }
  0x72   : > { %v2775_v22 = vor.u32 %v2774_v35, %v2770_v56  ;;  %v2779_v23 = vrot.slane %v2777_v27, 1  ;;  %v1678_v61 = vsel %vm11102_vm5, %v10127_v14, %v1677_v18  ;;  %v1691_v62 = vrot.slane %v11401_v13, 5 }
  0x73   : > { %v1681_v37 = vsel %vm11102_vm5, %v1679_v52, %v1680_v58  ;;  %v1685_v25 = vsel %vm11102_vm5, %v10128_v6, %v1684_v55  ;;  %v1688_v26 = vsel %vm11102_vm5, %v1686_v47, %v1687_v21  ;;  %v1698_v16 = vrot.slane %v11445_v34, 5  ;;  %v10125_v52 = vld [vmem:[%s11100_s11 + $0x60] sm:$0xe] }
  0x74   : > { %v2780_v33 = vsel %vm2768_vm9, %v2775_v22, %v2779_v23  ;;  %v10136_v53 = vcombine.low %v1678_v61, %v1681_v37  ;;  %v10137_v51 = vcombine.low %v1685_v25, %v1688_v26  ;;  %v10129_v31 = vrot.slane %v10121_v11, 9  ;;  %v11692_v61 = vld [vmem:[%s11366_s24 + $0x14] ss:$0 sps:$4 sm:$0x11]   ;;  %v9445_v25 = vld [vmem:[%s11702_s12] sm:$0xff]  ;;  %v10925_v26 = vld [vmem:[%s11366_s24 + $0xc] sm:$0xff]  }
  0x75   : > { %v1693_v59 = vrot.slane %v1691_v62, 4  ;;  %v1694_v29 = vrot.slane %v11420_v49, 5  ;;  %v11624_v13 = vsel %vm538_vm0, %v11496_v32, 0  ;;  %v10130_v20 = vrot.slane %v10122_v36, 9  ;;  %v2868_v49 = vld [vmem:[%s11366_s24] sm:$0xe]  ;;  %9573 = vrot.lane.b32.xlu0 %v9445_v25, %s10997_s13 }
  0x76   : > { %v1700_v43 = vrot.slane %v1698_v16, 4  ;;  %v1701_v34 = vrot.slane %v11448_v17, 5  ;;  %v1692_v32 = vsel %vm11102_vm5, %v10129_v31, %v1691_v62  ;;  %v1705_v0 = vrot.slane %v11461_v12, 5  ;;  %v9447_v62 = vld [vmem:[%s11702_s12 + $0x10] sm:$0xff]  ;;  %v10928_v31 = vld [vmem:[%s11100_s11 + $0x18] sm:$0xff]  }
  0x77   : > { %10501 = vmatmul.mubr.msk.bf16.vlgmr.msra.gmra.mrb[12].mxu1 %vm513_vm3, %v10033_v45  ;;  %v1695_v17 = vsel %vm11102_vm5, %v1693_v59, %v1694_v29  ;;  %v1699_v39 = vsel %vm11102_vm5, %v10130_v20, %v1698_v16  ;;  %v1712_v18 = vrot.slane %v11491_v15, 5  ;;  %v10267_v12 = vcombine.low %v2868_v49, %v11554_v44  ;;  %v10124_v45 = vld [vmem:[%s11100_s11 + $0x54] sm:$0xe]  ;;  %9577 = vrot.lane.b32.xlu1 %v9447_v62, %s10997_s13  ;;  %v9446_v59 = vld [vmem:[%s11702_s12 + $0x8] sm:$0xff]  ;;  %v10186_v49 = vld [vmem:[%s11100_s11 + $0x18] sm:$0xf] }
  0x78   : > { %10613 = vmatpush3.bf16.msra.mxu1 %v11072_v3  ;;  %10614 = vmatprep.mubr.msk.bf16.mxu1 %vm10996_vm8, %v15728_v4  ;;  %v1702_v40 = vsel %vm11102_vm5, %v1700_v43, %v1701_v34  ;;  %v10138_v46 = vcombine.low %v1692_v32, %v1695_v17  ;;  %v10131_v54 = vrot.slane %v10123_v38, 9  ;;  %v1707_v55 = vrot.slane %v1705_v0, 4  ;;  %v9450_v43 = vld [vmem:[%s11702_s12 + $0x28] sm:$0xff]  ;;  %v9449_v32 = vld [vmem:[%s11702_s12 + $0x20] sm:$0xff]  ;;  %v10286_v38 = vld [vmem:[%s11366_s24 + $0x18] sm:$0xf] }
  0x79   : > { %10618 = vmatprep.subr.bf16.mxu1 %v15728_v4  ;;  %10537 = vmatmul.mubr.msk.bf16.gmra.mrb[12].mxu0 %vm513_vm3, %v10109_v57  ;;  %v10139_v50 = vcombine.low %v1699_v39, %v1702_v40  ;;  %v1708_v56 = vrot.slane %v11468_v24, 5  ;;  %v10132_v35 = vrot.slane %v10124_v45, 9  ;;  %v1714_v27 = vrot.slane %v1712_v18, 4  ;;  %v10273_v24 = vld [vmem:[%s11366_s24 + $0xc] sm:$0xf]  ;;  %v9452_v39 = vld [vmem:[%s11702_s12 + $0x38] sm:$0xff] }
  0x7a   : > { %10542 = vmatprep.mubr.msk.bf16.mxu0 %vm513_vm3, %v10135_v5  ;;  %v1715_v15 = vrot.slane %v11512_v1, 5  ;;  %v2873_v44 = vrot.slane %v10267_v12, 1  ;;  %v2874_v42 = vrot.slane %v11580_v60, 1  ;;  %v1706_v1 = vsel %vm11102_vm5, %v10131_v54, %v1705_v0  ;;  %v10279_v34 = vld [vmem:[%s11366_s24 + $0xc] sm:$0xe]  ;;  %9575 = vrot.lane.b32.xlu0 %v9446_v59, %s10997_s13  ;;  %v10929_v40 = vld [vmem:[%s11100_s11 + $0x24] sm:$0xff]  }
  0x7b   : > { %v1709_v57 = vsel %vm11102_vm5, %v1707_v55, %v1708_v56  ;;  %v1719_v5 = vrot.slane %v11526_v41, 5  ;;  %v1713_v60 = vsel %vm11102_vm5, %v10132_v35, %v1712_v18  ;;  %v10133_v22 = vrot.slane %v10125_v52, 9  ;;  %v10287_v18 = vld [vmem:[%s11366_s24 + $0x1c] sm:$0xf]  ;;  %v10931_v12 = vld [vmem:[%s11100_s11 + $0x30] sm:$0xff]  }
  0x7c   : > { %v1716_v14 = vsel %vm11102_vm5, %v1714_v27, %v1715_v15  ;;  %v2875_v58 = vsel %vm2872_vm10, %v2873_v44, %v2874_v42  ;;  %v10140_v47 = vcombine.low %v1706_v1, %v1709_v57  ;;  %v1722_v41 = vrot.slane %v11536_v19, 5  ;;  %v11740_v45 = vld [vmem:[%s11100_s11 + $0x1c] sm:$0xf]  ;;  %v10189_v54 = vld [vmem:[%s11100_s11 + $0x24] sm:$0xf]  ;;  %v9451_v44 = vld [vmem:[%s11702_s12 + $0x30] sm:$0xff] }
  0x7d   : > { %v10141_v21 = vcombine.low %v1713_v60, %v1716_v14  ;;  %v1721_v23 = vrot.slane %v1719_v5, 4  ;;  %v1720_v19 = vsel %vm11102_vm5, %v10133_v22, %v1719_v5  ;;  %v2998_v36 = vshll.u32 %v11692_v61, 16  ;;  %v11753_v27 = vld [vmem:[%s11366_s24 + $0x20] ss:$0 sps:$4 sm:$0x11]   ;;  %v9454_v57 = vld [vmem:[%s11702_s12 + $0x48] sm:$0xff] }
  0x7e   : > { %9581 = vrot.lane.b32.xlu0 %v9449_v32, %s10997_s13  ;;  %v3053_v56 = vrot.slane %v11692_v61, 1  ;;  %v11750_v35 = vcombine.low %v10286_v38, %v10287_v18  ;;  %v11756_v15 = vld [vmem:[%s11100_s11 + $0x28] sm:$0xf]  ;;  %v11763_v42 = vsel %vm538_vm0, %v11643_v30, 0  ;;  %v2130_v1 = vshrl.u32 %v11740_v45, 16  ;;  %v9455_v32 = vld [vmem:[%s11702_s12 + $0x50] sm:$0xff] }
  0x7f   : > { %10615 = vmatmul.mubr.msk.bf16.vlgmr.msra.gmra.mrb[16].mxu1 %vm513_vm3, %v2780_v33  ;;  %v1723_v11 = vsel %vm11102_vm5, %v1721_v23, %v1722_v41  ;;  %v3000_v20 = vrot.slane %v2998_v36, 1  ;;  %v10243_v5 = vld [vmem:[%s15724_s1 + $0x10] sm:$0x3]  ;;  %v2141_v14 = vshrl.u32 %v10189_v54, 16  ;;  %v2144_v52 = vshll.u32 %v10189_v54, 16  ;;  %v9453_v23 = vld [vmem:[%s11702_s12 + $0x40] sm:$0xff] }
  0x80   : > { %10619 = vmatpush3.bf16.msra.mxu1 %v11107_v8  ;;  %10620 = vmatprep.mubr.msk.bf16.mxu1 %vm10996_vm8, %v15728_v4  ;;  %v10932_v41 = vld [vmem:[%s11100_s11 + $0x3c] sm:$0xff]   ;;  %v10934_v61 = vld [vmem:[%s11100_s11 + $0x48] sm:$0xff]   ;;  %v3170_v62 = vshrl.u32 %v11750_v35, 16  ;;  %v3177_v25 = vshll.u32 %v11753_v27, 16  ;;  %v11796_v36 = vld [vmem:[%s11100_s11 + $0x34] sm:$0xf] }
  0x81   : > { %10624 = vmatprep.subr.bf16.mxu1 %v15728_v4  ;;  %10543 = vmatmul.mubr.msk.bf16.vlgmr.msra.gmra.mrb[0].mxu0 %vm513_vm3, %v10136_v53  ;;  %v9448_v53 = vld [vmem:[%s11702_s12 + $0x18] sm:$0xff]  ;;  %v11815_v38 = vsel %vm538_vm0, %v10243_v5, 0 }
  0x82   : > { %10546 = vmatprep.mubr.msk.bf16.mxu0 %vm513_vm3, %v10137_v51  ;;  %10559 = vmatpush3.bf16.msra.mxu0 %v11624_v13  ;;  %v10142_v51 = vcombine.low %v1720_v19, %v1723_v11  ;;  %v2132_v11 = vrot.slane %v2130_v1, 4  ;;  %v3179_v1 = vrot.slane %v3177_v25, 1 }
  0x83   : > { %10858 = vmatprep.subr.msk.bf16.mxu0 %vm538_vm0, %v11643_v30  ;;  %9579 = vrot.lane.b32.xlu1 %v9448_v53, %s10997_s13  ;;  %v2143_v53 = vrot.slane %v2141_v14, 4  ;;  %v9457_v14 = vld [vmem:[%s11702_s12 + $0x60] sm:$0xff] }
  0x84   : > { %9585 = vrot.lane.b32.xlu0 %v9451_v44, %s10997_s13  ;;  %v9458_v44 = vld [vmem:[%s11702_s12 + $0x68] sm:$0xff] }
  0x87   : > { %10621 = vmatmul.mubr.msk.bf16.vlgmr.msra.gmra.mrb[20].mxu1 %vm513_vm3, %v11566_v28  ;;  %v11668_v28 = vld [vmem:[%s11366_s24 + $0x10] sm:$0xf]  ;;  %9583 = vrot.lane.b32.xlu1 %v9450_v43, %s10997_s13 }
  0x88   : > { %10625 = vmatpush3.bf16.msra.mxu1 %v11069_v2  ;;  %10626 = vmatprep.mubr.msk.bf16.mxu1 %vm10996_vm8, %v15728_v4  ;;  %v10276_v6 = vcombine.low %v10273_v24, %v11668_v28  ;;  %v10280_v0 = vcombine.low %v10279_v34, %v11668_v28  ;;  %v10292_v24 = vld [vmem:[%s11366_s24 + $0x18] sm:$0xe]  ;;  %v2126_v28 = vshll.u32 %v11740_v45, 16  ;;  %v3232_v34 = vrot.slane %v11753_v27, 1  ;;  %v10195_v27 = vld [vmem:[%s11100_s11 + $0x3c] sm:$0xf] }
  0x89   : > { %10630 = vmatprep.subr.bf16.mxu1 %v15728_v4  ;;  %10547 = vmatmul.mubr.msk.bf16.gmra.mrb[4].mxu0 %vm513_vm3, %v10138_v46  ;;  %v2117_v46 = vshrl.u32 %v10186_v49, 16  ;;  %v10293_v22 = vcombine.low %v10292_v24, %v10287_v18  ;;  %v11818_v18 = vld [vmem:[%s11571_s29 + $0x4] sm:$0xf]  ;;  %v10935_v24 = vld [vmem:[%s11100_s11 + $0x54] sm:$0xff]  }
  0x8a   : > { %10550 = vmatprep.mubr.msk.bf16.mxu0 %vm513_vm3, %v10139_v50  ;;  %v2993_v37 = vshll.u32 %v10276_v6, 16  ;;  %v2991_v16 = vshrl.u32 %v10276_v6, 16  ;;  %v2120_v50 = vshll.u32 %v10186_v49, 16  ;;  %v3052_v55 = vrot.slane %v10280_v0, 1  ;;  %9589 = vrot.lane.b32.xlu0 %v9453_v23, %s10997_s13  ;;  %v3288_v0 = vld [vmem:[%s11571_s29] sm:$0xf] }
  0x8b   : > { %9587 = vrot.lane.b32.xlu1 %v9452_v39, %s10997_s13  ;;  %v2119_v30 = vrot.slane %v2117_v46, 4  ;;  %v2154_v6 = vshrl.u32 %v11756_v15, 16  ;;  %v11787_v19 = vrot.slane %v2126_v28, 5  ;;  %v3231_v43 = vrot.slane %v10293_v22, 1  ;;  %v10198_v22 = vld [vmem:[%s11100_s11 + $0x48] sm:$0xf] }
  0x8c   : > { %v2995_v33 = vrot.slane %v2993_v37, 1  ;;  %v2122_v60 = vrot.slane %v2120_v50, 5  ;;  %v11785_v37 = vld [vmem:[%s11100_s11 + $0x20] sm:$0x1]  ;;  %v2178_v46 = vshrl.u32 %v11796_v36, 16  ;;  %v10933_v50 = vld [vmem:[%s11366_s24 + $0x18] sm:$0xff]  }
  0x8d   : > { %v2156_v59 = vrot.slane %v2154_v6, 4  ;;  %v2136_v49 = vshll.u32 %v11785_v37, 16  ;;  %v11844_v6 = vcombine.low %v3288_v0, %v11818_v18  ;;  %v11875_v0 = vld [vmem:[%s11571_s29 + $0x8] ss:$0 sps:$4 sm:$0x11]  }
  0x8e   : > { %v2996_v29 = vor.u32 %v2995_v33, %v2991_v16  ;;  %v11792_v16 = vld [vmem:[%s11100_s11 + $0x2c] sm:$0x1]  ;;  %v10192_v33 = vld [vmem:[%s11100_s11 + $0x30] sm:$0xf]  ;;  %9593 = vrot.lane.b32.xlu0 %v9455_v32, %s10997_s13 }
  0x8f   : > { %10627 = vmatmul.mubr.msk.bf16.vlgmr.msra.gmra.mrb[24].mxu1 %vm513_vm3, %v2875_v58  ;;  %v2150_v58 = vshll.u32 %v11756_v15, 16  ;;  %9591 = vrot.lane.b32.xlu1 %v9454_v57, %s10997_s13  ;;  %v2165_v39 = vshrl.u32 %v10192_v33, 16  ;;  %v11833_v57 = vsel %vm2872_vm10, %v3231_v43, %v3232_v34  ;;  %v2216_v43 = vshll.u32 %v10198_v22, 16  ;;  %v9459_v34 = vld [vmem:[%s11702_s12 + $0x70] sm:$0xff] }
  0x90   : > { %10631 = vmatpush3.bf16.msra.mxu1 %v11110_v9  ;;  %10632 = vmatprep.mubr.msk.bf16.mxu1 %vm10996_vm8, %v15728_v4  ;;  %v3001_v17 = vsel %vm2768_vm9, %v2996_v29, %v3000_v20  ;;  %v9456_v29 = vld [vmem:[%s11702_s12 + $0x58] sm:$0xff] }
  0x91   : > { %10636 = vmatprep.subr.bf16.mxu1 %v15728_v4  ;;  %10551 = vmatmul.mubr.msk.bf16.gmra.mrb[8].mxu0 %vm513_vm3, %v10140_v47  ;;  %v3054_v47 = vsel %vm2872_vm10, %v3052_v55, %v3053_v56 }
  0x92   : > { %10554 = vmatprep.mubr.msk.bf16.mxu0 %vm513_vm3, %v10141_v21  ;;  %v3172_v21 = vshll.u32 %v11750_v35, 16  ;;  %v2160_v35 = vshll.u32 %v11792_v16, 16  ;;  %9597 = vrot.lane.b32.xlu0 %v9457_v14, %s10997_s13  ;;  %v10939_v14 = vld [vmem:[%s11100_s11 + $0x6c] sm:$0xff]  }
  0x93   : > { %9595 = vrot.lane.b32.xlu1 %v9456_v29, %s10997_s13 }
  0x94   : > { %v3174_v20 = vrot.slane %v3172_v21, 1 }
  0x96   : > { %v3175_v28 = vor.u32 %v3174_v20, %v3170_v62  ;;  %v11850_v62 = vld [vmem:[%s11100_s11 + $0x4c] sm:$0xf]  ;;  %v2213_v20 = vshrl.u32 %v10198_v22, 16  ;;  %9601 = vrot.lane.b32.xlu0 %v9459_v34, %s10997_s13  ;;  %v10201_v22 = vld [vmem:[%s11100_s11 + $0x54] sm:$0xf] }
  0x97   : > { %10633 = vmatmul.mubr.msk.bf16.vlgmr.msra.gmra.mrb[28].mxu1 %vm513_vm3, %v10925_v26  ;;  %v2123_v26 = vor.u32 %v2122_v60, %v2119_v30  ;;  %v11836_v30 = vld [vmem:[%s11100_s11 + $0x38] sm:$0x1]  ;;  %v11839_v60 = vld [vmem:[%s11100_s11 + $0x40] sm:$0xf]  ;;  %9599 = vrot.lane.b32.xlu1 %v9458_v44, %s10997_s13  ;;  %v2222_v32 = vshll.u32 %v11850_v62, 16  ;;  %v9462_v44 = vld [vmem:[%s11702_s12 + $0x88] sm:$0xff] }
  0x98   : > { %10637 = vmatpush3.bf16.msra.mxu1 %v11114_v10  ;;  %10638 = vmatprep.mubr.msk.bf16.mxu1 %vm10996_vm8, %v15728_v4  ;;  %v2202_v29 = vshrl.u32 %v11839_v60, 16 }
  0x99   : > { %10642 = vmatprep.subr.bf16.mxu1 %v15728_v4  ;;  %10555 = vmatmul.mubr.msk.bf16.gmra.mrb[12].mxu0 %vm513_vm3, %v10142_v51  ;;  %v2146_v51 = vrot.slane %v2144_v52, 5  ;;  %v11824_v54 = vrot.slane %v2123_v26, 4  ;;  %v10938_v52 = vld [vmem:[%s11100_s11 + $0x60] sm:$0xff]  }
  0x9a   : > { %10560 = vmatprep.mubr.msk.bf16.mxu0 %vm513_vm3, %v10928_v31  ;;  %v11799_v31 = vrot.slane %v2150_v58, 5 }
  0x9b   : > { %v2147_v55 = vor.u32 %v2146_v51, %v2143_v53  ;;  %v2129_v25 = vsel %vm11157_vm7, %v11824_v54, %v11787_v19  ;;  %v2162_v53 = vrot.slane %v2160_v35, 5  ;;  %v9460_v51 = vld [vmem:[%s11702_s12 + $0x78] sm:$0xff]  ;;  %v11887_v35 = vld [vmem:[%s11100_s11 + $0x44] sm:$0x1] }
  0x9c   : > { %v2157_v56 = vor.u32 %v2156_v59, %v11799_v31  ;;  %v2198_v59 = vshll.u32 %v11839_v60, 16  ;;  %9603 = vrot.lane.b32.xlu1 %v9460_v51, %s10997_s13 }
  0x9d   : > { %v2148_v26 = vrot.slane %v2147_v55, 4 }
  0x9f   : > { %10639 = vmatmul.mubr.msk.bf16.vlgmr.msra.gmra.mrb[32].mxu1 %vm513_vm3, %v3001_v17  ;;  %v2133_v17 = vor.u32 %v2132_v11, %v11787_v19  ;;  %v2192_v11 = vshll.u32 %v10195_v27, 16  ;;  %v2153_v54 = vsel %vm11157_vm7, %v2148_v26, %v11799_v31  ;;  %v9461_v31 = vld [vmem:[%s11702_s12 + $0x80] sm:$0xff]  ;;  %v2208_v26 = vshll.u32 %v11887_v35, 16 }
  0xa0   : > { %10643 = vmatpush3.bf16.msra.mxu1 %v11382_v63  ;;  %10644 = vmatprep.mubr.msk.bf16.mxu1 %vm10996_vm8, %v15728_v4 }
  0xa1   : > { %10648 = vmatprep.subr.bf16.mxu1 %v15728_v4  ;;  %10561 = vmatmul.mubr.msk.bf16.vlgmr.msra.gmra.mrb[0].mxu0 %vm513_vm3, %v10929_v40  ;;  %v2168_v40 = vshll.u32 %v10192_v33, 16  ;;  %v2134_v58 = vrot.slane %v2133_v17, 4  ;;  %v2158_v33 = vrot.slane %v2157_v56, 4  ;;  %v2226_v17 = vshrl.u32 %v11850_v62, 16 }
  0xa2   : > { %10564 = vmatprep.mubr.msk.bf16.mxu0 %vm513_vm3, %v10931_v12  ;;  %10577 = vmatpush3.bf16.msra.mxu0 %v11763_v42  ;;  %v2174_v12 = vshll.u32 %v11796_v36, 16  ;;  %v3302_v56 = vshll.u32 %v11844_v6, 16 }
  0xa3   : > { %10859 = vmatprep.subr.msk.bf16.mxu0 %vm538_vm0, %v10243_v5  ;;  %v2138_v5 = vrot.slane %v2136_v49, 5  ;;  %v2170_v21 = vrot.slane %v2168_v40, 5  ;;  %v2184_v49 = vshll.u32 %v11836_v30, 16  ;;  %v2163_v55 = vsel %vm11157_vm7, %v2158_v33, %v2162_v53  ;;  %v11903_v33 = vld [vmem:[%s11100_s11 + $0x58] sm:$0xf]  ;;  %9607 = vrot.lane.b32.xlu1 %v9462_v44, %s10997_s13 }
  0xa4   : > { %v11847_v23 = vrot.slane %v2174_v12, 5  ;;  %v3300_v53 = vshrl.u32 %v11844_v6, 16  ;;  %v3304_v51 = vrot.slane %v3302_v56, 1  ;;  %9605 = vrot.lane.b32.xlu0 %v9461_v31, %s10997_s13  ;;  %v2210_v56 = vrot.slane %v2208_v26, 5  ;;  %v9466_v31 = vld [vmem:[%s11702_s12 + $0xa8] sm:$0xff] }
  0xa5   : > { %v2139_v19 = vsel %vm11157_vm7, %v2134_v58, %v2138_v5  ;;  %v2218_v5 = vrot.slane %v2216_v43, 5  ;;  %v2186_v58 = vrot.slane %v2184_v49, 5  ;;  %v2237_v49 = vshrl.u32 %v10201_v22, 16 }
  0xa6   : > { %v3305_v26 = vor.u32 %v3304_v51, %v3300_v53  ;;  %v15948_v53 = vmov 0.0  }
  0xa7   : > { %10645 = vmatmul.mubr.msk.bf16.vlgmr.msra.gmra.mrb[36].mxu1 %vm513_vm3, %v3054_v47  ;;  %v2167_v47 = vrot.slane %v2165_v39, 4 }
  0xa8   : > { %10649 = vmatpush3.bf16.msra.mxu1 %v11624_v13  ;;  %10650 = vmatprep.mubr.msk.bf16.mxu1 %vm10996_vm8, %v15728_v4 }
  0xa9   : > { %10654 = vmatprep.subr.bf16.mxu1 %v15728_v4  ;;  %10565 = vmatmul.mubr.msk.bf16.gmra.mrb[4].mxu0 %vm513_vm3, %v10932_v41  ;;  %v2180_v41 = vrot.slane %v2178_v46, 4  ;;  %v2171_v39 = vor.u32 %v2170_v21, %v2167_v47  ;;  %v2194_v46 = vrot.slane %v2192_v11, 5  ;;  %v11898_v47 = vrot.slane %v2222_v32, 5  ;;  %v11920_v32 = vld [vmem:[%s11100_s11 + $0x64] sm:$0xf] }
  0xaa   : > { %10568 = vmatprep.mubr.msk.bf16.mxu0 %vm513_vm3, %v10934_v61  ;;  %v2189_v61 = vshrl.u32 %v10195_v27, 16  ;;  %v11890_v27 = vld [vmem:[%s11100_s11 + $0x50] sm:$0x1]  ;;  %v2228_v21 = vrot.slane %v2226_v17, 4 }
  0xab   : > { %v2181_v40 = vor.u32 %v2180_v41, %v11847_v23  ;;  %v2172_v41 = vrot.slane %v2171_v39, 4  ;;  %v9463_v17 = vld [vmem:[%s11702_s12 + $0x90] sm:$0xff] }
  0xac   : > { %v2191_v12 = vrot.slane %v2189_v61, 4  ;;  %v2229_v39 = vor.u32 %v2228_v21, %v11898_v47  ;;  %9609 = vrot.lane.b32.xlu0 %v9463_v17, %s10997_s13  ;;  %v2239_v21 = vrot.slane %v2237_v49, 4  ;;  %v11952_v17 = vld [vmem:[%s11100_s11 + $0x70] sm:$0xf] }
  0xad   : > { %v2182_v61 = vrot.slane %v2181_v40, 4  ;;  %v2240_v40 = vshll.u32 %v10201_v22, 16 }
  0xae   : > { %v2195_v11 = vor.u32 %v2194_v46, %v2191_v12  ;;  %v2246_v12 = vshll.u32 %v11903_v33, 16  ;;  %v2250_v46 = vshrl.u32 %v11903_v33, 16  ;;  %v2230_v22 = vrot.slane %v2229_v39, 4 }
  0xaf   : > { %10651 = vmatmul.mubr.msk.bf16.vlgmr.msra.gmra.mrb[40].mxu1 %vm513_vm3, %v10933_v50  ;;  %v3180_v50 = vsel %vm2768_vm9, %v3175_v28, %v3179_v1  ;;  %v2204_v28 = vrot.slane %v2202_v29, 4  ;;  %v2215_v1 = vrot.slane %v2213_v20, 4  ;;  %v10204_v29 = vld [vmem:[%s11100_s11 + $0x60] sm:$0xf]  ;;  %v9464_v20 = vld [vmem:[%s11702_s12 + $0x98] sm:$0xff] }
  0xb0   : > { %10655 = vmatpush3.bf16.msra.mxu1 %v11763_v42  ;;  %10656 = vmatprep.mubr.msk.bf16.mxu1 %vm10996_vm8, %v15728_v4  ;;  %v2261_v44 = vshrl.u32 %v10204_v29, 16 }
  0xb1   : > { %10660 = vmatprep.subr.bf16.mxu1 %v15728_v4  ;;  %10569 = vmatmul.mubr.msk.bf16.gmra.mrb[8].mxu0 %vm513_vm3, %v10935_v24  ;;  %v11894_v24 = vrot.slane %v2198_v59, 5  ;;  %v3307_v59 = vshll.u32 %v11875_v0, 16  ;;  %v2219_v34 = vor.u32 %v2218_v5, %v2215_v1  ;;  %v2270_v1 = vshll.u32 %v11920_v32, 16 }
  0xb2   : > { %10572 = vmatprep.mubr.msk.bf16.mxu0 %vm513_vm3, %v10938_v52  ;;  %v10211_v52 = vcombine.low %v2129_v25, %v2139_v19  ;;  %v11907_v25 = vcombine.low %v2153_v54, %v2163_v55  ;;  %v2232_v19 = vshll.u32 %v11890_v27, 16  ;;  %v2187_v54 = vsel %vm11157_vm7, %v2182_v61, %v2186_v58  ;;  %9611 = vrot.lane.b32.xlu1 %v9464_v20, %s10997_s13  ;;  %v9465_v58 = vld [vmem:[%s11702_s12 + $0xa0] sm:$0xff]  ;;  %v11943_v20 = vld [vmem:[%s11100_s11 + $0x5c] sm:$0x1] }
  0xb3   : > { %v2205_v43 = vor.u32 %v2204_v28, %v11894_v24  ;;  %v2196_v55 = vrot.slane %v2195_v11, 4  ;;  %v2264_v28 = vshll.u32 %v10204_v29, 16  ;;  %v2274_v5 = vshrl.u32 %v11920_v32, 16  ;;  %9613 = vrot.lane.b32.xlu0 %v9465_v58, %s10997_s13 }
  0xb4   : > { %v11940_v61 = vrot.slane %v2246_v12, 5  ;;  %v2252_v11 = vrot.slane %v2250_v46, 4  ;;  %v3309_v51 = vrot.slane %v3307_v59, 1  ;;  %v11967_v12 = vld [vmem:[%s11100_s11 + $0x68] sm:$0x1]  ;;  %v9468_v46 = vld [vmem:[%s11702_s12 + $0xb8] sm:$0xff] }
  0xb5   : > { %v2276_v49 = vrot.slane %v2274_v5, 4  ;;  %v2201_v39 = vsel %vm11157_vm7, %v2196_v55, %v11894_v24 }
  0xb6   : > { %9615 = vrot.lane.b32.xlu1 %v9466_v31, %s10997_s13  ;;  %v2253_v59 = vor.u32 %v2252_v11, %v11940_v61  ;;  %v3310_v5 = vsel %vm2768_vm9, %v3305_v26, %v3309_v51  ;;  %v11992_v26 = vld [vmem:[%s11100_s11 + $0x74] sm:$0x1]  ;;  %v9472_v51 = vld [vmem:[%s11702_s12 + $0xd8] sm:$0xff] }
  0xb7   : > { %10657 = vmatmul.mubr.msk.bf16.vlgmr.msra.gmra.mrb[44].mxu1 %vm513_vm3, %v3180_v50  ;;  %v2177_v50 = vsel %vm11157_vm7, %v2172_v41, %v11847_v23  ;;  %v2220_v23 = vrot.slane %v2219_v34, 4  ;;  %v2242_v41 = vrot.slane %v2240_v40, 5  ;;  %v2266_v34 = vrot.slane %v2264_v28, 5 }
  0xb8   : > { %10661 = vmatpush3.bf16.msra.mxu1 %v11815_v38  ;;  %10662 = vmatprep.mubr.msk.bf16.mxu1 %vm10996_vm8, %v15728_v4  ;;  %v10213_v29 = vcombine.low %v2177_v50, %v2187_v54  ;;  %v9467_v50 = vld [vmem:[%s11702_s12 + $0xb0] sm:$0xff]  ;;  %v2256_v54 = vshll.u32 %v11943_v20, 16 }
  0xb9   : > { %10666 = vmatprep.subr.bf16.mxu1 %v15728_v4  ;;  %10573 = vmatmul.mubr.msk.bf16.gmra.mrb[12].mxu0 %vm513_vm3, %v10939_v14  ;;  %v2206_v14 = vrot.slane %v2205_v43, 4  ;;  %v10207_v4 = vld [vmem:[%s11100_s11 + $0x6c] sm:$0xf]  ;;  %v2263_v43 = vrot.slane %v2261_v44, 4  ;;  %v2225_v40 = vsel %vm11157_vm7, %v2220_v23, %v11898_v47  ;;  %v2243_v24 = vor.u32 %v2242_v41, %v2239_v21 }
  0xba   : > { %10578 = vmatprep.mubr.msk.bf16.mxu0 %vm513_vm3, %v10211_v52  ;;  %v2234_v52 = vrot.slane %v2232_v19, 5  ;;  %v11949_v19 = vrot.slane %v2270_v1, 5  ;;  %v2285_v47 = vshrl.u32 %v10207_v4, 16  ;;  %v2288_v55 = vshll.u32 %v10207_v4, 16  ;;  %9619 = vrot.lane.b32.xlu1 %v9468_v46, %s10997_s13 }
  0xbb   : > { %v2298_v44 = vshrl.u32 %v11952_v17, 16  ;;  %v2280_v1 = vshll.u32 %v11967_v12, 16  ;;  %9617 = vrot.lane.b32.xlu0 %v9467_v50, %s10997_s13  ;;  %v2244_v23 = vrot.slane %v2243_v24, 4  ;;  %v2258_v21 = vrot.slane %v2256_v54, 5 }
  0xbc   : > { %v2277_v28 = vor.u32 %v2276_v49, %v11949_v19  ;;  %v2287_v58 = vrot.slane %v2285_v47, 4  ;;  %v9469_v49 = vld [vmem:[%s11702_s12 + $0xc0] sm:$0xff]  ;;  %v2304_v50 = vshll.u32 %v11992_v26, 16  ;;  %v2508_v24 = vrot.slane %v11740_v45, 5  ;;  %v10227_v47 = vld [vmem:[%s11100_s11 + $0x18] sm:$0xe] }
  0xbd   : > { %v2300_v11 = vrot.slane %v2298_v44, 4  ;;  %v10235_v45 = vrot.slane %v10227_v47, 9  ;;  %v2536_v47 = vrot.slane %v11850_v62, 5 }
  0xbf   : > { %10663 = vmatmul.mubr.msk.bf16.vlgmr.msra.gmra.mrb[48].mxu1 %vm513_vm3, %v11833_v57  ;;  %v2211_v57 = vsel %vm11157_vm7, %v2206_v14, %v2210_v56  ;;  %v2294_v56 = vshll.u32 %v11952_v17, 16  ;;  %v9470_v14 = vld [vmem:[%s11702_s12 + $0xc8] sm:$0xff]  ;;  %9621 = vrot.lane.b32.xlu0 %v9469_v49, %s10997_s13 }
  0xc0   : > { %10667 = vmatpush3.bf16.msra.mxu1 %v11072_v3  ;;  %10668 = vmatprep.mubr.msk.bf16.mxu1 %vm10996_vm8, %v15948_v53  ;;  %v2235_v3 = vsel %vm11157_vm7, %v2230_v22, %v2234_v52  ;;  %v10214_v31 = vcombine.low %v2201_v39, %v2211_v57  ;;  %v2254_v52 = vrot.slane %v2253_v59, 4  ;;  %v2290_v22 = vrot.slane %v2288_v55, 5  ;;  %v3398_v57 = vld [vmem:[%s11571_s29] sm:$0xe]  ;;  %v9471_v59 = vld [vmem:[%s11702_s12 + $0xd0] sm:$0xff]  ;;  %v9474_v55 = vld [vmem:[%s11702_s12 + $0xe8] sm:$0xff] }
  0xc1   : > { %10672 = vmatprep.subr.bf16.mxu1 %v15948_v53  ;;  %10579 = vmatmul.mubr.msk.bf16.vlgmr.msra.gmra.mrb[0].mxu0 %vm513_vm3, %v11907_v25  ;;  %v2267_v25 = vor.u32 %v2266_v34, %v2263_v43  ;;  %v10215_v4 = vcombine.low %v2225_v40, %v2235_v3  ;;  %v11988_v41 = vrot.slane %v2294_v56, 5  ;;  %v2278_v43 = vrot.slane %v2277_v28, 4 }
  0xc2   : > { %10582 = vmatprep.mubr.msk.bf16.mxu0 %vm513_vm3, %v10213_v29  ;;  %10595 = vmatpush3.bf16.msra.mxu0 %v11815_v38  ;;  %v2282_v34 = vrot.slane %v2280_v1, 5  ;;  %v2249_v39 = vsel %vm11157_vm7, %v2244_v23, %v11940_v61  ;;  %v2291_v40 = vor.u32 %v2290_v22, %v2287_v58  ;;  %v10300_v54 = vcombine.low %v3398_v57, %v11818_v18  ;;  %v9473_v18 = vld [vmem:[%s11702_s12 + $0xe0] sm:$0xff] }
  0xc3   : > { %v2268_v29 = vrot.slane %v2267_v25, 4  ;;  %9623 = vrot.lane.b32.xlu1 %v9470_v14, %s10997_s13  ;;  %v2301_v46 = vor.u32 %v2300_v11, %v11988_v41  ;;  %9625 = vrot.lane.b32.xlu0 %v9471_v59, %s10997_s13  ;;  %v2510_v1 = vrot.slane %v2508_v24, 4  ;;  %v3403_v14 = vrot.slane %v11875_v0, 1  ;;  %v10228_v58 = vld [vmem:[%s11100_s11 + $0x24] sm:$0xe]  ;;  %v9475_v11 = vld [vmem:[%s11702_s12 + $0xf0] sm:$0xff] }
  0xc4   : > { %v2283_v61 = vsel %vm11157_vm7, %v2278_v43, %v2282_v34  ;;  %v2292_v25 = vrot.slane %v2291_v40, 4  ;;  %v2515_v23 = vrot.slane %v11756_v15, 5  ;;  %v2522_v22 = vrot.slane %v11796_v36, 5  ;;  %v10229_v15 = vld [vmem:[%s11100_s11 + $0x30] sm:$0xe]  ;;  %v9477_v40 = vld [vmem:[%s11702_s12 + $0x100] sm:$0xff] }
  0xc5   : > { %v2273_v3 = vsel %vm11157_vm7, %v2268_v29, %v11949_v19  ;;  %v2302_v28 = vrot.slane %v2301_v46, 4  ;;  %v2306_v19 = vrot.slane %v2304_v50, 5  ;;  %v9478_v29 = vld [vmem:[%s11702_s12 + $0x108] sm:$0xff]  ;;  %v10236_v49 = vrot.slane %v10228_v58, 9  ;;  %v9480_v50 = vld [vmem:[%s11702_s12 + $0x118] sm:$0xff] }
  0xc6   : > { %v10217_v44 = vcombine.low %v2273_v3, %v2283_v61  ;;  %v10237_v36 = vrot.slane %v10229_v15, 9  ;;  %v2524_v57 = vrot.slane %v2522_v22, 4  ;;  %v12070_v46 = vld [vmem:[%s11571_s29 + $0x14] ss:$0 sps:$4 sm:$0x11]   ;;  %v2529_v3 = vrot.slane %v11839_v60, 5 }
  0xc7   : > { %10669 = vmatmul.mubr.msk.bf16.vlgmr.msra.gmra.mrb[52].mxu1 %vm513_vm3, %v3310_v5  ;;  %9627 = vrot.lane.b32.xlu1 %v9472_v51, %s10997_s13  ;;  %v2511_v5 = vrot.slane %v11785_v37, 5  ;;  %v10306_v37 = vld [vmem:[%s11571_s29 + $0xc] sm:$0xf]  ;;  %v2307_v0 = vsel %vm11157_vm7, %v2302_v28, %v2306_v19  ;;  %v2517_v51 = vrot.slane %v2515_v23, 4  ;;  %v3527_v60 = vshll.u32 %v12070_v46, 16 }
  0xc8   : > { %10673 = vmatpush3.bf16.msra.mxu1 %v11107_v8  ;;  %10674 = vmatprep.mubr.msk.bf16.mxu1 %vm10996_vm8, %v15948_v53  ;;  %v2259_v8 = vsel %vm11157_vm7, %v2254_v52, %v2258_v21  ;;  %v2509_v52 = vsel %vm11102_vm5, %v10235_v45, %v2508_v24  ;;  %v10944_v61 = vld [vmem:[%s11571_s29 + $0xc] sm:$0xff]   ;;  %v2523_v24 = vsel %vm11102_vm5, %v10237_v36, %v2522_v22  ;;  %v10232_v58 = vld [vmem:[%s11100_s11 + $0x54] sm:$0xe]  ;;  %v2550_v22 = vrot.slane %v11920_v32, 5 }
  0xc9   : > { %10678 = vmatprep.subr.bf16.mxu1 %v15948_v53  ;;  %10583 = vmatmul.mubr.msk.bf16.gmra.mrb[4].mxu0 %vm513_vm3, %v10214_v31  ;;  %v10216_v56 = vcombine.low %v2249_v39, %v2259_v8  ;;  %v3402_v31 = vrot.slane %v10300_v54, 1  ;;  %v2512_v21 = vsel %vm11102_vm5, %v2510_v1, %v2511_v5  ;;  %v2518_v39 = vrot.slane %v11792_v16, 5  ;;  %v10230_v54 = vld [vmem:[%s11100_s11 + $0x3c] sm:$0xe]  ;;  %v9482_v28 = vld [vmem:[%s11702_s12 + $0x128] sm:$0xff] }
  0xca   : > { %10586 = vmatprep.mubr.msk.bf16.mxu0 %vm513_vm3, %v10215_v4  ;;  %v9476_v4 = vld [vmem:[%s11702_s12 + $0xf8] sm:$0xff]  ;;  %9629 = vrot.lane.b32.xlu0 %v9473_v18, %s10997_s13  ;;  %v10244_v34 = vcombine.low %v2509_v52, %v2512_v21  ;;  %v2525_v8 = vrot.slane %v11836_v30, 5  ;;  %v2516_v30 = vsel %vm11102_vm5, %v10236_v49, %v2515_v23  ;;  %v10238_v1 = vrot.slane %v10230_v54, 9  ;;  %v9486_v15 = vld [vmem:[%s11702_s12 + $0x148] sm:$0xff] }
  0xcb   : > { %9631 = vrot.lane.b32.xlu1 %v9474_v55, %s10997_s13  ;;  %v3404_v48 = vsel %vm2872_vm10, %v3402_v31, %v3403_v14  ;;  %v9479_v55 = vld [vmem:[%s11702_s12 + $0x110] sm:$0xff]  ;;  %v2531_v5 = vrot.slane %v2529_v3, 4  ;;  %v2532_v18 = vrot.slane %v11887_v35, 5  ;;  %v2538_v31 = vrot.slane %v2536_v47, 4 }
  0xcc   : > { %v2526_v59 = vsel %vm11102_vm5, %v2524_v57, %v2525_v8  ;;  %v2539_v14 = vrot.slane %v11890_v27, 5  ;;  %v3529_v35 = vrot.slane %v3527_v60, 1  ;;  %v10312_v27 = vld [vmem:[%s11571_s29 + $0xc] sm:$0xe]  ;;  %v2543_v23 = vrot.slane %v11903_v33, 5  ;;  %v9488_v8 = vld [vmem:[%s11702_s12 + $0x158] sm:$0xff] }
  0xcd   : > { %v10246_v45 = vcombine.low %v2523_v24, %v2526_v59  ;;  %v10233_v33 = vld [vmem:[%s11100_s11 + $0x60] sm:$0xe]  ;;  %v2553_v36 = vrot.slane %v11967_v12, 5  ;;  %v10319_v12 = vld [vmem:[%s11571_s29 + $0x18] sm:$0xf] }
  0xce   : > { %9633 = vrot.lane.b32.xlu0 %v9475_v11, %s10997_s13  ;;  %v2540_v21 = vsel %vm11102_vm5, %v2538_v31, %v2539_v14  ;;  %v9483_v11 = vld [vmem:[%s11702_s12 + $0x130] sm:$0xff]  ;;  %v2545_v49 = vrot.slane %v2543_v23, 4  ;;  %v10241_v32 = vrot.slane %v10233_v33, 9  ;;  %v10950_v60 = vld [vmem:[%s11571_s29 + $0x20] ss:$0 sps:$4 sm:$0x11]  }
  0xcf   : > { %10675 = vmatmul.mubr.msk.bf16.vlgmr.msra.gmra.mrb[56].mxu1 %vm513_vm3, %v11844_v6  ;;  %v12038_v6 = vld [vmem:[%s11571_s29 + $0x10] sm:$0xf]  ;;  %9635 = vrot.lane.b32.xlu1 %v9476_v4, %s10997_s13  ;;  %v9481_v4 = vld [vmem:[%s11702_s12 + $0x120] sm:$0xff] }
  0xd0   : > { %10679 = vmatpush3.bf16.msra.mxu1 %v11069_v2  ;;  %10680 = vmatprep.mubr.msk.bf16.mxu1 %vm10996_vm8, %v15948_v53  ;;  %v2297_v2 = vsel %vm11157_vm7, %v2292_v25, %v11988_v41  ;;  %v10309_v41 = vcombine.low %v10306_v37, %v12038_v6  ;;  %v10231_v25 = vld [vmem:[%s11100_s11 + $0x48] sm:$0xe]  ;;  %v9505_v33 = vld [vmem:[%s11702_s12 + $0x1e0] sm:$0xff] }
  0xd1   : > { %10684 = vmatprep.subr.bf16.mxu1 %v15948_v53  ;;  %10587 = vmatmul.mubr.msk.bf16.gmra.mrb[8].mxu0 %vm513_vm3, %v10216_v56  ;;  %v10218_v43 = vcombine.low %v2297_v2, %v2307_v0  ;;  %v10239_v62 = vrot.slane %v10231_v25, 9  ;;  %v9484_v2 = vld [vmem:[%s11702_s12 + $0x138] sm:$0xff]  ;;  %v2530_v0 = vsel %vm11102_vm5, %v10238_v1, %v2529_v3  ;;  %v9487_v3 = vld [vmem:[%s11702_s12 + $0x150] sm:$0xff] }
  0xd2   : > { %10590 = vmatprep.mubr.msk.bf16.mxu0 %vm513_vm3, %v10217_v44  ;;  %v3522_v16 = vshll.u32 %v10309_v41, 16  ;;  %9637 = vrot.lane.b32.xlu0 %v9477_v40, %s10997_s13  ;;  %v3520_v56 = vshrl.u32 %v10309_v41, 16  ;;  %v10313_v41 = vcombine.low %v10312_v27, %v12038_v6  ;;  %v9485_v6 = vld [vmem:[%s11702_s12 + $0x140] sm:$0xff]  ;;  %v12141_v40 = vld [vmem:[%s11571_s29 + $0x1c] sm:$0xf] }
  0xd3   : > { %9639 = vrot.lane.b32.xlu1 %v9478_v29, %s10997_s13  ;;  %v2537_v52 = vsel %vm11102_vm5, %v10239_v62, %v2536_v47  ;;  %v10322_v24 = vcombine.low %v10319_v12, %v12141_v40  ;;  %v9494_v62 = vld [vmem:[%s11702_s12 + $0x188] sm:$0xff] }
  0xd4   : > { %v3524_v44 = vrot.slane %v3522_v16, 1  ;;  %v3581_v57 = vrot.slane %v10313_v41, 1  ;;  %v9506_v41 = vld [vmem:[%s11702_s12 + $0x1e8] sm:$0xff] }
  0xd5   : > { %v3701_v25 = vshll.u32 %v10322_v24, 16  ;;  %v3699_v1 = vshrl.u32 %v10322_v24, 16 }
  0xd6   : > { %9641 = vrot.lane.b32.xlu0 %v9479_v55, %s10997_s13  ;;  %v3525_v37 = vor.u32 %v3524_v44, %v3520_v56  ;;  %v2560_v56 = vrot.slane %v11992_v26, 5  ;;  %v9489_v44 = vld [vmem:[%s11702_s12 + $0x160] sm:$0xff] }
  0xd7   : > { %10681 = vmatmul.mubr.msk.bf16.vlgmr.msra.gmra.mrb[60].mxu1 %vm513_vm3, %v3404_v48  ;;  %9643 = vrot.lane.b32.xlu1 %v9480_v50, %s10997_s13  ;;  %v2557_v50 = vrot.slane %v11952_v17, 5  ;;  %v9490_v17 = vld [vmem:[%s11702_s12 + $0x168] sm:$0xff] }
  0xd8   : > { %10685 = vmatpush3.bf16.msra.mxu1 %v11110_v9  ;;  %10686 = vmatprep.mubr.msk.bf16.mxu1 %vm10996_vm8, %v15948_v53  ;;  %v2519_v9 = vsel %vm11102_vm5, %v2517_v51, %v2518_v39  ;;  %v3530_v48 = vsel %vm2768_vm9, %v3525_v37, %v3529_v35  ;;  %v2546_v51 = vrot.slane %v11943_v20, 5  ;;  %v2552_v39 = vrot.slane %v2550_v22, 4  ;;  %v9496_v37 = vld [vmem:[%s11702_s12 + $0x198] sm:$0xff] }
  0xd9   : > { %10690 = vmatprep.subr.bf16.mxu1 %v15948_v53  ;;  %10591 = vmatmul.mubr.msk.bf16.gmra.mrb[12].mxu0 %vm513_vm3, %v10218_v43  ;;  %v10245_v19 = vcombine.low %v2516_v30, %v2519_v9  ;;  %v10248_v43 = vcombine.low %v2537_v52, %v2540_v21  ;;  %v3582_v20 = vrot.slane %v12070_v46, 1  ;;  %v2551_v46 = vsel %vm11102_vm5, %v10241_v32, %v2550_v22  ;;  %v10234_v9 = vld [vmem:[%s11100_s11 + $0x6c] sm:$0xe]  ;;  %v10325_v35 = vld [vmem:[%s11571_s29 + $0x18] sm:$0xe] }
  0xda   : > { %10596 = vmatprep.mubr.msk.bf16.mxu0 %vm513_vm3, %v10244_v34  ;;  %9645 = vrot.lane.b32.xlu0 %v9481_v4, %s10997_s13  ;;  %v10240_v34 = vrot.slane %v10232_v58, 9  ;;  %v2547_v16 = vsel %vm11102_vm5, %v2545_v49, %v2546_v51  ;;  %v2554_v30 = vsel %vm11102_vm5, %v2552_v39, %v2553_v36  ;;  %v10242_v47 = vrot.slane %v10234_v9, 9  ;;  %v9500_v21 = vld [vmem:[%s11702_s12 + $0x1b8] sm:$0xff]  ;;  %v9499_v58 = vld [vmem:[%s11702_s12 + $0x1b0] sm:$0xff] }
  0xdb   : > { %9647 = vrot.lane.b32.xlu1 %v9482_v28, %s10997_s13  ;;  %v10250_v54 = vcombine.low %v2551_v46, %v2554_v30  ;;  %v2559_v55 = vrot.slane %v2557_v50, 4  ;;  %v9492_v28 = vld [vmem:[%s11702_s12 + $0x178] sm:$0xff]  ;;  %v10326_v27 = vcombine.low %v10325_v35, %v12141_v40  ;;  %v3761_v52 = vrot.slane %v10950_v60, 1 }
  0xdc   : > { %v2558_v26 = vsel %vm11102_vm5, %v10242_v47, %v2557_v50 }
  0xde   : > { %9649 = vrot.lane.b32.xlu0 %v9483_v11, %s10997_s13  ;;  %v9502_v11 = vld [vmem:[%s11702_s12 + $0x1c8] sm:$0xff] }
  0xdf   : > { %10687 = vmatmul.mubr.msk.bf16.vlgmr.msra.gmra.mrb[64].mxu1 %vm513_vm3, %v10944_v61  ;;  %9651 = vrot.lane.b32.xlu1 %v9484_v2, %s10997_s13  ;;  %v3583_v61 = vsel %vm2872_vm10, %v3581_v57, %v3582_v20  ;;  %v9495_v2 = vld [vmem:[%s11702_s12 + $0x190] sm:$0xff] }
  0xe0   : > { %10691 = vmatpush3.bf16.msra.mxu1 %v11114_v10  ;;  %10692 = vmatprep.mubr.msk.bf16.mxu1 %vm10996_vm8, %v15948_v53  ;;  %v2533_v10 = vsel %vm11102_vm5, %v2531_v5, %v2532_v18  ;;  %v3703_v5 = vrot.slane %v3701_v25, 1  ;;  %v3706_v18 = vshll.u32 %v10950_v60, 16 }
  0xe1   : > { %10696 = vmatprep.subr.bf16.mxu1 %v15948_v53  ;;  %10597 = vmatmul.mubr.msk.bf16.vlgmr.msra.gmra.mrb[0].mxu0 %vm513_vm3, %v10245_v19  ;;  %v10247_v29 = vcombine.low %v2530_v0, %v2533_v10  ;;  %v10948_v19 = vld [vmem:[%s11571_s29 + $0x18] sm:$0xff]   ;;  %v9498_v0 = vld [vmem:[%s11702_s12 + $0x1a8] sm:$0xff]  ;;  %v9497_v10 = vld [vmem:[%s11702_s12 + $0x1a0] sm:$0xff] }
  0xe2   : > { %10600 = vmatprep.mubr.msk.bf16.mxu0 %vm513_vm3, %v10246_v45  ;;  %9653 = vrot.lane.b32.xlu0 %v9485_v6, %s10997_s13  ;;  %v9491_v45 = vld [vmem:[%s11702_s12 + $0x170] sm:$0xff]  ;;  %v3704_v14 = vor.u32 %v3703_v5, %v3699_v1  ;;  %v3708_v4 = vrot.slane %v3706_v18, 1 }
  0xe3   : > { %9655 = vrot.lane.b32.xlu1 %v9486_v15, %s10997_s13  ;;  %v9508_v15 = vld [vmem:[%s11702_s12 + $0x1f8] sm:$0xff] }
  0xe6   : > { %9657 = vrot.lane.b32.xlu0 %v9487_v3, %s10997_s13 }
  0xe7   : > { %10693 = vmatmul.mubr.msk.bf16.vlgmr.msra.gmra.mrb[68].mxu1 %vm513_vm3, %v3530_v48  ;;  %9659 = vrot.lane.b32.xlu1 %v9488_v8, %s10997_s13  ;;  %v9503_v48 = vld [vmem:[%s11702_s12 + $0x1d0] sm:$0xff] }
  0xe8   : > { %10697 = vmatpush3.bf16.msra.mxu1 %v11382_v63  ;;  %10698 = vmatprep.mubr.msk.bf16.mxu1 %vm10996_vm8, %v15948_v53  ;;  %v2544_v63 = vsel %vm11102_vm5, %v10240_v34, %v2543_v23  ;;  %v3760_v23 = vrot.slane %v10326_v27, 1 }
  0xe9   : > { %10702 = vmatprep.subr.bf16.mxu1 %v15948_v53  ;;  %10601 = vmatmul.mubr.msk.bf16.gmra.mrb[4].mxu0 %vm513_vm3, %v10247_v29  ;;  %v10249_v59 = vcombine.low %v2544_v63, %v2547_v16  ;;  %v9507_v29 = vld [vmem:[%s11702_s12 + $0x1f0] sm:$0xff] }
  0xea   : > { %10604 = vmatprep.mubr.msk.bf16.mxu0 %vm513_vm3, %v10248_v43  ;;  %9661 = vrot.lane.b32.xlu0 %v9489_v44, %s10997_s13  ;;  %v3762_v22 = vsel %vm2872_vm10, %v3760_v23, %v3761_v52 }
  0xeb   : > { %9663 = vrot.lane.b32.xlu1 %v9490_v17, %s10997_s13 }
  0xee   : > { %9665 = vrot.lane.b32.xlu0 %v9491_v45, %s10997_s13 }
  0xef   : > { %10699 = vmatmul.mubr.msk.bf16.vlgmr.msra.gmra.mrb[72].mxu1 %vm513_vm3, %v3583_v61  ;;  %9667 = vrot.lane.b32.xlu1 %v9492_v28, %s10997_s13 }
  0xf0   : > { %10703 = vmatpush3.bf16.msra.mxu1 %v11624_v13  ;;  %10704 = vmatprep.mubr.msk.bf16.mxu1 %vm10996_vm8, %v15948_v53  ;;  %v2561_v13 = vsel %vm11102_vm5, %v2559_v55, %v2560_v56 }
  0xf1   : > { %10708 = vmatprep.subr.bf16.mxu1 %v15948_v53  ;;  %10605 = vmatmul.mubr.msk.bf16.gmra.mrb[8].mxu0 %vm513_vm3, %v10249_v59  ;;  %v10251_v31 = vcombine.low %v2558_v26, %v2561_v13 }
  0xf2   : > { %10608 = vmatprep.mubr.msk.bf16.mxu0 %vm513_vm3, %v10250_v54  ;;  %9669 = vrot.lane.b32.xlu0 %v9493_v7, %s10997_s13 }
  0xf3   : > { %9671 = vrot.lane.b32.xlu1 %v9494_v62, %s10997_s13 }
  0xf6   : > { %9673 = vrot.lane.b32.xlu0 %v9495_v2, %s10997_s13 }
  0xf7   : > { %10705 = vmatmul.mubr.msk.bf16.vlgmr.msra.gmra.mrb[76].mxu1 %vm513_vm3, %v10948_v19  ;;  %9675 = vrot.lane.b32.xlu1 %v9496_v37, %s10997_s13 }
  0xf8   : > { %10709 = vmatpush3.bf16.msra.mxu1 %v11763_v42  ;;  %10710 = vmatprep.mubr.msk.bf16.mxu1 %vm10996_vm8, %v15948_v53  ;;  %v3709_v42 = vsel %vm2768_vm9, %v3704_v14, %v3708_v4 }
  0xf9   : > { %10714 = vmatprep.subr.bf16.mxu1 %v15948_v53  ;;  %10609 = vmatmul.mubr.msk.bf16.gmra.mrb[12].mxu0 %vm513_vm3, %v10251_v31 }
  0xfa   : > { %9677 = vrot.lane.b32.xlu0 %v9497_v10, %s10997_s13 }
  0xfb   : > { %9679 = vrot.lane.b32.xlu1 %v9498_v0, %s10997_s13 }
  0xfe   : > { %9681 = vrot.lane.b32.xlu0 %v9499_v58, %s10997_s13 }
  0xff   : > { %10711 = vmatmul.mubr.msk.bf16.vlgmr.msra.gmra.mrb[80].mxu1 %vm513_vm3, %v3709_v42  ;;  %9683 = vrot.lane.b32.xlu1 %v9500_v21, %s10997_s13 }
 0x100   : > { %10715 = vmatpush3.bf16.msra.mxu1 %v11815_v38  ;;  %10716 = vmatprep.mubr.msk.bf16.mxu1 %vm10996_vm8, %v15948_v53  ;;  %v9501_v38 = vld [vmem:[%s11702_s12 + $0x1c0] sm:$0xff]  ;;  %v9504_v53 = vld [vmem:[%s11702_s12 + $0x1d8] sm:$0xff] }
 0x102   : > { %9685 = vrot.lane.b32.xlu0 %v9501_v38, %s10997_s13 }
 0x103   : > { %9687 = vrot.lane.b32.xlu1 %v9502_v11, %s10997_s13 }
 0x106   : > { %9689 = vrot.lane.b32.xlu0 %v9503_v48, %s10997_s13 }
 0x107   : > { %10717 = vmatmul.mubr.msk.bf16.vlgmr.msra.gmra.mrb[84].mxu1 %vm513_vm3, %v3762_v22  ;;  %9691 = vrot.lane.b32.xlu1 %v9504_v53, %s10997_s13 }
 0x10a   : > { %9693 = vrot.lane.b32.xlu0 %v9505_v33, %s10997_s13 }
 0x10b   : > { %9695 = vrot.lane.b32.xlu1 %v9506_v41, %s10997_s13 }
 0x10e   : > { %9697 = vrot.lane.b32.xlu0 %v9507_v29, %s10997_s13 }
 0x10f   : > { %9699 = vrot.lane.b32.xlu1 %v9508_v15, %s10997_s13  ;;  %v12264_v15 = vld [vmem:[%s15725_s2] ss:$0 sm:$0xff] }
 0x126   : > { %v12229_v43 = vpop.f32.mrb[0].mxu1 }
 0x127   : > { %v12231_v34 = vpop.f32.mrb[1].mxu1 }
 0x128   : > { %v12233_v49 = vpop.f32.mrb[2].mxu1 }
 0x129   : > { %v12235_v51 = vpop.f32.mrb[3].mxu1 }
 0x12e   : > { %v12237_v32 = vpop.f32.mrb[4].mxu1 }
 0x12f   : > { %v12239_v39 = vpop.f32.mrb[5].mxu1 }
 0x130   : > { %v12241_v36 = vpop.f32.mrb[6].mxu1 }
 0x131   : > { %v12243_v6 = vpop.f32.mrb[7].mxu1 }
 0x136   : > { %v12245_v57 = vpop.f32.mrb[8].mxu1 }
 0x137   : > { %15949 = vst [vmem:[#allocation2_spill] sm:$0xff] %v12245_v57  ;;  %v12247_v20 = vpop.f32.mrb[9].mxu1 }
 0x138   : > { %15950 = vst [vmem:[#allocation3_spill] sm:$0xff] %v12247_v20  ;;  %v12249_v8 = vpop.f32.mrb[10].mxu1 }
 0x139   : > { %15951 = vst [vmem:[#allocation4_spill] sm:$0xff] %v12249_v8  ;;  %v12251_v12 = vpop.f32.mrb[11].mxu1 }
 0x13a   : > { %15952 = vst [vmem:[#allocation5_spill] sm:$0xff] %v12251_v12 }
 0x14a   : > { %v12253_v40 = vpop.f32.mrb[12].mxu1 }
 0x14b   : > { %15953 = vst [vmem:[#allocation6_spill] sm:$0xff] %v12253_v40  ;;  %v12255_v63 = vpop.f32.mrb[13].mxu1 }
 0x14c   : > { %15954 = vst [vmem:[#allocation7_spill] sm:$0xff] %v12255_v63  ;;  %v12257_v16 = vpop.f32.mrb[14].mxu1 }
 0x14d   : > { %15955 = vst [vmem:[#allocation8_spill] sm:$0xff] %v12257_v16  ;;  %v12259_v50 = vpop.f32.mrb[15].mxu1 }
 0x14e   : > { %15956 = vst [vmem:[#allocation9_spill] sm:$0xff] %v12259_v50 }
 0x152   : > { %v2818_v46 = vpop.f32.mrb[16].mxu1 }
 0x153   : > { %v10616_v30 = vpop.f32.mrb[17].mxu1 }
 0x154   : > { %v2821_v9 = vpop.f32.mrb[18].mxu1 }
 0x155   : > { %v10617_v3 = vpop.f32.mrb[19].mxu1 }
 0x15a   : > { %v2861_v61 = vpop.f32.mrb[20].mxu1 }
 0x15b   : > { %v2862_v24 = vadd.f32 %v2861_v61, %v2818_v46  ;;  %v10622_v17 = vpop.f32.mrb[21].mxu1  ;;  %v10998_v46 = vmov 1966171168  }
 0x15c   : > { %v2864_v59 = vpop.f32.mrb[22].mxu1  ;;  %v4075_v30 = vunpack.c.l.s4 %v10998_v46 }
 0x15d   : > { %v2865_v54 = vadd.f32 %v2864_v59, %v2821_v9  ;;  %v10623_v47 = vpop.f32.mrb[23].mxu1  ;;  %v4077_v9 = vlaneseq }
 0x15e   : > { %v4076_v47 = vunpack.c.0.s8 %v4075_v30 }
 0x162   : > { %v2913_v55 = vpop.f32.mrb[24].mxu1 }
 0x163   : > { %v2920_v56 = vadd.f32 %v2913_v55, %v2862_v24  ;;  %v10628_v44 = vpop.f32.mrb[25].mxu1  ;;  %v12267_v55 = vshrl.u32 %v4077_v9, 7 }
 0x164   : > { %v2916_v60 = vpop.f32.mrb[26].mxu1 }
 0x165   : > { %v2921_v25 = vadd.f32 %v2916_v60, %v2865_v54  ;;  %v10629_v28 = vpop.f32.mrb[27].mxu1 }
 0x16a   : > { %v2970_v26 = vpop.f32.mrb[28].mxu1 }
 0x16b   : > { %v2977_v13 = vadd.f32 %v2970_v26, %v2920_v56  ;;  %v10634_v19 = vpop.f32.mrb[29].mxu1 }
 0x16c   : > { %v2973_v45 = vpop.f32.mrb[30].mxu1 }
 0x16d   : > { %v2978_v1 = vadd.f32 %v2973_v45, %v2921_v25  ;;  %v10635_v5 = vpop.f32.mrb[31].mxu1  ;;  %v12272_v45 = vsub.s32 %v4076_v47, %v12267_v55 }
 0x16e   : > { %v10999_v5 = vmov 1983009808  }
 0x16f   : > { %15957 = vst [vmem:[#allocation10_spill] sm:$0xff] %v12272_v45 }
 0x172   : > { %v3039_v18 = vpop.f32.mrb[32].mxu1 }
 0x173   : > { %v3046_v62 = vadd.f32 %v3039_v18, %v2977_v13  ;;  %v10640_v31 = vpop.f32.mrb[33].mxu1  ;;  %v12276_v18 = vunpack.c.l.s4 %v10999_v5 }
 0x174   : > { %v3042_v7 = vpop.f32.mrb[34].mxu1 }
 0x175   : > { %v3047_v14 = vadd.f32 %v3042_v7, %v2978_v1  ;;  %v10641_v4 = vpop.f32.mrb[35].mxu1 }
 0x17a   : > { %v3092_v37 = vpop.f32.mrb[36].mxu1 }
 0x17b   : > { %v3099_v35 = vadd.f32 %v3092_v37, %v3046_v62  ;;  %v10646_v2 = vpop.f32.mrb[37].mxu1 }
 0x17c   : > { %v3095_v42 = vpop.f32.mrb[38].mxu1 }
 0x17d   : > { %v3100_v27 = vadd.f32 %v3095_v42, %v3047_v14  ;;  %v10647_v0 = vpop.f32.mrb[39].mxu1 }
 0x182   : > { %v3149_v10 = vpop.f32.mrb[40].mxu1 }
 0x183   : > { %v3156_v23 = vadd.f32 %v3149_v10, %v3099_v35  ;;  %v10652_v52 = vpop.f32.mrb[41].mxu1 }
 0x184   : > { %v3152_v21 = vpop.f32.mrb[42].mxu1 }
 0x185   : > { %v3157_v58 = vadd.f32 %v3152_v21, %v3100_v27  ;;  %v10653_v22 = vpop.f32.mrb[43].mxu1 }
 0x186   : > { %v12285_v22 = vsub.s32 0, %v12267_v55 }
 0x188   : > { %15958 = vst [vmem:[#allocation11_spill] sm:$0xff] %v12285_v22 }
 0x18a   : > { %v3218_v11 = vpop.f32.mrb[44].mxu1 }
 0x18b   : > { %v3225_v38 = vadd.f32 %v3218_v11, %v3156_v23  ;;  %v10658_v53 = vpop.f32.mrb[45].mxu1 }
 0x18c   : > { %v3221_v48 = vpop.f32.mrb[46].mxu1 }
 0x18d   : > { %v3226_v41 = vadd.f32 %v3221_v48, %v3157_v58  ;;  %v10659_v33 = vpop.f32.mrb[47].mxu1 }
 0x192   : > { %v3271_v29 = vpop.f32.mrb[48].mxu1 }
 0x193   : > { %v3278_v3 = vadd.f32 %v3271_v29, %v3225_v38  ;;  %v10664_v61 = vpop.f32.mrb[49].mxu1 }
 0x194   : > { %v3274_v24 = vpop.f32.mrb[50].mxu1 }
 0x195   : > { %v3280_v17 = vadd.f32 %v12264_v15, %v3278_v3  ;;  %v3279_v59 = vadd.f32 %v3274_v24, %v3226_v41  ;;  %v10665_v54 = vpop.f32.mrb[51].mxu1 }
 0x197   : > { %v3832_v56 = vrot.slane %v3280_v17, 7  ;;  %v3281_v44 = vadd.f32 %v12264_v15, %v3279_v59  ;;  %v3893_v25 = vrot.slane %v3280_v17, 1  ;;  %v3973_v19 = vmul.f32 0.75, %v3280_v17 }
 0x199   : > { %v3882_v60 = vsel %vm3831_vm11, %v3280_v17, %v3832_v56  ;;  %v3833_v28 = vrot.slane %v3281_v44, 7  ;;  %v3894_v26 = vrot.slane %v3281_v44, 1  ;;  %v3974_v14 = vmul.f32 0.75, %v3281_v44 }
 0x19a   : > { %v3953_v13 = vmul.f32 0.25, %v3882_v60  ;;  %v12274_v1 = vpop.f32.mrb[52].mxu1 }
 0x19b   : > { %v3834_v62 = vsel %vm3831_vm11, %v3832_v56, %v3833_v28  ;;  %v3895_v31 = vsel %vm2872_vm10, %v3893_v25, %v3894_v26  ;;  %v3943_v7 = vsel %vm2872_vm10, %v3894_v26, %v3281_v44  ;;  %v10670_v4 = vpop.f32.mrb[53].mxu1 }
 0x19c   : > { %v3993_v37 = vadd.f32 %v3973_v19, %v3953_v13  ;;  %v3954_v35 = vmul.f32 0.25, %v3834_v62  ;;  %v4013_v2 = vmul.f32 0.25, %v3895_v31  ;;  %v4014_v42 = vmul.f32 0.25, %v3943_v7  ;;  %v12281_v27 = vpop.f32.mrb[54].mxu1 }
 0x19d   : > { %v10671_v0 = vpop.f32.mrb[55].mxu1 }
 0x19e   : > { %v4073_v10 = vcombine.high %v3993_v37, %v3993_v37  ;;  %v4080_v23 = vrot.slane %v3993_v37, %v12272_v45  ;;  %v3994_v52 = vadd.f32 %v3974_v14, %v3954_v35  ;;  %v4033_v21 = vadd.f32 %v4013_v2, %v3973_v19 }
 0x19f   : > { %v4034_v58 = vadd.f32 %v4014_v42, %v3974_v14 }
 0x1a0   : > { %v4087_v38 = vrot.slane %v4073_v10, %v12272_v45  ;;  %v4088_v53 = vcombine.high %v4080_v23, %v4080_v23  ;;  %v12290_v48 = vrot.slane %v4080_v23, %v12272_v45  ;;  %v4122_v41 = vcombine.high %v3994_v52, %v3994_v52 }
 0x1a1   : > { %v4129_v33 = vrot.slane %v3994_v52, %v12272_v45  ;;  %v5233_v29 = vcombine.high %v4033_v21, %v4033_v21  ;;  %v5240_v46 = vrot.slane %v4033_v21, %v12272_v45  ;;  %v5282_v30 = vcombine.high %v4034_v58, %v4034_v58 }
 0x1a2   : > { %v4089_v9 = vcombine.high %v4087_v38, %v4087_v38  ;;  %v12295_v3 = vrot.slane %v4087_v38, %v12272_v45  ;;  %v12298_v61 = vrot.slane %v4088_v53, %v12272_v45  ;;  %v12302_v17 = vpop.f32.mrb[56].mxu1  ;;  %v4136_v59 = vrot.slane %v4122_v41, %v12272_v45 }
 0x1a3   : > { %v4137_v54 = vcombine.high %v4129_v33, %v4129_v33  ;;  %v12306_v47 = vrot.slane %v4129_v33, %v12272_v45  ;;  %v5247_v56 = vrot.slane %v5233_v29, %v12272_v45  ;;  %v10676_v44 = vpop.f32.mrb[57].mxu1  ;;  %v5248_v26 = vcombine.high %v5240_v46, %v5240_v46 }
 0x1a4   : > { %v12310_v60 = vrot.slane %v4089_v9, %v12272_v45  ;;  %v4119_v25 = vcombine.high %v12295_v3, %v12295_v3  ;;  %v4120_v28 = vcombine.high %v12298_v61, %v12298_v61  ;;  %v12316_v13 = vpop.f32.mrb[58].mxu1  ;;  %v4138_v19 = vcombine.high %v4136_v59, %v4136_v59 }
 0x1a5   : > { %v12319_v5 = vrot.slane %v4136_v59, %v12272_v45  ;;  %v12322_v62 = vrot.slane %v4137_v54, %v12272_v45  ;;  %v4167_v31 = vcombine.high %v12306_v47, %v12306_v47  ;;  %v10677_v7 = vpop.f32.mrb[59].mxu1  ;;  %v5249_v4 = vcombine.high %v5247_v56, %v5247_v56 }
 0x1a6   : > { %v4121_v14 = vcombine.high %v12310_v60, %v12310_v60  ;;  %v5256_v37 = vrot.slane %v5240_v46, %v12272_v45  ;;  %v5263_v35 = vrot.slane %v5247_v56, %v12272_v45  ;;  %v4166_v2 = vrot.slane %v4138_v19, %v12272_v45 }
 0x1a7   : > { %v4168_v42 = vcombine.high %v12319_v5, %v12319_v5  ;;  %v4169_v0 = vcombine.high %v12322_v62, %v12322_v62  ;;  %v5270_v10 = vrot.slane %v5248_v26, %v12272_v45  ;;  %v5277_v23 = vrot.slane %v5249_v4, %v12272_v45 }
 0x1a8   : > { %v5278_v52 = vcombine.high %v5256_v37, %v5256_v37  ;;  %v5279_v21 = vcombine.high %v5263_v35, %v5263_v35  ;;  %v5289_v38 = vrot.slane %v4034_v58, %v12272_v45  ;;  %v4170_v53 = vcombine.high %v4166_v2, %v4166_v2 }
 0x1a9   : > { %v5280_v41 = vcombine.high %v5270_v10, %v5270_v10  ;;  %v5296_v33 = vrot.slane %v5282_v30, %v12272_v45  ;;  %v6216_v29 = vrot.slane %v5256_v37, %v12285_v22  ;;  %v5281_v46 = vcombine.high %v5277_v23, %v5277_v23 }
 0x1aa   : > { %v5297_v9 = vcombine.high %v5289_v38, %v5289_v38  ;;  %v5305_v59 = vrot.slane %v5289_v38, %v12272_v45  ;;  %v6220_v54 = vrot.slane %v5270_v10, %v12285_v22  ;;  %v12342_v56 = vpop.f32.mrb[60].mxu1  ;;  %v6224_v19 = vrot.slane %v5278_v52, %v12285_v22 }
 0x1ab   : > { %v5298_v44 = vcombine.high %v5296_v33, %v5296_v33  ;;  %v5312_v26 = vrot.slane %v5296_v33, %v12272_v45  ;;  %v6228_v58 = vrot.slane %v5280_v41, %v12285_v22  ;;  %v10682_v7 = vpop.f32.mrb[61].mxu1  ;;  %v6232_v37 = vrot.slane %v5263_v35, %v12285_v22 }
 0x1ac   : > { %v5319_v30 = vrot.slane %v5297_v9, %v12272_v45  ;;  %v5327_v4 = vcombine.high %v5305_v59, %v5305_v59  ;;  %v6236_v11 = vrot.slane %v5277_v23, %v12285_v22  ;;  %v3445_v38 = vpop.f32.mrb[62].mxu1  ;;  %v6240_v50 = vrot.slane %v5279_v21, %v12285_v22 }
 0x1ad   : > { %v5326_v10 = vrot.slane %v5298_v44, %v12272_v45  ;;  %v5328_v24 = vcombine.high %v5312_v26, %v5312_v26  ;;  %v6244_v33 = vrot.slane %v5281_v46, %v12285_v22  ;;  %v10683_v16 = vpop.f32.mrb[63].mxu1  ;;  %v6248_v41 = vrot.slane %v5305_v59, %v12285_v22 }
 0x1ae   : > { %v5329_v52 = vcombine.high %v5319_v30, %v5319_v30  ;;  %v6252_v7 = vrot.slane %v5319_v30, %v12285_v22  ;;  %v6256_v9 = vrot.slane %v5327_v4, %v12285_v22  ;;  %v6264_v35 = vrot.slane %v5312_v26, %v12285_v22 }
 0x1af   : > { %v5330_v63 = vcombine.high %v5326_v10, %v5326_v10  ;;  %v6268_v23 = vrot.slane %v5326_v10, %v12285_v22  ;;  %v6272_v44 = vrot.slane %v5328_v24, %v12285_v22  ;;  %v7013_v21 = vsel %vm3831_vm11, %v12290_v48, %v6216_v29 }
 0x1b0   : > { %v6260_v40 = vrot.slane %v5329_v52, %v12285_v22  ;;  %v7014_v16 = vsel %vm3831_vm11, %v12298_v61, %v6220_v54  ;;  %v15959_v46 = vcombine.high %v12290_v48, %v12290_v48  ;;  %v7016_v26 = vsel %vm3831_vm11, %v4120_v28, %v6228_v58 }
 0x1b1   : > { %v6276_v30 = vrot.slane %v5330_v63, %v12285_v22  ;;  %v7017_v24 = vsel %vm3831_vm11, %v12295_v3, %v6232_v37  ;;  %v7018_v4 = vsel %vm3831_vm11, %v12310_v60, %v6236_v11  ;;  %v7019_v29 = vsel %vm3831_vm11, %v4119_v25, %v6240_v50 }
 0x1b2   : > { %v7015_v59 = vsel %vm3831_vm11, %v15959_v46, %v6224_v19  ;;  %v7020_v10 = vsel %vm3831_vm11, %v4121_v14, %v6244_v33  ;;  %v7021_v61 = vsel %vm3831_vm11, %v12306_v47, %v6248_v41  ;;  %v7022_v48 = vsel %vm3831_vm11, %v12322_v62, %v6252_v7  ;;  %v3499_v54 = vpop.f32.mrb[64].mxu1 }
 0x1b3   : > { %v7023_v63 = vsel %vm3831_vm11, %v4167_v31, %v6256_v9  ;;  %v7024_v28 = vsel %vm3831_vm11, %v4169_v0, %v6260_v40  ;;  %v7025_v3 = vsel %vm3831_vm11, %v12319_v5, %v6264_v35  ;;  %v7026_v11 = vsel %vm3831_vm11, %v4166_v2, %v6268_v23  ;;  %v10688_v60 = vpop.f32.mrb[65].mxu1 }
 0x1b4   : > { %v7027_v50 = vsel %vm3831_vm11, %v4168_v42, %v6272_v44  ;;  %v7028_v25 = vsel %vm3831_vm11, %v4170_v53, %v6276_v30  ;;  %v3502_v14 = vpop.f32.mrb[66].mxu1  ;;  %v10598_v47 = vpop.f32.mrb[0].mxu0  ;;  %v12387_v19 = vmul.f32 0.25, %v7013_v21  ;;  %v12389_v62 = vmul.f32 0.25, %v7014_v16 }
 0x1b5   : > { %v10689_v58 = vpop.f32.mrb[67].mxu1  ;;  %v2649_v31 = vpop.f32.mrb[1].mxu0  ;;  %v15960_v40 = vunpack.c.0.s8 %v12276_v18  ;;  %v12396_v5 = vmul.f32 0.25, %v7015_v59  ;;  %v12398_v2 = vmul.f32 0.25, %v7016_v26  ;;  %v12400_v42 = vmul.f32 0.25, %v7017_v24 }
 0x1b6   : > { %v12402_v53 = vmul.f32 0.25, %v7018_v4  ;;  %v10599_v37 = vpop.f32.mrb[2].mxu0  ;;  %v12404_v33 = vmul.f32 0.25, %v7019_v29  ;;  %v12406_v52 = vmul.f32 0.25, %v7020_v10  ;;  %v12408_v41 = vmul.f32 0.25, %v7021_v61 }
 0x1b7   : > { %v12394_v0 = vsub.s32 %v15960_v40, %v12267_v55  ;;  %15962 = vst [vmem:[#allocation13_spill] sm:$0xff] %v12396_v5  ;;  %15963 = vst [vmem:[#allocation14_spill] sm:$0xff] %v12398_v2  ;;  %v12410_v7 = vmul.f32 0.25, %v7022_v48  ;;  %v2652_v18 = vpop.f32.mrb[3].mxu0  ;;  %v12412_v55 = vmul.f32 0.25, %v7023_v63  ;;  %v12414_v9 = vmul.f32 0.25, %v7024_v28 }
 0x1b8   : > { %15964 = vst [vmem:[#allocation15_spill] sm:$0xff] %v12400_v42  ;;  %15965 = vst [vmem:[#allocation16_spill] sm:$0xff] %v12402_v53  ;;  %v3392_v35 = vadd.f32 %v12302_v17, %v12274_v1  ;;  %v3395_v23 = vadd.f32 %v12316_v13, %v12281_v27  ;;  %v10722_v44 = vadd.f32 %v10598_v47, %v12229_v43  ;;  %v12424_v59 = vmul.f32 0.25, %v7025_v3 }
 0x1b9   : > { %15961 = vst [vmem:[#allocation12_spill] sm:$0xff] %v12394_v0  ;;  %15966 = vst [vmem:[#allocation17_spill] sm:$0xff] %v12404_v33  ;;  %v10723_v21 = vadd.f32 %v2649_v31, %v12231_v34  ;;  %v10724_v16 = vadd.f32 %v10599_v37, %v12233_v49  ;;  %v10725_v46 = vadd.f32 %v2652_v18, %v12235_v51  ;;  %v12426_v30 = vmul.f32 0.25, %v7026_v11 }
 0x1ba   : > { %15967 = vst [vmem:[#allocation18_spill] sm:$0xff] %v12406_v52  ;;  %15968 = vst [vmem:[#allocation19_spill] sm:$0xff] %v12408_v41  ;;  %v3449_v26 = vadd.f32 %v12342_v56, %v3392_v35  ;;  %v3450_v24 = vadd.f32 %v3445_v38, %v3395_v23  ;;  %v3568_v4 = vpop.f32.mrb[68].mxu1  ;;  %v12429_v1 = vmul.f32 0.25, %v7027_v50  ;;  %v2737_v27 = vadd.f32 %v10722_v44, %v12264_v15 }
 0x1bb   : > { %15969 = vst [vmem:[#allocation20_spill] sm:$0xff] %v12410_v7  ;;  %15970 = vst [vmem:[#allocation21_spill] sm:$0xff] %v12412_v55  ;;  %v12433_v43 = vadd.f32 %v10723_v21, %v12264_v15  ;;  %v10694_v34 = vpop.f32.mrb[69].mxu1  ;;  %v2738_v49 = vadd.f32 %v10724_v16, %v12264_v15  ;;  %v12436_v17 = vmul.f32 0.25, %v7028_v25  ;;  %v12439_v10 = vadd.f32 %v10725_v46, %v12264_v15 }
 0x1bc   : > { %15971 = vst [vmem:[#allocation22_spill] sm:$0xff] %v12414_v9  ;;  %15972 = vst [vmem:[#allocation23_spill] sm:$0xff] %v12424_v59  ;;  %v3506_v51 = vadd.f32 %v3499_v54, %v3449_v26  ;;  %v3507_v13 = vadd.f32 %v3502_v14, %v3450_v24  ;;  %v3571_v29 = vpop.f32.mrb[70].mxu1  ;;  %v12441_v56 = vpop.f32.mrb[4].mxu0  ;;  %v3838_v38 = vrot.slane %v2737_v27, 7  ;;  %v3899_v61 = vrot.slane %v2737_v27, 1 }
 0x1bd   : > { %15973 = vst [vmem:[#allocation24_spill] sm:$0xff] %v12426_v30  ;;  %15974 = vst [vmem:[#allocation25_spill] sm:$0xff] %v12429_v1  ;;  %v3977_v48 = vmul.f32 0.75, %v2737_v27  ;;  %v3835_v63 = vrot.slane %v12433_v43, 7  ;;  %v10695_v28 = vpop.f32.mrb[71].mxu1  ;;  %v12444_v3 = vpop.f32.mrb[5].mxu0 }
 0x1be   : > { %15975 = vst [vmem:[#allocation26_spill] sm:$0xff] %v12436_v17  ;;  %v12446_v11 = vadd.f32 %v3568_v4, %v3506_v51  ;;  %v12450_v54 = vmul.f32 0.75, %v12433_v43  ;;  %v3839_v50 = vrot.slane %v2738_v49, 7  ;;  %v12452_v25 = vpop.f32.mrb[6].mxu0  ;;  %v3884_v14 = vsel %vm3831_vm11, %v2737_v27, %v3838_v38 }
 0x1bf   : > { %v3883_v47 = vsel %vm3831_vm11, %v12433_v43, %v3835_v63  ;;  %v3900_v58 = vrot.slane %v2738_v49, 1  ;;  %v3978_v31 = vmul.f32 0.75, %v2738_v49  ;;  %v12457_v40 = vpop.f32.mrb[7].mxu0  ;;  %v3957_v37 = vmul.f32 0.25, %v3884_v14 }
 0x1c0   : > { %v3955_v18 = vmul.f32 0.25, %v3883_v47  ;;  %v3840_v35 = vsel %vm3831_vm11, %v3838_v38, %v3839_v50  ;;  %v12460_v23 = vadd.f32 %v3571_v29, %v3507_v13  ;;  %v3836_v46 = vrot.slane %v12439_v10, 7 }
 0x1c1   : > { %v3901_v44 = vsel %vm2872_vm10, %v3899_v61, %v3900_v58  ;;  %v3945_v21 = vsel %vm2872_vm10, %v3900_v58, %v2738_v49  ;;  %v3958_v16 = vmul.f32 0.25, %v3840_v35  ;;  %v3997_v26 = vadd.f32 %v3977_v48, %v3957_v37 }
 0x1c2   : > { %v3995_v24 = vadd.f32 %v12450_v54, %v3955_v18  ;;  %v4017_v4 = vmul.f32 0.25, %v3901_v44  ;;  %v4018_v27 = vmul.f32 0.25, %v3945_v21  ;;  %v12466_v34 = vpop.f32.mrb[72].mxu1  ;;  %v3837_v28 = vsel %vm3831_vm11, %v3835_v63, %v3836_v46 }
 0x1c3   : > { %v3998_v51 = vadd.f32 %v3978_v31, %v3958_v16  ;;  %v3897_v13 = vrot.slane %v12439_v10, 1  ;;  %v12471_v29 = vmul.f32 0.75, %v12439_v10  ;;  %v10700_v38 = vpop.f32.mrb[73].mxu1  ;;  %v4269_v49 = vcombine.high %v3997_v26, %v3997_v26 }
 0x1c4   : > { %v4276_v61 = vrot.slane %v3997_v26, %v12272_v45  ;;  %v4171_v50 = vcombine.high %v3995_v24, %v3995_v24  ;;  %v4178_v14 = vrot.slane %v3995_v24, %v12272_v45  ;;  %v12475_v47 = vpop.f32.mrb[74].mxu1  ;;  %v4037_v58 = vadd.f32 %v4017_v4, %v3977_v48 }
 0x1c5   : > { %v4038_v37 = vadd.f32 %v4018_v27, %v3978_v31  ;;  %v4318_v18 = vcombine.high %v3998_v51, %v3998_v51  ;;  %v4325_v35 = vrot.slane %v3998_v51, %v12272_v45  ;;  %v10701_v63 = vpop.f32.mrb[75].mxu1  ;;  %v4283_v44 = vrot.slane %v4269_v49, %v12272_v45 }
 0x1c6   : > { %v4284_v21 = vcombine.high %v4276_v61, %v4276_v61  ;;  %v12480_v16 = vrot.slane %v4276_v61, %v12272_v45  ;;  %v4185_v46 = vrot.slane %v4171_v50, %v12272_v45  ;;  %v4186_v26 = vcombine.high %v4178_v14, %v4178_v14 }
 0x1c7   : > { %v12484_v38 = vrot.slane %v4178_v14, %v12272_v45  ;;  %v4332_v24 = vrot.slane %v4318_v18, %v12272_v45  ;;  %v4333_v48 = vcombine.high %v4325_v35, %v4325_v35  ;;  %v4285_v31 = vcombine.high %v4283_v44, %v4283_v44 }
 0x1c8   : > { %v12488_v4 = vrot.slane %v4283_v44, %v12272_v45  ;;  %v12491_v27 = vrot.slane %v4284_v21, %v12272_v45  ;;  %v4187_v49 = vcombine.high %v4185_v46, %v4185_v46  ;;  %v12496_v61 = vrot.slane %v4185_v46, %v12272_v45 }
 0x1c9   : > { %v12499_v50 = vrot.slane %v4186_v26, %v12272_v45  ;;  %v12504_v18 = vrot.slane %v4285_v31, %v12272_v45  ;;  %v4334_v21 = vcombine.high %v4332_v24, %v4332_v24  ;;  %v12518_v14 = vrot.slane %v4325_v35, %v12272_v45 }
 0x1ca   : > { %v12511_v51 = vrot.slane %v4187_v49, %v12272_v45  ;;  %v12523_v63 = vrot.slane %v4332_v24, %v12272_v45  ;;  %v12526_v44 = vrot.slane %v4333_v48, %v12272_v45  ;;  %v5429_v35 = vcombine.high %v4037_v58, %v4037_v58 }
 0x1cb   : > { %15976 = vst [vmem:[#allocation27_spill] sm:$0xff] %v12504_v18  ;;  %v12529_v49 = vrot.slane %v4334_v21, %v12272_v45  ;;  %v4363_v26 = vcombine.high %v12518_v14, %v12518_v14  ;;  %v5436_v60 = vrot.slane %v4037_v58, %v12272_v45  ;;  %v5478_v21 = vcombine.high %v4038_v37, %v4038_v37 }
 0x1cc   : > { %v4364_v31 = vcombine.high %v12523_v63, %v12523_v63  ;;  %v4365_v24 = vcombine.high %v12526_v44, %v12526_v44  ;;  %v5443_v12 = vrot.slane %v5429_v35, %v12272_v45  ;;  %v5485_v20 = vrot.slane %v4038_v37, %v12272_v45 }
 0x1cd   : > { %v4366_v48 = vcombine.high %v12529_v49, %v12529_v49  ;;  %v5444_v8 = vcombine.high %v5436_v60, %v5436_v60  ;;  %v5452_v46 = vrot.slane %v5436_v60, %v12272_v45  ;;  %v5492_v57 = vrot.slane %v5478_v21, %v12272_v45 }
 0x1ce   : > { %v15977_v58 = vrot.slane %v12433_v43, 1  ;;  %v12553_v17 = vsel %vm2872_vm10, %v3897_v13, %v12439_v10  ;;  %v12555_v1 = vmul.f32 0.25, %v3837_v28  ;;  %v5445_v30 = vcombine.high %v5443_v12, %v5443_v12 }
 0x1cf   : > { %v5459_v35 = vrot.slane %v5443_v12, %v12272_v45  ;;  %v5466_v60 = vrot.slane %v5444_v8, %v12272_v45  ;;  %v5474_v59 = vcombine.high %v5452_v46, %v5452_v46  ;;  %v5493_v37 = vcombine.high %v5485_v20, %v5485_v20 }
 0x1d0   : > { %v12549_v0 = vsel %vm2872_vm10, %v15977_v58, %v3897_v13  ;;  %v5494_v9 = vcombine.high %v5492_v57, %v5492_v57  ;;  %v5501_v21 = vrot.slane %v5485_v20, %v12272_v45  ;;  %v5508_v43 = vrot.slane %v5492_v57, %v12272_v45 }
 0x1d1   : > { %v5473_v58 = vrot.slane %v5445_v30, %v12272_v45  ;;  %v5475_v55 = vcombine.high %v5459_v35, %v5459_v35  ;;  %v5476_v7 = vcombine.high %v5466_v60, %v5466_v60  ;;  %v6344_v10 = vrot.slane %v5452_v46, %v12285_v22 }
 0x1d2   : > { %v5515_v28 = vrot.slane %v5493_v37, %v12272_v45  ;;  %v5522_v13 = vrot.slane %v5494_v9, %v12272_v45  ;;  %v5523_v12 = vcombine.high %v5501_v21, %v5501_v21  ;;  %v5524_v41 = vcombine.high %v5508_v43, %v5508_v43 }
 0x1d3   : > { %v5477_v8 = vcombine.high %v5473_v58, %v5473_v58  ;;  %v6348_v52 = vrot.slane %v5466_v60, %v12285_v22  ;;  %v6352_v33 = vrot.slane %v5474_v59, %v12285_v22  ;;  %v6356_v20 = vrot.slane %v5476_v7, %v12285_v22  ;;  %v12576_v60 = vpop.f32.mrb[8].mxu0 }
 0x1d4   : > { %v5525_v57 = vcombine.high %v5515_v28, %v5515_v28  ;;  %v5526_v53 = vcombine.high %v5522_v13, %v5522_v13  ;;  %v6360_v30 = vrot.slane %v5459_v35, %v12285_v22  ;;  %v6364_v42 = vrot.slane %v5473_v58, %v12285_v22  ;;  %15979 = vst [vmem:[#allocation29_spill] sm:$0xff] %v12576_v60 }
 0x1d5   : > { %v6368_v46 = vrot.slane %v5475_v55, %v12285_v22  ;;  %v12572_v37 = vrot.slane %v5477_v8, %v12285_v22  ;;  %v6376_v9 = vrot.slane %v5501_v21, %v12285_v22  ;;  %v6380_v2 = vrot.slane %v5515_v28, %v12285_v22 }
 0x1d6   : > { %v6384_v59 = vrot.slane %v5523_v12, %v12285_v22  ;;  %v6388_v7 = vrot.slane %v5525_v57, %v12285_v22  ;;  %v6392_v5 = vrot.slane %v5508_v43, %v12285_v22  ;;  %v6396_v35 = vrot.slane %v5522_v13, %v12285_v22 }
 0x1d7   : > { %15978 = vst [vmem:[#allocation28_spill] sm:$0xff] %v12572_v37  ;;  %v6400_v58 = vrot.slane %v5524_v41, %v12285_v22  ;;  %v6404_v55 = vrot.slane %v5526_v53, %v12285_v22  ;;  %v7045_v8 = vsel %vm3831_vm11, %v12480_v16, %v6344_v10  ;;  %v7046_v21 = vsel %vm3831_vm11, %v12491_v27, %v6348_v52 }
 0x1d8   : > { %v15980_v28 = vcombine.high %v12480_v16, %v12480_v16  ;;  %v15981_v43 = vcombine.high %v12491_v27, %v12491_v27  ;;  %v7049_v53 = vsel %vm3831_vm11, %v12488_v4, %v6360_v30  ;;  %v12602_v41 = vsel %vm3831_vm11, %v12504_v18, %v6364_v42 }
 0x1d9   : > { %15983 = vst [vmem:[#allocation31_spill] sm:$0xff] %v12602_v41  ;;  %v15984_v52 = vcombine.high %v12488_v4, %v12488_v4  ;;  %v7054_v27 = vsel %vm3831_vm11, %v12526_v44, %v6380_v2  ;;  %v7055_v10 = vsel %vm3831_vm11, %v4363_v26, %v6384_v59  ;;  %v7057_v42 = vsel %vm3831_vm11, %v12523_v63, %v6392_v5 }
 0x1da   : > { %v7047_v12 = vsel %vm3831_vm11, %v15980_v28, %v6352_v33  ;;  %v12596_v13 = vsel %vm3831_vm11, %v15981_v43, %v6356_v20  ;;  %v7053_v33 = vsel %vm3831_vm11, %v12518_v14, %v6376_v9  ;;  %v7056_v20 = vsel %vm3831_vm11, %v4365_v24, %v6388_v7 }
 0x1db   : > { %15982 = vst [vmem:[#allocation30_spill] sm:$0xff] %v12596_v13  ;;  %v12608_v16 = vsel %vm3831_vm11, %v15984_v52, %v6368_v46  ;;  %v7058_v57 = vsel %vm3831_vm11, %v12529_v49, %v6396_v35  ;;  %v7059_v4 = vsel %vm3831_vm11, %v4364_v31, %v6400_v58  ;;  %v7060_v30 = vsel %vm3831_vm11, %v4366_v48, %v6404_v55 }
 0x1dc   : > { %15985 = vst [vmem:[#allocation32_spill] sm:$0xff] %v12608_v16  ;;  %v12622_v46 = vmul.f32 0.25, %v7045_v8  ;;  %v12624_v14 = vmul.f32 0.25, %v7046_v21  ;;  %v12626_v9 = vmul.f32 0.25, %v7047_v12  ;;  %v12629_v2 = vmul.f32 0.25, %v12596_v13 }
 0x1dd   : > { %v12631_v44 = vmul.f32 0.25, %v7049_v53  ;;  %v12634_v5 = vmul.f32 0.25, %v12602_v41  ;;  %v12637_v63 = vmul.f32 0.25, %v12608_v16  ;;  %v12639_v26 = vmul.f32 0.25, %v7053_v33 }
 0x1de   : > { %15986 = vst [vmem:[#allocation33_spill] sm:$0xff] %v12624_v14  ;;  %15987 = vst [vmem:[#allocation34_spill] sm:$0xff] %v12626_v9  ;;  %v12641_v31 = vmul.f32 0.25, %v7054_v27  ;;  %v12643_v49 = vmul.f32 0.25, %v7055_v10  ;;  %v12645_v24 = vmul.f32 0.25, %v7056_v20  ;;  %v12647_v48 = vmul.f32 0.25, %v7057_v42 }
 0x1df   : > { %15988 = vst [vmem:[#allocation35_spill] sm:$0xff] %v12629_v2  ;;  %15989 = vst [vmem:[#allocation36_spill] sm:$0xff] %v12631_v44  ;;  %v12649_v59 = vmul.f32 0.25, %v7058_v57  ;;  %v12651_v7 = vmul.f32 0.25, %v7059_v4  ;;  %v12653_v35 = vmul.f32 0.25, %v7060_v30  ;;  %v12655_v58 = vmul.f32 0.75, %v7045_v8 }
 0x1e0   : > { %15990 = vst [vmem:[#allocation37_spill] sm:$0xff] %v12634_v5  ;;  %15991 = vst [vmem:[#allocation38_spill] sm:$0xff] %v12637_v63  ;;  %v12657_v55 = vmul.f32 0.75, %v7046_v21  ;;  %v12659_v28 = vmul.f32 0.75, %v7047_v12  ;;  %v12661_v43 = vmul.f32 0.75, %v7049_v53  ;;  %v12663_v52 = vmul.f32 0.75, %v7053_v33 }
 0x1e1   : > { %15992 = vst [vmem:[#allocation39_spill] sm:$0xff] %v12639_v26  ;;  %15993 = vst [vmem:[#allocation40_spill] sm:$0xff] %v12641_v31  ;;  %v12665_v13 = vmul.f32 0.75, %v7054_v27  ;;  %v12667_v16 = vmul.f32 0.75, %v7055_v10  ;;  %v12669_v41 = vmul.f32 0.75, %v7056_v20  ;;  %v12671_v18 = vmul.f32 0.75, %v7057_v42 }
 0x1e2   : > { %15994 = vst [vmem:[#allocation41_spill] sm:$0xff] %v12643_v49  ;;  %15995 = vst [vmem:[#allocation42_spill] sm:$0xff] %v12645_v24  ;;  %v12673_v37 = vmul.f32 0.75, %v7058_v57  ;;  %v12675_v8 = vmul.f32 0.75, %v7059_v4  ;;  %v12677_v21 = vmul.f32 0.75, %v7060_v30  ;;  %v3996_v12 = vadd.f32 %v12471_v29, %v12555_v1 }
 0x1e3   : > { %15996 = vst [vmem:[#allocation43_spill] sm:$0xff] %v12647_v48  ;;  %15997 = vst [vmem:[#allocation44_spill] sm:$0xff] %v12649_v59  ;;  %v4015_v53 = vmul.f32 0.25, %v12549_v0  ;;  %v4016_v33 = vmul.f32 0.25, %v12553_v17  ;;  %v10726_v27 = vadd.f32 %v12441_v56, %v12237_v32  ;;  %v12687_v10 = vadd.f32 %v12466_v34, %v12446_v11  ;;  %v12697_v0 = vpop.f32.mrb[76].mxu1  ;;  %v12702_v34 = vpop.f32.mrb[9].mxu0 }
 0x1e4   : > { %15998 = vst [vmem:[#allocation45_spill] sm:$0xff] %v12651_v7  ;;  %15999 = vst [vmem:[#allocation46_spill] sm:$0xff] %v12653_v35  ;;  %v10727_v20 = vadd.f32 %v12444_v3, %v12239_v39  ;;  %v10728_v42 = vadd.f32 %v12452_v25, %v12241_v36  ;;  %v12695_v1 = vadd.f32 %v12475_v47, %v12460_v23  ;;  %v10706_v57 = vpop.f32.mrb[77].mxu1 }
 0x1e5   : > { %16000 = vst [vmem:[#allocation47_spill] sm:$0xff] %v12655_v58  ;;  %16001 = vst [vmem:[#allocation48_spill] sm:$0xff] %v12657_v55  ;;  %v4035_v17 = vadd.f32 %v4015_v53, %v12450_v54  ;;  %v4036_v32 = vadd.f32 %v4016_v33, %v12471_v29  ;;  %v4220_v56 = vcombine.high %v3996_v12, %v3996_v12  ;;  %v12759_v24 = vpop.f32.mrb[78].mxu1 }
 0x1e6   : > { %16002 = vst [vmem:[#allocation49_spill] sm:$0xff] %v12659_v28  ;;  %16003 = vst [vmem:[#allocation50_spill] sm:$0xff] %v12661_v43  ;;  %v4227_v11 = vrot.slane %v3996_v12, %v12272_v45  ;;  %v12705_v39 = vadd.f32 %v10726_v27, %v12264_v15  ;;  %v12708_v36 = vadd.f32 %v10727_v20, %v12264_v15 }
 0x1e7   : > { %16004 = vst [vmem:[#allocation51_spill] sm:$0xff] %v12663_v52  ;;  %16005 = vst [vmem:[#allocation52_spill] sm:$0xff] %v12665_v13  ;;  %v12711_v3 = vadd.f32 %v10728_v42, %v12264_v15  ;;  %v12715_v54 = vadd.f32 %v12457_v40, %v12243_v6  ;;  %v4234_v25 = vrot.slane %v4220_v56, %v12272_v45  ;;  %v12733_v56 = vpop.f32.mrb[10].mxu0 }
 0x1e8   : > { %16006 = vst [vmem:[#allocation53_spill] sm:$0xff] %v12667_v16  ;;  %16007 = vst [vmem:[#allocation54_spill] sm:$0xff] %v12669_v41  ;;  %v4235_v23 = vcombine.high %v4227_v11, %v4227_v11  ;;  %v12719_v29 = vrot.slane %v4227_v11, %v12272_v45  ;;  %v5331_v47 = vcombine.high %v4035_v17, %v4035_v17 }
 0x1e9   : > { %16008 = vst [vmem:[#allocation55_spill] sm:$0xff] %v12671_v18  ;;  %16009 = vst [vmem:[#allocation56_spill] sm:$0xff] %v12673_v37  ;;  %v5338_v4 = vrot.slane %v4035_v17, %v12272_v45  ;;  %v5380_v30 = vcombine.high %v4036_v32, %v4036_v32  ;;  %v5387_v12 = vrot.slane %v4036_v32, %v12272_v45 }
 0x1ea   : > { %16010 = vst [vmem:[#allocation57_spill] sm:$0xff] %v12675_v8  ;;  %16011 = vst [vmem:[#allocation58_spill] sm:$0xff] %v12677_v21  ;;  %v4236_v15 = vcombine.high %v4234_v25, %v4234_v25  ;;  %v12725_v33 = vrot.slane %v4234_v25, %v12272_v45  ;;  %v4257_v6 = vrot.slane %v4235_v23, %v12272_v45 }
 0x1eb   : > { %16012 = vst [vmem:[#allocation59_spill] sm:$0xff] %v12687_v10  ;;  %16013 = vst [vmem:[#allocation60_spill] sm:$0xff] %v12695_v1  ;;  %v4265_v40 = vcombine.high %v12719_v29, %v12719_v29  ;;  %v5345_v27 = vrot.slane %v5331_v47, %v12272_v45  ;;  %v5346_v20 = vcombine.high %v5338_v4, %v5338_v4 }
 0x1ec   : > { %16014 = vst [vmem:[#allocation61_spill] sm:$0xff] %v12697_v0  ;;  %16015 = vst [vmem:[#allocation62_spill] sm:$0xff] %v12702_v34  ;;  %v5354_v42 = vrot.slane %v5338_v4, %v12272_v45  ;;  %v5394_v17 = vrot.slane %v5380_v30, %v12272_v45  ;;  %v4264_v32 = vrot.slane %v4236_v15, %v12272_v45 }
 0x1ed   : > { %16016 = vst [vmem:[#allocation63_spill] sm:$0xff] %v12705_v39  ;;  %16017 = vst [vmem:[#allocation64_spill] sm:$0xff] %v12708_v36  ;;  %v4266_v11 = vcombine.high %v12725_v33, %v12725_v33  ;;  %v4267_v57 = vcombine.high %v4257_v6, %v4257_v6  ;;  %v5395_v25 = vcombine.high %v5387_v12, %v5387_v12 }
 0x1ee   : > { %16018 = vst [vmem:[#allocation65_spill] sm:$0xff] %v12711_v3  ;;  %16019 = vst [vmem:[#allocation66_spill] sm:$0xff] %v12715_v54  ;;  %v5347_v23 = vcombine.high %v5345_v27, %v5345_v27  ;;  %v5361_v53 = vrot.slane %v5345_v27, %v12272_v45  ;;  %v5368_v1 = vrot.slane %v5346_v20, %v12272_v45 }
 0x1ef   : > { %16020 = vst [vmem:[#allocation67_spill] sm:$0xff] %v12733_v56  ;;  %v5376_v47 = vcombine.high %v5354_v42, %v5354_v42  ;;  %v4268_v34 = vcombine.high %v4264_v32, %v4264_v32  ;;  %v5396_v0 = vcombine.high %v5394_v17, %v5394_v17  ;;  %v5403_v4 = vrot.slane %v5387_v12, %v12272_v45 }
 0x1f0   : > { %v5410_v30 = vrot.slane %v5394_v17, %v12272_v45  ;;  %v5375_v56 = vrot.slane %v5347_v23, %v12272_v45  ;;  %v5377_v15 = vcombine.high %v5361_v53, %v5361_v53  ;;  %v5378_v10 = vcombine.high %v5368_v1, %v5368_v1  ;;  %16021 = vst [vmem:[#allocation68_spill] sm:$0xff] %v12759_v24 }
 0x1f1   : > { %v5417_v60 = vrot.slane %v5395_v25, %v12272_v45  ;;  %v5424_v54 = vrot.slane %v5396_v0, %v12272_v45  ;;  %v5425_v3 = vcombine.high %v5403_v4, %v5403_v4  ;;  %v6280_v27 = vrot.slane %v5354_v42, %v12285_v22 }
 0x1f2   : > { %v5426_v36 = vcombine.high %v5410_v30, %v5410_v30  ;;  %v5379_v20 = vcombine.high %v5375_v56, %v5375_v56  ;;  %v6284_v35 = vrot.slane %v5368_v1, %v12285_v22  ;;  %v6288_v12 = vrot.slane %v5376_v47, %v12285_v22 }
 0x1f3   : > { %v5427_v39 = vcombine.high %v5417_v60, %v5417_v60  ;;  %v5428_v7 = vcombine.high %v5424_v54, %v5424_v54  ;;  %v6292_v17 = vrot.slane %v5378_v10, %v12285_v22  ;;  %v6296_v23 = vrot.slane %v5361_v53, %v12285_v22 }
 0x1f4   : > { %v6300_v59 = vrot.slane %v5375_v56, %v12285_v22  ;;  %v6304_v25 = vrot.slane %v5377_v15, %v12285_v22  ;;  %v6308_v0 = vrot.slane %v5379_v20, %v12285_v22  ;;  %v6312_v45 = vrot.slane %v5403_v4, %v12285_v22 }
 0x1f5   : > { %v6316_v42 = vrot.slane %v5417_v60, %v12285_v22  ;;  %v6320_v48 = vrot.slane %v5425_v3, %v12285_v22  ;;  %v6324_v1 = vrot.slane %v5427_v39, %v12285_v22  ;;  %v6328_v47 = vrot.slane %v5410_v30, %v12285_v22  ;;  %v12779_v30 = vpop.f32.mrb[11].mxu0 }
 0x1f6   : > { %v6332_v10 = vrot.slane %v5424_v54, %v12285_v22  ;;  %v6336_v53 = vrot.slane %v5426_v36, %v12285_v22  ;;  %v6340_v56 = vrot.slane %v5428_v7, %v12285_v22  ;;  %v7029_v15 = vsel %vm3831_vm11, %v12484_v38, %v6280_v27  ;;  %16024 = vst [vmem:[#allocation69_spill] sm:$0xff] %v12779_v30  ;;  %v10707_v27 = vpop.f32.mrb[79].mxu1 }
 0x1f7   : > { %v7030_v60 = vsel %vm3831_vm11, %v12499_v50, %v6284_v35  ;;  %v16022_v3 = vcombine.high %v12484_v38, %v12484_v38  ;;  %v16023_v54 = vcombine.high %v12499_v50, %v12499_v50  ;;  %v7033_v36 = vsel %vm3831_vm11, %v12496_v61, %v6296_v23 }
 0x1f8   : > { %v7034_v7 = vsel %vm3831_vm11, %v12511_v51, %v6300_v59  ;;  %v16025_v35 = vcombine.high %v12496_v61, %v12496_v61  ;;  %v16026_v20 = vcombine.high %v12511_v51, %v12511_v51  ;;  %v7039_v59 = vsel %vm3831_vm11, %v4265_v40, %v6320_v48 }
 0x1f9   : > { %v7031_v39 = vsel %vm3831_vm11, %v16022_v3, %v6288_v12  ;;  %v7032_v4 = vsel %vm3831_vm11, %v16023_v54, %v6292_v17  ;;  %v7037_v12 = vsel %vm3831_vm11, %v12719_v29, %v6312_v45  ;;  %v7038_v17 = vsel %vm3831_vm11, %v4257_v6, %v6316_v42 }
 0x1fa   : > { %v7035_v38 = vsel %vm3831_vm11, %v16025_v35, %v6304_v25  ;;  %v7036_v50 = vsel %vm3831_vm11, %v16026_v20, %v6308_v0  ;;  %v7040_v23 = vsel %vm3831_vm11, %v4267_v57, %v6324_v1  ;;  %v7041_v3 = vsel %vm3831_vm11, %v12725_v33, %v6328_v47 }
 0x1fb   : > { %v7042_v61 = vsel %vm3831_vm11, %v4264_v32, %v6332_v10  ;;  %v7043_v25 = vsel %vm3831_vm11, %v4266_v11, %v6336_v53  ;;  %v7044_v51 = vsel %vm3831_vm11, %v4268_v34, %v6340_v56  ;;  %v7189_v54 = vmul.f32 0.25, %v7029_v15 }
 0x1fc   : > { %v7190_v0 = vmul.f32 0.25, %v7030_v60  ;;  %v7191_v27 = vmul.f32 0.25, %v7031_v39  ;;  %v12799_v35 = vmul.f32 0.25, %v7032_v4  ;;  %v7193_v45 = vmul.f32 0.25, %v7033_v36 }
 0x1fd   : > { %v12801_v29 = vmul.f32 0.25, %v7034_v7  ;;  %v12803_v48 = vmul.f32 0.25, %v7035_v38  ;;  %v12805_v6 = vmul.f32 0.25, %v7036_v50  ;;  %v7197_v40 = vmul.f32 0.25, %v7037_v12 }
 0x1fe   : > { %16027 = vst [vmem:[#allocation70_spill] sm:$0xff] %v12799_v35  ;;  %v7198_v33 = vmul.f32 0.25, %v7038_v17  ;;  %v7199_v57 = vmul.f32 0.25, %v7039_v59  ;;  %v7200_v32 = vmul.f32 0.25, %v7040_v23  ;;  %v7201_v42 = vmul.f32 0.25, %v7041_v3 }
 0x1ff   : > { %16028 = vst [vmem:[#allocation71_spill] sm:$0xff] %v12801_v29  ;;  %16029 = vst [vmem:[#allocation72_spill] sm:$0xff] %v12803_v48  ;;  %v7202_v11 = vmul.f32 0.25, %v7042_v61  ;;  %v7203_v1 = vmul.f32 0.25, %v7043_v25  ;;  %v7204_v34 = vmul.f32 0.25, %v7044_v51  ;;  %v7301_v47 = vmul.f32 0.75, %v7029_v15 }
 0x200   : > { %16030 = vst [vmem:[#allocation73_spill] sm:$0xff] %v12805_v6  ;;  %v7302_v10 = vmul.f32 0.75, %v7030_v60  ;;  %v7303_v53 = vmul.f32 0.75, %v7031_v39  ;;  %v7304_v56 = vmul.f32 0.75, %v7032_v4  ;;  %v7305_v20 = vmul.f32 0.75, %v7033_v36  ;;  %v16032_v60 = vld [vmem:[#allocation13_spill] sm:$0xff] }
 0x201   : > { %v7306_v35 = vmul.f32 0.75, %v7034_v7  ;;  %v7307_v30 = vmul.f32 0.75, %v7035_v38  ;;  %v12807_v29 = vmul.f32 0.75, %v7036_v50  ;;  %v7309_v48 = vmul.f32 0.75, %v7037_v12  ;;  %v16033_v4 = vld [vmem:[#allocation14_spill] sm:$0xff]  ;;  %v16034_v7 = vld [vmem:[#allocation15_spill] sm:$0xff] }
 0x202   : > { %v7310_v24 = vmul.f32 0.75, %v7038_v17  ;;  %v7311_v6 = vmul.f32 0.75, %v7039_v59  ;;  %v7312_v22 = vmul.f32 0.75, %v7040_v23  ;;  %v7313_v49 = vmul.f32 0.75, %v7041_v3  ;;  %v16035_v50 = vld [vmem:[#allocation16_spill] sm:$0xff]  ;;  %v16037_v17 = vld [vmem:[#allocation17_spill] sm:$0xff] }
 0x203   : > { %16031 = vst [vmem:[#allocation74_spill] sm:$0xff] %v12807_v29  ;;  %v7314_v31 = vmul.f32 0.75, %v7042_v61  ;;  %v7315_v26 = vmul.f32 0.75, %v7043_v25  ;;  %v7316_v63 = vmul.f32 0.75, %v7044_v51  ;;  %v12810_v5 = vadd.f32 %v7301_v47, %v12387_v19  ;;  %v16039_v19 = vld [vmem:[#allocation18_spill] sm:$0xff]  ;;  %v16042_v61 = vld [vmem:[#allocation20_spill] sm:$0xff] }
 0x204   : > { %v12813_v15 = vadd.f32 %v7302_v10, %v12389_v62  ;;  %v12816_v39 = vadd.f32 %v7303_v53, %v16032_v60  ;;  %v12819_v36 = vadd.f32 %v7304_v56, %v16033_v4  ;;  %v12822_v38 = vadd.f32 %v7305_v20, %v16034_v7  ;;  %v16040_v62 = vld [vmem:[#allocation19_spill] sm:$0xff]  ;;  %v16043_v51 = vld [vmem:[#allocation21_spill] sm:$0xff]  ;;  %v16044_v4 = vld [vmem:[#allocation22_spill] sm:$0xff] }
 0x205   : > { %v12825_v12 = vadd.f32 %v7306_v35, %v16035_v50  ;;  %v12828_v59 = vadd.f32 %v7307_v30, %v16037_v17  ;;  %v12832_v23 = vadd.f32 %v12807_v29, %v16039_v19  ;;  %v12835_v3 = vadd.f32 %v7309_v48, %v16040_v62  ;;  %v16045_v50 = vld [vmem:[#allocation23_spill] sm:$0xff]  ;;  %v16046_v17 = vld [vmem:[#allocation24_spill] sm:$0xff]  ;;  %v16047_v19 = vld [vmem:[#allocation25_spill] sm:$0xff] }
 0x206   : > { %v12838_v25 = vadd.f32 %v7310_v24, %v16042_v61  ;;  %v12841_v60 = vadd.f32 %v7311_v6, %v16043_v51  ;;  %v12844_v7 = vadd.f32 %v7312_v22, %v16044_v4  ;;  %v12853_v29 = vadd.f32 %v7315_v26, %v16047_v19  ;;  %v16048_v62 = vld [vmem:[#allocation26_spill] sm:$0xff] }
 0x207   : > { %16036 = vst [vmem:[#allocation13_spill] sm:$0xff] %v12825_v12  ;;  %16038 = vst [vmem:[#allocation14_spill] sm:$0xff] %v12828_v59  ;;  %v12847_v12 = vadd.f32 %v7313_v49, %v16045_v50  ;;  %v12850_v59 = vadd.f32 %v7314_v31, %v16046_v17  ;;  %v12859_v61 = vadd.f32 %v12655_v58, %v7189_v54  ;;  %v16052_v58 = vld [vmem:[#allocation38_spill] sm:$0xff] }
 0x208   : > { %16041 = vst [vmem:[#allocation15_spill] sm:$0xff] %v12835_v3  ;;  %v12856_v3 = vadd.f32 %v7316_v63, %v16048_v62  ;;  %v12862_v51 = vadd.f32 %v12657_v55, %v7190_v0  ;;  %v12865_v4 = vadd.f32 %v12659_v28, %v7191_v27  ;;  %v12868_v50 = vadd.f32 %v12661_v43, %v7193_v45  ;;  %v12888_v45 = vpop.permute.xlu0 %9573  ;;  %v12902_v28 = vpop.permute.xlu1 %9577  ;;  %v16051_v55 = vld [vmem:[#allocation37_spill] sm:$0xff]  ;;  %v16054_v43 = vld [vmem:[#allocation39_spill] sm:$0xff] }
 0x209   : > { %v12871_v17 = vadd.f32 %v12663_v52, %v7197_v40  ;;  %v12874_v19 = vadd.f32 %v12665_v13, %v7198_v33  ;;  %v12877_v62 = vadd.f32 %v12667_v16, %v7199_v57  ;;  %v12880_v54 = vadd.f32 %v12669_v41, %v7200_v32 }
 0x20a   : > { %16049 = vst [vmem:[#allocation16_spill] sm:$0xff] %v12865_v4  ;;  %16050 = vst [vmem:[#allocation17_spill] sm:$0xff] %v12868_v50  ;;  %v12883_v0 = vadd.f32 %v12671_v18, %v7201_v42  ;;  %v12886_v27 = vadd.f32 %v12673_v37, %v7202_v11  ;;  %v12891_v40 = vadd.f32 %v12675_v8, %v7203_v1  ;;  %v7719_v37 = vmax.f32 %v12816_v39, 0.0 }
 0x20b   : > { %v12894_v33 = vadd.f32 %v12677_v21, %v7204_v34  ;;  %v12897_v57 = vadd.f32 %v7301_v47, %v12622_v46  ;;  %v12900_v32 = vadd.f32 %v7302_v10, %v12624_v14  ;;  %v12905_v42 = vadd.f32 %v7303_v53, %v12626_v9  ;;  %v16055_v14 = vld [vmem:[#allocation40_spill] sm:$0xff]  ;;  %v16056_v53 = vld [vmem:[#allocation41_spill] sm:$0xff] }
 0x20c   : > { %v12908_v11 = vadd.f32 %v7304_v56, %v12629_v2  ;;  %v12911_v1 = vadd.f32 %v7305_v20, %v12631_v44  ;;  %v12914_v34 = vadd.f32 %v7306_v35, %v16051_v55  ;;  %v12917_v47 = vadd.f32 %v7307_v30, %v16052_v58  ;;  %v16057_v56 = vld [vmem:[#allocation42_spill] sm:$0xff]  ;;  %v16058_v20 = vld [vmem:[#allocation43_spill] sm:$0xff]  ;;  %v16059_v35 = vld [vmem:[#allocation44_spill] sm:$0xff]  ;;  %v12950_v13 = vpop.permute.xlu0 %9575 }
 0x20d   : > { %v12920_v10 = vadd.f32 %v7309_v48, %v16054_v43  ;;  %v12923_v21 = vadd.f32 %v7310_v24, %v16055_v14  ;;  %v12926_v9 = vadd.f32 %v7311_v6, %v16056_v53  ;;  %v12929_v2 = vadd.f32 %v7312_v22, %v16057_v56  ;;  %v16060_v30 = vld [vmem:[#allocation45_spill] sm:$0xff]  ;;  %v16061_v48 = vld [vmem:[#allocation46_spill] sm:$0xff] }
 0x20e   : > { %16053 = vst [vmem:[#allocation18_spill] sm:$0xff] %v12917_v47  ;;  %v12932_v44 = vadd.f32 %v7313_v49, %v16058_v20  ;;  %v12935_v55 = vadd.f32 %v7314_v31, %v16059_v35  ;;  %v12938_v58 = vadd.f32 %v7315_v26, %v16060_v30  ;;  %v12941_v8 = vadd.f32 %v7316_v63, %v16061_v48  ;;  %v16062_v18 = vld [vmem:[#allocation13_spill] sm:$0xff]  ;;  %v16063_v31 = vld [vmem:[#allocation14_spill] sm:$0xff]  ;;  %v12956_v48 = vpop.permute.xlu1 %9579 }
 0x20f   : > { %v7717_v24 = vmax.f32 %v12810_v5, 0.0  ;;  %v7718_v6 = vmax.f32 %v12813_v15, 0.0  ;;  %v7720_v22 = vmax.f32 %v12819_v36, 0.0  ;;  %v7721_v49 = vmax.f32 %v12822_v38, 0.0  ;;  %v16064_v63 = vld [vmem:[#allocation15_spill] sm:$0xff] }
 0x210   : > { %v7722_v41 = vmax.f32 %v16062_v18, 0.0  ;;  %v7723_v16 = vmax.f32 %v16063_v31, 0.0  ;;  %v7724_v26 = vmax.f32 %v12832_v23, 0.0  ;;  %v7725_v52 = vmax.f32 %v16064_v63, 0.0 }
 0x211   : > { %v7726_v5 = vmax.f32 %v12838_v25, 0.0  ;;  %v7727_v15 = vmax.f32 %v12841_v60, 0.0  ;;  %v7728_v39 = vmax.f32 %v12844_v7, 0.0  ;;  %v7729_v36 = vmax.f32 %v12847_v12, 0.0 }
 0x212   : > { %v7730_v18 = vmax.f32 %v12850_v59, 0.0  ;;  %v7731_v38 = vmax.f32 %v12853_v29, 0.0  ;;  %v7732_v31 = vmax.f32 %v12856_v3, 0.0  ;;  %v7733_v23 = vmax.f32 %v12897_v57, 0.0 }
 0x213   : > { %v7734_v63 = vmax.f32 %v12900_v32, 0.0  ;;  %v7735_v25 = vmax.f32 %v12905_v42, 0.0  ;;  %v7736_v60 = vmax.f32 %v12908_v11, 0.0  ;;  %v7737_v30 = vmax.f32 %v12911_v1, 0.0 }
 0x214   : > { %v7738_v7 = vmax.f32 %v12914_v34, 0.0  ;;  %v7741_v59 = vmax.f32 %v12920_v10, 0.0  ;;  %v7742_v29 = vmax.f32 %v12923_v21, 0.0  ;;  %v7743_v3 = vmax.f32 %v12926_v9, 0.0  ;;  %v12978_v34 = vpop.permute.xlu0 %9581 }
 0x215   : > { %v7744_v57 = vmax.f32 %v12929_v2, 0.0  ;;  %v7745_v32 = vmax.f32 %v12932_v44, 0.0  ;;  %v7746_v42 = vmax.f32 %v12935_v55, 0.0  ;;  %v7747_v11 = vmax.f32 %v12938_v58, 0.0  ;;  %v12984_v2 = vpop.permute.xlu1 %9583 }
 0x216   : > { %v7748_v1 = vmax.f32 %v12941_v8, 0.0  ;;  %v7749_v12 = vmax.f32 %v12859_v61, 0.0  ;;  %v7750_v10 = vmax.f32 %v12862_v51, 0.0  ;;  %16065 = vst [vmem:[#allocation19_spill] sm:$0xff] %v12984_v2  ;;  %v7757_v44 = vmax.f32 %v12871_v17, 0.0 }
 0x217   : > { %v7758_v55 = vmax.f32 %v12874_v19, 0.0  ;;  %v7759_v58 = vmax.f32 %v12877_v62, 0.0  ;;  %v7760_v8 = vmax.f32 %v12880_v54, 0.0  ;;  %v7761_v47 = vmax.f32 %v12883_v0, 0.0  ;;  %v16066_v62 = vld [vmem:[#allocation12_spill] sm:$0xff] }
 0x218   : > { %v7762_v61 = vmax.f32 %v12886_v27, 0.0  ;;  %v7763_v51 = vmax.f32 %v12891_v40, 0.0  ;;  %v7764_v21 = vmax.f32 %v12894_v33, 0.0  ;;  %v8229_v9 = vcombine.low %v7717_v24, %v7718_v6 }
 0x219   : > { %v8230_v4 = vcombine.low %v7719_v37, %v7720_v22  ;;  %v8246_v2 = vcombine.low %v7721_v49, %v7722_v41  ;;  %v8247_v50 = vcombine.low %v7723_v16, %v7724_v26  ;;  %v8263_v17 = vcombine.low %v7725_v52, %v7726_v5  ;;  %v9586_v37 = vpop.permute.xlu0 %9585  ;;  %v9588_v40 = vpop.permute.xlu1 %9587 }
 0x21a   : > { %v8264_v35 = vcombine.low %v7727_v15, %v7728_v39  ;;  %v8280_v19 = vcombine.low %v7729_v36, %v7730_v18  ;;  %v8281_v20 = vcombine.low %v7731_v38, %v7732_v31  ;;  %v8237_v56 = vrot.slane %v8229_v9, %v16066_v62  ;;  %v13032_v38 = vpop.f32.mrb[12].mxu0 }
 0x21b   : > { %v8244_v54 = vrot.slane %v8230_v4, %v16066_v62  ;;  %v8254_v0 = vrot.slane %v8246_v2, %v16066_v62  ;;  %v8261_v27 = vrot.slane %v8247_v50, %v16066_v62  ;;  %v8271_v41 = vrot.slane %v8263_v17, %v16066_v62  ;;  %16069 = vst [vmem:[#allocation22_spill] sm:$0xff] %v13032_v38  ;;  %v16074_v2 = vld [vmem:[#allocation64_spill] sm:$0xff] }
 0x21c   : > { %v8278_v16 = vrot.slane %v8264_v35, %v16066_v62  ;;  %v8288_v52 = vrot.slane %v8280_v19, %v16066_v62  ;;  %v8295_v4 = vrot.slane %v8281_v20, %v16066_v62  ;;  %v8297_v24 = vcombine.low %v7733_v23, %v7734_v63 }
 0x21d   : > { %v8245_v33 = vcombine.low %v8237_v56, %v8244_v54  ;;  %v8262_v50 = vcombine.low %v8254_v0, %v8261_v27  ;;  %v8298_v6 = vcombine.low %v7735_v25, %v7736_v60  ;;  %v13009_v26 = vcombine.low %v7737_v30, %v7738_v7 }
 0x21e   : > { %v8279_v22 = vcombine.low %v8271_v41, %v8278_v16  ;;  %v8296_v49 = vcombine.low %v8288_v52, %v8295_v4  ;;  %v8331_v35 = vcombine.low %v7741_v59, %v7742_v29  ;;  %v8305_v5 = vrot.slane %v8297_v24, %v16066_v62  ;;  %v13047_v59 = vpop.permute.xlu1 %9591  ;;  %v13092_v52 = vld [vmem:[%s15725_s2] ss:$0 sm:$0xff] }
 0x21f   : > { %16067 = vst [vmem:[#allocation20_spill] sm:$0xff] %v13009_v26  ;;  %v8312_v15 = vrot.slane %v8298_v6, %v16066_v62  ;;  %v8332_v39 = vcombine.low %v7743_v3, %v7744_v57  ;;  %v8348_v20 = vcombine.low %v7745_v32, %v7746_v42  ;;  %9381 = vst.msk [vmem:[%s13003_s26] sm:$0xff] %vm513_vm3, %v8245_v33  ;;  %v16077_v4 = vld [vmem:[#allocation66_spill] sm:$0xff] }
 0x220   : > { %9382 = vst.msk [vmem:[%s13003_s26 + $0x8] sm:$0xff] %vm513_vm3, %v8262_v50  ;;  %v8339_v36 = vrot.slane %v8331_v35, %v16066_v62  ;;  %v8349_v30 = vcombine.low %v7747_v11, %v7748_v1  ;;  %v13020_v18 = vcombine.low %v7749_v12, %v7750_v10  ;;  %9383 = vst.msk [vmem:[%s13003_s26 + $0x10] sm:$0xff] %vm513_vm3, %v8279_v22  ;;  %v16078_v24 = vld [vmem:[#allocation10_spill] sm:$0xff] }
 0x221   : > { %9384 = vst.msk [vmem:[%s13003_s26 + $0x18] sm:$0xff] %vm513_vm3, %v8296_v49  ;;  %v8313_v31 = vcombine.low %v8305_v5, %v8312_v15  ;;  %v8346_v23 = vrot.slane %v8332_v39, %v16066_v62  ;;  %v8356_v63 = vrot.slane %v8348_v20, %v16066_v62  ;;  %v8399_v25 = vcombine.low %v7757_v44, %v7758_v55 }
 0x222   : > { %16068 = vst [vmem:[#allocation21_spill] sm:$0xff] %v13020_v18  ;;  %9766 = vst.msk [vmem:[%s13003_s26] sm:$0xff] %vm9765_vm12, %v12888_v45  ;;  %v13042_v45 = vpop.permute.xlu0 %9589  ;;  %v8400_v7 = vcombine.low %v7759_v58, %v7760_v8  ;;  %v8416_v12 = vcombine.low %v7761_v47, %v7762_v61  ;;  %v8417_v3 = vcombine.low %v7763_v51, %v7764_v21  ;;  %v3841_v44 = vrot.slane %v16074_v2, 7  ;;  %v16075_v8 = vld [vmem:[#allocation65_spill] sm:$0xff]  ;;  %v9596_v33 = vpop.permute.xlu1 %9595  ;;  %v16118_v18 = vld [vmem:[#allocation67_spill] sm:$0xff] }
 0x223   : > { %9767 = vst.msk [vmem:[%s13003_s26 + $0x8] sm:$0xff] %vm9765_vm12, %v12950_v13  ;;  %9768 = vst.msk [vmem:[%s13003_s26 + $0x10] sm:$0xff] %vm9765_vm12, %v12902_v28  ;;  %v8363_v13 = vrot.slane %v8349_v30, %v16066_v62  ;;  %v8347_v29 = vcombine.low %v8339_v36, %v8346_v23  ;;  %v8407_v28 = vrot.slane %v8399_v25, %v16066_v62  ;;  %v3902_v58 = vrot.slane %v16074_v2, 1 }
 0x224   : > { %9769 = vst.msk [vmem:[%s13003_s26 + $0x18] sm:$0xff] %vm9765_vm12, %v12956_v48  ;;  %16070 = vst [vmem:[#allocation23_spill] sm:$0xff] %v13042_v45  ;;  %v16072_v48 = vld [vmem:[#allocation63_spill] sm:$0xff]  ;;  %v8414_v11 = vrot.slane %v8400_v7, %v16066_v62  ;;  %v8424_v47 = vrot.slane %v8416_v12, %v16066_v62  ;;  %v8431_v10 = vrot.slane %v8417_v3, %v16066_v62  ;;  %v3845_v61 = vrot.slane %v16075_v8, 7 }
 0x225   : > { %16071 = vst [vmem:[#allocation24_spill] sm:$0xff] %v13047_v59  ;;  %9385 = vst.msk [vmem:[%s13003_s26 + $0x20] sm:$0xff] %vm513_vm3, %v8313_v31  ;;  %v16073_v57 = vrot.slane %v16072_v48, 7  ;;  %v8364_v42 = vcombine.low %v8356_v63, %v8363_v13  ;;  %v3905_v1 = vrot.slane %v16072_v48, 1  ;;  %v3981_v9 = vmul.f32 0.75, %v16072_v48 }
 0x226   : > { %9770 = vst.msk [vmem:[%s13003_s26 + $0x20] sm:$0xff] %vm9765_vm12, %v12978_v34  ;;  %v8415_v55 = vcombine.low %v8407_v28, %v8414_v11  ;;  %v13073_v34 = vmul.f32 0.75, %v16074_v2  ;;  %v8432_v51 = vcombine.low %v8424_v47, %v8431_v10  ;;  %v3885_v19 = vsel %vm3831_vm11, %v16074_v2, %v3841_v44  ;;  %v9594_v0 = vpop.permute.xlu0 %9593 }
 0x227   : > { %v3886_v32 = vsel %vm3831_vm11, %v16072_v48, %v16073_v57  ;;  %9387 = vst.msk [vmem:[%s13003_s26 + $0x30] sm:$0xff] %vm513_vm3, %v8347_v29  ;;  %9388 = vst.msk [vmem:[%s13003_s26 + $0x38] sm:$0xff] %vm513_vm3, %v8364_v42  ;;  %v3906_v54 = vrot.slane %v16075_v8, 1  ;;  %v3959_v27 = vmul.f32 0.25, %v3885_v19  ;;  %v3982_v16 = vmul.f32 0.75, %v16075_v8  ;;  %v13127_v42 = vpop.f32.mrb[80].mxu1 }
 0x228   : > { %v3961_v21 = vmul.f32 0.25, %v3886_v32  ;;  %9772 = vst.msk [vmem:[%s13003_s26 + $0x30] sm:$0xff] %vm9765_vm12, %v9586_v37  ;;  %9773 = vst.msk [vmem:[%s13003_s26 + $0x38] sm:$0xff] %vm9765_vm12, %v9588_v40  ;;  %v16076_v37 = vmov %v16073_v57  ;;  %v13096_v40 = vadd.f32 %v13092_v52, %v16077_v4 }
 0x229   : > { %9391 = vst.msk [vmem:[%s13003_s26 + $0x50] sm:$0xff] %vm513_vm3, %v8415_v55  ;;  %v3846_v41 = vsel %vm3831_vm11, %v16076_v37, %v3845_v61  ;;  %9392 = vst.msk [vmem:[%s13003_s26 + $0x58] sm:$0xff] %vm513_vm3, %v8432_v51  ;;  %v3907_v22 = vsel %vm2872_vm10, %v3905_v1, %v3906_v54  ;;  %v3947_v49 = vsel %vm2872_vm10, %v3906_v54, %v16075_v8 }
 0x22a   : > { %v4001_v17 = vadd.f32 %v3981_v9, %v3961_v21  ;;  %9776 = vst.msk [vmem:[%s13003_s26 + $0x50] sm:$0xff] %vm9765_vm12, %v9594_v0  ;;  %9777 = vst.msk [vmem:[%s13003_s26 + $0x58] sm:$0xff] %vm9765_vm12, %v9596_v33  ;;  %v3999_v35 = vadd.f32 %v13073_v34, %v3959_v27  ;;  %v3962_v5 = vmul.f32 0.25, %v3846_v41  ;;  %v4021_v15 = vmul.f32 0.25, %v3907_v22  ;;  %v13136_v21 = vpop.f32.mrb[13].mxu0  ;;  %v16113_v41 = vld [vmem:[#allocation61_spill] sm:$0xff] }
 0x22b   : > { %v4022_v39 = vmul.f32 0.25, %v3947_v49  ;;  %v3842_v31 = vrot.slane %v13096_v40, 7  ;;  %16083 = vst [vmem:[#allocation41_spill] sm:$0xff] %v13127_v42  ;;  %16085 = vst [vmem:[#allocation14_spill] sm:$0xff] %v13136_v21  ;;  %v13150_v27 = vpop.f32.mrb[14].mxu0 }
 0x22c   : > { %v4465_v50 = vcombine.high %v4001_v17, %v4001_v17  ;;  %v4472_v6 = vrot.slane %v4001_v17, %v16078_v24  ;;  %v4367_v23 = vcombine.high %v3999_v35, %v3999_v35  ;;  %v4374_v63 = vrot.slane %v3999_v35, %v16078_v24  ;;  %16088 = vst [vmem:[#allocation63_spill] sm:$0xff] %v13150_v27 }
 0x22d   : > { %v4002_v25 = vadd.f32 %v3982_v16, %v3962_v5  ;;  %v4041_v13 = vadd.f32 %v4021_v15, %v3981_v9  ;;  %v4042_v32 = vadd.f32 %v4022_v39, %v3982_v16  ;;  %v10712_v9 = vpop.f32.mrb[81].mxu1 }
 0x22e   : > { %v4479_v20 = vrot.slane %v4465_v50, %v16078_v24  ;;  %v4480_v36 = vcombine.high %v4472_v6, %v4472_v6  ;;  %v13111_v30 = vrot.slane %v4472_v6, %v16078_v24  ;;  %v4381_v3 = vrot.slane %v4367_v23, %v16078_v24  ;;  %v13217_v51 = vpop.f32.mrb[82].mxu1 }
 0x22f   : > { %v4382_v48 = vcombine.high %v4374_v63, %v4374_v63  ;;  %v13125_v57 = vrot.slane %v4374_v63, %v16078_v24  ;;  %v4514_v10 = vcombine.high %v4002_v25, %v4002_v25  ;;  %v4521_v19 = vrot.slane %v4002_v25, %v16078_v24  ;;  %16099 = vst [vmem:[#allocation80_spill] sm:$0xff] %v13217_v51  ;;  %v10713_v47 = vpop.f32.mrb[83].mxu1 }
 0x230   : > { %16079 = vst [vmem:[#allocation25_spill] sm:$0xff] %v13111_v30  ;;  %v4481_v7 = vcombine.high %v4479_v20, %v4479_v20  ;;  %v13116_v12 = vrot.slane %v4479_v20, %v16078_v24  ;;  %v13119_v29 = vrot.slane %v4480_v36, %v16078_v24  ;;  %v4383_v55 = vcombine.high %v4381_v3, %v4381_v3 }
 0x231   : > { %16082 = vst [vmem:[#allocation40_spill] sm:$0xff] %v13125_v57  ;;  %v13139_v8 = vrot.slane %v4381_v3, %v16078_v24  ;;  %v13142_v61 = vrot.slane %v4382_v48, %v16078_v24  ;;  %v4528_v54 = vrot.slane %v4514_v10, %v16078_v24  ;;  %v5625_v0 = vcombine.high %v4041_v13, %v4041_v13 }
 0x232   : > { %16080 = vst [vmem:[#allocation26_spill] sm:$0xff] %v13116_v12  ;;  %16081 = vst [vmem:[#allocation39_spill] sm:$0xff] %v13119_v29  ;;  %v13130_v11 = vrot.slane %v4481_v7, %v16078_v24  ;;  %v13153_v37 = vrot.slane %v4383_v55, %v16078_v24  ;;  %v5632_v4 = vrot.slane %v4041_v13, %v16078_v24 }
 0x233   : > { %16086 = vst [vmem:[#allocation15_spill] sm:$0xff] %v13139_v8  ;;  %16087 = vst [vmem:[#allocation12_spill] sm:$0xff] %v13142_v61  ;;  %v4529_v33 = vcombine.high %v4521_v19, %v4521_v19  ;;  %v4530_v50 = vcombine.high %v4528_v54, %v4528_v54  ;;  %v4537_v6 = vrot.slane %v4521_v19, %v16078_v24 }
 0x234   : > { %16084 = vst [vmem:[#allocation13_spill] sm:$0xff] %v13130_v11  ;;  %16089 = vst [vmem:[#allocation64_spill] sm:$0xff] %v13153_v37  ;;  %v4544_v22 = vrot.slane %v4528_v54, %v16078_v24  ;;  %v5639_v35 = vrot.slane %v5625_v0, %v16078_v24  ;;  %v5640_v5 = vcombine.high %v5632_v4, %v5632_v4  ;;  %v16094_v0 = vld [vmem:[#allocation11_spill] sm:$0xff] }
 0x235   : > { %v13166_v15 = vrot.slane %v5632_v4, %v16078_v24  ;;  %v4551_v39 = vrot.slane %v4529_v33, %v16078_v24  ;;  %v13170_v20 = vrot.slane %v4530_v50, %v16078_v24  ;;  %v4559_v36 = vcombine.high %v4537_v6, %v4537_v6 }
 0x236   : > { %v4560_v23 = vcombine.high %v4544_v22, %v4544_v22  ;;  %v5641_v63 = vcombine.high %v5639_v35, %v5639_v35  ;;  %v13173_v25 = vrot.slane %v5639_v35, %v16078_v24  ;;  %v13176_v13 = vrot.slane %v5640_v5, %v16078_v24 }
 0x237   : > { %16090 = vst [vmem:[#allocation65_spill] sm:$0xff] %v13166_v15  ;;  %v5670_v7 = vcombine.high %v13166_v15, %v13166_v15  ;;  %v4561_v3 = vcombine.high %v4551_v39, %v4551_v39  ;;  %v5674_v10 = vcombine.high %v4042_v32, %v4042_v32  ;;  %v5681_v9 = vrot.slane %v4042_v32, %v16078_v24 }
 0x238   : > { %16091 = vst [vmem:[#allocation66_spill] sm:$0xff] %v13173_v25  ;;  %16092 = vst [vmem:[#allocation75_spill] sm:$0xff] %v13176_v13  ;;  %v13184_v55 = vrot.slane %v5641_v63, %v16078_v24  ;;  %v5671_v19 = vcombine.high %v13173_v25, %v13173_v25  ;;  %v5672_v54 = vcombine.high %v13176_v13, %v13176_v13 }
 0x239   : > { %v5688_v33 = vrot.slane %v5674_v10, %v16078_v24  ;;  %v5689_v50 = vcombine.high %v5681_v9, %v5681_v9  ;;  %v5697_v35 = vrot.slane %v5681_v9, %v16078_v24  ;;  %v13199_v63 = vrot.slane %v5670_v7, %v16094_v0 }
 0x23a   : > { %16093 = vst [vmem:[#allocation76_spill] sm:$0xff] %v13184_v55  ;;  %v5673_v5 = vcombine.high %v13184_v55, %v13184_v55  ;;  %v13202_v60 = vrot.slane %v5672_v54, %v16094_v0  ;;  %v13211_v16 = vrot.slane %v5671_v19, %v16094_v0 }
 0x23b   : > { %16095 = vst [vmem:[#allocation11_spill] sm:$0xff] %v13199_v63  ;;  %v5690_v28 = vcombine.high %v5688_v33, %v5688_v33  ;;  %v5704_v10 = vrot.slane %v5688_v33, %v16078_v24  ;;  %v5711_v9 = vrot.slane %v5689_v50, %v16078_v24  ;;  %v5719_v4 = vcombine.high %v5697_v35, %v5697_v35 }
 0x23c   : > { %16096 = vst [vmem:[#allocation77_spill] sm:$0xff] %v13202_v60  ;;  %16097 = vst [vmem:[#allocation78_spill] sm:$0xff] %v13211_v16  ;;  %v13214_v7 = vrot.slane %v5673_v5, %v16094_v0  ;;  %v6504_v54 = vrot.slane %v5697_v35, %v16094_v0  ;;  %v3843_v35 = vsel %vm3831_vm11, %v3841_v44, %v3842_v31 }
 0x23d   : > { %v5718_v56 = vrot.slane %v5690_v28, %v16078_v24  ;;  %v5720_v17 = vcombine.high %v5704_v10, %v5704_v10  ;;  %v5721_v33 = vcombine.high %v5711_v9, %v5711_v9  ;;  %v6508_v50 = vrot.slane %v5711_v9, %v16094_v0 }
 0x23e   : > { %16098 = vst [vmem:[#allocation79_spill] sm:$0xff] %v13214_v7  ;;  %v6512_v1 = vrot.slane %v5719_v4, %v16094_v0  ;;  %v6520_v32 = vrot.slane %v5704_v10, %v16094_v0  ;;  %v7085_v19 = vsel %vm3831_vm11, %v4537_v6, %v6504_v54 }
 0x23f   : > { %v5722_v5 = vcombine.high %v5718_v56, %v5718_v56  ;;  %v6516_v28 = vrot.slane %v5721_v33, %v16094_v0  ;;  %v6524_v49 = vrot.slane %v5718_v56, %v16094_v0  ;;  %v6528_v9 = vrot.slane %v5720_v17, %v16094_v0 }
 0x240   : > { %v7086_v47 = vsel %vm3831_vm11, %v4551_v39, %v6508_v50  ;;  %v7087_v4 = vsel %vm3831_vm11, %v4559_v36, %v6512_v1  ;;  %v7089_v10 = vsel %vm3831_vm11, %v4544_v22, %v6520_v32  ;;  %v13235_v6 = vmul.f32 0.25, %v7085_v19  ;;  %v16110_v50 = vld [vmem:[#allocation2_spill] sm:$0xff] }
 0x241   : > { %v13238_v54 = vrot.slane %v5722_v5, %v16094_v0  ;;  %v13241_v44 = vsel %vm3831_vm11, %v4561_v3, %v6516_v28  ;;  %v13245_v31 = vsel %vm3831_vm11, %v13170_v20, %v6524_v49  ;;  %v13248_v56 = vsel %vm3831_vm11, %v4560_v23, %v6528_v9  ;;  %v16111_v5 = vld [vmem:[#allocation29_spill] sm:$0xff]  ;;  %v16112_v9 = vld [vmem:[#allocation59_spill] sm:$0xff] }
 0x242   : > { %16100 = vst [vmem:[#allocation81_spill] sm:$0xff] %v13235_v6  ;;  %16101 = vst [vmem:[#allocation82_spill] sm:$0xff] %v13241_v44  ;;  %v13250_v17 = vmul.f32 0.25, %v7086_v47  ;;  %v13252_v1 = vmul.f32 0.25, %v7087_v4  ;;  %v13254_v22 = vmul.f32 0.25, %v7089_v10  ;;  %v13256_v39 = vmul.f32 0.75, %v7085_v19 }
 0x243   : > { %16102 = vst [vmem:[#allocation83_spill] sm:$0xff] %v13245_v31  ;;  %16103 = vst [vmem:[#allocation84_spill] sm:$0xff] %v13248_v56  ;;  %v13258_v36 = vmul.f32 0.75, %v7086_v47  ;;  %v13260_v32 = vmul.f32 0.75, %v7087_v4  ;;  %v13262_v3 = vmul.f32 0.75, %v7089_v10  ;;  %v3903_v49 = vrot.slane %v13096_v40, 1 }
 0x244   : > { %16104 = vst [vmem:[#allocation85_spill] sm:$0xff] %v13250_v17  ;;  %16105 = vst [vmem:[#allocation86_spill] sm:$0xff] %v13252_v1  ;;  %v3960_v33 = vmul.f32 0.25, %v3843_v35  ;;  %v3980_v23 = vmul.f32 0.75, %v13096_v40  ;;  %v10730_v28 = vadd.f32 %v16111_v5, %v16110_v50  ;;  %v13270_v48 = vadd.f32 %v16113_v41, %v16112_v9  ;;  %v16115_v4 = vld [vmem:[#allocation3_spill] sm:$0xff]  ;;  %v16116_v10 = vld [vmem:[#allocation62_spill] sm:$0xff] }
 0x245   : > { %16106 = vst [vmem:[#allocation87_spill] sm:$0xff] %v13256_v39  ;;  %16107 = vst [vmem:[#allocation88_spill] sm:$0xff] %v13258_v36  ;;  %v3904_v19 = vsel %vm2872_vm10, %v3902_v58, %v3903_v49  ;;  %v3946_v47 = vsel %vm2872_vm10, %v3903_v49, %v13096_v40  ;;  %v10731_v45 = vadd.f32 %v16116_v10, %v16115_v4  ;;  %v16117_v35 = vld [vmem:[#allocation4_spill] sm:$0xff]  ;;  %v16122_v9 = vld [vmem:[#allocation5_spill] sm:$0xff] }
 0x246   : > { %16108 = vst [vmem:[#allocation89_spill] sm:$0xff] %v13260_v32  ;;  %16109 = vst [vmem:[#allocation90_spill] sm:$0xff] %v13262_v3  ;;  %v10732_v60 = vadd.f32 %v16118_v18, %v16117_v35  ;;  %v4000_v63 = vadd.f32 %v3980_v23, %v3960_v33  ;;  %v4019_v29 = vmul.f32 0.25, %v3904_v19  ;;  %v4020_v50 = vmul.f32 0.25, %v3946_v47  ;;  %v16119_v58 = vld [vmem:[#allocation60_spill] sm:$0xff]  ;;  %v16123_v4 = vld [vmem:[#allocation69_spill] sm:$0xff] }
 0x247   : > { %16114 = vst [vmem:[#allocation2_spill] sm:$0xff] %v13270_v48  ;;  %v13282_v5 = vadd.f32 %v13092_v52, %v10730_v28  ;;  %v13285_v41 = vadd.f32 %v13092_v52, %v10731_v45  ;;  %v16120_v40 = vld [vmem:[#allocation68_spill] sm:$0xff]  ;;  %v13296_v10 = vadd.f32 %v16123_v4, %v16122_v9 }
 0x248   : > { %v13288_v2 = vadd.f32 %v13092_v52, %v10732_v60  ;;  %v13292_v49 = vadd.f32 %v16120_v40, %v16119_v58  ;;  %v4039_v18 = vadd.f32 %v4019_v29, %v13073_v34  ;;  %v4040_v33 = vadd.f32 %v4020_v50, %v3980_v23 }
 0x249   : > { %v4416_v19 = vcombine.high %v4000_v63, %v4000_v63  ;;  %v4423_v28 = vrot.slane %v4000_v63, %v16078_v24  ;;  %v15783_v45 = vrot.slane %v13282_v5, 7  ;;  %v13303_v60 = vmul.f32 0.75, %v13282_v5 }
 0x24a   : > { %16121 = vst [vmem:[#allocation29_spill] sm:$0xff] %v13292_v49  ;;  %v5527_v4 = vcombine.high %v4039_v18, %v4039_v18  ;;  %v5534_v34 = vrot.slane %v4039_v18, %v16078_v24  ;;  %v5576_v29 = vcombine.high %v4040_v33, %v4040_v33  ;;  %v5583_v63 = vrot.slane %v4040_v33, %v16078_v24 }
 0x24b   : > { %v4430_v58 = vrot.slane %v4416_v19, %v16078_v24  ;;  %v4431_v40 = vcombine.high %v4423_v28, %v4423_v28  ;;  %v4439_v9 = vrot.slane %v4423_v28, %v16078_v24  ;;  %v13314_v23 = vsel %vm3831_vm11, %v13282_v5, %v15783_v45 }
 0x24c   : > { %v5541_v28 = vrot.slane %v5527_v4, %v16078_v24  ;;  %v5542_v13 = vcombine.high %v5534_v34, %v5534_v34  ;;  %v5550_v18 = vrot.slane %v5534_v34, %v16078_v24  ;;  %v5590_v30 = vrot.slane %v5576_v29, %v16078_v24 }
 0x24d   : > { %v4432_v50 = vcombine.high %v4430_v58, %v4430_v58  ;;  %v4446_v47 = vrot.slane %v4430_v58, %v16078_v24  ;;  %v4453_v19 = vrot.slane %v4431_v40, %v16078_v24  ;;  %v4461_v35 = vcombine.high %v4439_v9, %v4439_v9 }
 0x24e   : > { %v5591_v59 = vcombine.high %v5583_v63, %v5583_v63  ;;  %v5543_v45 = vcombine.high %v5541_v28, %v5541_v28  ;;  %v13323_v26 = vrot.slane %v5541_v28, %v16078_v24  ;;  %v13326_v58 = vrot.slane %v5542_v13, %v16078_v24 }
 0x24f   : > { %v4460_v33 = vrot.slane %v4432_v50, %v16078_v24  ;;  %v4462_v15 = vcombine.high %v4446_v47, %v4446_v47  ;;  %v4463_v61 = vcombine.high %v4453_v19, %v4453_v19  ;;  %v5572_v40 = vcombine.high %v5550_v18, %v5550_v18 }
 0x250   : > { %16124 = vst [vmem:[#allocation59_spill] sm:$0xff] %v13323_v26  ;;  %16125 = vst [vmem:[#allocation61_spill] sm:$0xff] %v13326_v58  ;;  %v5592_v4 = vcombine.high %v5590_v30, %v5590_v30  ;;  %v5599_v16 = vrot.slane %v5583_v63, %v16078_v24  ;;  %v5606_v34 = vrot.slane %v5590_v30, %v16078_v24 }
 0x251   : > { %v4464_v7 = vcombine.high %v4460_v33, %v4460_v33  ;;  %v13331_v29 = vrot.slane %v5543_v45, %v16078_v24  ;;  %v5573_v50 = vcombine.high %v13323_v26, %v13323_v26  ;;  %v5574_v28 = vcombine.high %v13326_v58, %v13326_v58 }
 0x252   : > { %v5613_v11 = vrot.slane %v5591_v59, %v16078_v24  ;;  %v5620_v13 = vrot.slane %v5592_v4, %v16078_v24  ;;  %v5621_v55 = vcombine.high %v5599_v16, %v5599_v16  ;;  %v5622_v12 = vcombine.high %v5606_v34, %v5606_v34 }
 0x253   : > { %16126 = vst [vmem:[#allocation3_spill] sm:$0xff] %v13331_v29  ;;  %v6408_v25 = vrot.slane %v5550_v18, %v16094_v0  ;;  %v5575_v30 = vcombine.high %v13331_v29, %v13331_v29  ;;  %v13345_v37 = vrot.slane %v5572_v40, %v16094_v0  ;;  %v13348_v51 = vrot.slane %v5574_v28, %v16094_v0 }
 0x254   : > { %v5623_v63 = vcombine.high %v5613_v11, %v5613_v11  ;;  %v5624_v8 = vcombine.high %v5620_v13, %v5620_v13  ;;  %v13355_v4 = vrot.slane %v5573_v50, %v16094_v0  ;;  %v6440_v45 = vrot.slane %v5599_v16, %v16094_v0 }
 0x255   : > { %16127 = vst [vmem:[#allocation62_spill] sm:$0xff] %v13345_v37  ;;  %16128 = vst [vmem:[#allocation4_spill] sm:$0xff] %v13348_v51  ;;  %v13358_v49 = vrot.slane %v5575_v30, %v16094_v0  ;;  %v6444_v40 = vrot.slane %v5613_v11, %v16094_v0  ;;  %v6448_v37 = vrot.slane %v5621_v55, %v16094_v0 }
 0x256   : > { %16129 = vst [vmem:[#allocation67_spill] sm:$0xff] %v13355_v4  ;;  %v6452_v28 = vrot.slane %v5623_v63, %v16094_v0  ;;  %v6456_v51 = vrot.slane %v5606_v34, %v16094_v0  ;;  %v6460_v59 = vrot.slane %v5620_v13, %v16094_v0  ;;  %v6464_v18 = vrot.slane %v5622_v12, %v16094_v0  ;;  %v16149_v4 = vld [vmem:[#allocation52_spill] sm:$0xff] }
 0x257   : > { %16130 = vst [vmem:[#allocation60_spill] sm:$0xff] %v13358_v49  ;;  %v6468_v50 = vrot.slane %v5624_v8, %v16094_v0  ;;  %v13370_v30 = vsel %vm3831_vm11, %v13125_v57, %v6408_v25  ;;  %v7069_v16 = vsel %vm3831_vm11, %v4439_v9, %v6440_v45  ;;  %v7070_v11 = vsel %vm3831_vm11, %v4453_v19, %v6444_v40 }
 0x258   : > { %16131 = vst [vmem:[#allocation68_spill] sm:$0xff] %v13370_v30  ;;  %v7071_v55 = vsel %vm3831_vm11, %v4461_v35, %v6448_v37  ;;  %v7072_v63 = vsel %vm3831_vm11, %v4463_v61, %v6452_v28  ;;  %v7073_v34 = vsel %vm3831_vm11, %v4446_v47, %v6456_v51  ;;  %v7074_v13 = vsel %vm3831_vm11, %v4460_v33, %v6460_v59 }
 0x259   : > { %v7075_v12 = vsel %vm3831_vm11, %v4462_v15, %v6464_v18  ;;  %v7076_v8 = vsel %vm3831_vm11, %v4464_v7, %v6468_v50  ;;  %v7229_v58 = vmul.f32 0.25, %v7069_v16  ;;  %v7230_v49 = vmul.f32 0.25, %v7070_v11  ;;  %v13393_v7 = vpop.permute.xlu1 %9599 }
 0x25a   : > { %v7231_v25 = vmul.f32 0.25, %v7071_v55  ;;  %v13380_v57 = vmul.f32 0.25, %v7072_v63  ;;  %v7233_v9 = vmul.f32 0.25, %v7073_v34  ;;  %v13382_v45 = vmul.f32 0.25, %v7074_v13  ;;  %16138 = vst [vmem:[#allocation95_spill] sm:$0xff] %v13393_v7  ;;  %v16144_v7 = vld [vmem:[#allocation45_spill] sm:$0xff] }
 0x25b   : > { %v13384_v19 = vmul.f32 0.25, %v7075_v12  ;;  %v13386_v37 = vmul.f32 0.25, %v7076_v8  ;;  %v13389_v61 = vmul.f32 0.75, %v13370_v30  ;;  %v7341_v51 = vmul.f32 0.75, %v7069_v16  ;;  %v16143_v30 = vld [vmem:[#allocation44_spill] sm:$0xff] }
 0x25c   : > { %16132 = vst [vmem:[#allocation5_spill] sm:$0xff] %v13380_v57  ;;  %16133 = vst [vmem:[#allocation69_spill] sm:$0xff] %v13382_v45  ;;  %v7342_v47 = vmul.f32 0.75, %v7070_v11  ;;  %v7343_v15 = vmul.f32 0.75, %v7071_v55  ;;  %v13391_v35 = vmul.f32 0.75, %v7072_v63  ;;  %v7345_v33 = vmul.f32 0.75, %v7073_v34  ;;  %v13408_v55 = vpop.permute.xlu0 %9597 }
 0x25d   : > { %16134 = vst [vmem:[#allocation91_spill] sm:$0xff] %v13384_v19  ;;  %16135 = vst [vmem:[#allocation92_spill] sm:$0xff] %v13386_v37  ;;  %v13395_v59 = vmul.f32 0.75, %v7074_v13  ;;  %v13397_v18 = vmul.f32 0.75, %v7075_v12  ;;  %v13399_v40 = vmul.f32 0.75, %v7076_v8  ;;  %v13403_v28 = vadd.f32 %v13389_v61, %v12622_v46  ;;  %v16141_v63 = vld [vmem:[#allocation42_spill] sm:$0xff]  ;;  %v13441_v38 = vpop.permute.xlu1 %9603 }
 0x25e   : > { %16136 = vst [vmem:[#allocation93_spill] sm:$0xff] %v13389_v61  ;;  %16137 = vst [vmem:[#allocation94_spill] sm:$0xff] %v13391_v35  ;;  %v7469_v50 = vadd.f32 %v7341_v51, %v16054_v43  ;;  %v7470_v16 = vadd.f32 %v7342_v47, %v16055_v14  ;;  %v7471_v11 = vadd.f32 %v7343_v15, %v16056_v53  ;;  %v16142_v13 = vld [vmem:[#allocation43_spill] sm:$0xff]  ;;  %v16145_v61 = vld [vmem:[#allocation46_spill] sm:$0xff] }
 0x25f   : > { %16139 = vst [vmem:[#allocation96_spill] sm:$0xff] %v13403_v28  ;;  %16140 = vst [vmem:[#allocation97_spill] sm:$0xff] %v13408_v55  ;;  %v7472_v34 = vadd.f32 %v13391_v35, %v16141_v63  ;;  %v7473_v12 = vadd.f32 %v7345_v33, %v16142_v13  ;;  %v7474_v8 = vadd.f32 %v13395_v59, %v16143_v30  ;;  %v16148_v13 = vld [vmem:[#allocation51_spill] sm:$0xff] }
 0x260   : > { %v7475_v46 = vadd.f32 %v13397_v18, %v16144_v7  ;;  %v7476_v43 = vadd.f32 %v13399_v40, %v16145_v61  ;;  %v13420_v14 = vadd.f32 %v13256_v39, %v7229_v58  ;;  %v13423_v53 = vadd.f32 %v13258_v36, %v7230_v49  ;;  %v16150_v7 = vld [vmem:[#allocation53_spill] sm:$0xff]  ;;  %v16151_v61 = vld [vmem:[#allocation54_spill] sm:$0xff]  ;;  %v16152_v39 = vld [vmem:[#allocation55_spill] sm:$0xff] }
 0x261   : > { %v13426_v55 = vadd.f32 %v13260_v32, %v7231_v25  ;;  %v13429_v63 = vadd.f32 %v13262_v3, %v7233_v9  ;;  %v7613_v30 = vadd.f32 %v16148_v13, %v7229_v58  ;;  %v7614_v29 = vadd.f32 %v16149_v4, %v7230_v49  ;;  %v16153_v36 = vld [vmem:[#allocation56_spill] sm:$0xff]  ;;  %v16154_v32 = vld [vmem:[#allocation57_spill] sm:$0xff]  ;;  %v16155_v3 = vld [vmem:[#allocation58_spill] sm:$0xff] }
 0x262   : > { %v7615_v26 = vadd.f32 %v16150_v7, %v7231_v25  ;;  %v7616_v27 = vadd.f32 %v16151_v61, %v13380_v57  ;;  %v7617_v21 = vadd.f32 %v16152_v39, %v7233_v9  ;;  %v7618_v42 = vadd.f32 %v16153_v36, %v13382_v45  ;;  %v9602_v7 = vpop.permute.xlu0 %9601 }
 0x263   : > { %16146 = vst [vmem:[#allocation42_spill] sm:$0xff] %v13426_v55  ;;  %16147 = vst [vmem:[#allocation43_spill] sm:$0xff] %v13429_v63  ;;  %v7619_v48 = vadd.f32 %v16154_v32, %v13384_v19  ;;  %v7620_v58 = vadd.f32 %v16155_v3, %v13386_v37  ;;  %v7629_v49 = vadd.f32 %v7341_v51, %v13235_v6  ;;  %v7773_v9 = vmax.f32 %v7613_v30, 0.0 }
 0x264   : > { %v7630_v4 = vadd.f32 %v7342_v47, %v13250_v17  ;;  %v13448_v25 = vadd.f32 %v7343_v15, %v13252_v1  ;;  %v13451_v39 = vadd.f32 %v7345_v33, %v13254_v22  ;;  %v7774_v36 = vmax.f32 %v7614_v29, 0.0  ;;  %v13454_v29 = vpop.permute.xlu1 %9607 }
 0x265   : > { %v7775_v13 = vmax.f32 %v7615_v26, 0.0  ;;  %v7776_v32 = vmax.f32 %v7616_v27, 0.0  ;;  %v7777_v61 = vmax.f32 %v7617_v21, 0.0  ;;  %v7778_v57 = vmax.f32 %v7618_v42, 0.0 }
 0x266   : > { %v7779_v19 = vmax.f32 %v7619_v48, 0.0  ;;  %v7780_v45 = vmax.f32 %v7620_v58, 0.0  ;;  %v7789_v51 = vmax.f32 %v7469_v50, 0.0  ;;  %v7790_v37 = vmax.f32 %v7470_v16, 0.0 }
 0x267   : > { %v7791_v47 = vmax.f32 %v7471_v11, 0.0  ;;  %v7792_v17 = vmax.f32 %v7472_v34, 0.0  ;;  %v7793_v15 = vmax.f32 %v7473_v12, 0.0  ;;  %v7794_v1 = vmax.f32 %v7474_v8, 0.0  ;;  %v13462_v34 = vpop.permute.xlu0 %9605 }
 0x268   : > { %v7795_v6 = vmax.f32 %v7475_v46, 0.0  ;;  %v7796_v33 = vmax.f32 %v7476_v43, 0.0  ;;  %v7805_v35 = vmax.f32 %v7629_v49, 0.0  ;;  %v7806_v30 = vmax.f32 %v7630_v4, 0.0  ;;  %16156 = vst [vmem:[#allocation44_spill] sm:$0xff] %v13462_v34 }
 0x269   : > { %v7821_v21 = vmax.f32 %v13420_v14, 0.0  ;;  %v7822_v27 = vmax.f32 %v13423_v53, 0.0  ;;  %v8467_v16 = vcombine.low %v7773_v9, %v7774_v36  ;;  %v8468_v11 = vcombine.low %v7775_v13, %v7776_v32 }
 0x26a   : > { %v8484_v12 = vcombine.low %v7777_v61, %v7778_v57  ;;  %v8485_v8 = vcombine.low %v7779_v19, %v7780_v45  ;;  %v8535_v46 = vcombine.low %v7789_v51, %v7790_v37  ;;  %v8536_v43 = vcombine.low %v7791_v47, %v7792_v17 }
 0x26b   : > { %v8475_v58 = vrot.slane %v8467_v16, %v16066_v62  ;;  %v8482_v49 = vrot.slane %v8468_v11, %v16066_v62  ;;  %v8552_v4 = vcombine.low %v7793_v15, %v7794_v1  ;;  %v8553_v14 = vcombine.low %v7795_v6, %v7796_v33  ;;  %v9612_v6 = vpop.permute.xlu1 %9611  ;;  %v9610_v33 = vpop.permute.xlu0 %9609 }
 0x26c   : > { %v8492_v53 = vrot.slane %v8484_v12, %v16066_v62  ;;  %v8499_v48 = vrot.slane %v8485_v8, %v16066_v62  ;;  %v8543_v9 = vrot.slane %v8535_v46, %v16066_v62  ;;  %v8550_v36 = vrot.slane %v8536_v43, %v16066_v62 }
 0x26d   : > { %v8483_v13 = vcombine.low %v8475_v58, %v8482_v49  ;;  %v8560_v57 = vrot.slane %v8552_v4, %v16066_v62  ;;  %v8567_v17 = vrot.slane %v8553_v14, %v16066_v62  ;;  %v13472_v45 = vcombine.low %v7805_v35, %v7806_v30 }
 0x26e   : > { %v8500_v1 = vcombine.low %v8492_v53, %v8499_v48  ;;  %v8551_v19 = vcombine.low %v8543_v9, %v8550_v36  ;;  %v13474_v37 = vcombine.low %v7821_v21, %v7822_v27  ;;  %v3965_v32 = vmul.f32 0.25, %v13314_v23 }
 0x26f   : > { %v8568_v61 = vcombine.low %v8560_v57, %v8567_v17  ;;  %9395 = vst.msk [vmem:[%s13003_s26 + $0x70] sm:$0xff] %vm513_vm3, %v8483_v13  ;;  %v16158_v47 = vrot.slane %v13285_v41, 7  ;;  %v13496_v27 = vmul.f32 0.75, %v13285_v41  ;;  %v3851_v48 = vrot.slane %v13288_v2, 7  ;;  %v13532_v53 = vpop.permute.xlu1 %9615 }
 0x270   : > { %16157 = vst [vmem:[#allocation45_spill] sm:$0xff] %v13474_v37  ;;  %9396 = vst.msk [vmem:[%s13003_s26 + $0x78] sm:$0xff] %vm513_vm3, %v8500_v1  ;;  %v4005_v23 = vadd.f32 %v13303_v60, %v3965_v32  ;;  %v3912_v16 = vrot.slane %v13288_v2, 1  ;;  %v3986_v11 = vmul.f32 0.75, %v13288_v2  ;;  %v16161_v58 = vrot.slane %v13282_v5, 7 }
 0x271   : > { %v3887_v35 = vsel %vm3831_vm11, %v13285_v41, %v16158_v47  ;;  %9399 = vst.msk [vmem:[%s13003_s26 + $0x90] sm:$0xff] %vm513_vm3, %v8551_v19  ;;  %9400 = vst.msk [vmem:[%s13003_s26 + $0x98] sm:$0xff] %vm513_vm3, %v8568_v61 }
 0x272   : > { %9780 = vst.msk [vmem:[%s13003_s26 + $0x70] sm:$0xff] %vm9765_vm12, %v9602_v7  ;;  %v3963_v21 = vmul.f32 0.25, %v3887_v35  ;;  %9781 = vst.msk [vmem:[%s13003_s26 + $0x78] sm:$0xff] %vm9765_vm12, %v13441_v38  ;;  %v13510_v7 = vadd.f32 %v13092_v52, %v13296_v10  ;;  %v4661_v12 = vcombine.high %v4005_v23, %v4005_v23  ;;  %v4668_v8 = vrot.slane %v4005_v23, %v16078_v24 }
 0x273   : > { %9784 = vst.msk [vmem:[%s13003_s26 + $0x90] sm:$0xff] %vm9765_vm12, %v9610_v33  ;;  %9785 = vst.msk [vmem:[%s13003_s26 + $0x98] sm:$0xff] %vm9765_vm12, %v9612_v6  ;;  %v16159_v38 = vcombine.high %v13170_v20, %v13170_v20  ;;  %v3852_v49 = vsel %vm3831_vm11, %v16161_v58, %v3851_v48  ;;  %v16162_v52 = vrot.slane %v13282_v5, 1  ;;  %v3949_v4 = vsel %vm2872_vm10, %v3912_v16, %v13288_v2 }
 0x274   : > { %v4003_v46 = vadd.f32 %v13496_v27, %v3963_v21  ;;  %v3848_v14 = vrot.slane %v13510_v7, 7  ;;  %16163 = vst [vmem:[#allocation51_spill] sm:$0xff] %v13532_v53  ;;  %v4675_v20 = vrot.slane %v4661_v12, %v16078_v24  ;;  %v4676_v9 = vcombine.high %v4668_v8, %v4668_v8  ;;  %v13606_v21 = vpop.permute.xlu0 %9613 }
 0x275   : > { %v13521_v43 = vsel %vm3831_vm11, %v16159_v38, %v13238_v54  ;;  %v3913_v10 = vsel %vm2872_vm10, %v16162_v52, %v3912_v16  ;;  %v13536_v54 = vrot.slane %v4668_v8, %v16078_v24  ;;  %v3966_v57 = vmul.f32 0.25, %v3852_v49  ;;  %v13567_v38 = vpop.permute.xlu1 %9619  ;;  %16170 = vst [vmem:[#allocation58_spill] sm:$0xff] %v13606_v21 }
 0x276   : > { %16160 = vst [vmem:[#allocation46_spill] sm:$0xff] %v13521_v43  ;;  %v4563_v36 = vcombine.high %v4003_v46, %v4003_v46  ;;  %v4570_v13 = vrot.slane %v4003_v46, %v16078_v24  ;;  %v4025_v5 = vmul.f32 0.25, %v3913_v10  ;;  %v4026_v17 = vmul.f32 0.25, %v3949_v4 }
 0x277   : > { %16164 = vst [vmem:[#allocation52_spill] sm:$0xff] %v13536_v54  ;;  %v4677_v6 = vcombine.high %v4675_v20, %v4675_v20  ;;  %v13540_v1 = vrot.slane %v4675_v20, %v16078_v24  ;;  %v13543_v2 = vrot.slane %v4676_v9, %v16078_v24  ;;  %v4006_v35 = vadd.f32 %v3986_v11, %v3966_v57 }
 0x278   : > { %v4577_v32 = vrot.slane %v4563_v36, %v16078_v24  ;;  %v4578_v61 = vcombine.high %v4570_v13, %v4570_v13  ;;  %v13549_v47 = vrot.slane %v4570_v13, %v16078_v24  ;;  %v4045_v48 = vadd.f32 %v4025_v5, %v13303_v60 }
 0x279   : > { %16165 = vst [vmem:[#allocation53_spill] sm:$0xff] %v13543_v2  ;;  %v13552_v33 = vrot.slane %v4677_v6, %v16078_v24  ;;  %v4046_v49 = vadd.f32 %v4026_v17, %v3986_v11  ;;  %v4710_v52 = vcombine.high %v4006_v35, %v4006_v35  ;;  %v4717_v10 = vrot.slane %v4006_v35, %v16078_v24 }
 0x27a   : > { %16166 = vst [vmem:[#allocation54_spill] sm:$0xff] %v13549_v47  ;;  %v4579_v16 = vcombine.high %v4577_v32, %v4577_v32  ;;  %v13560_v12 = vrot.slane %v4577_v32, %v16078_v24  ;;  %v13563_v8 = vrot.slane %v4578_v61, %v16078_v24  ;;  %v5821_v9 = vcombine.high %v4045_v48, %v4045_v48 }
 0x27b   : > { %v4724_v36 = vrot.slane %v4710_v52, %v16078_v24  ;;  %v4725_v13 = vcombine.high %v4717_v10, %v4717_v10  ;;  %v13581_v57 = vrot.slane %v4717_v10, %v16078_v24  ;;  %v5828_v11 = vrot.slane %v4045_v48, %v16078_v24  ;;  %v13647_v52 = vpop.permute.xlu0 %9617 }
 0x27c   : > { %16167 = vst [vmem:[#allocation55_spill] sm:$0xff] %v13563_v8  ;;  %v13573_v60 = vrot.slane %v4579_v16, %v16078_v24  ;;  %v5835_v17 = vrot.slane %v5821_v9, %v16078_v24  ;;  %v5870_v6 = vcombine.high %v4046_v49, %v4046_v49  ;;  %v5877_v32 = vrot.slane %v4046_v49, %v16078_v24  ;;  %v13600_v9 = vpop.permute.xlu1 %9623 }
 0x27d   : > { %v4726_v61 = vcombine.high %v4724_v36, %v4724_v36  ;;  %v4740_v35 = vrot.slane %v4724_v36, %v16078_v24  ;;  %v13590_v16 = vrot.slane %v4725_v13, %v16078_v24  ;;  %v5836_v10 = vcombine.high %v5828_v11, %v5828_v11  ;;  %16169 = vst [vmem:[#allocation57_spill] sm:$0xff] %v13600_v9 }
 0x27e   : > { %v5837_v30 = vcombine.high %v5835_v17, %v5835_v17  ;;  %v13595_v48 = vrot.slane %v5828_v11, %v16078_v24  ;;  %v13598_v50 = vrot.slane %v5835_v17, %v16078_v24  ;;  %v5884_v13 = vrot.slane %v5870_v6, %v16078_v24 }
 0x27f   : > { %v4754_v49 = vrot.slane %v4726_v61, %v16078_v24  ;;  %v4756_v3 = vcombine.high %v4740_v35, %v4740_v35  ;;  %v13609_v19 = vrot.slane %v5836_v10, %v16078_v24  ;;  %v5885_v46 = vcombine.high %v5877_v32, %v5877_v32 }
 0x280   : > { %16168 = vst [vmem:[#allocation56_spill] sm:$0xff] %v13595_v48  ;;  %v13612_v11 = vrot.slane %v5837_v30, %v16078_v24  ;;  %v5866_v17 = vcombine.high %v13595_v48, %v13595_v48  ;;  %v5886_v58 = vcombine.high %v5884_v13, %v5884_v13  ;;  %v5893_v23 = vrot.slane %v5877_v32, %v16078_v24  ;;  %v13638_v36 = vpop.permute.xlu1 %9627 }
 0x281   : > { %16171 = vst [vmem:[#allocation98_spill] sm:$0xff] %v13609_v19  ;;  %v4758_v20 = vcombine.high %v4754_v49, %v4754_v49  ;;  %v5900_v30 = vrot.slane %v5884_v13, %v16078_v24  ;;  %v13627_v4 = vrot.slane %v5885_v46, %v16078_v24  ;;  %16173 = vst [vmem:[#allocation100_spill] sm:$0xff] %v13638_v36 }
 0x282   : > { %v5914_v61 = vrot.slane %v5886_v58, %v16078_v24  ;;  %v5915_v51 = vcombine.high %v5893_v23, %v5893_v23  ;;  %v13633_v6 = vrot.slane %v5866_v17, %v16094_v0  ;;  %v6632_v13 = vrot.slane %v5893_v23, %v16094_v0 }
 0x283   : > { %v5916_v26 = vcombine.high %v5900_v30, %v5900_v30  ;;  %v5917_v46 = vcombine.high %v13627_v4, %v13627_v4  ;;  %v6648_v17 = vrot.slane %v5900_v30, %v16094_v0  ;;  %v3909_v30 = vrot.slane %v13510_v7, 1 }
 0x284   : > { %16172 = vst [vmem:[#allocation99_spill] sm:$0xff] %v13633_v6  ;;  %v5918_v5 = vcombine.high %v5914_v61, %v5914_v61  ;;  %v13645_v32 = vrot.slane %v5915_v51, %v16094_v0  ;;  %v6652_v10 = vrot.slane %v5914_v61, %v16094_v0  ;;  %v13654_v42 = vsel %vm3831_vm11, %v13581_v57, %v6632_v13 }
 0x285   : > { %v6656_v23 = vrot.slane %v5916_v26, %v16094_v0  ;;  %16174 = vst [vmem:[#allocation101_spill] sm:$0xff] %v13654_v42  ;;  %v13657_v15 = vrot.slane %v5917_v46, %v16094_v0  ;;  %v16175_v51 = vrot.slane %v13285_v41, 7  ;;  %v3984_v26 = vmul.f32 0.75, %v13510_v7 }
 0x286   : > { %v6660_v58 = vrot.slane %v5918_v5, %v16094_v0  ;;  %v13668_v55 = vsel %vm3831_vm11, %v4740_v35, %v6648_v17  ;;  %v13671_v13 = vsel %vm3831_vm11, %v4754_v49, %v6652_v10  ;;  %v16178_v46 = vrot.slane %v13285_v41, 1  ;;  %v13689_v41 = vpop.permute.xlu1 %9631 }
 0x287   : > { %v3849_v37 = vsel %vm3831_vm11, %v16175_v51, %v3848_v14  ;;  %16176 = vst [vmem:[#allocation102_spill] sm:$0xff] %v13668_v55  ;;  %16177 = vst [vmem:[#allocation103_spill] sm:$0xff] %v13671_v13  ;;  %v3948_v36 = vsel %vm2872_vm10, %v3909_v30, %v13510_v7  ;;  %v13679_v14 = vsel %vm3831_vm11, %v4756_v3, %v6656_v23  ;;  %v13684_v51 = vpop.f32.mrb[15].mxu0  ;;  %v13687_v49 = vmul.f32 0.25, %v13245_v31 }
 0x288   : > { %v3964_v61 = vmul.f32 0.25, %v3849_v37  ;;  %v3910_v5 = vsel %vm2872_vm10, %v16178_v46, %v3909_v30  ;;  %16179 = vst [vmem:[#allocation104_spill] sm:$0xff] %v13679_v14  ;;  %v13682_v37 = vsel %vm3831_vm11, %v4758_v20, %v6660_v58  ;;  %16181 = vst [vmem:[#allocation106_spill] sm:$0xff] %v13684_v51  ;;  %v4024_v63 = vmul.f32 0.25, %v3948_v36  ;;  %v13703_v58 = vpop.permute.xlu0 %9621 }
 0x289   : > { %16180 = vst [vmem:[#allocation105_spill] sm:$0xff] %v13682_v37  ;;  %v4023_v17 = vmul.f32 0.25, %v3910_v5  ;;  %16182 = vst [vmem:[#allocation107_spill] sm:$0xff] %v13689_v41  ;;  %v13692_v10 = vmul.f32 0.25, %v13248_v56  ;;  %v13695_v7 = vmul.f32 0.25, %v13521_v43  ;;  %v13698_v3 = vmul.f32 0.25, %v13668_v55 }
 0x28a   : > { %v4004_v35 = vadd.f32 %v3984_v26, %v3964_v61  ;;  %v13701_v20 = vmul.f32 0.25, %v13671_v13  ;;  %16185 = vst [vmem:[#allocation110_spill] sm:$0xff] %v13703_v58  ;;  %v4044_v23 = vadd.f32 %v4024_v63, %v3984_v26  ;;  %v13708_v46 = vmul.f32 0.25, %v13679_v14 }
 0x28b   : > { %16183 = vst [vmem:[#allocation108_spill] sm:$0xff] %v13698_v3  ;;  %v4043_v36 = vadd.f32 %v4023_v17, %v13496_v27  ;;  %v13711_v5 = vmul.f32 0.25, %v13682_v37  ;;  %v13715_v55 = vadd.f32 %v13395_v59, %v13687_v49  ;;  %v13719_v13 = vadd.f32 %v13397_v18, %v13692_v10 }
 0x28c   : > { %16184 = vst [vmem:[#allocation109_spill] sm:$0xff] %v13701_v20  ;;  %v4612_v30 = vcombine.high %v4004_v35, %v4004_v35  ;;  %v4619_v61 = vrot.slane %v4004_v35, %v16078_v24  ;;  %16186 = vst [vmem:[#allocation111_spill] sm:$0xff] %v13708_v46  ;;  %v5772_v14 = vcombine.high %v4044_v23, %v4044_v23 }
 0x28d   : > { %16187 = vst [vmem:[#allocation112_spill] sm:$0xff] %v13711_v5  ;;  %v5723_v35 = vcombine.high %v4043_v36, %v4043_v36  ;;  %v5730_v17 = vrot.slane %v4043_v36, %v16078_v24  ;;  %v5779_v37 = vrot.slane %v4044_v23, %v16078_v24  ;;  %v7636_v59 = vadd.f32 %v13399_v40, %v13695_v7  ;;  %v13742_v40 = vpop.permute.xlu0 %9625 }
 0x28e   : > { %v4626_v27 = vrot.slane %v4612_v30, %v16078_v24  ;;  %v4627_v63 = vcombine.high %v4619_v61, %v4619_v61  ;;  %v13723_v26 = vrot.slane %v4619_v61, %v16078_v24  ;;  %v13735_v61 = vpop.permute.xlu1 %9635  ;;  %v5786_v23 = vrot.slane %v5772_v14, %v16078_v24  ;;  %16190 = vst [vmem:[#allocation115_spill] sm:$0xff] %v13742_v40 }
 0x28f   : > { %16188 = vst [vmem:[#allocation113_spill] sm:$0xff] %v13735_v61  ;;  %v5737_v31 = vrot.slane %v5723_v35, %v16078_v24  ;;  %v5738_v36 = vcombine.high %v5730_v17, %v5730_v17  ;;  %v13739_v58 = vrot.slane %v5730_v17, %v16078_v24  ;;  %v5787_v34 = vcombine.high %v5779_v37, %v5779_v37 }
 0x290   : > { %v4628_v43 = vcombine.high %v4626_v27, %v4626_v27  ;;  %v4642_v56 = vrot.slane %v4626_v27, %v16078_v24  ;;  %v13731_v18 = vrot.slane %v4627_v63, %v16078_v24  ;;  %v5788_v51 = vcombine.high %v5786_v23, %v5786_v23 }
 0x291   : > { %16189 = vst [vmem:[#allocation114_spill] sm:$0xff] %v13739_v58  ;;  %v5739_v30 = vcombine.high %v5737_v31, %v5737_v31  ;;  %v13748_v61 = vrot.slane %v5737_v31, %v16078_v24  ;;  %v13751_v35 = vrot.slane %v5738_v36, %v16078_v24  ;;  %v5768_v17 = vcombine.high %v13739_v58, %v13739_v58 }
 0x292   : > { %v4656_v27 = vrot.slane %v4628_v43, %v16078_v24  ;;  %v4658_v21 = vcombine.high %v4642_v56, %v4642_v56  ;;  %v5795_v40 = vrot.slane %v5779_v37, %v16078_v24  ;;  %v5802_v43 = vrot.slane %v5786_v23, %v16078_v24  ;;  %v13768_v48 = vpop.permute.xlu1 %9639 }
 0x293   : > { %16191 = vst [vmem:[#allocation116_spill] sm:$0xff] %v13751_v35  ;;  %v13758_v28 = vrot.slane %v5739_v30, %v16078_v24  ;;  %v5809_v36 = vrot.slane %v5787_v34, %v16078_v24  ;;  %v5816_v6 = vrot.slane %v5788_v51, %v16078_v24  ;;  %16192 = vst [vmem:[#allocation117_spill] sm:$0xff] %v13768_v48  ;;  %v13777_v34 = vpop.permute.xlu0 %9629 }
 0x294   : > { %v4660_v14 = vcombine.high %v4656_v27, %v4656_v27  ;;  %v5817_v2 = vcombine.high %v5795_v40, %v5795_v40  ;;  %v5818_v54 = vcombine.high %v5802_v43, %v5802_v43  ;;  %v13775_v31 = vrot.slane %v5768_v17, %v16094_v0  ;;  %16194 = vst [vmem:[#allocation119_spill] sm:$0xff] %v13777_v34 }
 0x295   : > { %v5819_v23 = vcombine.high %v5809_v36, %v5809_v36  ;;  %v5820_v51 = vcombine.high %v5816_v6, %v5816_v6  ;;  %v6568_v37 = vrot.slane %v5795_v40, %v16094_v0  ;;  %v6572_v48 = vrot.slane %v5809_v36, %v16094_v0 }
 0x296   : > { %16193 = vst [vmem:[#allocation118_spill] sm:$0xff] %v13775_v31  ;;  %v6576_v47 = vrot.slane %v5817_v2, %v16094_v0  ;;  %v6584_v58 = vrot.slane %v5802_v43, %v16094_v0  ;;  %v6588_v63 = vrot.slane %v5816_v6, %v16094_v0  ;;  %v6592_v17 = vrot.slane %v5818_v54, %v16094_v0 }
 0x297   : > { %v6580_v30 = vrot.slane %v5819_v23, %v16094_v0  ;;  %v6596_v34 = vrot.slane %v5820_v51, %v16094_v0  ;;  %v13791_v31 = vsel %vm3831_vm11, %v13723_v26, %v6568_v37  ;;  %v7810_v40 = vmax.f32 %v13715_v55, 0.0  ;;  %v9644_v55 = vpop.permute.xlu1 %9643 }
 0x298   : > { %16195 = vst [vmem:[#allocation120_spill] sm:$0xff] %v13791_v31  ;;  %v13795_v36 = vsel %vm3831_vm11, %v4642_v56, %v6584_v58  ;;  %v13798_v2 = vsel %vm3831_vm11, %v4656_v27, %v6588_v63  ;;  %v7811_v43 = vmax.f32 %v13719_v13, 0.0  ;;  %v7812_v23 = vmax.f32 %v7636_v59, 0.0  ;;  %v13813_v59 = vpop.permute.xlu0 %9633 }
 0x299   : > { %16196 = vst [vmem:[#allocation121_spill] sm:$0xff] %v13795_v36  ;;  %16197 = vst [vmem:[#allocation122_spill] sm:$0xff] %v13798_v2  ;;  %v13802_v6 = vsel %vm3831_vm11, %v4658_v21, %v6592_v17  ;;  %v13805_v54 = vsel %vm3831_vm11, %v4660_v14, %v6596_v34  ;;  %v7377_v37 = vmul.f32 0.75, %v13795_v36  ;;  %v7378_v51 = vmul.f32 0.75, %v13798_v2 }
 0x29a   : > { %16198 = vst [vmem:[#allocation123_spill] sm:$0xff] %v13802_v6  ;;  %16199 = vst [vmem:[#allocation124_spill] sm:$0xff] %v13805_v54  ;;  %v7379_v56 = vmul.f32 0.75, %v13802_v6  ;;  %v7380_v58 = vmul.f32 0.75, %v13805_v54  ;;  %v16200_v27 = vmax.f32 %v13451_v39, 0.0  ;;  %v8621_v13 = vcombine.low %v7811_v43, %v7812_v23 }
 0x29b   : > { %16201 = vst [vmem:[#allocation125_spill] sm:$0xff] %v13813_v59  ;;  %v7505_v21 = vadd.f32 %v7377_v37, %v13254_v22  ;;  %v7506_v14 = vadd.f32 %v7378_v51, %v13687_v49  ;;  %v7665_v34 = vadd.f32 %v7377_v37, %v13698_v3  ;;  %v7666_v17 = vadd.f32 %v7378_v51, %v13701_v20 }
 0x29c   : > { %v8620_v63 = vcombine.low %v16200_v27, %v7810_v40  ;;  %v7507_v8 = vadd.f32 %v7379_v56, %v13692_v10  ;;  %v7508_v6 = vadd.f32 %v7380_v58, %v13695_v7  ;;  %v7667_v54 = vadd.f32 %v7379_v56, %v13708_v46  ;;  %v13825_v7 = vpop.permute.xlu1 %9647 }
 0x29d   : > { %v7668_v39 = vadd.f32 %v7380_v58, %v13711_v5  ;;  %v7857_v40 = vmax.f32 %v7505_v21, 0.0  ;;  %v7858_v43 = vmax.f32 %v7506_v14, 0.0  ;;  %v7873_v23 = vmax.f32 %v7665_v34, 0.0  ;;  %16202 = vst [vmem:[#allocation126_spill] sm:$0xff] %v13825_v7 }
 0x29e   : > { %v7874_v27 = vmax.f32 %v7666_v17, 0.0  ;;  %v7859_v59 = vmax.f32 %v7507_v8, 0.0  ;;  %v7860_v22 = vmax.f32 %v7508_v6, 0.0  ;;  %v7875_v2 = vmax.f32 %v7667_v54, 0.0  ;;  %v13837_v54 = vpop.permute.xlu0 %9637 }
 0x29f   : > { %v7876_v49 = vmax.f32 %v7668_v39, 0.0  ;;  %v8628_v37 = vrot.slane %v8620_v63, %v16066_v62  ;;  %v8635_v51 = vrot.slane %v8621_v13, %v16066_v62  ;;  %v8824_v20 = vcombine.low %v7857_v40, %v7858_v43  ;;  %16206 = vst [vmem:[#allocation129_spill] sm:$0xff] %v13837_v54 }
 0x2a0   : > { %v8892_v10 = vcombine.low %v7873_v23, %v7874_v27  ;;  %v8825_v56 = vcombine.low %v7859_v59, %v7860_v22  ;;  %v13829_v58 = vsel %vm3831_vm11, %v13731_v18, %v6572_v48  ;;  %v16204_v8 = vcombine.high %v13723_v26, %v13723_v26  ;;  %v9652_v27 = vpop.permute.xlu1 %9651 }
 0x2a1   : > { %v8893_v46 = vcombine.low %v7875_v2, %v7876_v49  ;;  %16203 = vst [vmem:[#allocation127_spill] sm:$0xff] %v13829_v58  ;;  %v8636_v63 = vcombine.low %v8628_v37, %v8635_v51  ;;  %v8832_v13 = vrot.slane %v8824_v20, %v16066_v62  ;;  %v16207_v2 = vcombine.high %v13731_v18, %v13731_v18  ;;  %v16220_v49 = vld [vmem:[#allocation6_spill] sm:$0xff] }
 0x2a2   : > { %v13835_v6 = vsel %vm3831_vm11, %v16204_v8, %v6576_v47  ;;  %v8900_v21 = vrot.slane %v8892_v10, %v16066_v62  ;;  %v8839_v59 = vrot.slane %v8825_v56, %v16066_v62  ;;  %v16209_v47 = vrot.slane %v13627_v4, %v16094_v0  ;;  %v16221_v37 = vld [vmem:[#allocation22_spill] sm:$0xff]  ;;  %v16223_v56 = vld [vmem:[#allocation41_spill] sm:$0xff] }
 0x2a3   : > { %16205 = vst [vmem:[#allocation128_spill] sm:$0xff] %v13835_v6  ;;  %v13845_v48 = vsel %vm3831_vm11, %v16207_v2, %v6580_v30  ;;  %v8907_v26 = vrot.slane %v8893_v46, %v16066_v62  ;;  %v16211_v20 = vcombine.high %v13581_v57, %v13581_v57  ;;  %9404 = vst.msk [vmem:[%s13003_s26 + $0xb8] sm:$0xff] %vm513_vm3, %v8636_v63  ;;  %v7248_v30 = vmul.f32 0.25, %v13241_v44  ;;  %v16222_v10 = vld [vmem:[#allocation2_spill] sm:$0xff]  ;;  %v16225_v63 = vld [vmem:[#allocation7_spill] sm:$0xff]  ;;  %v9642_v2 = vpop.permute.xlu0 %9641 }
 0x2a4   : > { %16208 = vst [vmem:[#allocation130_spill] sm:$0xff] %v13845_v48  ;;  %v13854_v14 = vsel %vm3831_vm11, %v13590_v16, %v16209_v47  ;;  %v16213_v46 = vcombine.high %v13590_v16, %v13590_v16  ;;  %v13874_v34 = vmul.f32 0.25, %v13654_v42  ;;  %9789 = vst.msk [vmem:[%s13003_s26 + $0xb8] sm:$0xff] %vm9765_vm12, %v13567_v38  ;;  %v7373_v39 = vmul.f32 0.75, %v13791_v31  ;;  %v16219_v38 = vld [vmem:[#allocation94_spill] sm:$0xff]  ;;  %v16228_v47 = vld [vmem:[#allocation85_spill] sm:$0xff] }
 0x2a5   : > { %16210 = vst [vmem:[#allocation131_spill] sm:$0xff] %v13854_v14  ;;  %v13861_v18 = vsel %vm3831_vm11, %v16211_v20, %v13645_v32  ;;  %v13877_v57 = vmul.f32 0.25, %v13854_v14  ;;  %v8840_v32 = vcombine.low %v8832_v13, %v8839_v59  ;;  %v8908_v17 = vcombine.low %v8900_v21, %v8907_v26  ;;  %v16226_v13 = vld [vmem:[#allocation14_spill] sm:$0xff]  ;;  %v16227_v59 = vld [vmem:[#allocation81_spill] sm:$0xff] }
 0x2a6   : > { %16212 = vst [vmem:[#allocation132_spill] sm:$0xff] %v13861_v18  ;;  %v13870_v4 = vsel %vm3831_vm11, %v16213_v46, %v13657_v15  ;;  %16215 = vst [vmem:[#allocation134_spill] sm:$0xff] %v13874_v34  ;;  %v13883_v16 = vmul.f32 0.25, %v13861_v18  ;;  %v7374_v40 = vmul.f32 0.75, %v13829_v58  ;;  %v7375_v43 = vmul.f32 0.75, %v13835_v6  ;;  %v16229_v46 = vld [vmem:[#allocation86_spill] sm:$0xff] }
 0x2a7   : > { %16214 = vst [vmem:[#allocation133_spill] sm:$0xff] %v13870_v4  ;;  %16216 = vst [vmem:[#allocation135_spill] sm:$0xff] %v13877_v57  ;;  %v13886_v15 = vmul.f32 0.25, %v13870_v4  ;;  %v7376_v23 = vmul.f32 0.75, %v13845_v48  ;;  %v7632_v22 = vadd.f32 %v16219_v38, %v7248_v30  ;;  %v10734_v51 = vadd.f32 %v16221_v37, %v16220_v49 }
 0x2a8   : > { %16217 = vst [vmem:[#allocation136_spill] sm:$0xff] %v13883_v16  ;;  %9416 = vst.msk [vmem:[%s13003_s26 + $0x118] sm:$0xff] %vm513_vm3, %v8840_v32  ;;  %v13901_v8 = vadd.f32 %v16223_v56, %v16222_v10  ;;  %v10735_v21 = vadd.f32 %v16226_v13, %v16225_v63  ;;  %v7501_v26 = vadd.f32 %v7373_v39, %v16227_v59 }
 0x2a9   : > { %16218 = vst [vmem:[#allocation137_spill] sm:$0xff] %v13886_v15  ;;  %9420 = vst.msk [vmem:[%s13003_s26 + $0x138] sm:$0xff] %vm513_vm3, %v8908_v17  ;;  %v7502_v20 = vadd.f32 %v7374_v40, %v16228_v47  ;;  %v7503_v32 = vadd.f32 %v7375_v43, %v16229_v46  ;;  %v7504_v17 = vadd.f32 %v7376_v23, %v7248_v30  ;;  %v7808_v56 = vmax.f32 %v7632_v22, 0.0 }
 0x2aa   : > { %16224 = vst [vmem:[#allocation94_spill] sm:$0xff] %v13901_v8  ;;  %9801 = vst.msk [vmem:[%s13003_s26 + $0x118] sm:$0xff] %vm9765_vm12, %v9644_v55  ;;  %v7661_v38 = vadd.f32 %v7373_v39, %v13874_v34  ;;  %v7662_v49 = vadd.f32 %v7374_v40, %v13877_v57  ;;  %v7663_v37 = vadd.f32 %v7375_v43, %v13883_v16  ;;  %v7853_v63 = vmax.f32 %v7501_v26, 0.0  ;;  %v13921_v39 = vld [vmem:[%s15725_s2] ss:$0 sm:$0xff]  ;;  %v16233_v26 = vld [vmem:[#allocation8_spill] sm:$0xff] }
 0x2ab   : > { %9805 = vst.msk [vmem:[%s13003_s26 + $0x138] sm:$0xff] %vm9765_vm12, %v9652_v27  ;;  %v7664_v10 = vadd.f32 %v7376_v23, %v13886_v15  ;;  %v7854_v55 = vmax.f32 %v7502_v20, 0.0  ;;  %v7855_v13 = vmax.f32 %v7503_v32, 0.0  ;;  %v7856_v27 = vmax.f32 %v7504_v17, 0.0  ;;  %16231 = vst [vmem:[#allocation6_spill] sm:$0xff] %v13921_v39  ;;  %v16234_v20 = vld [vmem:[#allocation63_spill] sm:$0xff]  ;;  %v13929_v17 = vpop.permute.xlu0 %9645 }
 0x2ac   : > { %v7869_v5 = vmax.f32 %v7661_v38, 0.0  ;;  %v7870_v59 = vmax.f32 %v7662_v49, 0.0  ;;  %v7871_v3 = vmax.f32 %v7663_v37, 0.0  ;;  %v16230_v46 = vmax.f32 %v13448_v25, 0.0  ;;  %16235 = vst [vmem:[#allocation2_spill] sm:$0xff] %v13929_v17  ;;  %v16287_v17 = vld [vmem:[#allocation26_spill] sm:$0xff] }
 0x2ad   : > { %v7872_v47 = vmax.f32 %v7664_v10, 0.0  ;;  %v8807_v7 = vcombine.low %v7853_v63, %v7854_v55  ;;  %v2749_v40 = vadd.f32 %v13921_v39, %v10734_v51  ;;  %v8808_v43 = vcombine.low %v7855_v13, %v7856_v27  ;;  %v16291_v16 = vld [vmem:[#allocation78_spill] sm:$0xff] }
 0x2ae   : > { %v8604_v30 = vcombine.low %v16230_v46, %v7808_v56  ;;  %v8875_v23 = vcombine.low %v7869_v5, %v7870_v59  ;;  %v13925_v22 = vadd.f32 %v13921_v39, %v10735_v21  ;;  %v10736_v32 = vadd.f32 %v16234_v20, %v16233_v26  ;;  %v13945_v46 = vpop.f32.mrb[84].mxu1 }
 0x2af   : > { %v8815_v38 = vrot.slane %v8807_v7, %v16066_v62  ;;  %v8876_v49 = vcombine.low %v7871_v3, %v7872_v47  ;;  %v3856_v37 = vrot.slane %v2749_v40, 7  ;;  %v8822_v10 = vrot.slane %v8808_v43, %v16066_v62  ;;  %16238 = vst [vmem:[#allocation7_spill] sm:$0xff] %v13945_v46  ;;  %v16239_v43 = vld [vmem:[#allocation29_spill] sm:$0xff]  ;;  %v10718_v20 = vpop.f32.mrb[85].mxu1 }
 0x2b0   : > { %16232 = vst [vmem:[#allocation22_spill] sm:$0xff] %v13925_v22  ;;  %v8618_v25 = vrot.slane %v8604_v30, %v16066_v62  ;;  %v8883_v51 = vrot.slane %v8875_v23, %v16066_v62  ;;  %v3917_v5 = vrot.slane %v2749_v40, 1  ;;  %v3989_v56 = vmul.f32 0.75, %v2749_v40  ;;  %v16240_v23 = vld [vmem:[#allocation80_spill] sm:$0xff] }
 0x2b1   : > { %v16236_v21 = vrot.slane %v13472_v45, %v16066_v62  ;;  %v8890_v55 = vrot.slane %v8876_v49, %v16066_v62  ;;  %v3890_v13 = vsel %vm3831_vm11, %v2749_v40, %v3856_v37  ;;  %v15842_v3 = vrot.slane %v13925_v22, 7 }
 0x2b2   : > { %v8823_v7 = vcombine.low %v8815_v38, %v8822_v10  ;;  %v3969_v27 = vmul.f32 0.25, %v3890_v13  ;;  %v13943_v47 = vmul.f32 0.75, %v13925_v22  ;;  %v2750_v40 = vadd.f32 %v13921_v39, %v10736_v32 }
 0x2b3   : > { %v8619_v63 = vcombine.low %v16236_v21, %v8618_v25  ;;  %v8891_v45 = vcombine.low %v8883_v51, %v8890_v55  ;;  %v3889_v30 = vsel %vm3831_vm11, %v13925_v22, %v15842_v3  ;;  %v13956_v26 = vadd.f32 %v16240_v23, %v16239_v43  ;;  %v9650_v51 = vpop.permute.xlu0 %9649 }
 0x2b4   : > { %16237 = vst [vmem:[#allocation41_spill] sm:$0xff] %v13943_v47  ;;  %9415 = vst.msk [vmem:[%s13003_s26 + $0x110] sm:$0xff] %vm513_vm3, %v8823_v7  ;;  %v4009_v25 = vadd.f32 %v3989_v56, %v3969_v27  ;;  %v3967_v38 = vmul.f32 0.25, %v3889_v30  ;;  %v16242_v32 = vcombine.high %v13748_v61, %v13748_v61  ;;  %v3857_v21 = vrot.slane %v2750_v40, 7 }
 0x2b5   : > { %9403 = vst.msk [vmem:[%s13003_s26 + $0xb0] sm:$0xff] %vm513_vm3, %v8619_v63  ;;  %16241 = vst [vmem:[#allocation14_spill] sm:$0xff] %v13956_v26  ;;  %v3918_v63 = vrot.slane %v2750_v40, 1  ;;  %v3990_v55 = vmul.f32 0.75, %v2750_v40  ;;  %v16244_v20 = vcombine.high %v13598_v50, %v13598_v50 }
 0x2b6   : > { %9788 = vst.msk [vmem:[%s13003_s26 + $0xb0] sm:$0xff] %vm9765_vm12, %v13647_v52  ;;  %v13969_v10 = vrot.slane %v16242_v32, %v16094_v0  ;;  %9800 = vst.msk [vmem:[%s13003_s26 + $0x110] sm:$0xff] %vm9765_vm12, %v9642_v2  ;;  %v16243_v52 = vcombine.high %v13758_v28, %v13758_v28  ;;  %v4857_v7 = vcombine.high %v4009_v25, %v4009_v25 }
 0x2b7   : > { %9419 = vst.msk [vmem:[%s13003_s26 + $0x130] sm:$0xff] %vm513_vm3, %v8891_v45  ;;  %v4864_v27 = vrot.slane %v4009_v25, %v16078_v24  ;;  %v4007_v30 = vadd.f32 %v13943_v47, %v3967_v38  ;;  %v3858_v2 = vsel %vm3831_vm11, %v3856_v37, %v3857_v21  ;;  %v3919_v43 = vsel %vm2872_vm10, %v3917_v5, %v3918_v63  ;;  %v16324_v47 = vld [vmem:[#allocation50_spill] sm:$0xff] }
 0x2b8   : > { %v13979_v13 = vrot.slane %v16243_v52, %v16094_v0  ;;  %9804 = vst.msk [vmem:[%s13003_s26 + $0x130] sm:$0xff] %vm9765_vm12, %v9650_v51  ;;  %v3951_v23 = vsel %vm2872_vm10, %v3918_v63, %v2750_v40  ;;  %v13994_v32 = vrot.slane %v16244_v20, %v16094_v0  ;;  %v4871_v51 = vrot.slane %v4857_v7, %v16078_v24 }
 0x2b9   : > { %v4872_v25 = vcombine.high %v4864_v27, %v4864_v27  ;;  %v13998_v38 = vrot.slane %v4864_v27, %v16078_v24  ;;  %v4759_v52 = vcombine.high %v4007_v30, %v4007_v30  ;;  %v4766_v59 = vrot.slane %v4007_v30, %v16078_v24 }
 0x2ba   : > { %v3970_v37 = vmul.f32 0.25, %v3858_v2  ;;  %v4029_v21 = vmul.f32 0.25, %v3919_v43  ;;  %v4030_v5 = vmul.f32 0.25, %v3951_v23  ;;  %v4873_v3 = vcombine.high %v4871_v51, %v4871_v51  ;;  %v14013_v2 = vpop.f32.mrb[86].mxu1 }
 0x2bb   : > { %16245 = vst [vmem:[#allocation81_spill] sm:$0xff] %v13998_v38  ;;  %v14002_v40 = vrot.slane %v4871_v51, %v16078_v24  ;;  %v14005_v63 = vrot.slane %v4872_v25, %v16078_v24  ;;  %v4773_v20 = vrot.slane %v4759_v52, %v16078_v24  ;;  %v4774_v27 = vcombine.high %v4766_v59, %v4766_v59  ;;  %v10719_v7 = vpop.f32.mrb[87].mxu1 }
 0x2bc   : > { %v14011_v45 = vrot.slane %v4766_v59, %v16078_v24  ;;  %v4010_v30 = vadd.f32 %v3990_v55, %v3970_v37  ;;  %16249 = vst [vmem:[#allocation63_spill] sm:$0xff] %v14013_v2  ;;  %v14016_v43 = vrot.slane %v4873_v3, %v16078_v24  ;;  %v4049_v25 = vadd.f32 %v4029_v21, %v3989_v56 }
 0x2bd   : > { %16246 = vst [vmem:[#allocation85_spill] sm:$0xff] %v14002_v40  ;;  %16247 = vst [vmem:[#allocation86_spill] sm:$0xff] %v14005_v63  ;;  %v4775_v49 = vcombine.high %v4773_v20, %v4773_v20  ;;  %v14023_v52 = vrot.slane %v4773_v20, %v16078_v24  ;;  %v14026_v59 = vrot.slane %v4774_v27, %v16078_v24 }
 0x2be   : > { %16248 = vst [vmem:[#allocation8_spill] sm:$0xff] %v14011_v45  ;;  %16250 = vst [vmem:[#allocation29_spill] sm:$0xff] %v14016_v43  ;;  %v4050_v38 = vadd.f32 %v4030_v5, %v3990_v55  ;;  %v4906_v23 = vcombine.high %v4010_v30, %v4010_v30  ;;  %v4913_v40 = vrot.slane %v4010_v30, %v16078_v24 }
 0x2bf   : > { %16251 = vst [vmem:[#allocation80_spill] sm:$0xff] %v14023_v52  ;;  %16252 = vst [vmem:[#allocation138_spill] sm:$0xff] %v14026_v59  ;;  %v14034_v56 = vrot.slane %v4775_v49, %v16078_v24  ;;  %v6017_v20 = vcombine.high %v4049_v25, %v4049_v25  ;;  %v6024_v55 = vrot.slane %v4049_v25, %v16078_v24 }
 0x2c0   : > { %v4920_v27 = vrot.slane %v4906_v23, %v16078_v24  ;;  %v4921_v51 = vcombine.high %v4913_v40, %v4913_v40  ;;  %v14042_v37 = vrot.slane %v4913_v40, %v16078_v24  ;;  %v6066_v30 = vcombine.high %v4050_v38, %v4050_v38 }
 0x2c1   : > { %16253 = vst [vmem:[#allocation139_spill] sm:$0xff] %v14034_v56  ;;  %v6031_v49 = vrot.slane %v6017_v20, %v16078_v24  ;;  %v6073_v3 = vrot.slane %v4050_v38, %v16078_v24  ;;  %v6032_v63 = vcombine.high %v6024_v55, %v6024_v55  ;;  %v14058_v43 = vrot.slane %v6024_v55, %v16078_v24  ;;  %v16308_v56 = vld [vmem:[#allocation32_spill] sm:$0xff] }
 0x2c2   : > { %16254 = vst [vmem:[#allocation140_spill] sm:$0xff] %v14042_v37  ;;  %v4922_v21 = vcombine.high %v4920_v27, %v4920_v27  ;;  %v14050_v7 = vrot.slane %v4920_v27, %v16078_v24  ;;  %v14053_v23 = vrot.slane %v4921_v51, %v16078_v24  ;;  %v6080_v5 = vrot.slane %v6066_v30, %v16078_v24 }
 0x2c3   : > { %v6033_v25 = vcombine.high %v6031_v49, %v6031_v49  ;;  %16257 = vst [vmem:[#allocation143_spill] sm:$0xff] %v14058_v43  ;;  %v14061_v20 = vrot.slane %v6031_v49, %v16078_v24  ;;  %v14072_v40 = vrot.slane %v6032_v63, %v16078_v24  ;;  %v6062_v49 = vcombine.high %v14058_v43, %v14058_v43 }
 0x2c4   : > { %16255 = vst [vmem:[#allocation141_spill] sm:$0xff] %v14050_v7  ;;  %16256 = vst [vmem:[#allocation142_spill] sm:$0xff] %v14053_v23  ;;  %v14064_v38 = vrot.slane %v4922_v21, %v16078_v24  ;;  %v6081_v7 = vcombine.high %v6073_v3, %v6073_v3  ;;  %v6082_v15 = vcombine.high %v6080_v5, %v6080_v5 }
 0x2c5   : > { %16258 = vst [vmem:[#allocation144_spill] sm:$0xff] %v14061_v20  ;;  %16260 = vst [vmem:[#allocation146_spill] sm:$0xff] %v14072_v40  ;;  %v14075_v55 = vrot.slane %v6033_v25, %v16078_v24  ;;  %v6089_v51 = vrot.slane %v6073_v3, %v16078_v24  ;;  %v14089_v25 = vrot.slane %v6080_v5, %v16078_v24  ;;  %v16273_v5 = vld [vmem:[#allocation27_spill] sm:$0xff]  ;;  %v16288_v20 = vld [vmem:[#allocation76_spill] sm:$0xff] }
 0x2c6   : > { %16259 = vst [vmem:[#allocation145_spill] sm:$0xff] %v14064_v38  ;;  %v14094_v21 = vrot.slane %v6081_v7, %v16078_v24  ;;  %v14097_v27 = vrot.slane %v6082_v15, %v16078_v24  ;;  %v14104_v30 = vrot.slane %v6062_v49, %v16094_v0 }
 0x2c7   : > { %16261 = vst [vmem:[#allocation147_spill] sm:$0xff] %v14075_v55  ;;  %16262 = vst [vmem:[#allocation148_spill] sm:$0xff] %v14089_v25  ;;  %v6111_v38 = vcombine.high %v6089_v51, %v6089_v51  ;;  %v6112_v63 = vcombine.high %v14089_v25, %v14089_v25  ;;  %v6760_v23 = vrot.slane %v6089_v51, %v16094_v0  ;;  %v16283_v25 = vld [vmem:[#allocation60_spill] sm:$0xff]  ;;  %v16290_v55 = vld [vmem:[#allocation13_spill] sm:$0xff] }
 0x2c8   : > { %16263 = vst [vmem:[#allocation149_spill] sm:$0xff] %v14094_v21  ;;  %16264 = vst [vmem:[#allocation150_spill] sm:$0xff] %v14097_v27  ;;  %v6113_v7 = vcombine.high %v14094_v21, %v14094_v21  ;;  %v6114_v15 = vcombine.high %v14097_v27, %v14097_v27  ;;  %v16281_v27 = vld [vmem:[#allocation67_spill] sm:$0xff] }
 0x2c9   : > { %16265 = vst [vmem:[#allocation151_spill] sm:$0xff] %v14104_v30  ;;  %v14116_v43 = vrot.slane %v6111_v38, %v16094_v0  ;;  %v14123_v51 = vrot.slane %v6112_v63, %v16094_v0  ;;  %v14127_v30 = vsel %vm3831_vm11, %v14042_v37, %v6760_v23  ;;  %v16271_v38 = vcombine.high %v13612_v11, %v13612_v11  ;;  %v16280_v37 = vld [vmem:[#allocation64_spill] sm:$0xff] }
 0x2ca   : > { %16268 = vst [vmem:[#allocation154_spill] sm:$0xff] %v14127_v30  ;;  %v14130_v40 = vrot.slane %v6113_v7, %v16094_v0  ;;  %v14133_v3 = vrot.slane %v6114_v15, %v16094_v0  ;;  %v16274_v63 = vcombine.high %v16273_v5, %v16273_v5  ;;  %v16277_v30 = vld [vmem:[#allocation15_spill] sm:$0xff] }
 0x2cb   : > { %16266 = vst [vmem:[#allocation152_spill] sm:$0xff] %v14116_v43  ;;  %16267 = vst [vmem:[#allocation153_spill] sm:$0xff] %v14123_v51  ;;  %v6628_v49 = vrot.slane %v16271_v38, %v16094_v0  ;;  %v16272_v43 = vld [vmem:[#allocation28_spill] sm:$0xff]  ;;  %v16275_v51 = vld [vmem:[#allocation59_spill] sm:$0xff]  ;;  %v16282_v38 = vcombine.high %v16277_v30, %v16277_v30 }
 0x2cc   : > { %16269 = vst [vmem:[#allocation155_spill] sm:$0xff] %v14130_v40  ;;  %16270 = vst [vmem:[#allocation156_spill] sm:$0xff] %v14133_v3  ;;  %v7052_v21 = vsel %vm3831_vm11, %v16274_v63, %v16272_v43  ;;  %v16276_v23 = vrot.slane %v16275_v51, %v16094_v0  ;;  %v16278_v40 = vld [vmem:[#allocation3_spill] sm:$0xff]  ;;  %v16284_v43 = vcombine.high %v16280_v37, %v16280_v37  ;;  %v16285_v63 = vld [vmem:[#allocation66_spill] sm:$0xff] }
 0x2cd   : > { %v16279_v15 = vrot.slane %v16278_v40, %v16094_v0  ;;  %v7067_v5 = vsel %vm3831_vm11, %v16282_v38, %v16281_v27  ;;  %v16292_v27 = vcombine.high %v16287_v17, %v16287_v17  ;;  %v16293_v38 = vld [vmem:[#allocation79_spill] sm:$0xff]  ;;  %v7324_v52 = vmul.f32 0.75, %v7052_v21 }
 0x2ce   : > { %v7065_v7 = vsel %vm3831_vm11, %v16277_v30, %v16276_v23  ;;  %v7068_v51 = vsel %vm3831_vm11, %v16284_v43, %v16283_v25  ;;  %v16286_v23 = vrot.slane %v16285_v63, %v16094_v0  ;;  %v16294_v25 = vcombine.high %v16290_v55, %v16290_v55 }
 0x2cf   : > { %v7066_v3 = vsel %vm3831_vm11, %v16280_v37, %v16279_v15  ;;  %v16289_v15 = vrot.slane %v16288_v20, %v16094_v0  ;;  %v7083_v37 = vsel %vm3831_vm11, %v16292_v27, %v16291_v16  ;;  %v16295_v63 = vrot.slane %v13748_v61, %v16094_v0 }
 0x2d0   : > { %v7081_v40 = vsel %vm3831_vm11, %v16287_v17, %v16286_v23  ;;  %v7084_v43 = vsel %vm3831_vm11, %v16294_v25, %v16293_v38  ;;  %v16296_v23 = vrot.slane %v13758_v28, %v16094_v0  ;;  %v16297_v16 = vcombine.high %v13560_v12, %v13560_v12 }
 0x2d1   : > { %v7082_v30 = vsel %vm3831_vm11, %v16290_v55, %v16289_v15  ;;  %v7097_v20 = vsel %vm3831_vm11, %v13560_v12, %v16295_v63  ;;  %v16298_v15 = vcombine.high %v13573_v60, %v13573_v60  ;;  %v16299_v27 = vrot.slane %v13598_v50, %v16094_v0 }
 0x2d2   : > { %v7098_v17 = vsel %vm3831_vm11, %v13573_v60, %v16296_v23  ;;  %v7099_v55 = vsel %vm3831_vm11, %v16297_v16, %v13969_v10  ;;  %v16301_v38 = vrot.slane %v13612_v11, %v16094_v0  ;;  %v16303_v60 = vcombine.high %v13540_v1, %v13540_v1 }
 0x2d3   : > { %v7100_v61 = vsel %vm3831_vm11, %v16298_v15, %v13979_v13  ;;  %v14209_v28 = vsel %vm3831_vm11, %v13540_v1, %v16299_v27  ;;  %v16305_v50 = vcombine.high %v13552_v33, %v13552_v33  ;;  %v7212_v25 = vmul.f32 0.25, %v7052_v21 }
 0x2d4   : > { %16300 = vst [vmem:[#allocation28_spill] sm:$0xff] %v14209_v28  ;;  %v14216_v12 = vsel %vm3831_vm11, %v13552_v33, %v16301_v38  ;;  %v14223_v10 = vsel %vm3831_vm11, %v16303_v60, %v13994_v32  ;;  %v7225_v63 = vmul.f32 0.25, %v7065_v7  ;;  %v7226_v11 = vmul.f32 0.25, %v7066_v3  ;;  %v16307_v60 = vld [vmem:[#allocation31_spill] sm:$0xff] }
 0x2d5   : > { %16302 = vst [vmem:[#allocation27_spill] sm:$0xff] %v14216_v12  ;;  %16304 = vst [vmem:[#allocation59_spill] sm:$0xff] %v14223_v10  ;;  %v14229_v13 = vsel %vm3831_vm11, %v16305_v50, %v6628_v49  ;;  %v7227_v23 = vmul.f32 0.25, %v7067_v5  ;;  %v7228_v16 = vmul.f32 0.25, %v7068_v51  ;;  %v7241_v15 = vmul.f32 0.25, %v7081_v40 }
 0x2d6   : > { %16306 = vst [vmem:[#allocation15_spill] sm:$0xff] %v14229_v13  ;;  %v7242_v27 = vmul.f32 0.25, %v7082_v30  ;;  %v7243_v38 = vmul.f32 0.25, %v7083_v37  ;;  %v7244_v57 = vmul.f32 0.25, %v7084_v43  ;;  %v7257_v34 = vmul.f32 0.25, %v7097_v20 }
 0x2d7   : > { %v7258_v1 = vmul.f32 0.25, %v7098_v17  ;;  %v7259_v59 = vmul.f32 0.25, %v7099_v55  ;;  %v7260_v32 = vmul.f32 0.25, %v7100_v61  ;;  %v7322_v45 = vmul.f32 0.75, %v16307_v60 }
 0x2d8   : > { %v7323_v33 = vmul.f32 0.75, %v16308_v56  ;;  %v7337_v49 = vmul.f32 0.75, %v7065_v7  ;;  %v7338_v50 = vmul.f32 0.75, %v7066_v3  ;;  %v7339_v2 = vmul.f32 0.75, %v7067_v5  ;;  %v16317_v7 = vld [vmem:[#allocation71_spill] sm:$0xff] }
 0x2d9   : > { %v7340_v26 = vmul.f32 0.75, %v7068_v51  ;;  %v7353_v46 = vmul.f32 0.75, %v7081_v40  ;;  %v7354_v8 = vmul.f32 0.75, %v7082_v30  ;;  %v7355_v4 = vmul.f32 0.75, %v7083_v37  ;;  %v16318_v51 = vld [vmem:[#allocation72_spill] sm:$0xff]  ;;  %v16319_v30 = vld [vmem:[#allocation73_spill] sm:$0xff] }
 0x2da   : > { %v7356_v18 = vmul.f32 0.75, %v7084_v43  ;;  %v14233_v14 = vmul.f32 0.75, %v7097_v20  ;;  %v14235_v42 = vmul.f32 0.75, %v7098_v17  ;;  %v14237_v44 = vmul.f32 0.75, %v7099_v55  ;;  %v16320_v43 = vld [vmem:[#allocation36_spill] sm:$0xff]  ;;  %v16321_v17 = vld [vmem:[#allocation37_spill] sm:$0xff] }
 0x2db   : > { %v14239_v48 = vmul.f32 0.75, %v7100_v61  ;;  %v14242_v60 = vmul.f32 0.75, %v14209_v28  ;;  %v14245_v56 = vmul.f32 0.75, %v14216_v12  ;;  %v14248_v21 = vmul.f32 0.75, %v14223_v10  ;;  %v16322_v61 = vld [vmem:[#allocation38_spill] sm:$0xff] }
 0x2dc   : > { %16309 = vst [vmem:[#allocation3_spill] sm:$0xff] %v14233_v14  ;;  %16310 = vst [vmem:[#allocation64_spill] sm:$0xff] %v14235_v42  ;;  %v14251_v3 = vmul.f32 0.75, %v14229_v13  ;;  %v14254_v5 = vadd.f32 %v7322_v45, %v16317_v7  ;;  %v14257_v40 = vadd.f32 %v7323_v33, %v16318_v51  ;;  %v14260_v37 = vadd.f32 %v7324_v52, %v16319_v30 }
 0x2dd   : > { %16311 = vst [vmem:[#allocation67_spill] sm:$0xff] %v14237_v44  ;;  %16312 = vst [vmem:[#allocation60_spill] sm:$0xff] %v14239_v48  ;;  %v14263_v20 = vadd.f32 %v7337_v49, %v16320_v43  ;;  %v14266_v55 = vadd.f32 %v7338_v50, %v16321_v17  ;;  %v14269_v10 = vadd.f32 %v7339_v2, %v16322_v61 }
 0x2de   : > { %16313 = vst [vmem:[#allocation66_spill] sm:$0xff] %v14242_v60  ;;  %16314 = vst [vmem:[#allocation26_spill] sm:$0xff] %v14245_v56  ;;  %v14271_v13 = vadd.f32 %v7340_v26, %v7212_v25  ;;  %v14273_v12 = vadd.f32 %v7353_v46, %v7225_v63  ;;  %v14275_v7 = vadd.f32 %v7354_v8, %v7226_v11  ;;  %v7754_v35 = vmax.f32 %v14254_v5, 0.0 }
 0x2df   : > { %16315 = vst [vmem:[#allocation76_spill] sm:$0xff] %v14248_v21  ;;  %16316 = vst [vmem:[#allocation13_spill] sm:$0xff] %v14251_v3  ;;  %v14277_v51 = vadd.f32 %v7355_v4, %v7227_v23  ;;  %v14279_v28 = vadd.f32 %v7356_v18, %v7228_v16  ;;  %v14282_v30 = vadd.f32 %v14233_v14, %v7241_v15 }
 0x2e0   : > { %v14285_v43 = vadd.f32 %v14235_v42, %v7242_v27  ;;  %v14288_v17 = vadd.f32 %v14237_v44, %v7243_v38  ;;  %v14291_v61 = vadd.f32 %v14239_v48, %v7244_v57  ;;  %v14294_v6 = vadd.f32 %v14242_v60, %v7257_v34  ;;  %v16323_v42 = vld [vmem:[#allocation74_spill] sm:$0xff] }
 0x2e1   : > { %v14297_v58 = vadd.f32 %v14245_v56, %v7258_v1  ;;  %v14300_v31 = vadd.f32 %v14248_v21, %v7259_v59  ;;  %v14303_v14 = vadd.f32 %v14251_v3, %v7260_v32  ;;  %v7596_v24 = vadd.f32 %v16323_v42, %v7212_v25 }
 0x2e2   : > { %v7609_v44 = vadd.f32 %v16324_v47, %v7225_v63  ;;  %v7610_v22 = vadd.f32 %v7322_v45, %v7226_v11  ;;  %v7611_v54 = vadd.f32 %v7323_v33, %v7227_v23  ;;  %v7612_v48 = vadd.f32 %v7324_v52, %v7228_v16 }
 0x2e3   : > { %v7625_v39 = vadd.f32 %v7337_v49, %v7241_v15  ;;  %v7626_v36 = vadd.f32 %v7338_v50, %v7242_v27  ;;  %v7627_v60 = vadd.f32 %v7339_v2, %v7243_v38  ;;  %v7628_v41 = vadd.f32 %v7340_v26, %v7244_v57 }
 0x2e4   : > { %v7641_v9 = vadd.f32 %v7353_v46, %v7257_v34  ;;  %v7642_v56 = vadd.f32 %v7354_v8, %v7258_v1  ;;  %v7643_v19 = vadd.f32 %v7355_v4, %v7259_v59  ;;  %v7644_v53 = vadd.f32 %v7356_v18, %v7260_v32 }
 0x2e5   : > { %v7740_v21 = vmax.f32 %v7596_v24, 0.0  ;;  %v7755_v3 = vmax.f32 %v14257_v40, 0.0  ;;  %v7756_v42 = vmax.f32 %v14260_v37, 0.0  ;;  %v7769_v25 = vmax.f32 %v7609_v44, 0.0 }
 0x2e6   : > { %v7770_v47 = vmax.f32 %v7610_v22, 0.0  ;;  %v7771_v45 = vmax.f32 %v7611_v54, 0.0  ;;  %v7772_v63 = vmax.f32 %v7612_v48, 0.0  ;;  %v7785_v52 = vmax.f32 %v14263_v20, 0.0 }
 0x2e7   : > { %v7786_v2 = vmax.f32 %v14266_v55, 0.0  ;;  %v7787_v34 = vmax.f32 %v14269_v10, 0.0  ;;  %v7788_v4 = vmax.f32 %v14271_v13, 0.0  ;;  %v7801_v18 = vmax.f32 %v7625_v39, 0.0 }
 0x2e8   : > { %v7802_v24 = vmax.f32 %v7626_v36, 0.0  ;;  %v7803_v57 = vmax.f32 %v7627_v60, 0.0  ;;  %v7804_v8 = vmax.f32 %v7628_v41, 0.0  ;;  %v7817_v46 = vmax.f32 %v14273_v12, 0.0 }
 0x2e9   : > { %v7818_v26 = vmax.f32 %v14275_v7, 0.0  ;;  %v7819_v44 = vmax.f32 %v14277_v51, 0.0  ;;  %v7820_v54 = vmax.f32 %v14279_v28, 0.0  ;;  %v7833_v48 = vmax.f32 %v7641_v9, 0.0  ;;  %v16325_v9 = vld [vmem:[#allocation18_spill] sm:$0xff] }
 0x2ea   : > { %v7834_v22 = vmax.f32 %v7642_v56, 0.0  ;;  %v7835_v59 = vmax.f32 %v7643_v19, 0.0  ;;  %v7836_v11 = vmax.f32 %v7644_v53, 0.0  ;;  %v7849_v10 = vmax.f32 %v14282_v30, 0.0  ;;  %v16327_v53 = vld [vmem:[#allocation17_spill] sm:$0xff] }
 0x2eb   : > { %v7850_v13 = vmax.f32 %v14285_v43, 0.0  ;;  %v7851_v36 = vmax.f32 %v14288_v17, 0.0  ;;  %v7852_v41 = vmax.f32 %v14291_v61, 0.0  ;;  %v7881_v39 = vmax.f32 %v14294_v6, 0.0 }
 0x2ec   : > { %v7882_v12 = vmax.f32 %v14297_v58, 0.0  ;;  %v7883_v23 = vmax.f32 %v14300_v31, 0.0  ;;  %v7884_v28 = vmax.f32 %v14303_v14, 0.0  ;;  %v16326_v16 = vmax.f32 %v16325_v9, 0.0  ;;  %v16342_v9 = vld [vmem:[#allocation62_spill] sm:$0xff] }
 0x2ed   : > { %v16328_v15 = vmax.f32 %v16327_v53, 0.0  ;;  %v8383_v38 = vcombine.low %v7755_v3, %v7756_v42  ;;  %v8450_v1 = vcombine.low %v7769_v25, %v7770_v47  ;;  %v8451_v32 = vcombine.low %v7771_v45, %v7772_v63  ;;  %v16329_v3 = vld [vmem:[#allocation20_spill] sm:$0xff] }
 0x2ee   : > { %v8315_v19 = vcombine.low %v16326_v16, %v7740_v21  ;;  %v8518_v33 = vcombine.low %v7785_v52, %v7786_v2  ;;  %v8519_v49 = vcombine.low %v7787_v34, %v7788_v4  ;;  %v8586_v50 = vcombine.low %v7801_v18, %v7802_v24  ;;  %v16331_v2 = vld [vmem:[#allocation19_spill] sm:$0xff]  ;;  %v16332_v34 = vld [vmem:[#allocation24_spill] sm:$0xff] }
 0x2ef   : > { %v8382_v27 = vcombine.low %v16328_v15, %v7754_v35  ;;  %v8397_v31 = vrot.slane %v8383_v38, %v16066_v62  ;;  %v8458_v14 = vrot.slane %v8450_v1, %v16066_v62  ;;  %v8465_v60 = vrot.slane %v8451_v32, %v16066_v62  ;;  %v16343_v16 = vld [vmem:[#allocation40_spill] sm:$0xff]  ;;  %v16347_v1 = vld [vmem:[#allocation65_spill] sm:$0xff] }
 0x2f0   : > { %v8329_v6 = vrot.slane %v8315_v19, %v16066_v62  ;;  %v8526_v56 = vrot.slane %v8518_v33, %v16066_v62  ;;  %v8533_v35 = vrot.slane %v8519_v49, %v16066_v62  ;;  %v8587_v21 = vcombine.low %v7803_v57, %v7804_v8  ;;  %v16333_v8 = vld [vmem:[#allocation95_spill] sm:$0xff]  ;;  %v16345_v15 = vld [vmem:[#allocation4_spill] sm:$0xff]  ;;  %v16349_v33 = vld [vmem:[#allocation25_spill] sm:$0xff] }
 0x2f1   : > { %v8390_v58 = vrot.slane %v8382_v27, %v16066_v62  ;;  %v16330_v5 = vrot.slane %v16329_v3, %v16066_v62  ;;  %v8594_v20 = vrot.slane %v8586_v50, %v16066_v62  ;;  %v8654_v55 = vcombine.low %v7817_v46, %v7818_v26  ;;  %v16356_v3 = vld [vmem:[#allocation77_spill] sm:$0xff] }
 0x2f2   : > { %v8466_v7 = vcombine.low %v8458_v14, %v8465_v60  ;;  %v8534_v51 = vcombine.low %v8526_v56, %v8533_v35  ;;  %v8601_v30 = vrot.slane %v8587_v21, %v16066_v62  ;;  %v8655_v43 = vcombine.low %v7819_v44, %v7820_v54  ;;  %v16334_v54 = vld [vmem:[#allocation116_spill] sm:$0xff]  ;;  %v16353_v14 = vld [vmem:[#allocation39_spill] sm:$0xff] }
 0x2f3   : > { %v8330_v40 = vcombine.low %v16330_v5, %v8329_v6  ;;  %v8398_v37 = vcombine.low %v8390_v58, %v8397_v31  ;;  %v8662_v17 = vrot.slane %v8654_v55, %v16066_v62  ;;  %v8722_v61 = vcombine.low %v7833_v48, %v7834_v22  ;;  %v16350_v6 = vld [vmem:[#allocation57_spill] sm:$0xff]  ;;  %v16351_v58 = vld [vmem:[#allocation75_spill] sm:$0xff] }
 0x2f4   : > { %v8723_v42 = vcombine.low %v7835_v59, %v7836_v11  ;;  %v8790_v25 = vcombine.low %v7849_v10, %v7850_v13  ;;  %v8602_v47 = vcombine.low %v8594_v20, %v8601_v30  ;;  %v8669_v45 = vrot.slane %v8655_v43, %v16066_v62  ;;  %9394 = vst.msk [vmem:[%s13003_s26 + $0x68] sm:$0xff] %vm513_vm3, %v8466_v7  ;;  %v16336_v10 = vld [vmem:[#allocation51_spill] sm:$0xff]  ;;  %v16359_v20 = vld [vmem:[#allocation114_spill] sm:$0xff] }
 0x2f5   : > { %9386 = vst.msk [vmem:[%s13003_s26 + $0x28] sm:$0xff] %vm513_vm3, %v8330_v40  ;;  %9390 = vst.msk [vmem:[%s13003_s26 + $0x48] sm:$0xff] %vm513_vm3, %v8398_v37  ;;  %v8791_v63 = vcombine.low %v7851_v36, %v7852_v41  ;;  %v8926_v52 = vcombine.low %v7881_v39, %v7882_v12  ;;  %v8730_v4 = vrot.slane %v8722_v61, %v16066_v62  ;;  %v16339_v41 = vld [vmem:[#allocation61_spill] sm:$0xff]  ;;  %v16341_v12 = vld [vmem:[#allocation12_spill] sm:$0xff] }
 0x2f6   : > { %9398 = vst.msk [vmem:[%s13003_s26 + $0x88] sm:$0xff] %vm513_vm3, %v8534_v51  ;;  %v8737_v18 = vrot.slane %v8723_v42, %v16066_v62  ;;  %v8798_v24 = vrot.slane %v8790_v25, %v16066_v62  ;;  %v8927_v57 = vcombine.low %v7883_v23, %v7884_v28  ;;  %v8670_v46 = vcombine.low %v8662_v17, %v8669_v45  ;;  %v16354_v56 = vld [vmem:[#allocation11_spill] sm:$0xff]  ;;  %v16361_v7 = vld [vmem:[#allocation54_spill] sm:$0xff] }
 0x2f7   : > { %9771 = vst.msk [vmem:[%s13003_s26 + $0x28] sm:$0xff] %vm9765_vm12, %v16331_v2  ;;  %9775 = vst.msk [vmem:[%s13003_s26 + $0x48] sm:$0xff] %vm9765_vm12, %v16332_v34  ;;  %v8805_v26 = vrot.slane %v8791_v63, %v16066_v62  ;;  %v8934_v44 = vrot.slane %v8926_v52, %v16066_v62  ;;  %v16335_v48 = vcombine.high %v16334_v54, %v16334_v54  ;;  %v16358_v37 = vld [vmem:[#allocation107_spill] sm:$0xff]  ;;  %v16364_v61 = vld [vmem:[#allocation118_spill] sm:$0xff]  ;;  %v9656_v63 = vpop.permute.xlu1 %9655 }
 0x2f8   : > { %9779 = vst.msk [vmem:[%s13003_s26 + $0x68] sm:$0xff] %vm9765_vm12, %v16333_v8  ;;  %9783 = vst.msk [vmem:[%s13003_s26 + $0x88] sm:$0xff] %vm9765_vm12, %v13454_v29  ;;  %v8738_v59 = vcombine.low %v8730_v4, %v8737_v18  ;;  %v8941_v11 = vrot.slane %v8927_v57, %v16066_v62  ;;  %v16337_v29 = vld [vmem:[#allocation98_spill] sm:$0xff]  ;;  %v16340_v39 = vrot.slane %v16339_v41, %v16094_v0  ;;  %v16363_v43 = vld [vmem:[#allocation55_spill] sm:$0xff] }
 0x2f9   : > { %9402 = vst.msk [vmem:[%s13003_s26 + $0xa8] sm:$0xff] %vm513_vm3, %v8602_v47  ;;  %v6548_v22 = vrot.slane %v16335_v48, %v16094_v0  ;;  %v16338_v13 = vcombine.high %v16337_v29, %v16337_v29  ;;  %v8806_v28 = vcombine.low %v8798_v24, %v8805_v26  ;;  %9406 = vst.msk [vmem:[%s13003_s26 + $0xc8] sm:$0xff] %vm513_vm3, %v8670_v46  ;;  %v16367_v52 = vld [vmem:[#allocation117_spill] sm:$0xff]  ;;  %v16368_v2 = vld [vmem:[#allocation56_spill] sm:$0xff] }
 0x2fa   : > { %9787 = vst.msk [vmem:[%s13003_s26 + $0xa8] sm:$0xff] %vm9765_vm12, %v16336_v10  ;;  %v7062_v23 = vsel %vm3831_vm11, %v16341_v12, %v16340_v39  ;;  %v16344_v19 = vcombine.high %v16343_v16, %v16343_v16  ;;  %v16346_v27 = vcombine.high %v16341_v12, %v16341_v12  ;;  %v16348_v32 = vrot.slane %v16347_v1, %v16094_v0  ;;  %v16370_v4 = vld [vmem:[#allocation52_spill] sm:$0xff]  ;;  %v16372_v57 = vld [vmem:[#allocation53_spill] sm:$0xff]  ;;  %v16374_v46 = vld [vmem:[#allocation99_spill] sm:$0xff] }
 0x2fb   : > { %v6612_v36 = vrot.slane %v16338_v13, %v16094_v0  ;;  %v8942_v50 = vcombine.low %v8934_v44, %v8941_v11  ;;  %9410 = vst.msk [vmem:[%s13003_s26 + $0xe8] sm:$0xff] %vm513_vm3, %v8738_v59  ;;  %v16352_v31 = vrot.slane %v16351_v58, %v16094_v0  ;;  %v16355_v35 = vcombine.high %v16349_v33, %v16349_v33 }
 0x2fc   : > { %v7063_v53 = vsel %vm3831_vm11, %v16344_v19, %v16342_v9  ;;  %v7064_v38 = vsel %vm3831_vm11, %v16346_v27, %v16345_v15  ;;  %v7077_v49 = vsel %vm3831_vm11, %v16349_v33, %v16348_v32  ;;  %9791 = vst.msk [vmem:[%s13003_s26 + $0xc8] sm:$0xff] %vm9765_vm12, %v16350_v6  ;;  %v16357_v5 = vcombine.high %v16353_v14, %v16353_v14  ;;  %v16380_v15 = vld [vmem:[#allocation30_spill] sm:$0xff] }
 0x2fd   : > { %v7078_v60 = vsel %vm3831_vm11, %v16353_v14, %v16352_v31  ;;  %v7079_v21 = vsel %vm3831_vm11, %v16355_v35, %v16354_v56  ;;  %9414 = vst.msk [vmem:[%s13003_s26 + $0x108] sm:$0xff] %vm513_vm3, %v8806_v28  ;;  %v16360_v55 = vrot.slane %v16359_v20, %v16094_v0  ;;  %v16362_v30 = vrot.slane %v16334_v54, %v16094_v0  ;;  %v16388_v20 = vld [vmem:[#allocation35_spill] sm:$0xff] }
 0x2fe   : > { %v7080_v40 = vsel %vm3831_vm11, %v16357_v5, %v16356_v3  ;;  %9795 = vst.msk [vmem:[%s13003_s26 + $0xe8] sm:$0xff] %vm9765_vm12, %v16358_v37  ;;  %v16365_v42 = vcombine.high %v16361_v7, %v16361_v7  ;;  %v16366_v47 = vcombine.high %v16363_v43, %v16363_v43  ;;  %9799 = vst.msk [vmem:[%s13003_s26 + $0x108] sm:$0xff] %vm9765_vm12, %v16367_v52  ;;  %v7222_v11 = vmul.f32 0.25, %v7062_v23 }
 0x2ff   : > { %v7093_v51 = vsel %vm3831_vm11, %v16361_v7, %v16360_v55  ;;  %v7094_v17 = vsel %vm3831_vm11, %v16363_v43, %v16362_v30  ;;  %9422 = vst.msk [vmem:[%s13003_s26 + $0x148] sm:$0xff] %vm513_vm3, %v8942_v50  ;;  %v16369_v34 = vrot.slane %v16368_v2, %v16094_v0  ;;  %v16371_v24 = vrot.slane %v16337_v29, %v16094_v0  ;;  %v16389_v2 = vld [vmem:[#allocation47_spill] sm:$0xff] }
 0x300   : > { %v7095_v25 = vsel %vm3831_vm11, %v16365_v42, %v16364_v61  ;;  %v7096_v45 = vsel %vm3831_vm11, %v16366_v47, %v6548_v22  ;;  %v16375_v26 = vcombine.high %v16370_v4, %v16370_v4  ;;  %v16377_v54 = vcombine.high %v16372_v57, %v16372_v57  ;;  %9807 = vst.msk [vmem:[%s13003_s26 + $0x148] sm:$0xff] %vm9765_vm12, %v9656_v63  ;;  %v16379_v22 = vld [vmem:[#allocation68_spill] sm:$0xff] }
 0x301   : > { %v14459_v18 = vsel %vm3831_vm11, %v16370_v4, %v16369_v34  ;;  %v14466_v8 = vsel %vm3831_vm11, %v16372_v57, %v16371_v24  ;;  %v7221_v59 = vmul.f32 0.25, %v16379_v22  ;;  %v7223_v10 = vmul.f32 0.25, %v7063_v53  ;;  %v16390_v4 = vld [vmem:[#allocation48_spill] sm:$0xff]  ;;  %v16391_v57 = vld [vmem:[#allocation49_spill] sm:$0xff] }
 0x302   : > { %16373 = vst [vmem:[#allocation78_spill] sm:$0xff] %v14466_v8  ;;  %v14473_v44 = vsel %vm3831_vm11, %v16375_v26, %v16374_v46  ;;  %v14479_v48 = vsel %vm3831_vm11, %v16377_v54, %v6612_v36  ;;  %v7224_v29 = vmul.f32 0.25, %v7064_v38  ;;  %v7237_v13 = vmul.f32 0.25, %v7077_v49  ;;  %v16392_v54 = vld [vmem:[#allocation93_spill] sm:$0xff] }
 0x303   : > { %16376 = vst [vmem:[#allocation79_spill] sm:$0xff] %v14473_v44  ;;  %16378 = vst [vmem:[#allocation31_spill] sm:$0xff] %v14479_v48  ;;  %v7238_v41 = vmul.f32 0.25, %v7078_v60  ;;  %v7239_v39 = vmul.f32 0.25, %v7079_v21  ;;  %v7240_v12 = vmul.f32 0.25, %v7080_v40  ;;  %v7253_v28 = vmul.f32 0.25, %v7093_v51 }
 0x304   : > { %v7254_v9 = vmul.f32 0.25, %v7094_v17  ;;  %v7255_v16 = vmul.f32 0.25, %v7095_v25  ;;  %v7256_v19 = vmul.f32 0.25, %v7096_v45  ;;  %v7320_v27 = vmul.f32 0.75, %v16380_v15 }
 0x305   : > { %v7334_v1 = vmul.f32 0.75, %v7062_v23  ;;  %v7335_v36 = vmul.f32 0.75, %v7063_v53  ;;  %v7336_v32 = vmul.f32 0.75, %v7064_v38  ;;  %v7349_v33 = vmul.f32 0.75, %v7077_v49  ;;  %v16385_v38 = vld [vmem:[#allocation70_spill] sm:$0xff] }
 0x306   : > { %v7350_v50 = vmul.f32 0.75, %v7078_v60  ;;  %v7351_v6 = vmul.f32 0.75, %v7079_v21  ;;  %v7352_v58 = vmul.f32 0.75, %v7080_v40  ;;  %v14485_v31 = vmul.f32 0.75, %v7093_v51  ;;  %v16386_v60 = vld [vmem:[#allocation33_spill] sm:$0xff]  ;;  %v16387_v40 = vld [vmem:[#allocation34_spill] sm:$0xff] }
 0x307   : > { %v14487_v14 = vmul.f32 0.75, %v7094_v17  ;;  %v14489_v56 = vmul.f32 0.75, %v7095_v25  ;;  %v14491_v35 = vmul.f32 0.75, %v7096_v45  ;;  %v14494_v3 = vmul.f32 0.75, %v14459_v18 }
 0x308   : > { %16381 = vst [vmem:[#allocation32_spill] sm:$0xff] %v14485_v31  ;;  %v14497_v5 = vmul.f32 0.75, %v14466_v8  ;;  %v14500_v23 = vmul.f32 0.75, %v14473_v44  ;;  %v14503_v53 = vmul.f32 0.75, %v14479_v48  ;;  %v7448_v49 = vadd.f32 %v7320_v27, %v16385_v38 }
 0x309   : > { %16382 = vst [vmem:[#allocation71_spill] sm:$0xff] %v14487_v14  ;;  %16383 = vst [vmem:[#allocation72_spill] sm:$0xff] %v14489_v56  ;;  %v7462_v21 = vadd.f32 %v7334_v1, %v16386_v60  ;;  %v7463_v37 = vadd.f32 %v7335_v36, %v16387_v40  ;;  %v7464_v55 = vadd.f32 %v7336_v32, %v16388_v20 }
 0x30a   : > { %16384 = vst [vmem:[#allocation73_spill] sm:$0xff] %v14491_v35  ;;  %v7477_v7 = vadd.f32 %v7349_v33, %v7221_v59  ;;  %v7478_v51 = vadd.f32 %v7350_v50, %v7222_v11  ;;  %v14509_v30 = vadd.f32 %v7351_v6, %v7223_v10  ;;  %v14511_v43 = vadd.f32 %v7352_v58, %v7224_v29 }
 0x30b   : > { %v14514_v17 = vadd.f32 %v14485_v31, %v7237_v13  ;;  %v14517_v61 = vadd.f32 %v14487_v14, %v7238_v41  ;;  %v14520_v42 = vadd.f32 %v14489_v56, %v7239_v39  ;;  %v14523_v25 = vadd.f32 %v14491_v35, %v7240_v12 }
 0x30c   : > { %v14526_v47 = vadd.f32 %v14494_v3, %v7253_v28  ;;  %v14529_v45 = vadd.f32 %v14497_v5, %v7254_v9  ;;  %v14532_v63 = vadd.f32 %v14500_v23, %v7255_v16  ;;  %v14535_v52 = vadd.f32 %v14503_v53, %v7256_v19 }
 0x30d   : > { %v7605_v34 = vadd.f32 %v16389_v2, %v7221_v59  ;;  %v7606_v24 = vadd.f32 %v16390_v4, %v7222_v11  ;;  %v7607_v46 = vadd.f32 %v16391_v57, %v7223_v10  ;;  %v7608_v26 = vadd.f32 %v7320_v27, %v7224_v29 }
 0x30e   : > { %v7621_v22 = vadd.f32 %v16392_v54, %v7237_v13  ;;  %v7622_v15 = vadd.f32 %v7334_v1, %v7238_v41  ;;  %v7623_v38 = vadd.f32 %v7335_v36, %v7239_v39  ;;  %v7624_v60 = vadd.f32 %v7336_v32, %v7240_v12 }
 0x30f   : > { %v7637_v40 = vadd.f32 %v7349_v33, %v7253_v28  ;;  %v7638_v20 = vadd.f32 %v7350_v50, %v7254_v9  ;;  %v7639_v35 = vadd.f32 %v7351_v6, %v7255_v16  ;;  %v7640_v56 = vadd.f32 %v7352_v58, %v7256_v19 }
 0x310   : > { %v7752_v14 = vmax.f32 %v7448_v49, 0.0  ;;  %v7765_v31 = vmax.f32 %v7605_v34, 0.0  ;;  %v7766_v48 = vmax.f32 %v7606_v24, 0.0  ;;  %v7767_v44 = vmax.f32 %v7607_v46, 0.0 }
 0x311   : > { %v7768_v8 = vmax.f32 %v7608_v26, 0.0  ;;  %v7782_v59 = vmax.f32 %v7462_v21, 0.0  ;;  %v7783_v2 = vmax.f32 %v7463_v37, 0.0  ;;  %v7784_v11 = vmax.f32 %v7464_v55, 0.0  ;;  %v16393_v21 = vld [vmem:[#allocation16_spill] sm:$0xff] }
 0x312   : > { %v7797_v4 = vmax.f32 %v7621_v22, 0.0  ;;  %v7798_v10 = vmax.f32 %v7622_v15, 0.0  ;;  %v7799_v29 = vmax.f32 %v7623_v38, 0.0  ;;  %v7800_v27 = vmax.f32 %v7624_v60, 0.0 }
 0x313   : > { %v7813_v13 = vmax.f32 %v7477_v7, 0.0  ;;  %v7814_v41 = vmax.f32 %v7478_v51, 0.0  ;;  %v7815_v39 = vmax.f32 %v14509_v30, 0.0  ;;  %v7816_v12 = vmax.f32 %v14511_v43, 0.0  ;;  %v16395_v7 = vld [vmem:[#allocation96_spill] sm:$0xff] }
 0x314   : > { %v7829_v28 = vmax.f32 %v7637_v40, 0.0  ;;  %v7830_v9 = vmax.f32 %v7638_v20, 0.0  ;;  %v7831_v16 = vmax.f32 %v7639_v35, 0.0  ;;  %v7832_v19 = vmax.f32 %v7640_v56, 0.0 }
 0x315   : > { %v7845_v1 = vmax.f32 %v14514_v17, 0.0  ;;  %v7846_v36 = vmax.f32 %v14517_v61, 0.0  ;;  %v7847_v32 = vmax.f32 %v14520_v42, 0.0  ;;  %v7848_v33 = vmax.f32 %v14523_v25, 0.0 }
 0x316   : > { %v7877_v50 = vmax.f32 %v14526_v47, 0.0  ;;  %v7878_v6 = vmax.f32 %v14529_v45, 0.0  ;;  %v7879_v58 = vmax.f32 %v14532_v63, 0.0  ;;  %v7880_v49 = vmax.f32 %v14535_v52, 0.0 }
 0x317   : > { %v16394_v37 = vmax.f32 %v16393_v21, 0.0  ;;  %v8433_v56 = vcombine.low %v7765_v31, %v7766_v48  ;;  %v8434_v55 = vcombine.low %v7767_v44, %v7768_v8  ;;  %v16396_v51 = vmax.f32 %v16395_v7, 0.0  ;;  %v16397_v31 = vld [vmem:[#allocation21_spill] sm:$0xff]  ;;  %v16409_v21 = vld [vmem:[#allocation123_spill] sm:$0xff] }
 0x318   : > { %v8502_v43 = vcombine.low %v7783_v2, %v7784_v11  ;;  %v8569_v17 = vcombine.low %v7797_v4, %v7798_v10  ;;  %v8570_v61 = vcombine.low %v7799_v29, %v7800_v27  ;;  %v8637_v42 = vcombine.low %v7813_v13, %v7814_v41  ;;  %v16399_v4 = vld [vmem:[#allocation23_spill] sm:$0xff]  ;;  %v16400_v10 = vld [vmem:[#allocation97_spill] sm:$0xff]  ;;  %v16402_v27 = vld [vmem:[#allocation106_spill] sm:$0xff] }
 0x319   : > { %v8366_v35 = vcombine.low %v16394_v37, %v7752_v14  ;;  %v8501_v30 = vcombine.low %v16396_v51, %v7782_v59  ;;  %v8441_v47 = vrot.slane %v8433_v56, %v16066_v62  ;;  %v8448_v45 = vrot.slane %v8434_v55, %v16066_v62  ;;  %v16401_v29 = vld [vmem:[#allocation9_spill] sm:$0xff]  ;;  %v16411_v55 = vld [vmem:[#allocation83_spill] sm:$0xff] }
 0x31a   : > { %v8516_v52 = vrot.slane %v8502_v43, %v16066_v62  ;;  %v8577_v8 = vrot.slane %v8569_v17, %v16066_v62  ;;  %v8584_v44 = vrot.slane %v8570_v61, %v16066_v62  ;;  %v8638_v48 = vcombine.low %v7815_v39, %v7816_v12  ;;  %v16412_v61 = vld [vmem:[#allocation119_spill] sm:$0xff] }
 0x31b   : > { %v8380_v25 = vrot.slane %v8366_v35, %v16066_v62  ;;  %v8509_v63 = vrot.slane %v8501_v30, %v16066_v62  ;;  %v16398_v14 = vrot.slane %v16397_v31, %v16066_v62  ;;  %v8449_v24 = vcombine.low %v8441_v47, %v8448_v45  ;;  %v16410_v35 = vld [vmem:[#allocation124_spill] sm:$0xff]  ;;  %v16414_v47 = vld [vmem:[#allocation46_spill] sm:$0xff]  ;;  %v16417_v31 = vld [vmem:[#allocation129_spill] sm:$0xff] }
 0x31c   : > { %v8645_v57 = vrot.slane %v8637_v42, %v16066_v62  ;;  %v8705_v46 = vcombine.low %v7829_v28, %v7830_v9  ;;  %v8585_v54 = vcombine.low %v8577_v8, %v8584_v44  ;;  %v8652_v22 = vrot.slane %v8638_v48, %v16066_v62  ;;  %v16403_v28 = vld [vmem:[#allocation44_spill] sm:$0xff]  ;;  %v16404_v9 = vld [vmem:[#allocation58_spill] sm:$0xff]  ;;  %v16416_v8 = vld [vmem:[#allocation103_spill] sm:$0xff]  ;;  %v9654_v48 = vpop.permute.xlu0 %9653 }
 0x31d   : > { %v8381_v34 = vcombine.low %v16398_v14, %v8380_v25  ;;  %v8517_v26 = vcombine.low %v8509_v63, %v8516_v52  ;;  %v8706_v15 = vcombine.low %v7831_v16, %v7832_v19  ;;  %v8773_v60 = vcombine.low %v7845_v1, %v7846_v36  ;;  %9393 = vst.msk [vmem:[%s13003_s26 + $0x60] sm:$0xff] %vm513_vm3, %v8449_v24  ;;  %v16405_v16 = vld [vmem:[#allocation121_spill] sm:$0xff]  ;;  %v16413_v42 = vld [vmem:[#allocation84_spill] sm:$0xff]  ;;  %v16415_v63 = vld [vmem:[#allocation102_spill] sm:$0xff] }
 0x31e   : > { %v8713_v38 = vrot.slane %v8705_v46, %v16066_v62  ;;  %v8774_v40 = vcombine.low %v7847_v32, %v7848_v33  ;;  %v8909_v20 = vcombine.low %v7877_v50, %v7878_v6  ;;  %v8653_v59 = vcombine.low %v8645_v57, %v8652_v22  ;;  %9401 = vst.msk [vmem:[%s13003_s26 + $0xa0] sm:$0xff] %vm513_vm3, %v8585_v54  ;;  %v16406_v32 = vld [vmem:[#allocation6_spill] sm:$0xff]  ;;  %v16421_v54 = vld [vmem:[#allocation104_spill] sm:$0xff] }
 0x31f   : > { %9389 = vst.msk [vmem:[%s13003_s26 + $0x40] sm:$0xff] %vm513_vm3, %v8381_v34  ;;  %v8720_v2 = vrot.slane %v8706_v15, %v16066_v62  ;;  %v8910_v11 = vcombine.low %v7879_v58, %v7880_v49  ;;  %9397 = vst.msk [vmem:[%s13003_s26 + $0x80] sm:$0xff] %vm513_vm3, %v8517_v26  ;;  %v10737_v13 = vadd.f32 %v16402_v27, %v16401_v29  ;;  %v7265_v19 = vmul.f32 0.25, %v16405_v16  ;;  %v16407_v50 = vld [vmem:[#allocation122_spill] sm:$0xff] }
 0x320   : > { %9774 = vst.msk [vmem:[%s13003_s26 + $0x40] sm:$0xff] %vm9765_vm12, %v16399_v4  ;;  %9778 = vst.msk [vmem:[%s13003_s26 + $0x60] sm:$0xff] %vm9765_vm12, %v16400_v10  ;;  %v8781_v41 = vrot.slane %v8773_v60, %v16066_v62  ;;  %v8788_v39 = vrot.slane %v8774_v40, %v16066_v62  ;;  %v8917_v12 = vrot.slane %v8909_v20, %v16066_v62  ;;  %v7266_v6 = vmul.f32 0.25, %v16407_v50  ;;  %v16408_v49 = vld [vmem:[#allocation110_spill] sm:$0xff]  ;;  %v16422_v40 = vld [vmem:[#allocation105_spill] sm:$0xff] }
 0x321   : > { %9782 = vst.msk [vmem:[%s13003_s26 + $0x80] sm:$0xff] %vm9765_vm12, %v16403_v28  ;;  %9786 = vst.msk [vmem:[%s13003_s26 + $0xa0] sm:$0xff] %vm9765_vm12, %v16404_v9  ;;  %v8721_v1 = vcombine.low %v8713_v38, %v8720_v2  ;;  %v8924_v36 = vrot.slane %v8910_v11, %v16066_v62  ;;  %v2748_v33 = vadd.f32 %v16406_v32, %v10737_v13  ;;  %v7267_v37 = vmul.f32 0.25, %v16409_v21  ;;  %v16418_v14 = vld [vmem:[#allocation22_spill] sm:$0xff]  ;;  %v16424_v11 = vld [vmem:[#allocation91_spill] sm:$0xff] }
 0x322   : > { %9405 = vst.msk [vmem:[%s13003_s26 + $0xc0] sm:$0xff] %vm513_vm3, %v8653_v59  ;;  %v8789_v58 = vcombine.low %v8781_v41, %v8788_v39  ;;  %v7268_v56 = vmul.f32 0.25, %v16410_v35  ;;  %v7362_v7 = vmul.f32 0.75, %v16411_v55  ;;  %v7363_v25 = vmul.f32 0.75, %v16413_v42  ;;  %v16423_v59 = vld [vmem:[#allocation69_spill] sm:$0xff]  ;;  %v16425_v10 = vld [vmem:[#allocation92_spill] sm:$0xff] }
 0x323   : > { %9790 = vst.msk [vmem:[%s13003_s26 + $0xc0] sm:$0xff] %vm9765_vm12, %v16408_v49  ;;  %v8925_v51 = vcombine.low %v8917_v12, %v8924_v36  ;;  %v3854_v30 = vrot.slane %v2748_v33, 7  ;;  %v3915_v43 = vrot.slane %v2748_v33, 1  ;;  %v3988_v17 = vmul.f32 0.75, %v2748_v33  ;;  %v16426_v41 = vld [vmem:[#allocation41_spill] sm:$0xff]  ;;  %v16428_v50 = vld [vmem:[#allocation10_spill] sm:$0xff] }
 0x324   : > { %9409 = vst.msk [vmem:[%s13003_s26 + $0xe0] sm:$0xff] %vm513_vm3, %v8721_v1  ;;  %9413 = vst.msk [vmem:[%s13003_s26 + $0x100] sm:$0xff] %vm513_vm3, %v8789_v58  ;;  %v7364_v45 = vmul.f32 0.75, %v16414_v47  ;;  %v14616_v52 = vmul.f32 0.75, %v16415_v63  ;;  %v14619_v44 = vmul.f32 0.75, %v16416_v8  ;;  %v16419_v34 = vrot.slane %v16418_v14, 7 }
 0x325   : > { %9794 = vst.msk [vmem:[%s13003_s26 + $0xe0] sm:$0xff] %vm9765_vm12, %v16412_v61  ;;  %9798 = vst.msk [vmem:[%s13003_s26 + $0x100] sm:$0xff] %vm9765_vm12, %v16417_v31  ;;  %v16420_v57 = vrot.slane %v16418_v14, 1  ;;  %v3950_v26 = vsel %vm2872_vm10, %v3915_v43, %v2748_v33  ;;  %v14634_v22 = vmul.f32 0.75, %v16421_v54  ;;  %v14639_v20 = vmul.f32 0.75, %v16422_v40  ;;  %v16427_v1 = vld [vmem:[#allocation90_spill] sm:$0xff] }
 0x326   : > { %9421 = vst.msk [vmem:[%s13003_s26 + $0x140] sm:$0xff] %vm513_vm3, %v8925_v51  ;;  %v3855_v24 = vsel %vm3831_vm11, %v16419_v34, %v3854_v30  ;;  %v4028_v60 = vmul.f32 0.25, %v3950_v26  ;;  %v14642_v2 = vadd.f32 %v7362_v7, %v16423_v59  ;;  %v14645_v4 = vadd.f32 %v7363_v25, %v16424_v11  ;;  %v16432_v34 = vld [vmem:[#allocation127_spill] sm:$0xff] }
 0x327   : > { %v3916_v46 = vsel %vm2872_vm10, %v16420_v57, %v3915_v43  ;;  %9806 = vst.msk [vmem:[%s13003_s26 + $0x140] sm:$0xff] %vm9765_vm12, %v9654_v48  ;;  %v3968_v15 = vmul.f32 0.25, %v3855_v24  ;;  %v14648_v29 = vadd.f32 %v7364_v45, %v16425_v10  ;;  %v14651_v27 = vadd.f32 %v14616_v52, %v7265_v19  ;;  %v16449_v11 = vld [vmem:[#allocation7_spill] sm:$0xff] }
 0x328   : > { %v4027_v38 = vmul.f32 0.25, %v3916_v46  ;;  %v4048_v12 = vadd.f32 %v4028_v60, %v3988_v17  ;;  %v14655_v28 = vadd.f32 %v14619_v44, %v7266_v6  ;;  %v14658_v9 = vadd.f32 %v14634_v22, %v7267_v37 }
 0x329   : > { %v4008_v13 = vadd.f32 %v3988_v17, %v3968_v15  ;;  %v14661_v16 = vadd.f32 %v14639_v20, %v7268_v56  ;;  %v14664_v36 = vadd.f32 %v16427_v1, %v7265_v19  ;;  %v14666_v32 = vadd.f32 %v7362_v7, %v7266_v6 }
 0x32a   : > { %v4047_v39 = vadd.f32 %v4027_v38, %v16426_v41  ;;  %v5968_v35 = vcombine.high %v4048_v12, %v4048_v12  ;;  %v5975_v55 = vrot.slane %v4048_v12, %v16428_v50  ;;  %v14671_v51 = vadd.f32 %v7363_v25, %v7267_v37  ;;  %v16431_v38 = vld [vmem:[#allocation120_spill] sm:$0xff] }
 0x32b   : > { %v4808_v33 = vcombine.high %v4008_v13, %v4008_v13  ;;  %v4815_v58 = vrot.slane %v4008_v13, %v16428_v50  ;;  %v7652_v30 = vadd.f32 %v7364_v45, %v7268_v56 }
 0x32c   : > { %v5919_v49 = vcombine.high %v4047_v39, %v4047_v39  ;;  %v5926_v21 = vrot.slane %v4047_v39, %v16428_v50  ;;  %v5982_v42 = vrot.slane %v5968_v35, %v16428_v50  ;;  %v5983_v47 = vcombine.high %v5975_v55, %v5975_v55 }
 0x32d   : > { %v4822_v43 = vrot.slane %v4808_v33, %v16428_v50  ;;  %v4823_v17 = vcombine.high %v4815_v58, %v4815_v58  ;;  %v14675_v19 = vrot.slane %v4815_v58, %v16428_v50  ;;  %v5991_v15 = vrot.slane %v5975_v55, %v16428_v50 }
 0x32e   : > { %v5933_v6 = vrot.slane %v5919_v49, %v16428_v50  ;;  %v5934_v7 = vcombine.high %v5926_v21, %v5926_v21  ;;  %v14679_v61 = vrot.slane %v5926_v21, %v16428_v50  ;;  %v5984_v57 = vcombine.high %v5982_v42, %v5982_v42 }
 0x32f   : > { %v4824_v63 = vcombine.high %v4822_v43, %v4822_v43  ;;  %v14683_v37 = vrot.slane %v4822_v43, %v16428_v50  ;;  %v14686_v56 = vrot.slane %v4823_v17, %v16428_v50  ;;  %v14716_v60 = vrot.slane %v5982_v42, %v16428_v50 }
 0x330   : > { %v5935_v45 = vcombine.high %v5933_v6, %v5933_v6  ;;  %v14691_v8 = vrot.slane %v5933_v6, %v16428_v50  ;;  %v14694_v48 = vrot.slane %v5934_v7, %v16428_v50  ;;  %v5964_v31 = vcombine.high %v14679_v61, %v14679_v61 }
 0x331   : > { %v14699_v14 = vrot.slane %v4824_v63, %v16428_v50  ;;  %v14719_v40 = vrot.slane %v5983_v47, %v16428_v50  ;;  %v14722_v59 = vrot.slane %v5984_v57, %v16428_v50  ;;  %v6013_v10 = vcombine.high %v5991_v15, %v5991_v15 }
 0x332   : > { %v14706_v46 = vrot.slane %v5935_v45, %v16428_v50  ;;  %v5965_v26 = vcombine.high %v14691_v8, %v14691_v8  ;;  %v6014_v39 = vcombine.high %v14716_v60, %v14716_v60  ;;  %v14737_v33 = vrot.slane %v5964_v31, %v16094_v0 }
 0x333   : > { %v6015_v12 = vcombine.high %v14719_v40, %v14719_v40  ;;  %v6016_v1 = vcombine.high %v14722_v59, %v14722_v59  ;;  %v6696_v49 = vrot.slane %v5991_v15, %v16094_v0  ;;  %v14745_v35 = vrot.slane %v6013_v10, %v16094_v0 }
 0x334   : > { %v14755_v6 = vrot.slane %v6014_v39, %v16094_v0  ;;  %v7826_v47 = vmax.f32 %v14642_v2, 0.0  ;;  %v7827_v63 = vmax.f32 %v14645_v4, 0.0  ;;  %v7828_v45 = vmax.f32 %v14648_v29, 0.0  ;;  %v16429_v2 = vld [vmem:[#allocation43_spill] sm:$0xff] }
 0x335   : > { %v14748_v55 = vrot.slane %v6015_v12, %v16094_v0  ;;  %v14758_v7 = vrot.slane %v6016_v1, %v16094_v0  ;;  %v14762_v42 = vsel %vm3831_vm11, %v14675_v19, %v6696_v49  ;;  %v7841_v31 = vmax.f32 %v14664_v36, 0.0 }
 0x336   : > { %v7842_v57 = vmax.f32 %v14666_v32, 0.0  ;;  %v7843_v15 = vmax.f32 %v14671_v51, 0.0  ;;  %v7844_v10 = vmax.f32 %v7652_v30, 0.0  ;;  %v7889_v39 = vmax.f32 %v14651_v27, 0.0 }
 0x337   : > { %v7890_v12 = vmax.f32 %v14655_v28, 0.0  ;;  %v7891_v1 = vmax.f32 %v14658_v9, 0.0  ;;  %v7892_v49 = vmax.f32 %v14661_v16, 0.0  ;;  %v16430_v24 = vmax.f32 %v16429_v2, 0.0  ;;  %v16439_v2 = vld [vmem:[#allocation133_spill] sm:$0xff] }
 0x338   : > { %v8689_v25 = vcombine.low %v7827_v63, %v7828_v45  ;;  %v8756_v29 = vcombine.low %v7841_v31, %v7842_v57  ;;  %v8757_v21 = vcombine.low %v7843_v15, %v7844_v10  ;;  %v7261_v32 = vmul.f32 0.25, %v16431_v38  ;;  %v16434_v45 = vld [vmem:[#allocation130_spill] sm:$0xff] }
 0x339   : > { %v8688_v4 = vcombine.low %v16430_v24, %v7826_v47  ;;  %v8960_v36 = vcombine.low %v7889_v39, %v7890_v12  ;;  %v7262_v51 = vmul.f32 0.25, %v16432_v34  ;;  %v8961_v9 = vcombine.low %v7891_v1, %v7892_v49  ;;  %v16433_v47 = vld [vmem:[#allocation128_spill] sm:$0xff]  ;;  %v16435_v57 = vld [vmem:[#allocation82_spill] sm:$0xff]  ;;  %v16437_v12 = vld [vmem:[#allocation131_spill] sm:$0xff] }
 0x33a   : > { %v8703_v27 = vrot.slane %v8689_v25, %v16066_v62  ;;  %v8764_v28 = vrot.slane %v8756_v29, %v16066_v62  ;;  %v8771_v16 = vrot.slane %v8757_v21, %v16066_v62  ;;  %v7263_v63 = vmul.f32 0.25, %v16433_v47  ;;  %v16436_v25 = vld [vmem:[#allocation101_spill] sm:$0xff]  ;;  %v16438_v1 = vld [vmem:[#allocation132_spill] sm:$0xff] }
 0x33b   : > { %v8696_v30 = vrot.slane %v8688_v4, %v16066_v62  ;;  %v8968_v24 = vrot.slane %v8960_v36, %v16066_v62  ;;  %v7264_v38 = vmul.f32 0.25, %v16434_v45  ;;  %v8975_v34 = vrot.slane %v8961_v9, %v16066_v62  ;;  %v16440_v36 = vld [vmem:[#allocation5_spill] sm:$0xff] }
 0x33c   : > { %v7360_v15 = vmul.f32 0.75, %v16435_v57  ;;  %v14788_v10 = vmul.f32 0.75, %v16436_v25  ;;  %v8772_v39 = vcombine.low %v8764_v28, %v8771_v16  ;;  %v14791_v21 = vmul.f32 0.75, %v16437_v12  ;;  %v16441_v28 = vld [vmem:[#allocation87_spill] sm:$0xff]  ;;  %v16442_v16 = vld [vmem:[#allocation100_spill] sm:$0xff]  ;;  %v9660_v57 = vpop.permute.xlu1 %9659  ;;  %v16444_v25 = vld [vmem:[#allocation113_spill] sm:$0xff] }
 0x33d   : > { %v8704_v31 = vcombine.low %v8696_v30, %v8703_v27  ;;  %v14794_v49 = vmul.f32 0.75, %v16438_v1  ;;  %v14797_v4 = vmul.f32 0.75, %v16439_v2  ;;  %v8976_v29 = vcombine.low %v8968_v24, %v8975_v34  ;;  %v16443_v34 = vld [vmem:[#allocation88_spill] sm:$0xff] }
 0x33e   : > { %v7488_v30 = vadd.f32 %v7360_v15, %v16440_v36  ;;  %v7517_v27 = vadd.f32 %v14788_v10, %v7261_v32  ;;  %v7645_v9 = vadd.f32 %v16441_v28, %v7261_v32  ;;  %9412 = vst.msk [vmem:[%s13003_s26 + $0xf8] sm:$0xff] %vm513_vm3, %v8772_v39  ;;  %v7518_v47 = vadd.f32 %v14791_v21, %v7262_v51  ;;  %v16445_v32 = vld [vmem:[#allocation89_spill] sm:$0xff] }
 0x33f   : > { %9408 = vst.msk [vmem:[%s13003_s26 + $0xd8] sm:$0xff] %vm513_vm3, %v8704_v31  ;;  %v7519_v45 = vadd.f32 %v14794_v49, %v7263_v63  ;;  %v7520_v24 = vadd.f32 %v14797_v4, %v7264_v38  ;;  %v7646_v31 = vadd.f32 %v16443_v34, %v7262_v51  ;;  %9424 = vst.msk [vmem:[%s13003_s26 + $0x158] sm:$0xff] %vm513_vm3, %v8976_v29  ;;  %v16446_v34 = vld [vmem:[#allocation42_spill] sm:$0xff] }
 0x340   : > { %9793 = vst.msk [vmem:[%s13003_s26 + $0xd8] sm:$0xff] %vm9765_vm12, %v16442_v16  ;;  %9797 = vst.msk [vmem:[%s13003_s26 + $0xf8] sm:$0xff] %vm9765_vm12, %v16444_v25  ;;  %v7647_v12 = vadd.f32 %v16445_v32, %v7263_v63  ;;  %v7648_v39 = vadd.f32 %v7360_v15, %v7264_v38  ;;  %v7824_v1 = vmax.f32 %v7488_v30, 0.0  ;;  %v7837_v2 = vmax.f32 %v7645_v9, 0.0  ;;  %v16448_v25 = vld [vmem:[#allocation94_spill] sm:$0xff]  ;;  %v16451_v15 = vld [vmem:[#allocation63_spill] sm:$0xff] }
 0x341   : > { %9809 = vst.msk [vmem:[%s13003_s26 + $0x158] sm:$0xff] %vm9765_vm12, %v9660_v57  ;;  %v7838_v36 = vmax.f32 %v7646_v31, 0.0  ;;  %v7885_v28 = vmax.f32 %v7517_v27, 0.0  ;;  %v7886_v16 = vmax.f32 %v7518_v47, 0.0  ;;  %v7887_v17 = vmax.f32 %v7519_v45, 0.0  ;;  %v16450_v38 = vld [vmem:[#allocation14_spill] sm:$0xff] }
 0x342   : > { %v7839_v43 = vmax.f32 %v7647_v12, 0.0  ;;  %v7840_v41 = vmax.f32 %v7648_v39, 0.0  ;;  %v7888_v51 = vmax.f32 %v7520_v24, 0.0  ;;  %v16447_v13 = vmax.f32 %v16446_v34, 0.0  ;;  %v10954_v24 = vld [vmem:[%s15725_s2] ss:$0 sm:$0xff] }
 0x343   : > { %v8739_v54 = vcombine.low %v7837_v2, %v7838_v36  ;;  %v8943_v58 = vcombine.low %v7885_v28, %v7886_v16  ;;  %v3807_v63 = vadd.f32 %v16449_v11, %v16448_v25  ;;  %v3808_v30 = vadd.f32 %v16451_v15, %v16450_v38  ;;  %v16452_v32 = vld [vmem:[#allocation45_spill] sm:$0xff]  ;;  %v16454_v34 = vld [vmem:[#allocation115_spill] sm:$0xff]  ;;  %v16457_v15 = vld [vmem:[#allocation80_spill] sm:$0xff] }
 0x344   : > { %v8672_v29 = vcombine.low %v16447_v13, %v7824_v1  ;;  %v8740_v31 = vcombine.low %v7839_v43, %v7840_v41  ;;  %v8944_v27 = vcombine.low %v7887_v17, %v7888_v51  ;;  %v6684_v47 = vrot.slane %v14706_v46, %v16094_v0 }
 0x345   : > { %v8747_v45 = vrot.slane %v8739_v54, %v16066_v62  ;;  %v8951_v13 = vrot.slane %v8943_v58, %v16066_v62  ;;  %v3809_v11 = vadd.f32 %v10954_v24, %v3807_v63  ;;  %v3810_v57 = vadd.f32 %v10954_v24, %v3808_v30 }
 0x346   : > { %v8686_v9 = vrot.slane %v8672_v29, %v16066_v62  ;;  %v16453_v12 = vrot.slane %v16452_v32, %v16066_v62  ;;  %v8754_v43 = vrot.slane %v8740_v31, %v16066_v62  ;;  %v8958_v17 = vrot.slane %v8944_v27, %v16066_v62 }
 0x347   : > { %v6688_v54 = vrot.slane %v5965_v26, %v16094_v0  ;;  %v3859_v58 = vrot.slane %v3809_v11, 7  ;;  %v3920_v39 = vrot.slane %v3809_v11, 1  ;;  %v3991_v1 = vmul.f32 0.75, %v3809_v11 }
 0x348   : > { %v8687_v41 = vcombine.low %v16453_v12, %v8686_v9  ;;  %v3860_v2 = vrot.slane %v3810_v57, 7  ;;  %v8755_v36 = vcombine.low %v8747_v45, %v8754_v43  ;;  %v8959_v28 = vcombine.low %v8951_v13, %v8958_v17  ;;  %v9658_v9 = vpop.permute.xlu0 %9657 }
 0x349   : > { %v3921_v16 = vrot.slane %v3810_v57, 1  ;;  %v3992_v51 = vmul.f32 0.75, %v3810_v57  ;;  %v3891_v29 = vsel %vm3831_vm11, %v3809_v11, %v3859_v58  ;;  %v16455_v25 = vcombine.high %v14706_v46, %v14706_v46  ;;  %v16458_v46 = vld [vmem:[#allocation125_spill] sm:$0xff]  ;;  %v16459_v11 = vld [vmem:[#allocation139_spill] sm:$0xff] }
 0x34a   : > { %9407 = vst.msk [vmem:[%s13003_s26 + $0xd0] sm:$0xff] %vm513_vm3, %v8687_v41  ;;  %v3861_v26 = vsel %vm3831_vm11, %v3859_v58, %v3860_v2  ;;  %v16456_v38 = vrot.slane %v14691_v8, %v16094_v0  ;;  %9411 = vst.msk [vmem:[%s13003_s26 + $0xf0] sm:$0xff] %vm513_vm3, %v8755_v36  ;;  %v3971_v31 = vmul.f32 0.25, %v3891_v29  ;;  %v14875_v32 = vsel %vm3831_vm11, %v16459_v11, %v6684_v47 }
 0x34b   : > { %9792 = vst.msk [vmem:[%s13003_s26 + $0xd0] sm:$0xff] %vm9765_vm12, %v16454_v34  ;;  %v6692_v63 = vrot.slane %v16455_v25, %v16094_v0  ;;  %v3922_v27 = vsel %vm2872_vm10, %v3920_v39, %v3921_v16  ;;  %v3952_v45 = vsel %vm2872_vm10, %v3921_v16, %v3810_v57  ;;  %v3972_v13 = vmul.f32 0.25, %v3861_v26  ;;  %9796 = vst.msk [vmem:[%s13003_s26 + $0xf0] sm:$0xff] %vm9765_vm12, %v16458_v46 }
 0x34c   : > { %v14860_v30 = vsel %vm3831_vm11, %v16457_v15, %v16456_v38  ;;  %9423 = vst.msk [vmem:[%s13003_s26 + $0x150] sm:$0xff] %vm513_vm3, %v8959_v28  ;;  %v4031_v8 = vmul.f32 0.25, %v3922_v27  ;;  %v4032_v24 = vmul.f32 0.25, %v3952_v45  ;;  %v16460_v12 = vcombine.high %v16457_v15, %v16457_v15 }
 0x34d   : > { %9808 = vst.msk [vmem:[%s13003_s26 + $0x150] sm:$0xff] %vm9765_vm12, %v9658_v9  ;;  %v4011_v43 = vadd.f32 %v3991_v1, %v3971_v31  ;;  %v4012_v57 = vadd.f32 %v3992_v51, %v3972_v13  ;;  %v16461_v17 = vcombine.high %v16459_v11, %v16459_v11  ;;  %v14890_v39 = vmul.f32 0.25, %v14860_v30 }
 0x34e   : > { %v14881_v41 = vsel %vm3831_vm11, %v16460_v12, %v6688_v54  ;;  %v4051_v2 = vadd.f32 %v4031_v8, %v3991_v1  ;;  %v4052_v47 = vadd.f32 %v4032_v24, %v3992_v51  ;;  %v14893_v36 = vmul.f32 0.25, %v14875_v32 }
 0x34f   : > { %v14887_v58 = vsel %vm3831_vm11, %v16461_v17, %v6692_v63  ;;  %v14896_v28 = vmul.f32 0.25, %v14881_v41  ;;  %v4955_v54 = vcombine.high %v4011_v43, %v4011_v43  ;;  %v4962_v16 = vrot.slane %v4011_v43, %v16428_v50 }
 0x350   : > { %v5004_v34 = vcombine.high %v4012_v57, %v4012_v57  ;;  %v5011_v29 = vrot.slane %v4012_v57, %v16428_v50  ;;  %v6115_v26 = vcombine.high %v4051_v2, %v4051_v2  ;;  %v6122_v25 = vrot.slane %v4051_v2, %v16428_v50 }
 0x351   : > { %v6164_v63 = vcombine.high %v4052_v47, %v4052_v47  ;;  %v6171_v38 = vrot.slane %v4052_v47, %v16428_v50  ;;  %v4969_v1 = vrot.slane %v4955_v54, %v16428_v50  ;;  %v4970_v51 = vcombine.high %v4962_v16, %v4962_v16 }
 0x352   : > { %v14904_v15 = vrot.slane %v4962_v16, %v16428_v50  ;;  %v5018_v9 = vrot.slane %v5004_v34, %v16428_v50  ;;  %v5019_v31 = vcombine.high %v5011_v29, %v5011_v29  ;;  %v14908_v27 = vrot.slane %v5011_v29, %v16428_v50 }
 0x353   : > { %v6129_v45 = vrot.slane %v6115_v26, %v16428_v50  ;;  %v6130_v13 = vcombine.high %v6122_v25, %v6122_v25  ;;  %v4971_v46 = vcombine.high %v4969_v1, %v4969_v1  ;;  %v14912_v8 = vrot.slane %v4969_v1, %v16428_v50 }
 0x354   : > { %16462 = vst [vmem:[#allocation36_spill] sm:$0xff] %v14904_v15  ;;  %16463 = vst [vmem:[#allocation37_spill] sm:$0xff] %v14908_v27  ;;  %v14915_v24 = vrot.slane %v4970_v51, %v16428_v50  ;;  %v5020_v12 = vcombine.high %v5018_v9, %v5018_v9  ;;  %v14920_v43 = vrot.slane %v5018_v9, %v16428_v50 }
 0x355   : > { %16464 = vst [vmem:[#allocation38_spill] sm:$0xff] %v14912_v8  ;;  %v14923_v57 = vrot.slane %v5019_v31, %v16428_v50  ;;  %v14928_v2 = vrot.slane %v4971_v46, %v16428_v50  ;;  %v6131_v16 = vcombine.high %v6129_v45, %v6129_v45  ;;  %v14942_v1 = vrot.slane %v6122_v25, %v16428_v50 }
 0x356   : > { %16465 = vst [vmem:[#allocation74_spill] sm:$0xff] %v14915_v24  ;;  %16466 = vst [vmem:[#allocation50_spill] sm:$0xff] %v14920_v43  ;;  %v14935_v34 = vrot.slane %v5020_v12, %v16428_v50  ;;  %v14947_v9 = vrot.slane %v6129_v45, %v16428_v50  ;;  %v14950_v31 = vrot.slane %v6130_v13, %v16428_v50  ;;  %v16475_v45 = vld [vmem:[#allocation66_spill] sm:$0xff] }
 0x357   : > { %16467 = vst [vmem:[#allocation18_spill] sm:$0xff] %v14923_v57  ;;  %16468 = vst [vmem:[#allocation17_spill] sm:$0xff] %v14928_v2  ;;  %v14953_v46 = vrot.slane %v6131_v16, %v16428_v50  ;;  %v6178_v25 = vrot.slane %v6164_v63, %v16428_v50  ;;  %v6179_v17 = vcombine.high %v6171_v38, %v6171_v38  ;;  %v14976_v63 = vmul.f32 0.25, %v14887_v58  ;;  %v16476_v16 = vld [vmem:[#allocation26_spill] sm:$0xff] }
 0x358   : > { %16469 = vst [vmem:[#allocation20_spill] sm:$0xff] %v14935_v34  ;;  %16470 = vst [vmem:[#allocation19_spill] sm:$0xff] %v14942_v1  ;;  %v14965_v13 = vrot.slane %v6171_v38, %v16428_v50  ;;  %v7673_v51 = vadd.f32 %v16475_v45, %v14890_v39  ;;  %v7674_v47 = vadd.f32 %v16476_v16, %v14893_v36  ;;  %v16479_v16 = vld [vmem:[#allocation76_spill] sm:$0xff] }
 0x359   : > { %16471 = vst [vmem:[#allocation24_spill] sm:$0xff] %v14950_v31  ;;  %v6180_v54 = vcombine.high %v6178_v25, %v6178_v25  ;;  %v14970_v12 = vrot.slane %v6178_v25, %v16428_v50  ;;  %v14973_v11 = vrot.slane %v6179_v17, %v16428_v50  ;;  %v7675_v27 = vadd.f32 %v16479_v16, %v14896_v28 }
 0x35a   : > { %16472 = vst [vmem:[#allocation95_spill] sm:$0xff] %v14965_v13  ;;  %v6209_v26 = vcombine.high %v14965_v13, %v14965_v13  ;;  %v7898_v45 = vmax.f32 %v7674_v47, 0.0  ;;  %v16487_v47 = vrot.slane %v14694_v48, %v16094_v0 }
 0x35b   : > { %16473 = vst [vmem:[#allocation116_spill] sm:$0xff] %v14970_v12  ;;  %16474 = vst [vmem:[#allocation51_spill] sm:$0xff] %v14973_v11  ;;  %v14987_v25 = vrot.slane %v6180_v54, %v16428_v50  ;;  %v6210_v17 = vcombine.high %v14970_v12, %v14970_v12  ;;  %v6211_v29 = vcombine.high %v14973_v11, %v14973_v11  ;;  %v16480_v50 = vld [vmem:[#allocation13_spill] sm:$0xff]  ;;  %v7899_v11 = vmax.f32 %v7675_v27, 0.0  ;;  %v16488_v27 = vld [vmem:[#allocation138_spill] sm:$0xff] }
 0x35c   : > { %v14996_v38 = vrot.slane %v6209_v26, %v16094_v0  ;;  %v7676_v54 = vadd.f32 %v16480_v50, %v14976_v63  ;;  %v16484_v50 = vcombine.high %v14694_v48, %v14694_v48 }
 0x35d   : > { %16477 = vst [vmem:[#allocation98_spill] sm:$0xff] %v14987_v25  ;;  %v6212_v13 = vcombine.high %v14987_v25, %v14987_v25  ;;  %v15007_v34 = vrot.slane %v6211_v29, %v16094_v0  ;;  %v15012_v26 = vrot.slane %v6210_v17, %v16094_v0  ;;  %v16485_v29 = vrot.slane %v14679_v61, %v16094_v0 }
 0x35e   : > { %16478 = vst [vmem:[#allocation61_spill] sm:$0xff] %v14996_v38  ;;  %v7897_v38 = vmax.f32 %v7673_v51, 0.0  ;;  %v7900_v43 = vmax.f32 %v7676_v54, 0.0  ;;  %v6676_v12 = vrot.slane %v16484_v50, %v16094_v0  ;;  %v15033_v51 = vsel %vm3831_vm11, %v16488_v27, %v16487_v47 }
 0x35f   : > { %16481 = vst [vmem:[#allocation12_spill] sm:$0xff] %v15007_v34  ;;  %16482 = vst [vmem:[#allocation62_spill] sm:$0xff] %v15012_v26  ;;  %v15015_v16 = vrot.slane %v6212_v13, %v16094_v0  ;;  %v16486_v34 = vld [vmem:[#allocation8_spill] sm:$0xff]  ;;  %v15052_v47 = vmul.f32 0.25, %v15033_v51  ;;  %v9662_v26 = vpop.permute.xlu0 %9661 }
 0x360   : > { %v15026_v57 = vsel %vm3831_vm11, %v16486_v34, %v16485_v29  ;;  %v8994_v13 = vcombine.low %v7897_v38, %v7898_v45  ;;  %v8995_v17 = vcombine.low %v7899_v11, %v7900_v43  ;;  %v16489_v54 = vcombine.high %v16486_v34, %v16486_v34 }
 0x361   : > { %16483 = vst [vmem:[#allocation40_spill] sm:$0xff] %v15015_v16  ;;  %v15043_v61 = vmul.f32 0.25, %v15026_v57  ;;  %v16490_v29 = vcombine.high %v16488_v27, %v16488_v27  ;;  %v16491_v43 = vrot.slane %v14716_v60, %v16094_v0  ;;  %v7670_v27 = vadd.f32 %v14497_v5, %v15052_v47 }
 0x362   : > { %v15040_v50 = vsel %vm3831_vm11, %v16489_v54, %v14737_v33  ;;  %v9002_v34 = vrot.slane %v8994_v13, %v16066_v62  ;;  %v9009_v38 = vrot.slane %v8995_v17, %v16066_v62  ;;  %v16492_v54 = vrot.slane %v14722_v59, %v16094_v0 }
 0x363   : > { %v15049_v48 = vsel %vm3831_vm11, %v16490_v29, %v6676_v12  ;;  %v15055_v11 = vmul.f32 0.25, %v15040_v50  ;;  %v15062_v33 = vsel %vm3831_vm11, %v14683_v37, %v16491_v43  ;;  %v7669_v45 = vadd.f32 %v14494_v3, %v15043_v61  ;;  %v9666_v8 = vpop.permute.xlu0 %9665 }
 0x364   : > { %v15067_v12 = vmul.f32 0.25, %v15049_v48  ;;  %v15080_v13 = vsel %vm3831_vm11, %v14699_v14, %v16492_v54  ;;  %v16493_v17 = vcombine.high %v14683_v37, %v14683_v37  ;;  %v9010_v29 = vcombine.low %v9002_v34, %v9009_v38  ;;  %v9664_v34 = vpop.permute.xlu1 %9663 }
 0x365   : > { %v7671_v60 = vadd.f32 %v14500_v23, %v15055_v11  ;;  %v7893_v23 = vmax.f32 %v7669_v45, 0.0  ;;  %v16494_v59 = vcombine.high %v14699_v14, %v14699_v14  ;;  %v7894_v54 = vmax.f32 %v7670_v27, 0.0 }
 0x366   : > { %v15087_v3 = vsel %vm3831_vm11, %v16493_v17, %v14755_v6  ;;  %v7672_v5 = vadd.f32 %v14503_v53, %v15067_v12  ;;  %v15099_v37 = vmul.f32 0.25, %v15062_v33  ;;  %v15102_v6 = vmul.f32 0.25, %v15080_v13  ;;  %9426 = vst.msk [vmem:[%s13003_s26 + $0x168] sm:$0xff] %vm513_vm3, %v9010_v29 }
 0x367   : > { %v15096_v43 = vsel %vm3831_vm11, %v16494_v59, %v14758_v7  ;;  %v7895_v16 = vmax.f32 %v7671_v60, 0.0  ;;  %v15107_v38 = vmul.f32 0.25, %v15087_v3  ;;  %v16495_v7 = vrot.slane %v14719_v40, %v16094_v0  ;;  %9811 = vst.msk [vmem:[%s13003_s26 + $0x168] sm:$0xff] %vm9765_vm12, %v9664_v34 }
 0x368   : > { %v7896_v53 = vmax.f32 %v7672_v5, 0.0  ;;  %v15110_v14 = vmul.f32 0.25, %v15096_v43  ;;  %v8977_v27 = vcombine.low %v7893_v23, %v7894_v54  ;;  %v7681_v60 = vadd.f32 %v14616_v52, %v15099_v37 }
 0x369   : > { %v15117_v45 = vsel %vm3831_vm11, %v14686_v56, %v16495_v7  ;;  %v7682_v17 = vadd.f32 %v14619_v44, %v15102_v6  ;;  %v16496_v29 = vcombine.high %v14675_v19, %v14675_v19  ;;  %v7683_v59 = vadd.f32 %v14634_v22, %v15107_v38 }
 0x36a   : > { %v8978_v40 = vcombine.low %v7895_v16, %v7896_v53  ;;  %v7684_v23 = vadd.f32 %v14639_v20, %v15110_v14  ;;  %v16497_v52 = vcombine.high %v14686_v56, %v14686_v56  ;;  %v8985_v54 = vrot.slane %v8977_v27, %v16066_v62 }
 0x36b   : > { %v15130_v5 = vsel %vm3831_vm11, %v16496_v29, %v14745_v35  ;;  %v7905_v19 = vmax.f32 %v7681_v60, 0.0  ;;  %v7906_v34 = vmax.f32 %v7682_v17, 0.0  ;;  %v15145_v35 = vmul.f32 0.25, %v14762_v42 }
 0x36c   : > { %v15141_v44 = vsel %vm3831_vm11, %v16497_v52, %v14748_v55  ;;  %v8992_v16 = vrot.slane %v8978_v40, %v16066_v62  ;;  %v7907_v22 = vmax.f32 %v7683_v59, 0.0  ;;  %v7908_v53 = vmax.f32 %v7684_v23, 0.0  ;;  %v16498_v40 = vld [vmem:[#allocation28_spill] sm:$0xff] }
 0x36d   : > { %v15149_v20 = vmul.f32 0.25, %v15117_v45  ;;  %v9028_v7 = vcombine.low %v7905_v19, %v7906_v34  ;;  %v15152_v56 = vmul.f32 0.25, %v15130_v5  ;;  %v15155_v55 = vmul.f32 0.25, %v15141_v44 }
 0x36e   : > { %v7677_v27 = vadd.f32 %v14788_v10, %v15145_v35  ;;  %v8993_v60 = vcombine.low %v8985_v54, %v8992_v16  ;;  %v9029_v17 = vcombine.low %v7907_v22, %v7908_v53  ;;  %v7273_v59 = vmul.f32 0.25, %v16498_v40  ;;  %v16499_v16 = vld [vmem:[#allocation27_spill] sm:$0xff] }
 0x36f   : > { %v7678_v29 = vadd.f32 %v14791_v21, %v15149_v20  ;;  %v9036_v23 = vrot.slane %v9028_v7, %v16066_v62  ;;  %v7679_v52 = vadd.f32 %v14794_v49, %v15152_v56  ;;  %v7680_v19 = vadd.f32 %v14797_v4, %v15155_v55  ;;  %v16500_v21 = vld [vmem:[#allocation59_spill] sm:$0xff] }
 0x370   : > { %v7901_v34 = vmax.f32 %v7677_v27, 0.0  ;;  %9425 = vst.msk [vmem:[%s13003_s26 + $0x160] sm:$0xff] %vm513_vm3, %v8993_v60  ;;  %v9043_v10 = vrot.slane %v9029_v17, %v16066_v62  ;;  %v7274_v22 = vmul.f32 0.25, %v16499_v16  ;;  %v7275_v53 = vmul.f32 0.25, %v16500_v21  ;;  %v16501_v49 = vld [vmem:[#allocation15_spill] sm:$0xff] }
 0x371   : > { %v7902_v54 = vmax.f32 %v7678_v29, 0.0  ;;  %9810 = vst.msk [vmem:[%s13003_s26 + $0x160] sm:$0xff] %vm9765_vm12, %v9662_v26  ;;  %v7903_v7 = vmax.f32 %v7679_v52, 0.0  ;;  %v7904_v40 = vmax.f32 %v7680_v19, 0.0  ;;  %v7276_v25 = vmul.f32 0.25, %v16501_v49  ;;  %v16502_v52 = vld [vmem:[#allocation3_spill] sm:$0xff]  ;;  %v9668_v49 = vpop.permute.xlu1 %9667 }
 0x372   : > { %v15176_v4 = vmul.f32 0.75, %v14860_v30  ;;  %v9044_v27 = vcombine.low %v9036_v23, %v9043_v10  ;;  %v15179_v17 = vmul.f32 0.75, %v14875_v32  ;;  %v15182_v29 = vmul.f32 0.75, %v14881_v41 }
 0x373   : > { %v9011_v60 = vcombine.low %v7901_v34, %v7902_v54  ;;  %v9012_v16 = vcombine.low %v7903_v7, %v7904_v40  ;;  %v15185_v21 = vmul.f32 0.75, %v14887_v58  ;;  %v7657_v19 = vadd.f32 %v16502_v52, %v7273_v59  ;;  %v16503_v34 = vld [vmem:[#allocation64_spill] sm:$0xff]  ;;  %v16504_v54 = vld [vmem:[#allocation67_spill] sm:$0xff] }
 0x374   : > { %v7529_v26 = vadd.f32 %v15176_v4, %v7273_v59  ;;  %9428 = vst.msk [vmem:[%s13003_s26 + $0x178] sm:$0xff] %vm513_vm3, %v9044_v27  ;;  %v7530_v23 = vadd.f32 %v15179_v17, %v7274_v22  ;;  %v7531_v32 = vadd.f32 %v15182_v29, %v7275_v53  ;;  %v7658_v41 = vadd.f32 %v16503_v34, %v7274_v22  ;;  %v16505_v7 = vld [vmem:[#allocation60_spill] sm:$0xff] }
 0x375   : > { %v9019_v30 = vrot.slane %v9011_v60, %v16066_v62  ;;  %9813 = vst.msk [vmem:[%s13003_s26 + $0x178] sm:$0xff] %vm9765_vm12, %v9668_v49  ;;  %v9026_v58 = vrot.slane %v9012_v16, %v16066_v62  ;;  %v7532_v10 = vadd.f32 %v15185_v21, %v7276_v25  ;;  %v7659_v59 = vadd.f32 %v16504_v54, %v7275_v53  ;;  %v16506_v54 = vld [vmem:[#allocation78_spill] sm:$0xff] }
 0x376   : > { %v7660_v40 = vadd.f32 %v16505_v7, %v7276_v25  ;;  %v7865_v27 = vmax.f32 %v7657_v19, 0.0  ;;  %v7866_v52 = vmax.f32 %v7658_v41, 0.0  ;;  %v7913_v60 = vmax.f32 %v7529_v26, 0.0  ;;  %v16507_v19 = vld [vmem:[#allocation79_spill] sm:$0xff] }
 0x377   : > { %v7914_v24 = vmax.f32 %v7530_v23, 0.0  ;;  %v9027_v15 = vcombine.low %v9019_v30, %v9026_v58  ;;  %v7867_v1 = vmax.f32 %v7659_v59, 0.0  ;;  %v7915_v22 = vmax.f32 %v7531_v32, 0.0  ;;  %v16508_v26 = vld [vmem:[#allocation31_spill] sm:$0xff] }
 0x378   : > { %v7868_v2 = vmax.f32 %v7660_v40, 0.0  ;;  %v7916_v34 = vmax.f32 %v7532_v10, 0.0  ;;  %v8858_v49 = vcombine.low %v7865_v27, %v7866_v52  ;;  %v7269_v16 = vmul.f32 0.25, %v14459_v18 }
 0x379   : > { %v9062_v31 = vcombine.low %v7913_v60, %v7914_v24  ;;  %9427 = vst.msk [vmem:[%s13003_s26 + $0x170] sm:$0xff] %vm513_vm3, %v9027_v15  ;;  %v7270_v25 = vmul.f32 0.25, %v16506_v54  ;;  %v7271_v41 = vmul.f32 0.25, %v16507_v19  ;;  %v7272_v7 = vmul.f32 0.25, %v16508_v26  ;;  %v9672_v26 = vpop.permute.xlu1 %9671 }
 0x37a   : > { %v8859_v53 = vcombine.low %v7867_v1, %v7868_v2  ;;  %9812 = vst.msk [vmem:[%s13003_s26 + $0x170] sm:$0xff] %vm9765_vm12, %v9666_v8  ;;  %v8866_v30 = vrot.slane %v8858_v49, %v16066_v62  ;;  %v9063_v23 = vcombine.low %v7915_v22, %v7916_v34  ;;  %v15212_v24 = vmul.f32 0.75, %v15026_v57  ;;  %v16510_v57 = vld [vmem:[#allocation71_spill] sm:$0xff]  ;;  %v16512_v22 = vld [vmem:[#allocation73_spill] sm:$0xff] }
 0x37b   : > { %v9070_v32 = vrot.slane %v9062_v31, %v16066_v62  ;;  %v15216_v15 = vmul.f32 0.75, %v15033_v51  ;;  %v15219_v2 = vmul.f32 0.75, %v15040_v50  ;;  %v15222_v1 = vmul.f32 0.75, %v15049_v48  ;;  %v16509_v31 = vld [vmem:[#allocation32_spill] sm:$0xff] }
 0x37c   : > { %v8873_v18 = vrot.slane %v8859_v53, %v16066_v62  ;;  %v9077_v8 = vrot.slane %v9063_v23, %v16066_v62  ;;  %v7525_v58 = vadd.f32 %v15212_v24, %v7269_v16  ;;  %v7653_v10 = vadd.f32 %v16509_v31, %v7269_v16  ;;  %v16511_v48 = vld [vmem:[#allocation72_spill] sm:$0xff] }
 0x37d   : > { %v7654_v59 = vadd.f32 %v16510_v57, %v7270_v25  ;;  %v7526_v51 = vadd.f32 %v15216_v15, %v7270_v25  ;;  %v7527_v27 = vadd.f32 %v15219_v2, %v7271_v41  ;;  %v7528_v50 = vadd.f32 %v15222_v1, %v7272_v7  ;;  %v16513_v25 = vld [vmem:[#allocation126_spill] sm:$0xff] }
 0x37e   : > { %v8874_v40 = vcombine.low %v8866_v30, %v8873_v18  ;;  %v9078_v52 = vcombine.low %v9070_v32, %v9077_v8  ;;  %v7655_v60 = vadd.f32 %v16511_v48, %v7271_v41  ;;  %v7656_v34 = vadd.f32 %v16512_v22, %v7272_v7 }
 0x37f   : > { %v7861_v49 = vmax.f32 %v7653_v10, 0.0  ;;  %v7862_v16 = vmax.f32 %v7654_v59, 0.0  ;;  %v7909_v53 = vmax.f32 %v7525_v58, 0.0  ;;  %v7910_v54 = vmax.f32 %v7526_v51, 0.0  ;;  %v16514_v59 = vld [vmem:[#allocation108_spill] sm:$0xff] }
 0x380   : > { %9418 = vst.msk [vmem:[%s13003_s26 + $0x128] sm:$0xff] %vm513_vm3, %v8874_v40  ;;  %v7911_v19 = vmax.f32 %v7527_v27, 0.0  ;;  %9430 = vst.msk [vmem:[%s13003_s26 + $0x188] sm:$0xff] %vm513_vm3, %v9078_v52  ;;  %v7863_v30 = vmax.f32 %v7655_v60, 0.0  ;;  %v7864_v23 = vmax.f32 %v7656_v34, 0.0  ;;  %v7912_v32 = vmax.f32 %v7528_v50, 0.0 }
 0x381   : > { %9803 = vst.msk [vmem:[%s13003_s26 + $0x128] sm:$0xff] %vm9765_vm12, %v16513_v25  ;;  %v15241_v41 = vmul.f32 0.75, %v15062_v33  ;;  %9815 = vst.msk [vmem:[%s13003_s26 + $0x188] sm:$0xff] %vm9765_vm12, %v9672_v26  ;;  %v8841_v7 = vcombine.low %v7861_v49, %v7862_v16  ;;  %v9045_v18 = vcombine.low %v7909_v53, %v7910_v54  ;;  %v15246_v8 = vmul.f32 0.75, %v15080_v13  ;;  %v16515_v27 = vld [vmem:[#allocation109_spill] sm:$0xff]  ;;  %v16516_v13 = vld [vmem:[#allocation111_spill] sm:$0xff] }
 0x382   : > { %v15249_v58 = vmul.f32 0.75, %v15087_v3  ;;  %v8842_v31 = vcombine.low %v7863_v30, %v7864_v23  ;;  %v9046_v10 = vcombine.low %v7911_v19, %v7912_v32  ;;  %v15252_v57 = vmul.f32 0.75, %v15096_v43  ;;  %v16517_v60 = vld [vmem:[#allocation112_spill] sm:$0xff]  ;;  %v16518_v32 = vld [vmem:[#allocation134_spill] sm:$0xff] }
 0x383   : > { %v7537_v40 = vadd.f32 %v15241_v41, %v16514_v59  ;;  %v8849_v33 = vrot.slane %v8841_v7, %v16066_v62  ;;  %v9053_v51 = vrot.slane %v9045_v18, %v16066_v62  ;;  %v7538_v50 = vadd.f32 %v15246_v8, %v16515_v27  ;;  %v16521_v59 = vld [vmem:[#allocation147_spill] sm:$0xff]  ;;  %v16524_v27 = vld [vmem:[#allocation2_spill] sm:$0xff] }
 0x384   : > { %v7539_v52 = vadd.f32 %v15249_v58, %v16516_v13  ;;  %v8856_v3 = vrot.slane %v8842_v31, %v16066_v62  ;;  %v9060_v48 = vrot.slane %v9046_v10, %v16066_v62  ;;  %v7540_v43 = vadd.f32 %v15252_v57, %v16517_v60  ;;  %v16520_v10 = vld [vmem:[#allocation136_spill] sm:$0xff]  ;;  %v16525_v13 = vld [vmem:[#allocation137_spill] sm:$0xff] }
 0x385   : > { %v7921_v22 = vmax.f32 %v7537_v40, 0.0  ;;  %v7922_v34 = vmax.f32 %v7538_v50, 0.0  ;;  %v15267_v16 = vmul.f32 0.75, %v14762_v42  ;;  %v15270_v53 = vmul.f32 0.75, %v15117_v45  ;;  %v16519_v42 = vld [vmem:[#allocation135_spill] sm:$0xff]  ;;  %v9670_v45 = vpop.permute.xlu0 %9669 }
 0x386   : > { %v7923_v49 = vmax.f32 %v7539_v52, 0.0  ;;  %v8857_v54 = vcombine.low %v8849_v33, %v8856_v3  ;;  %v9061_v19 = vcombine.low %v9053_v51, %v9060_v48  ;;  %v7924_v26 = vmax.f32 %v7540_v43, 0.0 }
 0x387   : > { %v15273_v25 = vmul.f32 0.75, %v15130_v5  ;;  %v9096_v30 = vcombine.low %v7921_v22, %v7922_v34  ;;  %v15276_v23 = vmul.f32 0.75, %v15141_v44  ;;  %v7533_v7 = vadd.f32 %v15267_v16, %v16518_v32  ;;  %v16522_v44 = vld [vmem:[#allocation144_spill] sm:$0xff]  ;;  %v16529_v32 = vld [vmem:[#allocation29_spill] sm:$0xff] }
 0x388   : > { %v7534_v18 = vadd.f32 %v15270_v53, %v16519_v42  ;;  %9417 = vst.msk [vmem:[%s13003_s26 + $0x120] sm:$0xff] %vm513_vm3, %v8857_v54  ;;  %9429 = vst.msk [vmem:[%s13003_s26 + $0x180] sm:$0xff] %vm513_vm3, %v9061_v19  ;;  %v9097_v31 = vcombine.low %v7923_v49, %v7924_v26  ;;  %v6748_v40 = vrot.slane %v16521_v59, %v16094_v0  ;;  %v16528_v54 = vld [vmem:[#allocation85_spill] sm:$0xff] }
 0x389   : > { %v7535_v5 = vadd.f32 %v15273_v25, %v16520_v10  ;;  %v16523_v33 = vcombine.high %v16522_v44, %v16522_v44  ;;  %9802 = vst.msk [vmem:[%s13003_s26 + $0x120] sm:$0xff] %vm9765_vm12, %v16524_v27  ;;  %9814 = vst.msk [vmem:[%s13003_s26 + $0x180] sm:$0xff] %vm9765_vm12, %v9670_v45  ;;  %v9104_v50 = vrot.slane %v9096_v30, %v16066_v62  ;;  %v7917_v3 = vmax.f32 %v7533_v7, 0.0 }
 0x38a   : > { %v7536_v52 = vadd.f32 %v15276_v23, %v16525_v13  ;;  %v7918_v48 = vmax.f32 %v7534_v18, 0.0  ;;  %v9111_v60 = vrot.slane %v9097_v31, %v16066_v62  ;;  %v16526_v22 = vcombine.high %v16521_v59, %v16521_v59 }
 0x38b   : > { %v6752_v51 = vrot.slane %v16523_v33, %v16094_v0  ;;  %v7919_v43 = vmax.f32 %v7535_v5, 0.0  ;;  %v16527_v49 = vrot.slane %v16522_v44, %v16094_v0  ;;  %v15316_v7 = vsel %vm3831_vm11, %v16529_v32, %v6748_v40 }
 0x38c   : > { %v6756_v34 = vrot.slane %v16526_v22, %v16094_v0  ;;  %v7920_v26 = vmax.f32 %v7536_v52, 0.0  ;;  %v9079_v30 = vcombine.low %v7917_v3, %v7918_v48  ;;  %v16530_v42 = vcombine.high %v16528_v54, %v16528_v54  ;;  %v16532_v52 = vld [vmem:[#allocation146_spill] sm:$0xff]  ;;  %v16536_v22 = vld [vmem:[#allocation81_spill] sm:$0xff] }
 0x38d   : > { %v15312_v19 = vsel %vm3831_vm11, %v16528_v54, %v16527_v49  ;;  %v9112_v45 = vcombine.low %v9104_v50, %v9111_v60  ;;  %v16531_v31 = vcombine.high %v16529_v32, %v16529_v32  ;;  %v7562_v59 = vmul.f32 0.25, %v15316_v7  ;;  %v16534_v60 = vld [vmem:[#allocation143_spill] sm:$0xff] }
 0x38e   : > { %v15322_v18 = vsel %vm3831_vm11, %v16530_v42, %v6752_v51  ;;  %v7561_v5 = vmul.f32 0.25, %v15312_v19  ;;  %v9080_v40 = vcombine.low %v7919_v43, %v7920_v26  ;;  %v9087_v44 = vrot.slane %v9079_v30, %v16066_v62  ;;  %v9676_v51 = vpop.permute.xlu1 %9675  ;;  %v16538_v26 = vld [vmem:[#allocation86_spill] sm:$0xff] }
 0x38f   : > { %v15328_v10 = vsel %vm3831_vm11, %v16531_v31, %v6756_v34  ;;  %v7563_v33 = vmul.f32 0.25, %v15322_v18  ;;  %9432 = vst.msk [vmem:[%s13003_s26 + $0x198] sm:$0xff] %vm513_vm3, %v9112_v45  ;;  %v7690_v13 = vadd.f32 %v7562_v59, %v15179_v17  ;;  %v16533_v3 = vcombine.high %v16532_v52, %v16532_v52  ;;  %v16539_v45 = vld [vmem:[#allocation151_spill] sm:$0xff] }
 0x390   : > { %v7564_v27 = vmul.f32 0.25, %v15328_v10  ;;  %v7689_v50 = vadd.f32 %v7561_v5, %v15176_v4  ;;  %v16535_v43 = vrot.slane %v16534_v60, %v16094_v0  ;;  %9817 = vst.msk [vmem:[%s13003_s26 + $0x198] sm:$0xff] %vm9765_vm12, %v9676_v51  ;;  %v9094_v49 = vrot.slane %v9080_v40, %v16066_v62 }
 0x391   : > { %v6740_v48 = vrot.slane %v16533_v3, %v16094_v0  ;;  %v7691_v4 = vadd.f32 %v7563_v33, %v15182_v29  ;;  %v16537_v54 = vrot.slane %v16532_v52, %v16094_v0  ;;  %v7930_v42 = vmax.f32 %v7690_v13, 0.0  ;;  %v9674_v3 = vpop.permute.xlu0 %9673 }
 0x392   : > { %v15348_v34 = vsel %vm3831_vm11, %v16536_v22, %v16535_v43  ;;  %v7692_v17 = vadd.f32 %v7564_v27, %v15185_v21  ;;  %v7929_v32 = vmax.f32 %v7689_v50, 0.0  ;;  %v16540_v31 = vcombine.high %v16536_v22, %v16536_v22  ;;  %v16544_v22 = vld [vmem:[#allocation141_spill] sm:$0xff] }
 0x393   : > { %v15360_v30 = vsel %vm3831_vm11, %v16538_v26, %v16537_v54  ;;  %v16541_v29 = vcombine.high %v16538_v26, %v16538_v26  ;;  %v9095_v59 = vcombine.low %v9087_v44, %v9094_v49  ;;  %v7931_v40 = vmax.f32 %v7691_v4, 0.0  ;;  %v16545_v4 = vld [vmem:[#allocation150_spill] sm:$0xff]  ;;  %v16547_v54 = vld [vmem:[#allocation145_spill] sm:$0xff] }
 0x394   : > { %v15367_v5 = vsel %vm3831_vm11, %v16540_v31, %v16539_v45  ;;  %v7932_v33 = vmax.f32 %v7692_v17, 0.0  ;;  %v7557_v27 = vmul.f32 0.25, %v15348_v34  ;;  %v9130_v51 = vcombine.low %v7929_v32, %v7930_v42 }
 0x395   : > { %v15373_v21 = vsel %vm3831_vm11, %v16541_v29, %v6740_v48  ;;  %v7558_v50 = vmul.f32 0.25, %v15360_v30  ;;  %v7559_v13 = vmul.f32 0.25, %v15367_v5  ;;  %9431 = vst.msk [vmem:[%s13003_s26 + $0x190] sm:$0xff] %vm513_vm3, %v9095_v59  ;;  %v16542_v48 = vld [vmem:[#allocation148_spill] sm:$0xff]  ;;  %v16546_v17 = vrot.slane %v16545_v4, %v16094_v0  ;;  %v16548_v59 = vld [vmem:[#allocation153_spill] sm:$0xff] }
 0x396   : > { %v7560_v52 = vmul.f32 0.25, %v15373_v21  ;;  %v9131_v60 = vcombine.low %v7931_v40, %v7932_v33  ;;  %v7685_v43 = vadd.f32 %v7557_v27, %v15212_v24  ;;  %v16543_v44 = vrot.slane %v16542_v48, %v16094_v0  ;;  %9816 = vst.msk [vmem:[%s13003_s26 + $0x190] sm:$0xff] %vm9765_vm12, %v9674_v3  ;;  %v16550_v27 = vld [vmem:[#allocation156_spill] sm:$0xff]  ;;  %v16552_v4 = vld [vmem:[#allocation149_spill] sm:$0xff] }
 0x397   : > { %v15394_v26 = vsel %vm3831_vm11, %v16547_v54, %v16546_v17  ;;  %v9138_v32 = vrot.slane %v9130_v51, %v16066_v62  ;;  %v7686_v24 = vadd.f32 %v7558_v50, %v15216_v15  ;;  %v7687_v42 = vadd.f32 %v7559_v13, %v15219_v2 }
 0x398   : > { %v15387_v49 = vsel %vm3831_vm11, %v16544_v22, %v16543_v44  ;;  %v7688_v45 = vadd.f32 %v7560_v52, %v15222_v1  ;;  %v9145_v31 = vrot.slane %v9131_v60, %v16066_v62  ;;  %v7925_v29 = vmax.f32 %v7685_v43, 0.0 }
 0x399   : > { %v16549_v40 = vcombine.high %v16544_v22, %v16544_v22  ;;  %v16551_v51 = vcombine.high %v16547_v54, %v16547_v54  ;;  %v7926_v2 = vmax.f32 %v7686_v24, 0.0  ;;  %v7927_v1 = vmax.f32 %v7687_v42, 0.0  ;;  %v16554_v54 = vld [vmem:[#allocation142_spill] sm:$0xff]  ;;  %v9680_v42 = vpop.permute.xlu1 %9679 }
 0x39a   : > { %v7928_v50 = vmax.f32 %v7688_v45, 0.0  ;;  %v7569_v13 = vmul.f32 0.25, %v15387_v49  ;;  %v9146_v52 = vcombine.low %v9138_v32, %v9145_v31  ;;  %v7570_v3 = vmul.f32 0.25, %v15394_v26 }
 0x39b   : > { %v15408_v33 = vsel %vm3831_vm11, %v16549_v40, %v16548_v59  ;;  %v15415_v15 = vsel %vm3831_vm11, %v16551_v51, %v16550_v27  ;;  %v9113_v48 = vcombine.low %v7925_v29, %v7926_v2  ;;  %v16553_v17 = vrot.slane %v16552_v4, %v16094_v0  ;;  %v16555_v29 = vld [vmem:[#allocation152_spill] sm:$0xff] }
 0x39c   : > { %v7571_v60 = vmul.f32 0.25, %v15408_v33  ;;  %v7572_v43 = vmul.f32 0.25, %v15415_v15  ;;  %v9114_v44 = vcombine.low %v7927_v1, %v7928_v50  ;;  %v7697_v22 = vadd.f32 %v7569_v13, %v15241_v41  ;;  %9434 = vst.msk [vmem:[%s13003_s26 + $0x1a8] sm:$0xff] %vm513_vm3, %v9146_v52  ;;  %v16556_v59 = vld [vmem:[#allocation140_spill] sm:$0xff]  ;;  %v16560_v52 = vld [vmem:[#allocation154_spill] sm:$0xff] }
 0x39d   : > { %v15427_v24 = vsel %vm3831_vm11, %v16554_v54, %v16553_v17  ;;  %v7698_v32 = vadd.f32 %v7570_v3, %v15246_v8  ;;  %v16557_v41 = vcombine.high %v16556_v59, %v16556_v59  ;;  %9819 = vst.msk [vmem:[%s13003_s26 + $0x1a8] sm:$0xff] %vm9765_vm12, %v9680_v42  ;;  %v9121_v27 = vrot.slane %v9113_v48, %v16066_v62  ;;  %v16558_v8 = vld [vmem:[#allocation155_spill] sm:$0xff]  ;;  %v9678_v42 = vpop.permute.xlu0 %9677 }
 0x39e   : > { %v7699_v45 = vadd.f32 %v7571_v60, %v15249_v58  ;;  %v7700_v31 = vadd.f32 %v7572_v43, %v15252_v57  ;;  %v9128_v51 = vrot.slane %v9114_v44, %v16066_v62  ;;  %v7937_v2 = vmax.f32 %v7697_v22, 0.0 }
 0x39f   : > { %v15439_v40 = vsel %vm3831_vm11, %v16557_v41, %v16555_v29  ;;  %v16559_v58 = vcombine.high %v16554_v54, %v16554_v54  ;;  %v7938_v1 = vmax.f32 %v7698_v32, 0.0  ;;  %v7565_v3 = vmul.f32 0.25, %v16560_v52 }
 0x3a0   : > { %v7939_v50 = vmax.f32 %v7699_v45, 0.0  ;;  %v7940_v13 = vmax.f32 %v7700_v31, 0.0  ;;  %v9129_v60 = vcombine.low %v9121_v27, %v9128_v51  ;;  %v7566_v43 = vmul.f32 0.25, %v15427_v24 }
 0x3a1   : > { %v15450_v57 = vsel %vm3831_vm11, %v16559_v58, %v16558_v8  ;;  %v7567_v48 = vmul.f32 0.25, %v15439_v40  ;;  %v9164_v22 = vcombine.low %v7937_v2, %v7938_v1  ;;  %v7693_v17 = vadd.f32 %v7565_v3, %v15267_v16 }
 0x3a2   : > { %v7568_v44 = vmul.f32 0.25, %v15450_v57  ;;  %v9165_v4 = vcombine.low %v7939_v50, %v7940_v13  ;;  %v15458_v54 = vmul.f32 0.75, %v15312_v19  ;;  %9433 = vst.msk [vmem:[%s13003_s26 + $0x1a0] sm:$0xff] %vm513_vm3, %v9129_v60  ;;  %v7694_v32 = vadd.f32 %v7566_v43, %v15270_v53 }
 0x3a3   : > { %v7695_v45 = vadd.f32 %v7567_v48, %v15273_v25  ;;  %v15466_v29 = vmul.f32 0.75, %v15316_v7  ;;  %9818 = vst.msk [vmem:[%s13003_s26 + $0x1a0] sm:$0xff] %vm9765_vm12, %v9678_v42  ;;  %v9172_v59 = vrot.slane %v9164_v22, %v16066_v62  ;;  %v7933_v19 = vmax.f32 %v7693_v17, 0.0 }
 0x3a4   : > { %v7696_v31 = vadd.f32 %v7568_v44, %v15276_v23  ;;  %v9179_v16 = vrot.slane %v9165_v4, %v16066_v62  ;;  %v15473_v41 = vmul.f32 0.75, %v15322_v18  ;;  %v7934_v27 = vmax.f32 %v7694_v32, 0.0 }
 0x3a5   : > { %v7935_v53 = vmax.f32 %v7695_v45, 0.0  ;;  %v15476_v25 = vmul.f32 0.75, %v15328_v10  ;;  %v7545_v7 = vadd.f32 %v15458_v54, %v14890_v39  ;;  %v7546_v2 = vadd.f32 %v15466_v29, %v14893_v36  ;;  %v9684_v10 = vpop.permute.xlu1 %9683 }
 0x3a6   : > { %v7936_v51 = vmax.f32 %v7696_v31, 0.0  ;;  %v9180_v23 = vcombine.low %v9172_v59, %v9179_v16  ;;  %v7547_v8 = vadd.f32 %v15473_v41, %v14896_v28  ;;  %v9147_v58 = vcombine.low %v7933_v19, %v7934_v27 }
 0x3a7   : > { %v7548_v1 = vadd.f32 %v15476_v25, %v14976_v63  ;;  %v15487_v50 = vmul.f32 0.75, %v15348_v34  ;;  %v7945_v13 = vmax.f32 %v7545_v7, 0.0  ;;  %v7946_v3 = vmax.f32 %v7546_v2, 0.0 }
 0x3a8   : > { %v9148_v18 = vcombine.low %v7935_v53, %v7936_v51  ;;  %9436 = vst.msk [vmem:[%s13003_s26 + $0x1b8] sm:$0xff] %vm513_vm3, %v9180_v23  ;;  %v7947_v39 = vmax.f32 %v7547_v8, 0.0  ;;  %v15492_v60 = vmul.f32 0.75, %v15360_v30  ;;  %v9155_v36 = vrot.slane %v9147_v58, %v16066_v62 }
 0x3a9   : > { %9821 = vst.msk [vmem:[%s13003_s26 + $0x1b8] sm:$0xff] %vm9765_vm12, %v9684_v10  ;;  %v7948_v63 = vmax.f32 %v7548_v1, 0.0  ;;  %v15499_v34 = vmul.f32 0.75, %v15367_v5  ;;  %v9198_v43 = vcombine.low %v7945_v13, %v7946_v3  ;;  %v15502_v48 = vmul.f32 0.75, %v15373_v21  ;;  %v9688_v2 = vpop.permute.xlu1 %9687 }
 0x3aa   : > { %v9162_v28 = vrot.slane %v9148_v18, %v16066_v62  ;;  %v7541_v44 = vadd.f32 %v15487_v50, %v15043_v61  ;;  %v7542_v30 = vadd.f32 %v15492_v60, %v15052_v47  ;;  %v15511_v42 = vmul.f32 0.75, %v15387_v49  ;;  %v9682_v61 = vpop.permute.xlu0 %9681 }
 0x3ab   : > { %v9199_v4 = vcombine.low %v7947_v39, %v7948_v63  ;;  %v7543_v17 = vadd.f32 %v15499_v34, %v15055_v11  ;;  %v9206_v5 = vrot.slane %v9198_v43, %v16066_v62  ;;  %v7544_v21 = vadd.f32 %v15502_v48, %v15067_v12 }
 0x3ac   : > { %v9163_v22 = vcombine.low %v9155_v36, %v9162_v28  ;;  %v7941_v32 = vmax.f32 %v7541_v44, 0.0  ;;  %v7942_v45 = vmax.f32 %v7542_v30, 0.0  ;;  %v15520_v59 = vmul.f32 0.75, %v15394_v26 }
 0x3ad   : > { %v9213_v47 = vrot.slane %v9199_v4, %v16066_v62  ;;  %v7943_v31 = vmax.f32 %v7543_v17, 0.0  ;;  %v15523_v11 = vmul.f32 0.75, %v15408_v33  ;;  %v7944_v49 = vmax.f32 %v7544_v21, 0.0  ;;  %v16562_v17 = vld [vmem:[#allocation38_spill] sm:$0xff]  ;;  %v16563_v21 = vld [vmem:[#allocation24_spill] sm:$0xff] }
 0x3ae   : > { %9435 = vst.msk [vmem:[%s13003_s26 + $0x1b0] sm:$0xff] %vm513_vm3, %v9163_v22  ;;  %v9181_v16 = vcombine.low %v7941_v32, %v7942_v45  ;;  %v15528_v12 = vmul.f32 0.75, %v15415_v15  ;;  %v7553_v19 = vadd.f32 %v15511_v42, %v15099_v37  ;;  %v7554_v26 = vadd.f32 %v15520_v59, %v15102_v6  ;;  %v9686_v63 = vpop.permute.xlu0 %9685  ;;  %v9692_v45 = vpop.permute.xlu1 %9691 }
 0x3af   : > { %9820 = vst.msk [vmem:[%s13003_s26 + $0x1b0] sm:$0xff] %vm9765_vm12, %v9682_v61  ;;  %v9214_v27 = vcombine.low %v9206_v5, %v9213_v47  ;;  %v7555_v53 = vadd.f32 %v15523_v11, %v15107_v38  ;;  %v15537_v33 = vmul.f32 0.75, %v16560_v52  ;;  %v9182_v51 = vcombine.low %v7943_v31, %v7944_v49  ;;  %v16564_v47 = vld [vmem:[#allocation17_spill] sm:$0xff] }
 0x3b0   : > { %v9189_v23 = vrot.slane %v9181_v16, %v16066_v62  ;;  %v7556_v15 = vadd.f32 %v15528_v12, %v15110_v14  ;;  %v7953_v7 = vmax.f32 %v7553_v19, 0.0  ;;  %v7954_v37 = vmax.f32 %v7554_v26, 0.0 }
 0x3b1   : > { %9438 = vst.msk [vmem:[%s13003_s26 + $0x1c8] sm:$0xff] %vm513_vm3, %v9214_v27  ;;  %v7955_v8 = vmax.f32 %v7555_v53, 0.0  ;;  %v15545_v6 = vmul.f32 0.75, %v15427_v24  ;;  %v15548_v38 = vmul.f32 0.75, %v15439_v40  ;;  %v9196_v52 = vrot.slane %v9182_v51, %v16066_v62 }
 0x3b2   : > { %9823 = vst.msk [vmem:[%s13003_s26 + $0x1c8] sm:$0xff] %vm9765_vm12, %v9688_v2  ;;  %v7956_v58 = vmax.f32 %v7556_v15, 0.0  ;;  %v15554_v14 = vmul.f32 0.75, %v15450_v57  ;;  %v7549_v18 = vadd.f32 %v15537_v33, %v15145_v35  ;;  %v9232_v1 = vcombine.low %v7953_v7, %v7954_v37  ;;  %v16567_v7 = vld [vmem:[#allocation19_spill] sm:$0xff] }
 0x3b3   : > { %v7550_v24 = vadd.f32 %v15545_v6, %v15149_v20  ;;  %v7551_v40 = vadd.f32 %v15548_v38, %v15152_v56  ;;  %v6163_v10 = vcombine.high %v14953_v46, %v14953_v46  ;;  %v9197_v13 = vcombine.low %v9189_v23, %v9196_v52 }
 0x3b4   : > { %v9233_v3 = vcombine.low %v7955_v8, %v7956_v58  ;;  %v7552_v57 = vadd.f32 %v15554_v14, %v15155_v55  ;;  %v7949_v39 = vmax.f32 %v7549_v18, 0.0  ;;  %v9240_v36 = vrot.slane %v9232_v1, %v16066_v62 }
 0x3b5   : > { %v7950_v35 = vmax.f32 %v7550_v24, 0.0  ;;  %v7951_v28 = vmax.f32 %v7551_v40, 0.0  ;;  %v6808_v20 = vrot.slane %v14947_v9, %v16094_v0  ;;  %9437 = vst.msk [vmem:[%s13003_s26 + $0x1c0] sm:$0xff] %vm513_vm3, %v9197_v13  ;;  %v6812_v44 = vrot.slane %v14953_v46, %v16094_v0  ;;  %v16571_v24 = vld [vmem:[#allocation36_spill] sm:$0xff] }
 0x3b6   : > { %v9247_v56 = vrot.slane %v9233_v3, %v16066_v62  ;;  %v7952_v43 = vmax.f32 %v7552_v57, 0.0  ;;  %v16561_v55 = vcombine.high %v14947_v9, %v14947_v9  ;;  %9822 = vst.msk [vmem:[%s13003_s26 + $0x1c0] sm:$0xff] %vm9765_vm12, %v9686_v63  ;;  %v6820_v4 = vrot.slane %v6163_v10, %v16094_v0  ;;  %v9690_v10 = vpop.permute.xlu0 %9689  ;;  %v16572_v57 = vld [vmem:[#allocation74_spill] sm:$0xff] }
 0x3b7   : > { %v9215_v22 = vcombine.low %v7949_v39, %v7950_v35  ;;  %v7161_v5 = vsel %vm3831_vm11, %v16562_v17, %v6808_v20  ;;  %v6796_v32 = vrot.slane %v16563_v21, %v16094_v0  ;;  %v7162_v9 = vsel %vm3831_vm11, %v16564_v47, %v6812_v44 }
 0x3b8   : > { %v6816_v30 = vrot.slane %v16561_v55, %v16094_v0  ;;  %v9248_v46 = vcombine.low %v9240_v36, %v9247_v56  ;;  %v9216_v61 = vcombine.low %v7951_v28, %v7952_v43  ;;  %v16565_v31 = vcombine.high %v16562_v17, %v16562_v17  ;;  %v16577_v17 = vld [vmem:[#allocation50_spill] sm:$0xff] }
 0x3b9   : > { %v9223_v16 = vrot.slane %v9215_v22, %v16066_v62  ;;  %v16566_v19 = vcombine.high %v16564_v47, %v16564_v47  ;;  %v7577_v26 = vmul.f32 0.25, %v7161_v5  ;;  %v7578_v53 = vmul.f32 0.25, %v7162_v9  ;;  %v16575_v22 = vld [vmem:[#allocation116_spill] sm:$0xff] }
 0x3ba   : > { %v7163_v49 = vsel %vm3831_vm11, %v16565_v31, %v6816_v30  ;;  %9440 = vst.msk [vmem:[%s13003_s26 + $0x1d8] sm:$0xff] %vm513_vm3, %v9248_v46  ;;  %v9230_v51 = vrot.slane %v9216_v61, %v16066_v62  ;;  %v16568_v2 = vcombine.high %v16567_v7, %v16567_v7  ;;  %v16569_v58 = vcombine.high %v16563_v21, %v16563_v21  ;;  %v16578_v46 = vld [vmem:[#allocation98_spill] sm:$0xff]  ;;  %v16580_v47 = vld [vmem:[#allocation20_spill] sm:$0xff] }
 0x3bb   : > { %v7164_v27 = vsel %vm3831_vm11, %v16566_v19, %v6820_v4  ;;  %v7579_v23 = vmul.f32 0.25, %v7163_v49  ;;  %9825 = vst.msk [vmem:[%s13003_s26 + $0x1d8] sm:$0xff] %vm9765_vm12, %v9692_v45  ;;  %v7705_v8 = vadd.f32 %v7577_v26, %v15458_v54  ;;  %v7706_v52 = vadd.f32 %v7578_v53, %v15466_v29  ;;  %v16581_v19 = vld [vmem:[#allocation62_spill] sm:$0xff] }
 0x3bc   : > { %v7580_v15 = vmul.f32 0.25, %v7164_v27  ;;  %v6800_v37 = vrot.slane %v16568_v2, %v16094_v0  ;;  %v6804_v18 = vrot.slane %v16569_v58, %v16094_v0  ;;  %v16570_v1 = vrot.slane %v16567_v7, %v16094_v0 }
 0x3bd   : > { %v9231_v13 = vcombine.low %v9223_v16, %v9230_v51  ;;  %v7707_v3 = vadd.f32 %v7579_v23, %v15473_v41  ;;  %v7158_v29 = vsel %vm3831_vm11, %v16572_v57, %v6796_v32  ;;  %v7961_v39 = vmax.f32 %v7705_v8, 0.0  ;;  %v16583_v51 = vld [vmem:[#allocation40_spill] sm:$0xff] }
 0x3be   : > { %v7157_v40 = vsel %vm3831_vm11, %v16571_v24, %v16570_v1  ;;  %v7708_v54 = vadd.f32 %v7580_v15, %v15476_v25  ;;  %v7962_v36 = vmax.f32 %v7706_v52, 0.0  ;;  %v16573_v35 = vcombine.high %v16571_v24, %v16571_v24 }
 0x3bf   : > { %v16574_v20 = vcombine.high %v16572_v57, %v16572_v57  ;;  %9439 = vst.msk [vmem:[%s13003_s26 + $0x1d0] sm:$0xff] %vm513_vm3, %v9231_v13  ;;  %v7963_v41 = vmax.f32 %v7707_v3, 0.0  ;;  %v7573_v25 = vmul.f32 0.25, %v7157_v40  ;;  %v7574_v43 = vmul.f32 0.25, %v7158_v29  ;;  %v16585_v40 = vld [vmem:[#allocation95_spill] sm:$0xff]  ;;  %v16587_v13 = vld [vmem:[#allocation37_spill] sm:$0xff] }
 0x3c0   : > { %v7159_v28 = vsel %vm3831_vm11, %v16573_v35, %v6800_v37  ;;  %v7964_v56 = vmax.f32 %v7708_v54, 0.0  ;;  %9824 = vst.msk [vmem:[%s13003_s26 + $0x1d0] sm:$0xff] %vm9765_vm12, %v9690_v10  ;;  %v9266_v44 = vcombine.low %v7961_v39, %v7962_v36  ;;  %v16576_v4 = vrot.slane %v16575_v22, %v16094_v0  ;;  %v9696_v54 = vpop.permute.xlu1 %9695  ;;  %v16588_v36 = vld [vmem:[#allocation51_spill] sm:$0xff]  ;;  %v16590_v35 = vld [vmem:[#allocation18_spill] sm:$0xff] }
 0x3c1   : > { %v7160_v63 = vsel %vm3831_vm11, %v16574_v20, %v6804_v18  ;;  %v7575_v55 = vmul.f32 0.25, %v7159_v28  ;;  %v7701_v32 = vadd.f32 %v7573_v25, %v15487_v50  ;;  %v7702_v45 = vadd.f32 %v7574_v43, %v15492_v60 }
 0x3c2   : > { %v7576_v30 = vmul.f32 0.25, %v7160_v63  ;;  %v7169_v5 = vsel %vm3831_vm11, %v16577_v17, %v16576_v4  ;;  %v9267_v21 = vcombine.low %v7963_v41, %v7964_v56  ;;  %v16579_v61 = vrot.slane %v16578_v46, %v16094_v0  ;;  %v16591_v41 = vld [vmem:[#allocation61_spill] sm:$0xff] }
 0x3c3   : > { %v9274_v31 = vrot.slane %v9266_v44, %v16066_v62  ;;  %v7703_v49 = vadd.f32 %v7575_v55, %v15499_v34  ;;  %v16582_v27 = vcombine.high %v16577_v17, %v16577_v17  ;;  %v7957_v26 = vmax.f32 %v7701_v32, 0.0 }
 0x3c4   : > { %v7170_v9 = vsel %vm3831_vm11, %v16580_v47, %v16579_v61  ;;  %v7704_v16 = vadd.f32 %v7576_v30, %v15502_v48  ;;  %v9281_v60 = vrot.slane %v9267_v21, %v16066_v62  ;;  %v7958_v53 = vmax.f32 %v7702_v45, 0.0  ;;  %v9694_v45 = vpop.permute.xlu0 %9693 }
 0x3c5   : > { %v7171_v50 = vsel %vm3831_vm11, %v16582_v27, %v16581_v19  ;;  %v16584_v23 = vcombine.high %v16580_v47, %v16580_v47  ;;  %v7959_v34 = vmax.f32 %v7703_v49, 0.0  ;;  %v7585_v48 = vmul.f32 0.25, %v7169_v5 }
 0x3c6   : > { %v7960_v7 = vmax.f32 %v7704_v16, 0.0  ;;  %v7586_v2 = vmul.f32 0.25, %v7170_v9  ;;  %v9282_v37 = vcombine.low %v9274_v31, %v9281_v60  ;;  %v9249_v8 = vcombine.low %v7957_v26, %v7958_v53  ;;  %v9700_v16 = vpop.permute.xlu1 %9699 }
 0x3c7   : > { %v7172_v15 = vsel %vm3831_vm11, %v16584_v23, %v16583_v51  ;;  %v7587_v52 = vmul.f32 0.25, %v7171_v50  ;;  %v7713_v1 = vadd.f32 %v7585_v48, %v15511_v42  ;;  %v16586_v10 = vrot.slane %v16585_v40, %v16094_v0 }
 0x3c8   : > { %v7588_v58 = vmul.f32 0.25, %v7172_v15  ;;  %v9250_v18 = vcombine.low %v7959_v34, %v7960_v7  ;;  %v7714_v24 = vadd.f32 %v7586_v2, %v15520_v59  ;;  %9442 = vst.msk [vmem:[%s13003_s26 + $0x1e8] sm:$0xff] %vm513_vm3, %v9282_v37  ;;  %v9257_v57 = vrot.slane %v9249_v8, %v16066_v62  ;;  %v9698_v53 = vpop.permute.xlu0 %9697 }
 0x3c9   : > { %v7165_v3 = vsel %vm3831_vm11, %v16587_v13, %v16586_v10  ;;  %v7715_v29 = vadd.f32 %v7587_v52, %v15523_v11  ;;  %v16589_v42 = vrot.slane %v16588_v36, %v16094_v0  ;;  %9827 = vst.msk [vmem:[%s13003_s26 + $0x1e8] sm:$0xff] %vm9765_vm12, %v9696_v54  ;;  %v7969_v20 = vmax.f32 %v7713_v1, 0.0  ;;  %v16593_v0 = vld [vmem:[#allocation12_spill] sm:$0xff] }
 0x3ca   : > { %v7716_v39 = vadd.f32 %v7588_v58, %v15528_v12  ;;  %v9264_v28 = vrot.slane %v9250_v18, %v16066_v62  ;;  %v7970_v63 = vmax.f32 %v7714_v24, 0.0  ;;  %v16592_v56 = vcombine.high %v16587_v13, %v16587_v13 }
 0x3cb   : > { %v7166_v59 = vsel %vm3831_vm11, %v16590_v35, %v16589_v42  ;;  %v7971_v12 = vmax.f32 %v7715_v29, 0.0  ;;  %v16594_v43 = vcombine.high %v16590_v35, %v16590_v35  ;;  %v7581_v55 = vmul.f32 0.25, %v7165_v3 }
 0x3cc   : > { %v7167_v11 = vsel %vm3831_vm11, %v16592_v56, %v16591_v41  ;;  %v7972_v25 = vmax.f32 %v7716_v39, 0.0  ;;  %v9265_v30 = vcombine.low %v9257_v57, %v9264_v28  ;;  %v9300_v22 = vcombine.low %v7969_v20, %v7970_v63 }
 0x3cd   : > { %v7168_v44 = vsel %vm3831_vm11, %v16594_v43, %v16593_v0  ;;  %v7582_v4 = vmul.f32 0.25, %v7166_v59  ;;  %v7583_v17 = vmul.f32 0.25, %v7167_v11  ;;  %v7709_v32 = vadd.f32 %v7581_v55, %v15537_v33 }
 0x3ce   : > { %v9301_v5 = vcombine.low %v7971_v12, %v7972_v25  ;;  %v7584_v21 = vmul.f32 0.25, %v7168_v44  ;;  %9441 = vst.msk [vmem:[%s13003_s26 + $0x1e0] sm:$0xff] %vm513_vm3, %v9265_v30  ;;  %v9308_v47 = vrot.slane %v9300_v22, %v16066_v62 }
 0x3cf   : > { %v7710_v46 = vadd.f32 %v7582_v4, %v15545_v6  ;;  %v7711_v61 = vadd.f32 %v7583_v17, %v15548_v38  ;;  %9826 = vst.msk [vmem:[%s13003_s26 + $0x1e0] sm:$0xff] %vm9765_vm12, %v9694_v45  ;;  %v7965_v33 = vmax.f32 %v7709_v32, 0.0 }
 0x3d0   : > { %v9315_v9 = vrot.slane %v9301_v5, %v16066_v62  ;;  %v7712_v31 = vadd.f32 %v7584_v21, %v15554_v14 }
 0x3d1   : > { %v7966_v49 = vmax.f32 %v7710_v46, 0.0  ;;  %v7967_v27 = vmax.f32 %v7711_v61, 0.0 }
 0x3d2   : > { %v9316_v19 = vcombine.low %v9308_v47, %v9315_v9  ;;  %v7968_v50 = vmax.f32 %v7712_v31, 0.0 }
 0x3d3   : > { %v9283_v60 = vcombine.low %v7965_v33, %v7966_v49 }
 0x3d4   : > { %9444 = vst.msk [vmem:[%s13003_s26 + $0x1f8] sm:$0xff] %vm513_vm3, %v9316_v19  ;;  %v9284_v6 = vcombine.low %v7967_v27, %v7968_v50 }
 0x3d5   : > { %9829 = vst.msk [vmem:[%s13003_s26 + $0x1f8] sm:$0xff] %vm9765_vm12, %v9700_v16  ;;  %v9291_v38 = vrot.slane %v9283_v60, %v16066_v62 }
 0x3d6   : > { %v9298_v26 = vrot.slane %v9284_v6, %v16066_v62 }
 0x3d8   : > { %v9299_v51 = vcombine.low %v9291_v38, %v9298_v26 }
 0x3da   : > { %9443 = vst.msk [vmem:[%s13003_s26 + $0x1f0] sm:$0xff] %vm513_vm3, %v9299_v51 }
 0x3db   : > { %9828 = vst.msk [vmem:[%s13003_s26 + $0x1f0] sm:$0xff] %vm9765_vm12, %v9698_v53 }
 0x3dc PF: > { %s14_s19 = sadd.s32 1, %s10993_s19   ;;  %s16595_s15 = smov %s10985_s17 }
 0x3dd   : > { %p11_p9 = scmp.ge.s32.totalorder %s14_s19, 6   ;;  %s16596_s16 = smov %s10989_s18 }
 0x3de   : > { %s16597_s17 = smov %s16600_s20  ;;  %s16598_s18 = smov %s16604_s21 }
 0x3df   :  { %13 = sbr.rel (!%p11_p9) target bundleno = 3 (0x3), region = 86 }

</bundles_post_ra>
